<compile_context>
chip_gen: v6e
topology: v6e:2x2x1
jax: 0.10.0
libtpu: 0.0.40
codegen_flags: <defaults>
</compile_context>

<pallas_src>
import functools

import jax
import jax.numpy as jnp
from jax import lax
from jax.experimental import pallas as pl
from jax.experimental.pallas import tpu as pltpu

BN_EPS = 1e-5


# ----------------------------------------------------------------------------
# Parameter folding (Conv bias + BatchNorm(eval) -> folded weight / bias)
# ----------------------------------------------------------------------------
def _fold_scale_bias(p):
    scale = p["gamma"] * lax.rsqrt(p["var"] + BN_EPS)
    bias = (p["b"] - p["mean"]) * scale + p["beta"]
    return scale, bias


def _fold_1x1(p):
    """Returns (Cin, Cout) folded weight and (1, Cout) folded bias."""
    scale, bias = _fold_scale_bias(p)
    w = p["w"][:, :, 0, 0] * scale[:, None]                 # (Cout, Cin)
    return w.T, bias[None, :]


def _fold_kxk(p, k):
    """Returns (k*k, Cin, Cout) folded taps and (1, Cout) folded bias."""
    scale, bias = _fold_scale_bias(p)
    c_out, c_in = p["w"].shape[0], p["w"].shape[1]
    w = p["w"] * scale[:, None, None, None]                        # (Cout,Cin,k,k)
    w = jnp.transpose(w, (2, 3, 1, 0)).reshape(k * k, c_in, c_out)  # (k*k,Cin,Cout)
    return w, bias[None, :]


# ----------------------------------------------------------------------------
# Fused inception kernel (one image per grid step)
# ----------------------------------------------------------------------------
def _inception_kernel(x_ref, ws_ref, bs_ref, w2_ref, b2_ref, w3_ref, b3_ref,
                      w4_ref, b4_ref, o_ref, xpad2, xpad3, xpadp, *, dims):
    H, W, C, c1, c2r, o3, o5, op = dims
    hw = H * W

    x = x_ref[0]                                            # (H, W, C) f32

    # ---- fused 1x1 stem: branch1 + branch2-reduce + branch3-reduce ----------
    stem = jnp.dot(x.reshape(hw, C), ws_ref[...],
                   preferred_element_type=jnp.float32)
    stem = jnp.maximum(stem + bs_ref[...], 0.0)             # (hw, c1+c2r+c3r)

    # branch1 slab -> straight into the concatenated output block.
    o_ref[0, :, :, 0:c1] = stem[:, 0:c1].reshape(H, W, c1).astype(o_ref.dtype)

    # ---- k x k conv: in-kernel zero halo + vreg-accumulated tap matmuls -----
    def conv_branch(slab, pad, k, xpad_ref, w_ref, b_ref):
        cr = slab.shape[-1]
        xpad_ref[...] = jnp.zeros_like(xpad_ref)            # zero halo
        xpad_ref[pad:pad + H, pad:pad + W, :] = slab.reshape(H, W, cr)
        acc = None
        for dy in range(k):
            for dx in range(k):
                win = xpad_ref[dy:dy + H, dx:dx + W, :].reshape(hw, cr)
                t = jnp.dot(win, w_ref[dy * k + dx],
                            preferred_element_type=jnp.float32)
                acc = t if acc is None else acc + t          # local f32 accum
        return jnp.maximum(acc + b_ref[...], 0.0)

    b2 = conv_branch(stem[:, c1:c1 + c2r], 1, 3, xpad2, w2_ref, b2_ref)
    o_ref[0, :, :, c1:c1 + o3] = b2.reshape(H, W, o3).astype(o_ref.dtype)

    b3 = conv_branch(stem[:, c1 + c2r:], 2, 5, xpad3, w3_ref, b3_ref)
    o_ref[0, :, :, c1 + o3:c1 + o3 + o5] = b3.reshape(H, W, o5).astype(o_ref.dtype)

    # ---- branch4: separable 3x3/s1 max-pool (-inf halo) + 1x1 conv ----------
    xpadp[...] = jnp.full(xpadp.shape, -jnp.inf, xpadp.dtype)
    xpadp[1:1 + H, 1:1 + W, :] = x
    rowmax = jnp.maximum(jnp.maximum(xpadp[:, 0:W, :], xpadp[:, 1:1 + W, :]),
                         xpadp[:, 2:2 + W, :])               # (H+2, W, C)
    pooled = jnp.maximum(jnp.maximum(rowmax[0:H], rowmax[1:1 + H]),
                         rowmax[2:2 + H])                    # (H, W, C)
    b4 = jnp.dot(pooled.reshape(hw, C), w4_ref[...],
                 preferred_element_type=jnp.float32)
    b4 = jnp.maximum(b4 + b4_ref[...], 0.0)
    o_ref[0, :, :, c1 + o3 + o5:] = b4.reshape(H, W, op).astype(o_ref.dtype)


def _full_spec(a):
    nd = a.ndim
    shape = a.shape

    def imap(n):
        return (0,) * nd

    return pl.BlockSpec(shape, imap)


# ----------------------------------------------------------------------------
# Forward pass
# ----------------------------------------------------------------------------
@jax.jit
def inception_block_forward(x_nchw, params):
    x = jnp.transpose(x_nchw, (0, 2, 3, 1)).astype(jnp.float32)    # NCHW -> NHWC
    N, H, W, C = x.shape

    # Fold BN(eval) into weights/biases (tiny XLA ops on weights only).
    w1, bias1 = _fold_1x1(params["b1"])
    w2r, bias2r = _fold_1x1(params["b2_red"])
    w3r, bias3r = _fold_1x1(params["b3_red"])
    c1, c2r, c3r = w1.shape[1], w2r.shape[1], w3r.shape[1]
    w_stem = jnp.concatenate([w1, w2r, w3r], axis=1)               # (C, c1+c2r+c3r)
    b_stem = jnp.concatenate([bias1, bias2r, bias3r], axis=1)

    w2, b2 = _fold_kxk(params["b2_out"], 3)                        # (9,  c2r, o3)
    w3, b3 = _fold_kxk(params["b3_out"], 5)                        # (25, c3r, o5)
    w4, b4 = _fold_1x1(params["b4_out"])                           # (C, op)

    o3, o5, op = w2.shape[2], w3.shape[2], w4.shape[1]
    c_total = c1 + o3 + o5 + op

    kernel = functools.partial(_inception_kernel,
                               dims=(H, W, C, c1, c2r, o3, o5, op))

    out = pl.pallas_call(
        kernel,
        out_shape=jax.ShapeDtypeStruct((N, H, W, c_total), jnp.float32),
        grid_spec=pltpu.PrefetchScalarGridSpec(
            num_scalar_prefetch=0,
            grid=(N,),
            in_specs=[
                pl.BlockSpec((1, H, W, C), lambda n: (n, 0, 0, 0)),
                _full_spec(w_stem), _full_spec(b_stem),
                _full_spec(w2), _full_spec(b2),
                _full_spec(w3), _full_spec(b3),
                _full_spec(w4), _full_spec(b4),
            ],
            out_specs=pl.BlockSpec((1, H, W, c_total), lambda n: (n, 0, 0, 0)),
            scratch_shapes=[
                pltpu.VMEM((H + 2, W + 2, c2r), jnp.float32),  # 3x3 halo tile
                pltpu.VMEM((H + 4, W + 4, c3r), jnp.float32),  # 5x5 halo tile
                pltpu.VMEM((H + 2, W + 2, C), jnp.float32),    # pool halo tile
            ]),
        compiler_params=pltpu.CompilerParams(
            dimension_semantics=("parallel",)),
    )(x, w_stem, b_stem, w2, b2, w3, b3, w4, b4)

    return jnp.transpose(out, (0, 3, 1, 2))                        # NHWC -> NCHW


# ----------------------------------------------------------------------------
# Deterministic parameter construction (shapes from Inception_block.__init__)
# ----------------------------------------------------------------------------
def _make_conv_block_params(key, c_in, c_out, k):
    ks = jax.random.split(key, 6)
    return {
        "w": 0.1 * jax.random.normal(ks[0], (c_out, c_in, k, k), jnp.float32),
        "b": 0.1 * jax.random.normal(ks[1], (c_out,), jnp.float32),
        "gamma": 1.0 + 0.1 * jax.random.normal(ks[2], (c_out,), jnp.float32),
        "beta": 0.1 * jax.random.normal(ks[3], (c_out,), jnp.float32),
        "mean": 0.1 * jax.random.normal(ks[4], (c_out,), jnp.float32),
        "var": jax.random.uniform(ks[5], (c_out,), jnp.float32, 0.5, 1.5),
    }


def make_inception_params(key, in_channels, out_1x1, red_3x3, out_3x3,
                          red_5x5, out_5x5, out_1x1pool):
    ks = jax.random.split(key, 6)
    return {
        "b1": _make_conv_block_params(ks[0], in_channels, out_1x1, 1),
        "b2_red": _make_conv_block_params(ks[1], in_channels, red_3x3, 1),
        "b2_out": _make_conv_block_params(ks[2], red_3x3, out_3x3, 3),
        "b3_red": _make_conv_block_params(ks[3], in_channels, red_5x5, 1),
        "b3_out": _make_conv_block_params(ks[4], red_5x5, out_5x5, 5),
        "b4_out": _make_conv_block_params(ks[5], in_channels, out_1x1pool, 1),
    }


# ----------------------------------------------------------------------------
# Pure-JAX reference (correctness only)
# ----------------------------------------------------------------------------
def _ref_conv_block(x_nhwc, p, pad):
    w_hwio = jnp.transpose(p["w"], (2, 3, 1, 0))
    y = lax.conv_general_dilated(
        x_nhwc, w_hwio, window_strides=(1, 1),
        padding=[(pad, pad), (pad, pad)],
        dimension_numbers=("NHWC", "HWIO", "NHWC"))
    y = y + p["b"]
    y = (y - p["mean"]) / jnp.sqrt(p["var"] + BN_EPS) * p["gamma"] + p["beta"]
    return jnp.maximum(y, 0.0)


def _ref_forward(x_nchw, params):
    x = jnp.transpose(x_nchw, (0, 2, 3, 1)).astype(jnp.float32)
    b1 = _ref_conv_block(x, params["b1"], 0)
    b2 = _ref_conv_block(_ref_conv_block(x, params["b2_red"], 0), params["b2_out"], 1)
    b3 = _ref_conv_block(_ref_conv_block(x, params["b3_red"], 0), params["b3_out"], 2)
    pooled = lax.reduce_window(x, -jnp.inf, lax.max, (1, 3, 3, 1), (1, 1, 1, 1),
                               [(0, 0), (1, 1), (1, 1), (0, 0)])
    b4 = _ref_conv_block(pooled, params["b4_out"], 0)
    out = jnp.concatenate([b1, b2, b3, b4], axis=-1)
    return jnp.transpose(out, (0, 3, 1, 2))


# ----------------------------------------------------------------------------
if __name__ == "__main__":
    key = jax.random.PRNGKey(0)
    kx, kp = jax.random.split(key)

    # Inception_block(in_channels=4, out_1x1=8, red_3x3=4, out_3x3=8,
    #                 red_5x5=4, out_5x5=8, out_1x1pool=8)
    N, C, H, W = 2, 4, 16, 16
    x = jax.random.normal(kx, (N, C, H, W), jnp.float32)
    params = make_inception_params(kp, C, 8, 4, 8, 4, 8, 8)

    out = jax.block_until_ready(inception_block_forward(x, params))
    assert out.shape == (N, 8 + 8 + 8 + 8, H, W), out.shape

    ref = jax.block_until_ready(_ref_forward(x, params))
    max_err = float(jnp.max(jnp.abs(out - ref)))
    # MXU default-precision matmuls vs. an all-f32 reference.
    assert jnp.allclose(out, ref, rtol=2e-2, atol=2e-2), max_err

    print("KERNEL_OK")
</pallas_src>

<mosaic_0001>
module attributes {stable_mosaic.version = 11 : i64} {
  func.func @_inception_kernel(%arg0: i32, %arg1: memref<1x16x16x4xf32, #tpu.memory_space<vmem>>, %arg2: memref<4x16xf32, #tpu.memory_space<vmem>>, %arg3: memref<1x16xf32, #tpu.memory_space<vmem>>, %arg4: memref<9x4x8xf32, #tpu.memory_space<vmem>>, %arg5: memref<1x8xf32, #tpu.memory_space<vmem>>, %arg6: memref<25x4x8xf32, #tpu.memory_space<vmem>>, %arg7: memref<1x8xf32, #tpu.memory_space<vmem>>, %arg8: memref<4x8xf32, #tpu.memory_space<vmem>>, %arg9: memref<1x8xf32, #tpu.memory_space<vmem>>, %arg10: memref<1x16x16x32xf32, #tpu.memory_space<vmem>>, %arg11: memref<18x18x4xf32, #tpu.memory_space<vmem>>, %arg12: memref<20x20x4xf32, #tpu.memory_space<vmem>>, %arg13: memref<18x18x4xf32, #tpu.memory_space<vmem>>) attributes {dimension_semantics = [#tpu.dimension_semantics<parallel>], iteration_bounds = array<i64: 2>, scalar_prefetch = 0 : i64, scratch_operands = 3 : i64, tpu.core_type = #tpu.core_type<tc>, window_params = [{transform_indices = @transform_0, window_bounds = array<i64: 1, 16, 16, 4>}, {pipeline_mode = #tpu.pipeline_mode<synchronous>, transform_indices = @transform_1, window_bounds = array<i64: 4, 16>}, {pipeline_mode = #tpu.pipeline_mode<synchronous>, transform_indices = @transform_2, window_bounds = array<i64: 1, 16>}, {pipeline_mode = #tpu.pipeline_mode<synchronous>, transform_indices = @transform_3, window_bounds = array<i64: 9, 4, 8>}, {pipeline_mode = #tpu.pipeline_mode<synchronous>, transform_indices = @transform_4, window_bounds = array<i64: 1, 8>}, {pipeline_mode = #tpu.pipeline_mode<synchronous>, transform_indices = @transform_5, window_bounds = array<i64: 25, 4, 8>}, {pipeline_mode = #tpu.pipeline_mode<synchronous>, transform_indices = @transform_6, window_bounds = array<i64: 1, 8>}, {pipeline_mode = #tpu.pipeline_mode<synchronous>, transform_indices = @transform_7, window_bounds = array<i64: 4, 8>}, {pipeline_mode = #tpu.pipeline_mode<synchronous>, transform_indices = @transform_8, window_bounds = array<i64: 1, 8>}, {transform_indices = @transform_9, window_bounds = array<i64: 1, 16, 16, 32>}]} {
    %c0 = arith.constant 0 : index
    %c0_0 = arith.constant 0 : index
    %c0_1 = arith.constant 0 : index
    %c0_2 = arith.constant 0 : index
    %0 = vector.load %arg1[%c0, %c0_0, %c0_1, %c0_2] : memref<1x16x16x4xf32, #tpu.memory_space<vmem>>, vector<1x16x16x4xf32>
    %1 = vector.shape_cast %0 : vector<1x16x16x4xf32> to vector<16x16x4xf32>
    %2 = vector.shape_cast %1 : vector<16x16x4xf32> to vector<256x4xf32>
    %c0_3 = arith.constant 0 : index
    %c0_4 = arith.constant 0 : index
    %3 = vector.load %arg2[%c0_3, %c0_4] : memref<4x16xf32, #tpu.memory_space<vmem>>, vector<4x16xf32>
    %cst = arith.constant dense<0.000000e+00> : vector<256x16xf32>
    %4 = tpu.matmul %2, %3, %cst {dimension_numbers = #tpu.dot_dimension_numbers<[1], [0], [0], [1], [0, 0, 1, 1], [], []>} : vector<256x4xf32>, vector<4x16xf32>, vector<256x16xf32> -> vector<256x16xf32>
    %c0_5 = arith.constant 0 : index
    %c0_6 = arith.constant 0 : index
    %5 = vector.load %arg3[%c0_5, %c0_6] : memref<1x16xf32, #tpu.memory_space<vmem>>, vector<1x16xf32>
    %6 = vector.broadcast %5 : vector<1x16xf32> to vector<256x16xf32>
    %7 = arith.addf %4, %6 : vector<256x16xf32>
    %cst_7 = arith.constant 0.000000e+00 : f32
    %8 = vector.broadcast %cst_7 : f32 to vector<256x16xf32>
    %9 = arith.maximumf %7, %8 : vector<256x16xf32>
    %10 = vector.extract_strided_slice %9 {offsets = [0, 0], sizes = [256, 8], strides = [1, 1]} : vector<256x16xf32> to vector<256x8xf32>
    %11 = vector.shape_cast %10 : vector<256x8xf32> to vector<16x16x8xf32>
    %c0_8 = arith.constant 0 : index
    %c0_9 = arith.constant 0 : index
    %c0_10 = arith.constant 0 : index
    %c0_11 = arith.constant 0 : index
    %12 = vector.load %arg10[%c0_8, %c0_9, %c0_10, %c0_11] : memref<1x16x16x32xf32, #tpu.memory_space<vmem>>, vector<1x16x16x8xf32>
    %13 = vector.shape_cast %12 : vector<1x16x16x8xf32> to vector<16x16x8xf32>
    %14 = vector.shape_cast %11 : vector<16x16x8xf32> to vector<1x16x16x8xf32>
    tpu.vector_store %arg10[%c0_8, %c0_9, %c0_10, %c0_11], %14 {strides = array<i32>} : memref<1x16x16x32xf32, #tpu.memory_space<vmem>>, vector<1x16x16x8xf32>,
    %15 = vector.extract_strided_slice %9 {offsets = [0, 8], sizes = [256, 4], strides = [1, 1]} : vector<256x16xf32> to vector<256x4xf32>
    %cst_12 = arith.constant 0.000000e+00 : f32
    %16 = vector.broadcast %cst_12 : f32 to vector<18x18x4xf32>
    %c0_13 = arith.constant 0 : index
    %c0_14 = arith.constant 0 : index
    %c0_15 = arith.constant 0 : index
    %17 = vector.load %arg11[%c0_13, %c0_14, %c0_15] : memref<18x18x4xf32, #tpu.memory_space<vmem>>, vector<18x18x4xf32>
    tpu.vector_store %arg11[%c0_13, %c0_14, %c0_15], %16 {strides = array<i32>} : memref<18x18x4xf32, #tpu.memory_space<vmem>>, vector<18x18x4xf32>,
    %18 = vector.shape_cast %15 : vector<256x4xf32> to vector<16x16x4xf32>
    %c1 = arith.constant 1 : index
    %c1_16 = arith.constant 1 : index
    %c0_17 = arith.constant 0 : index
    %19 = vector.load %arg11[%c1, %c1_16, %c0_17] : memref<18x18x4xf32, #tpu.memory_space<vmem>>, vector<16x16x4xf32>
    tpu.vector_store %arg11[%c1, %c1_16, %c0_17], %18 {strides = array<i32>} : memref<18x18x4xf32, #tpu.memory_space<vmem>>, vector<16x16x4xf32>,
    %c0_18 = arith.constant 0 : index
    %c0_19 = arith.constant 0 : index
    %c0_20 = arith.constant 0 : index
    %20 = vector.load %arg11[%c0_18, %c0_19, %c0_20] : memref<18x18x4xf32, #tpu.memory_space<vmem>>, vector<16x16x4xf32>
    %21 = vector.shape_cast %20 : vector<16x16x4xf32> to vector<256x4xf32>
    %c0_21 = arith.constant 0 : index
    %c0_22 = arith.constant 0 : index
    %c0_23 = arith.constant 0 : index
    %22 = vector.load %arg4[%c0_21, %c0_22, %c0_23] : memref<9x4x8xf32, #tpu.memory_space<vmem>>, vector<1x4x8xf32>
    %23 = vector.shape_cast %22 : vector<1x4x8xf32> to vector<4x8xf32>
    %cst_24 = arith.constant dense<0.000000e+00> : vector<256x8xf32>
    %24 = tpu.matmul %21, %23, %cst_24 {dimension_numbers = #tpu.dot_dimension_numbers<[1], [0], [0], [1], [0, 0, 1, 1], [], []>} : vector<256x4xf32>, vector<4x8xf32>, vector<256x8xf32> -> vector<256x8xf32>
    %c0_25 = arith.constant 0 : index
    %c1_26 = arith.constant 1 : index
    %c0_27 = arith.constant 0 : index
    %25 = vector.load %arg11[%c0_25, %c1_26, %c0_27] : memref<18x18x4xf32, #tpu.memory_space<vmem>>, vector<16x16x4xf32>
    %26 = vector.shape_cast %25 : vector<16x16x4xf32> to vector<256x4xf32>
    %c1_28 = arith.constant 1 : index
    %c0_29 = arith.constant 0 : index
    %c0_30 = arith.constant 0 : index
    %27 = vector.load %arg4[%c1_28, %c0_29, %c0_30] : memref<9x4x8xf32, #tpu.memory_space<vmem>>, vector<1x4x8xf32>
    %28 = vector.shape_cast %27 : vector<1x4x8xf32> to vector<4x8xf32>
    %cst_31 = arith.constant dense<0.000000e+00> : vector<256x8xf32>
    %29 = tpu.matmul %26, %28, %cst_31 {dimension_numbers = #tpu.dot_dimension_numbers<[1], [0], [0], [1], [0, 0, 1, 1], [], []>} : vector<256x4xf32>, vector<4x8xf32>, vector<256x8xf32> -> vector<256x8xf32>
    %30 = arith.addf %24, %29 : vector<256x8xf32>
    %c0_32 = arith.constant 0 : index
    %c2 = arith.constant 2 : index
    %c0_33 = arith.constant 0 : index
    %31 = vector.load %arg11[%c0_32, %c2, %c0_33] : memref<18x18x4xf32, #tpu.memory_space<vmem>>, vector<16x16x4xf32>
    %32 = vector.shape_cast %31 : vector<16x16x4xf32> to vector<256x4xf32>
    %c2_34 = arith.constant 2 : index
    %c0_35 = arith.constant 0 : index
    %c0_36 = arith.constant 0 : index
    %33 = vector.load %arg4[%c2_34, %c0_35, %c0_36] : memref<9x4x8xf32, #tpu.memory_space<vmem>>, vector<1x4x8xf32>
    %34 = vector.shape_cast %33 : vector<1x4x8xf32> to vector<4x8xf32>
    %cst_37 = arith.constant dense<0.000000e+00> : vector<256x8xf32>
    %35 = tpu.matmul %32, %34, %cst_37 {dimension_numbers = #tpu.dot_dimension_numbers<[1], [0], [0], [1], [0, 0, 1, 1], [], []>} : vector<256x4xf32>, vector<4x8xf32>, vector<256x8xf32> -> vector<256x8xf32>
    %36 = arith.addf %30, %35 : vector<256x8xf32>
    %c1_38 = arith.constant 1 : index
    %c0_39 = arith.constant 0 : index
    %c0_40 = arith.constant 0 : index
    %37 = vector.load %arg11[%c1_38, %c0_39, %c0_40] : memref<18x18x4xf32, #tpu.memory_space<vmem>>, vector<16x16x4xf32>
    %38 = vector.shape_cast %37 : vector<16x16x4xf32> to vector<256x4xf32>
    %c3 = arith.constant 3 : index
    %c0_41 = arith.constant 0 : index
    %c0_42 = arith.constant 0 : index
    %39 = vector.load %arg4[%c3, %c0_41, %c0_42] : memref<9x4x8xf32, #tpu.memory_space<vmem>>, vector<1x4x8xf32>
    %40 = vector.shape_cast %39 : vector<1x4x8xf32> to vector<4x8xf32>
    %cst_43 = arith.constant dense<0.000000e+00> : vector<256x8xf32>
    %41 = tpu.matmul %38, %40, %cst_43 {dimension_numbers = #tpu.dot_dimension_numbers<[1], [0], [0], [1], [0, 0, 1, 1], [], []>} : vector<256x4xf32>, vector<4x8xf32>, vector<256x8xf32> -> vector<256x8xf32>
    %42 = arith.addf %36, %41 : vector<256x8xf32>
    %c1_44 = arith.constant 1 : index
    %c1_45 = arith.constant 1 : index
    %c0_46 = arith.constant 0 : index
    %43 = vector.load %arg11[%c1_44, %c1_45, %c0_46] : memref<18x18x4xf32, #tpu.memory_space<vmem>>, vector<16x16x4xf32>
    %44 = vector.shape_cast %43 : vector<16x16x4xf32> to vector<256x4xf32>
    %c4 = arith.constant 4 : index
    %c0_47 = arith.constant 0 : index
    %c0_48 = arith.constant 0 : index
    %45 = vector.load %arg4[%c4, %c0_47, %c0_48] : memref<9x4x8xf32, #tpu.memory_space<vmem>>, vector<1x4x8xf32>
    %46 = vector.shape_cast %45 : vector<1x4x8xf32> to vector<4x8xf32>
    %cst_49 = arith.constant dense<0.000000e+00> : vector<256x8xf32>
    %47 = tpu.matmul %44, %46, %cst_49 {dimension_numbers = #tpu.dot_dimension_numbers<[1], [0], [0], [1], [0, 0, 1, 1], [], []>} : vector<256x4xf32>, vector<4x8xf32>, vector<256x8xf32> -> vector<256x8xf32>
    %48 = arith.addf %42, %47 : vector<256x8xf32>
    %c1_50 = arith.constant 1 : index
    %c2_51 = arith.constant 2 : index
    %c0_52 = arith.constant 0 : index
    %49 = vector.load %arg11[%c1_50, %c2_51, %c0_52] : memref<18x18x4xf32, #tpu.memory_space<vmem>>, vector<16x16x4xf32>
    %50 = vector.shape_cast %49 : vector<16x16x4xf32> to vector<256x4xf32>
    %c5 = arith.constant 5 : index
    %c0_53 = arith.constant 0 : index
    %c0_54 = arith.constant 0 : index
    %51 = vector.load %arg4[%c5, %c0_53, %c0_54] : memref<9x4x8xf32, #tpu.memory_space<vmem>>, vector<1x4x8xf32>
    %52 = vector.shape_cast %51 : vector<1x4x8xf32> to vector<4x8xf32>
    %cst_55 = arith.constant dense<0.000000e+00> : vector<256x8xf32>
    %53 = tpu.matmul %50, %52, %cst_55 {dimension_numbers = #tpu.dot_dimension_numbers<[1], [0], [0], [1], [0, 0, 1, 1], [], []>} : vector<256x4xf32>, vector<4x8xf32>, vector<256x8xf32> -> vector<256x8xf32>
    %54 = arith.addf %48, %53 : vector<256x8xf32>
    %c2_56 = arith.constant 2 : index
    %c0_57 = arith.constant 0 : index
    %c0_58 = arith.constant 0 : index
    %55 = vector.load %arg11[%c2_56, %c0_57, %c0_58] : memref<18x18x4xf32, #tpu.memory_space<vmem>>, vector<16x16x4xf32>
    %56 = vector.shape_cast %55 : vector<16x16x4xf32> to vector<256x4xf32>
    %c6 = arith.constant 6 : index
    %c0_59 = arith.constant 0 : index
    %c0_60 = arith.constant 0 : index
    %57 = vector.load %arg4[%c6, %c0_59, %c0_60] : memref<9x4x8xf32, #tpu.memory_space<vmem>>, vector<1x4x8xf32>
    %58 = vector.shape_cast %57 : vector<1x4x8xf32> to vector<4x8xf32>
    %cst_61 = arith.constant dense<0.000000e+00> : vector<256x8xf32>
    %59 = tpu.matmul %56, %58, %cst_61 {dimension_numbers = #tpu.dot_dimension_numbers<[1], [0], [0], [1], [0, 0, 1, 1], [], []>} : vector<256x4xf32>, vector<4x8xf32>, vector<256x8xf32> -> vector<256x8xf32>
    %60 = arith.addf %54, %59 : vector<256x8xf32>
    %c2_62 = arith.constant 2 : index
    %c1_63 = arith.constant 1 : index
    %c0_64 = arith.constant 0 : index
    %61 = vector.load %arg11[%c2_62, %c1_63, %c0_64] : memref<18x18x4xf32, #tpu.memory_space<vmem>>, vector<16x16x4xf32>
    %62 = vector.shape_cast %61 : vector<16x16x4xf32> to vector<256x4xf32>
    %c7 = arith.constant 7 : index
    %c0_65 = arith.constant 0 : index
    %c0_66 = arith.constant 0 : index
    %63 = vector.load %arg4[%c7, %c0_65, %c0_66] : memref<9x4x8xf32, #tpu.memory_space<vmem>>, vector<1x4x8xf32>
    %64 = vector.shape_cast %63 : vector<1x4x8xf32> to vector<4x8xf32>
    %cst_67 = arith.constant dense<0.000000e+00> : vector<256x8xf32>
    %65 = tpu.matmul %62, %64, %cst_67 {dimension_numbers = #tpu.dot_dimension_numbers<[1], [0], [0], [1], [0, 0, 1, 1], [], []>} : vector<256x4xf32>, vector<4x8xf32>, vector<256x8xf32> -> vector<256x8xf32>
    %66 = arith.addf %60, %65 : vector<256x8xf32>
    %c2_68 = arith.constant 2 : index
    %c2_69 = arith.constant 2 : index
    %c0_70 = arith.constant 0 : index
    %67 = vector.load %arg11[%c2_68, %c2_69, %c0_70] : memref<18x18x4xf32, #tpu.memory_space<vmem>>, vector<16x16x4xf32>
    %68 = vector.shape_cast %67 : vector<16x16x4xf32> to vector<256x4xf32>
    %c8 = arith.constant 8 : index
    %c0_71 = arith.constant 0 : index
    %c0_72 = arith.constant 0 : index
    %69 = vector.load %arg4[%c8, %c0_71, %c0_72] : memref<9x4x8xf32, #tpu.memory_space<vmem>>, vector<1x4x8xf32>
    %70 = vector.shape_cast %69 : vector<1x4x8xf32> to vector<4x8xf32>
    %cst_73 = arith.constant dense<0.000000e+00> : vector<256x8xf32>
    %71 = tpu.matmul %68, %70, %cst_73 {dimension_numbers = #tpu.dot_dimension_numbers<[1], [0], [0], [1], [0, 0, 1, 1], [], []>} : vector<256x4xf32>, vector<4x8xf32>, vector<256x8xf32> -> vector<256x8xf32>
    %72 = arith.addf %66, %71 : vector<256x8xf32>
    %c0_74 = arith.constant 0 : index
    %c0_75 = arith.constant 0 : index
    %73 = vector.load %arg5[%c0_74, %c0_75] : memref<1x8xf32, #tpu.memory_space<vmem>>, vector<1x8xf32>
    %74 = vector.broadcast %73 : vector<1x8xf32> to vector<256x8xf32>
    %75 = arith.addf %72, %74 : vector<256x8xf32>
    %cst_76 = arith.constant 0.000000e+00 : f32
    %76 = vector.broadcast %cst_76 : f32 to vector<256x8xf32>
    %77 = arith.maximumf %75, %76 : vector<256x8xf32>
    %78 = vector.shape_cast %77 : vector<256x8xf32> to vector<16x16x8xf32>
    %c0_77 = arith.constant 0 : index
    %c0_78 = arith.constant 0 : index
    %c0_79 = arith.constant 0 : index
    %c8_80 = arith.constant 8 : index
    %79 = vector.load %arg10[%c0_77, %c0_78, %c0_79, %c8_80] : memref<1x16x16x32xf32, #tpu.memory_space<vmem>>, vector<1x16x16x8xf32>
    %80 = vector.shape_cast %79 : vector<1x16x16x8xf32> to vector<16x16x8xf32>
    %81 = vector.shape_cast %78 : vector<16x16x8xf32> to vector<1x16x16x8xf32>
    tpu.vector_store %arg10[%c0_77, %c0_78, %c0_79, %c8_80], %81 {strides = array<i32>} : memref<1x16x16x32xf32, #tpu.memory_space<vmem>>, vector<1x16x16x8xf32>,
    %82 = vector.extract_strided_slice %9 {offsets = [0, 12], sizes = [256, 4], strides = [1, 1]} : vector<256x16xf32> to vector<256x4xf32>
    %cst_81 = arith.constant 0.000000e+00 : f32
    %83 = vector.broadcast %cst_81 : f32 to vector<20x20x4xf32>
    %c0_82 = arith.constant 0 : index
    %c0_83 = arith.constant 0 : index
    %c0_84 = arith.constant 0 : index
    %84 = vector.load %arg12[%c0_82, %c0_83, %c0_84] : memref<20x20x4xf32, #tpu.memory_space<vmem>>, vector<20x20x4xf32>
    tpu.vector_store %arg12[%c0_82, %c0_83, %c0_84], %83 {strides = array<i32>} : memref<20x20x4xf32, #tpu.memory_space<vmem>>, vector<20x20x4xf32>,
    %85 = vector.shape_cast %82 : vector<256x4xf32> to vector<16x16x4xf32>
    %c2_85 = arith.constant 2 : index
    %c2_86 = arith.constant 2 : index
    %c0_87 = arith.constant 0 : index
    %86 = vector.load %arg12[%c2_85, %c2_86, %c0_87] : memref<20x20x4xf32, #tpu.memory_space<vmem>>, vector<16x16x4xf32>
    tpu.vector_store %arg12[%c2_85, %c2_86, %c0_87], %85 {strides = array<i32>} : memref<20x20x4xf32, #tpu.memory_space<vmem>>, vector<16x16x4xf32>,
    %c0_88 = arith.constant 0 : index
    %c0_89 = arith.constant 0 : index
    %c0_90 = arith.constant 0 : index
    %87 = vector.load %arg12[%c0_88, %c0_89, %c0_90] : memref<20x20x4xf32, #tpu.memory_space<vmem>>, vector<16x16x4xf32>
    %88 = vector.shape_cast %87 : vector<16x16x4xf32> to vector<256x4xf32>
    %c0_91 = arith.constant 0 : index
    %c0_92 = arith.constant 0 : index
    %c0_93 = arith.constant 0 : index
    %89 = vector.load %arg6[%c0_91, %c0_92, %c0_93] : memref<25x4x8xf32, #tpu.memory_space<vmem>>, vector<1x4x8xf32>
    %90 = vector.shape_cast %89 : vector<1x4x8xf32> to vector<4x8xf32>
    %cst_94 = arith.constant dense<0.000000e+00> : vector<256x8xf32>
    %91 = tpu.matmul %88, %90, %cst_94 {dimension_numbers = #tpu.dot_dimension_numbers<[1], [0], [0], [1], [0, 0, 1, 1], [], []>} : vector<256x4xf32>, vector<4x8xf32>, vector<256x8xf32> -> vector<256x8xf32>
    %c0_95 = arith.constant 0 : index
    %c1_96 = arith.constant 1 : index
    %c0_97 = arith.constant 0 : index
    %92 = vector.load %arg12[%c0_95, %c1_96, %c0_97] : memref<20x20x4xf32, #tpu.memory_space<vmem>>, vector<16x16x4xf32>
    %93 = vector.shape_cast %92 : vector<16x16x4xf32> to vector<256x4xf32>
    %c1_98 = arith.constant 1 : index
    %c0_99 = arith.constant 0 : index
    %c0_100 = arith.constant 0 : index
    %94 = vector.load %arg6[%c1_98, %c0_99, %c0_100] : memref<25x4x8xf32, #tpu.memory_space<vmem>>, vector<1x4x8xf32>
    %95 = vector.shape_cast %94 : vector<1x4x8xf32> to vector<4x8xf32>
    %cst_101 = arith.constant dense<0.000000e+00> : vector<256x8xf32>
    %96 = tpu.matmul %93, %95, %cst_101 {dimension_numbers = #tpu.dot_dimension_numbers<[1], [0], [0], [1], [0, 0, 1, 1], [], []>} : vector<256x4xf32>, vector<4x8xf32>, vector<256x8xf32> -> vector<256x8xf32>
    %97 = arith.addf %91, %96 : vector<256x8xf32>
    %c0_102 = arith.constant 0 : index
    %c2_103 = arith.constant 2 : index
    %c0_104 = arith.constant 0 : index
    %98 = vector.load %arg12[%c0_102, %c2_103, %c0_104] : memref<20x20x4xf32, #tpu.memory_space<vmem>>, vector<16x16x4xf32>
    %99 = vector.shape_cast %98 : vector<16x16x4xf32> to vector<256x4xf32>
    %c2_105 = arith.constant 2 : index
    %c0_106 = arith.constant 0 : index
    %c0_107 = arith.constant 0 : index
    %100 = vector.load %arg6[%c2_105, %c0_106, %c0_107] : memref<25x4x8xf32, #tpu.memory_space<vmem>>, vector<1x4x8xf32>
    %101 = vector.shape_cast %100 : vector<1x4x8xf32> to vector<4x8xf32>
    %cst_108 = arith.constant dense<0.000000e+00> : vector<256x8xf32>
    %102 = tpu.matmul %99, %101, %cst_108 {dimension_numbers = #tpu.dot_dimension_numbers<[1], [0], [0], [1], [0, 0, 1, 1], [], []>} : vector<256x4xf32>, vector<4x8xf32>, vector<256x8xf32> -> vector<256x8xf32>
    %103 = arith.addf %97, %102 : vector<256x8xf32>
    %c0_109 = arith.constant 0 : index
    %c3_110 = arith.constant 3 : index
    %c0_111 = arith.constant 0 : index
    %104 = vector.load %arg12[%c0_109, %c3_110, %c0_111] : memref<20x20x4xf32, #tpu.memory_space<vmem>>, vector<16x16x4xf32>
    %105 = vector.shape_cast %104 : vector<16x16x4xf32> to vector<256x4xf32>
    %c3_112 = arith.constant 3 : index
    %c0_113 = arith.constant 0 : index
    %c0_114 = arith.constant 0 : index
    %106 = vector.load %arg6[%c3_112, %c0_113, %c0_114] : memref<25x4x8xf32, #tpu.memory_space<vmem>>, vector<1x4x8xf32>
    %107 = vector.shape_cast %106 : vector<1x4x8xf32> to vector<4x8xf32>
    %cst_115 = arith.constant dense<0.000000e+00> : vector<256x8xf32>
    %108 = tpu.matmul %105, %107, %cst_115 {dimension_numbers = #tpu.dot_dimension_numbers<[1], [0], [0], [1], [0, 0, 1, 1], [], []>} : vector<256x4xf32>, vector<4x8xf32>, vector<256x8xf32> -> vector<256x8xf32>
    %109 = arith.addf %103, %108 : vector<256x8xf32>
    %c0_116 = arith.constant 0 : index
    %c4_117 = arith.constant 4 : index
    %c0_118 = arith.constant 0 : index
    %110 = vector.load %arg12[%c0_116, %c4_117, %c0_118] : memref<20x20x4xf32, #tpu.memory_space<vmem>>, vector<16x16x4xf32>
    %111 = vector.shape_cast %110 : vector<16x16x4xf32> to vector<256x4xf32>
    %c4_119 = arith.constant 4 : index
    %c0_120 = arith.constant 0 : index
    %c0_121 = arith.constant 0 : index
    %112 = vector.load %arg6[%c4_119, %c0_120, %c0_121] : memref<25x4x8xf32, #tpu.memory_space<vmem>>, vector<1x4x8xf32>
    %113 = vector.shape_cast %112 : vector<1x4x8xf32> to vector<4x8xf32>
    %cst_122 = arith.constant dense<0.000000e+00> : vector<256x8xf32>
    %114 = tpu.matmul %111, %113, %cst_122 {dimension_numbers = #tpu.dot_dimension_numbers<[1], [0], [0], [1], [0, 0, 1, 1], [], []>} : vector<256x4xf32>, vector<4x8xf32>, vector<256x8xf32> -> vector<256x8xf32>
    %115 = arith.addf %109, %114 : vector<256x8xf32>
    %c1_123 = arith.constant 1 : index
    %c0_124 = arith.constant 0 : index
    %c0_125 = arith.constant 0 : index
    %116 = vector.load %arg12[%c1_123, %c0_124, %c0_125] : memref<20x20x4xf32, #tpu.memory_space<vmem>>, vector<16x16x4xf32>
    %117 = vector.shape_cast %116 : vector<16x16x4xf32> to vector<256x4xf32>
    %c5_126 = arith.constant 5 : index
    %c0_127 = arith.constant 0 : index
    %c0_128 = arith.constant 0 : index
    %118 = vector.load %arg6[%c5_126, %c0_127, %c0_128] : memref<25x4x8xf32, #tpu.memory_space<vmem>>, vector<1x4x8xf32>
    %119 = vector.shape_cast %118 : vector<1x4x8xf32> to vector<4x8xf32>
    %cst_129 = arith.constant dense<0.000000e+00> : vector<256x8xf32>
    %120 = tpu.matmul %117, %119, %cst_129 {dimension_numbers = #tpu.dot_dimension_numbers<[1], [0], [0], [1], [0, 0, 1, 1], [], []>} : vector<256x4xf32>, vector<4x8xf32>, vector<256x8xf32> -> vector<256x8xf32>
    %121 = arith.addf %115, %120 : vector<256x8xf32>
    %c1_130 = arith.constant 1 : index
    %c1_131 = arith.constant 1 : index
    %c0_132 = arith.constant 0 : index
    %122 = vector.load %arg12[%c1_130, %c1_131, %c0_132] : memref<20x20x4xf32, #tpu.memory_space<vmem>>, vector<16x16x4xf32>
    %123 = vector.shape_cast %122 : vector<16x16x4xf32> to vector<256x4xf32>
    %c6_133 = arith.constant 6 : index
    %c0_134 = arith.constant 0 : index
    %c0_135 = arith.constant 0 : index
    %124 = vector.load %arg6[%c6_133, %c0_134, %c0_135] : memref<25x4x8xf32, #tpu.memory_space<vmem>>, vector<1x4x8xf32>
    %125 = vector.shape_cast %124 : vector<1x4x8xf32> to vector<4x8xf32>
    %cst_136 = arith.constant dense<0.000000e+00> : vector<256x8xf32>
    %126 = tpu.matmul %123, %125, %cst_136 {dimension_numbers = #tpu.dot_dimension_numbers<[1], [0], [0], [1], [0, 0, 1, 1], [], []>} : vector<256x4xf32>, vector<4x8xf32>, vector<256x8xf32> -> vector<256x8xf32>
    %127 = arith.addf %121, %126 : vector<256x8xf32>
    %c1_137 = arith.constant 1 : index
    %c2_138 = arith.constant 2 : index
    %c0_139 = arith.constant 0 : index
    %128 = vector.load %arg12[%c1_137, %c2_138, %c0_139] : memref<20x20x4xf32, #tpu.memory_space<vmem>>, vector<16x16x4xf32>
    %129 = vector.shape_cast %128 : vector<16x16x4xf32> to vector<256x4xf32>
    %c7_140 = arith.constant 7 : index
    %c0_141 = arith.constant 0 : index
    %c0_142 = arith.constant 0 : index
    %130 = vector.load %arg6[%c7_140, %c0_141, %c0_142] : memref<25x4x8xf32, #tpu.memory_space<vmem>>, vector<1x4x8xf32>
    %131 = vector.shape_cast %130 : vector<1x4x8xf32> to vector<4x8xf32>
    %cst_143 = arith.constant dense<0.000000e+00> : vector<256x8xf32>
    %132 = tpu.matmul %129, %131, %cst_143 {dimension_numbers = #tpu.dot_dimension_numbers<[1], [0], [0], [1], [0, 0, 1, 1], [], []>} : vector<256x4xf32>, vector<4x8xf32>, vector<256x8xf32> -> vector<256x8xf32>
    %133 = arith.addf %127, %132 : vector<256x8xf32>
    %c1_144 = arith.constant 1 : index
    %c3_145 = arith.constant 3 : index
    %c0_146 = arith.constant 0 : index
    %134 = vector.load %arg12[%c1_144, %c3_145, %c0_146] : memref<20x20x4xf32, #tpu.memory_space<vmem>>, vector<16x16x4xf32>
    %135 = vector.shape_cast %134 : vector<16x16x4xf32> to vector<256x4xf32>
    %c8_147 = arith.constant 8 : index
    %c0_148 = arith.constant 0 : index
    %c0_149 = arith.constant 0 : index
    %136 = vector.load %arg6[%c8_147, %c0_148, %c0_149] : memref<25x4x8xf32, #tpu.memory_space<vmem>>, vector<1x4x8xf32>
    %137 = vector.shape_cast %136 : vector<1x4x8xf32> to vector<4x8xf32>
    %cst_150 = arith.constant dense<0.000000e+00> : vector<256x8xf32>
    %138 = tpu.matmul %135, %137, %cst_150 {dimension_numbers = #tpu.dot_dimension_numbers<[1], [0], [0], [1], [0, 0, 1, 1], [], []>} : vector<256x4xf32>, vector<4x8xf32>, vector<256x8xf32> -> vector<256x8xf32>
    %139 = arith.addf %133, %138 : vector<256x8xf32>
    %c1_151 = arith.constant 1 : index
    %c4_152 = arith.constant 4 : index
    %c0_153 = arith.constant 0 : index
    %140 = vector.load %arg12[%c1_151, %c4_152, %c0_153] : memref<20x20x4xf32, #tpu.memory_space<vmem>>, vector<16x16x4xf32>
    %141 = vector.shape_cast %140 : vector<16x16x4xf32> to vector<256x4xf32>
    %c9 = arith.constant 9 : index
    %c0_154 = arith.constant 0 : index
    %c0_155 = arith.constant 0 : index
    %142 = vector.load %arg6[%c9, %c0_154, %c0_155] : memref<25x4x8xf32, #tpu.memory_space<vmem>>, vector<1x4x8xf32>
    %143 = vector.shape_cast %142 : vector<1x4x8xf32> to vector<4x8xf32>
    %cst_156 = arith.constant dense<0.000000e+00> : vector<256x8xf32>
    %144 = tpu.matmul %141, %143, %cst_156 {dimension_numbers = #tpu.dot_dimension_numbers<[1], [0], [0], [1], [0, 0, 1, 1], [], []>} : vector<256x4xf32>, vector<4x8xf32>, vector<256x8xf32> -> vector<256x8xf32>
    %145 = arith.addf %139, %144 : vector<256x8xf32>
    %c2_157 = arith.constant 2 : index
    %c0_158 = arith.constant 0 : index
    %c0_159 = arith.constant 0 : index
    %146 = vector.load %arg12[%c2_157, %c0_158, %c0_159] : memref<20x20x4xf32, #tpu.memory_space<vmem>>, vector<16x16x4xf32>
    %147 = vector.shape_cast %146 : vector<16x16x4xf32> to vector<256x4xf32>
    %c10 = arith.constant 10 : index
    %c0_160 = arith.constant 0 : index
    %c0_161 = arith.constant 0 : index
    %148 = vector.load %arg6[%c10, %c0_160, %c0_161] : memref<25x4x8xf32, #tpu.memory_space<vmem>>, vector<1x4x8xf32>
    %149 = vector.shape_cast %148 : vector<1x4x8xf32> to vector<4x8xf32>
    %cst_162 = arith.constant dense<0.000000e+00> : vector<256x8xf32>
    %150 = tpu.matmul %147, %149, %cst_162 {dimension_numbers = #tpu.dot_dimension_numbers<[1], [0], [0], [1], [0, 0, 1, 1], [], []>} : vector<256x4xf32>, vector<4x8xf32>, vector<256x8xf32> -> vector<256x8xf32>
    %151 = arith.addf %145, %150 : vector<256x8xf32>
    %c2_163 = arith.constant 2 : index
    %c1_164 = arith.constant 1 : index
    %c0_165 = arith.constant 0 : index
    %152 = vector.load %arg12[%c2_163, %c1_164, %c0_165] : memref<20x20x4xf32, #tpu.memory_space<vmem>>, vector<16x16x4xf32>
    %153 = vector.shape_cast %152 : vector<16x16x4xf32> to vector<256x4xf32>
    %c11 = arith.constant 11 : index
    %c0_166 = arith.constant 0 : index
    %c0_167 = arith.constant 0 : index
    %154 = vector.load %arg6[%c11, %c0_166, %c0_167] : memref<25x4x8xf32, #tpu.memory_space<vmem>>, vector<1x4x8xf32>
    %155 = vector.shape_cast %154 : vector<1x4x8xf32> to vector<4x8xf32>
    %cst_168 = arith.constant dense<0.000000e+00> : vector<256x8xf32>
    %156 = tpu.matmul %153, %155, %cst_168 {dimension_numbers = #tpu.dot_dimension_numbers<[1], [0], [0], [1], [0, 0, 1, 1], [], []>} : vector<256x4xf32>, vector<4x8xf32>, vector<256x8xf32> -> vector<256x8xf32>
    %157 = arith.addf %151, %156 : vector<256x8xf32>
    %c2_169 = arith.constant 2 : index
    %c2_170 = arith.constant 2 : index
    %c0_171 = arith.constant 0 : index
    %158 = vector.load %arg12[%c2_169, %c2_170, %c0_171] : memref<20x20x4xf32, #tpu.memory_space<vmem>>, vector<16x16x4xf32>
    %159 = vector.shape_cast %158 : vector<16x16x4xf32> to vector<256x4xf32>
    %c12 = arith.constant 12 : index
    %c0_172 = arith.constant 0 : index
    %c0_173 = arith.constant 0 : index
    %160 = vector.load %arg6[%c12, %c0_172, %c0_173] : memref<25x4x8xf32, #tpu.memory_space<vmem>>, vector<1x4x8xf32>
    %161 = vector.shape_cast %160 : vector<1x4x8xf32> to vector<4x8xf32>
    %cst_174 = arith.constant dense<0.000000e+00> : vector<256x8xf32>
    %162 = tpu.matmul %159, %161, %cst_174 {dimension_numbers = #tpu.dot_dimension_numbers<[1], [0], [0], [1], [0, 0, 1, 1], [], []>} : vector<256x4xf32>, vector<4x8xf32>, vector<256x8xf32> -> vector<256x8xf32>
    %163 = arith.addf %157, %162 : vector<256x8xf32>
    %c2_175 = arith.constant 2 : index
    %c3_176 = arith.constant 3 : index
    %c0_177 = arith.constant 0 : index
    %164 = vector.load %arg12[%c2_175, %c3_176, %c0_177] : memref<20x20x4xf32, #tpu.memory_space<vmem>>, vector<16x16x4xf32>
    %165 = vector.shape_cast %164 : vector<16x16x4xf32> to vector<256x4xf32>
    %c13 = arith.constant 13 : index
    %c0_178 = arith.constant 0 : index
    %c0_179 = arith.constant 0 : index
    %166 = vector.load %arg6[%c13, %c0_178, %c0_179] : memref<25x4x8xf32, #tpu.memory_space<vmem>>, vector<1x4x8xf32>
    %167 = vector.shape_cast %166 : vector<1x4x8xf32> to vector<4x8xf32>
    %cst_180 = arith.constant dense<0.000000e+00> : vector<256x8xf32>
    %168 = tpu.matmul %165, %167, %cst_180 {dimension_numbers = #tpu.dot_dimension_numbers<[1], [0], [0], [1], [0, 0, 1, 1], [], []>} : vector<256x4xf32>, vector<4x8xf32>, vector<256x8xf32> -> vector<256x8xf32>
    %169 = arith.addf %163, %168 : vector<256x8xf32>
    %c2_181 = arith.constant 2 : index
    %c4_182 = arith.constant 4 : index
    %c0_183 = arith.constant 0 : index
    %170 = vector.load %arg12[%c2_181, %c4_182, %c0_183] : memref<20x20x4xf32, #tpu.memory_space<vmem>>, vector<16x16x4xf32>
    %171 = vector.shape_cast %170 : vector<16x16x4xf32> to vector<256x4xf32>
    %c14 = arith.constant 14 : index
    %c0_184 = arith.constant 0 : index
    %c0_185 = arith.constant 0 : index
    %172 = vector.load %arg6[%c14, %c0_184, %c0_185] : memref<25x4x8xf32, #tpu.memory_space<vmem>>, vector<1x4x8xf32>
    %173 = vector.shape_cast %172 : vector<1x4x8xf32> to vector<4x8xf32>
    %cst_186 = arith.constant dense<0.000000e+00> : vector<256x8xf32>
    %174 = tpu.matmul %171, %173, %cst_186 {dimension_numbers = #tpu.dot_dimension_numbers<[1], [0], [0], [1], [0, 0, 1, 1], [], []>} : vector<256x4xf32>, vector<4x8xf32>, vector<256x8xf32> -> vector<256x8xf32>
    %175 = arith.addf %169, %174 : vector<256x8xf32>
    %c3_187 = arith.constant 3 : index
    %c0_188 = arith.constant 0 : index
    %c0_189 = arith.constant 0 : index
    %176 = vector.load %arg12[%c3_187, %c0_188, %c0_189] : memref<20x20x4xf32, #tpu.memory_space<vmem>>, vector<16x16x4xf32>
    %177 = vector.shape_cast %176 : vector<16x16x4xf32> to vector<256x4xf32>
    %c15 = arith.constant 15 : index
    %c0_190 = arith.constant 0 : index
    %c0_191 = arith.constant 0 : index
    %178 = vector.load %arg6[%c15, %c0_190, %c0_191] : memref<25x4x8xf32, #tpu.memory_space<vmem>>, vector<1x4x8xf32>
    %179 = vector.shape_cast %178 : vector<1x4x8xf32> to vector<4x8xf32>
    %cst_192 = arith.constant dense<0.000000e+00> : vector<256x8xf32>
    %180 = tpu.matmul %177, %179, %cst_192 {dimension_numbers = #tpu.dot_dimension_numbers<[1], [0], [0], [1], [0, 0, 1, 1], [], []>} : vector<256x4xf32>, vector<4x8xf32>, vector<256x8xf32> -> vector<256x8xf32>
    %181 = arith.addf %175, %180 : vector<256x8xf32>
    %c3_193 = arith.constant 3 : index
    %c1_194 = arith.constant 1 : index
    %c0_195 = arith.constant 0 : index
    %182 = vector.load %arg12[%c3_193, %c1_194, %c0_195] : memref<20x20x4xf32, #tpu.memory_space<vmem>>, vector<16x16x4xf32>
    %183 = vector.shape_cast %182 : vector<16x16x4xf32> to vector<256x4xf32>
    %c16 = arith.constant 16 : index
    %c0_196 = arith.constant 0 : index
    %c0_197 = arith.constant 0 : index
    %184 = vector.load %arg6[%c16, %c0_196, %c0_197] : memref<25x4x8xf32, #tpu.memory_space<vmem>>, vector<1x4x8xf32>
    %185 = vector.shape_cast %184 : vector<1x4x8xf32> to vector<4x8xf32>
    %cst_198 = arith.constant dense<0.000000e+00> : vector<256x8xf32>
    %186 = tpu.matmul %183, %185, %cst_198 {dimension_numbers = #tpu.dot_dimension_numbers<[1], [0], [0], [1], [0, 0, 1, 1], [], []>} : vector<256x4xf32>, vector<4x8xf32>, vector<256x8xf32> -> vector<256x8xf32>
    %187 = arith.addf %181, %186 : vector<256x8xf32>
    %c3_199 = arith.constant 3 : index
    %c2_200 = arith.constant 2 : index
    %c0_201 = arith.constant 0 : index
    %188 = vector.load %arg12[%c3_199, %c2_200, %c0_201] : memref<20x20x4xf32, #tpu.memory_space<vmem>>, vector<16x16x4xf32>
    %189 = vector.shape_cast %188 : vector<16x16x4xf32> to vector<256x4xf32>
    %c17 = arith.constant 17 : index
    %c0_202 = arith.constant 0 : index
    %c0_203 = arith.constant 0 : index
    %190 = vector.load %arg6[%c17, %c0_202, %c0_203] : memref<25x4x8xf32, #tpu.memory_space<vmem>>, vector<1x4x8xf32>
    %191 = vector.shape_cast %190 : vector<1x4x8xf32> to vector<4x8xf32>
    %cst_204 = arith.constant dense<0.000000e+00> : vector<256x8xf32>
    %192 = tpu.matmul %189, %191, %cst_204 {dimension_numbers = #tpu.dot_dimension_numbers<[1], [0], [0], [1], [0, 0, 1, 1], [], []>} : vector<256x4xf32>, vector<4x8xf32>, vector<256x8xf32> -> vector<256x8xf32>
    %193 = arith.addf %187, %192 : vector<256x8xf32>
    %c3_205 = arith.constant 3 : index
    %c3_206 = arith.constant 3 : index
    %c0_207 = arith.constant 0 : index
    %194 = vector.load %arg12[%c3_205, %c3_206, %c0_207] : memref<20x20x4xf32, #tpu.memory_space<vmem>>, vector<16x16x4xf32>
    %195 = vector.shape_cast %194 : vector<16x16x4xf32> to vector<256x4xf32>
    %c18 = arith.constant 18 : index
    %c0_208 = arith.constant 0 : index
    %c0_209 = arith.constant 0 : index
    %196 = vector.load %arg6[%c18, %c0_208, %c0_209] : memref<25x4x8xf32, #tpu.memory_space<vmem>>, vector<1x4x8xf32>
    %197 = vector.shape_cast %196 : vector<1x4x8xf32> to vector<4x8xf32>
    %cst_210 = arith.constant dense<0.000000e+00> : vector<256x8xf32>
    %198 = tpu.matmul %195, %197, %cst_210 {dimension_numbers = #tpu.dot_dimension_numbers<[1], [0], [0], [1], [0, 0, 1, 1], [], []>} : vector<256x4xf32>, vector<4x8xf32>, vector<256x8xf32> -> vector<256x8xf32>
    %199 = arith.addf %193, %198 : vector<256x8xf32>
    %c3_211 = arith.constant 3 : index
    %c4_212 = arith.constant 4 : index
    %c0_213 = arith.constant 0 : index
    %200 = vector.load %arg12[%c3_211, %c4_212, %c0_213] : memref<20x20x4xf32, #tpu.memory_space<vmem>>, vector<16x16x4xf32>
    %201 = vector.shape_cast %200 : vector<16x16x4xf32> to vector<256x4xf32>
    %c19 = arith.constant 19 : index
    %c0_214 = arith.constant 0 : index
    %c0_215 = arith.constant 0 : index
    %202 = vector.load %arg6[%c19, %c0_214, %c0_215] : memref<25x4x8xf32, #tpu.memory_space<vmem>>, vector<1x4x8xf32>
    %203 = vector.shape_cast %202 : vector<1x4x8xf32> to vector<4x8xf32>
    %cst_216 = arith.constant dense<0.000000e+00> : vector<256x8xf32>
    %204 = tpu.matmul %201, %203, %cst_216 {dimension_numbers = #tpu.dot_dimension_numbers<[1], [0], [0], [1], [0, 0, 1, 1], [], []>} : vector<256x4xf32>, vector<4x8xf32>, vector<256x8xf32> -> vector<256x8xf32>
    %205 = arith.addf %199, %204 : vector<256x8xf32>
    %c4_217 = arith.constant 4 : index
    %c0_218 = arith.constant 0 : index
    %c0_219 = arith.constant 0 : index
    %206 = vector.load %arg12[%c4_217, %c0_218, %c0_219] : memref<20x20x4xf32, #tpu.memory_space<vmem>>, vector<16x16x4xf32>
    %207 = vector.shape_cast %206 : vector<16x16x4xf32> to vector<256x4xf32>
    %c20 = arith.constant 20 : index
    %c0_220 = arith.constant 0 : index
    %c0_221 = arith.constant 0 : index
    %208 = vector.load %arg6[%c20, %c0_220, %c0_221] : memref<25x4x8xf32, #tpu.memory_space<vmem>>, vector<1x4x8xf32>
    %209 = vector.shape_cast %208 : vector<1x4x8xf32> to vector<4x8xf32>
    %cst_222 = arith.constant dense<0.000000e+00> : vector<256x8xf32>
    %210 = tpu.matmul %207, %209, %cst_222 {dimension_numbers = #tpu.dot_dimension_numbers<[1], [0], [0], [1], [0, 0, 1, 1], [], []>} : vector<256x4xf32>, vector<4x8xf32>, vector<256x8xf32> -> vector<256x8xf32>
    %211 = arith.addf %205, %210 : vector<256x8xf32>
    %c4_223 = arith.constant 4 : index
    %c1_224 = arith.constant 1 : index
    %c0_225 = arith.constant 0 : index
    %212 = vector.load %arg12[%c4_223, %c1_224, %c0_225] : memref<20x20x4xf32, #tpu.memory_space<vmem>>, vector<16x16x4xf32>
    %213 = vector.shape_cast %212 : vector<16x16x4xf32> to vector<256x4xf32>
    %c21 = arith.constant 21 : index
    %c0_226 = arith.constant 0 : index
    %c0_227 = arith.constant 0 : index
    %214 = vector.load %arg6[%c21, %c0_226, %c0_227] : memref<25x4x8xf32, #tpu.memory_space<vmem>>, vector<1x4x8xf32>
    %215 = vector.shape_cast %214 : vector<1x4x8xf32> to vector<4x8xf32>
    %cst_228 = arith.constant dense<0.000000e+00> : vector<256x8xf32>
    %216 = tpu.matmul %213, %215, %cst_228 {dimension_numbers = #tpu.dot_dimension_numbers<[1], [0], [0], [1], [0, 0, 1, 1], [], []>} : vector<256x4xf32>, vector<4x8xf32>, vector<256x8xf32> -> vector<256x8xf32>
    %217 = arith.addf %211, %216 : vector<256x8xf32>
    %c4_229 = arith.constant 4 : index
    %c2_230 = arith.constant 2 : index
    %c0_231 = arith.constant 0 : index
    %218 = vector.load %arg12[%c4_229, %c2_230, %c0_231] : memref<20x20x4xf32, #tpu.memory_space<vmem>>, vector<16x16x4xf32>
    %219 = vector.shape_cast %218 : vector<16x16x4xf32> to vector<256x4xf32>
    %c22 = arith.constant 22 : index
    %c0_232 = arith.constant 0 : index
    %c0_233 = arith.constant 0 : index
    %220 = vector.load %arg6[%c22, %c0_232, %c0_233] : memref<25x4x8xf32, #tpu.memory_space<vmem>>, vector<1x4x8xf32>
    %221 = vector.shape_cast %220 : vector<1x4x8xf32> to vector<4x8xf32>
    %cst_234 = arith.constant dense<0.000000e+00> : vector<256x8xf32>
    %222 = tpu.matmul %219, %221, %cst_234 {dimension_numbers = #tpu.dot_dimension_numbers<[1], [0], [0], [1], [0, 0, 1, 1], [], []>} : vector<256x4xf32>, vector<4x8xf32>, vector<256x8xf32> -> vector<256x8xf32>
    %223 = arith.addf %217, %222 : vector<256x8xf32>
    %c4_235 = arith.constant 4 : index
    %c3_236 = arith.constant 3 : index
    %c0_237 = arith.constant 0 : index
    %224 = vector.load %arg12[%c4_235, %c3_236, %c0_237] : memref<20x20x4xf32, #tpu.memory_space<vmem>>, vector<16x16x4xf32>
    %225 = vector.shape_cast %224 : vector<16x16x4xf32> to vector<256x4xf32>
    %c23 = arith.constant 23 : index
    %c0_238 = arith.constant 0 : index
    %c0_239 = arith.constant 0 : index
    %226 = vector.load %arg6[%c23, %c0_238, %c0_239] : memref<25x4x8xf32, #tpu.memory_space<vmem>>, vector<1x4x8xf32>
    %227 = vector.shape_cast %226 : vector<1x4x8xf32> to vector<4x8xf32>
    %cst_240 = arith.constant dense<0.000000e+00> : vector<256x8xf32>
    %228 = tpu.matmul %225, %227, %cst_240 {dimension_numbers = #tpu.dot_dimension_numbers<[1], [0], [0], [1], [0, 0, 1, 1], [], []>} : vector<256x4xf32>, vector<4x8xf32>, vector<256x8xf32> -> vector<256x8xf32>
    %229 = arith.addf %223, %228 : vector<256x8xf32>
    %c4_241 = arith.constant 4 : index
    %c4_242 = arith.constant 4 : index
    %c0_243 = arith.constant 0 : index
    %230 = vector.load %arg12[%c4_241, %c4_242, %c0_243] : memref<20x20x4xf32, #tpu.memory_space<vmem>>, vector<16x16x4xf32>
    %231 = vector.shape_cast %230 : vector<16x16x4xf32> to vector<256x4xf32>
    %c24 = arith.constant 24 : index
    %c0_244 = arith.constant 0 : index
    %c0_245 = arith.constant 0 : index
    %232 = vector.load %arg6[%c24, %c0_244, %c0_245] : memref<25x4x8xf32, #tpu.memory_space<vmem>>, vector<1x4x8xf32>
    %233 = vector.shape_cast %232 : vector<1x4x8xf32> to vector<4x8xf32>
    %cst_246 = arith.constant dense<0.000000e+00> : vector<256x8xf32>
    %234 = tpu.matmul %231, %233, %cst_246 {dimension_numbers = #tpu.dot_dimension_numbers<[1], [0], [0], [1], [0, 0, 1, 1], [], []>} : vector<256x4xf32>, vector<4x8xf32>, vector<256x8xf32> -> vector<256x8xf32>
    %235 = arith.addf %229, %234 : vector<256x8xf32>
    %c0_247 = arith.constant 0 : index
    %c0_248 = arith.constant 0 : index
    %236 = vector.load %arg7[%c0_247, %c0_248] : memref<1x8xf32, #tpu.memory_space<vmem>>, vector<1x8xf32>
    %237 = vector.broadcast %236 : vector<1x8xf32> to vector<256x8xf32>
    %238 = arith.addf %235, %237 : vector<256x8xf32>
    %cst_249 = arith.constant 0.000000e+00 : f32
    %239 = vector.broadcast %cst_249 : f32 to vector<256x8xf32>
    %240 = arith.maximumf %238, %239 : vector<256x8xf32>
    %241 = vector.shape_cast %240 : vector<256x8xf32> to vector<16x16x8xf32>
    %c0_250 = arith.constant 0 : index
    %c0_251 = arith.constant 0 : index
    %c0_252 = arith.constant 0 : index
    %c16_253 = arith.constant 16 : index
    %242 = vector.load %arg10[%c0_250, %c0_251, %c0_252, %c16_253] : memref<1x16x16x32xf32, #tpu.memory_space<vmem>>, vector<1x16x16x8xf32>
    %243 = vector.shape_cast %242 : vector<1x16x16x8xf32> to vector<16x16x8xf32>
    %244 = vector.shape_cast %241 : vector<16x16x8xf32> to vector<1x16x16x8xf32>
    tpu.vector_store %arg10[%c0_250, %c0_251, %c0_252, %c16_253], %244 {strides = array<i32>} : memref<1x16x16x32xf32, #tpu.memory_space<vmem>>, vector<1x16x16x8xf32>,
    %cst_254 = arith.constant 0xFF800000 : f32
    %245 = vector.broadcast %cst_254 : f32 to vector<18x18x4xf32>
    %c0_255 = arith.constant 0 : index
    %c0_256 = arith.constant 0 : index
    %c0_257 = arith.constant 0 : index
    %246 = vector.load %arg13[%c0_255, %c0_256, %c0_257] : memref<18x18x4xf32, #tpu.memory_space<vmem>>, vector<18x18x4xf32>
    tpu.vector_store %arg13[%c0_255, %c0_256, %c0_257], %245 {strides = array<i32>} : memref<18x18x4xf32, #tpu.memory_space<vmem>>, vector<18x18x4xf32>,
    %c1_258 = arith.constant 1 : index
    %c1_259 = arith.constant 1 : index
    %c0_260 = arith.constant 0 : index
    %247 = vector.load %arg13[%c1_258, %c1_259, %c0_260] : memref<18x18x4xf32, #tpu.memory_space<vmem>>, vector<16x16x4xf32>
    tpu.vector_store %arg13[%c1_258, %c1_259, %c0_260], %1 {strides = array<i32>} : memref<18x18x4xf32, #tpu.memory_space<vmem>>, vector<16x16x4xf32>,
    %c0_261 = arith.constant 0 : index
    %c0_262 = arith.constant 0 : index
    %c0_263 = arith.constant 0 : index
    %248 = vector.load %arg13[%c0_261, %c0_262, %c0_263] : memref<18x18x4xf32, #tpu.memory_space<vmem>>, vector<18x16x4xf32>
    %c0_264 = arith.constant 0 : index
    %c1_265 = arith.constant 1 : index
    %c0_266 = arith.constant 0 : index
    %249 = vector.load %arg13[%c0_264, %c1_265, %c0_266] : memref<18x18x4xf32, #tpu.memory_space<vmem>>, vector<18x16x4xf32>
    %250 = arith.maximumf %248, %249 : vector<18x16x4xf32>
    %c0_267 = arith.constant 0 : index
    %c2_268 = arith.constant 2 : index
    %c0_269 = arith.constant 0 : index
    %251 = vector.load %arg13[%c0_267, %c2_268, %c0_269] : memref<18x18x4xf32, #tpu.memory_space<vmem>>, vector<18x16x4xf32>
    %252 = arith.maximumf %250, %251 : vector<18x16x4xf32>
    %253 = vector.extract_strided_slice %252 {offsets = [0, 0, 0], sizes = [16, 16, 4], strides = [1, 1, 1]} : vector<18x16x4xf32> to vector<16x16x4xf32>
    %254 = vector.extract_strided_slice %252 {offsets = [1, 0, 0], sizes = [16, 16, 4], strides = [1, 1, 1]} : vector<18x16x4xf32> to vector<16x16x4xf32>
    %255 = arith.maximumf %253, %254 : vector<16x16x4xf32>
    %256 = vector.extract_strided_slice %252 {offsets = [2, 0, 0], sizes = [16, 16, 4], strides = [1, 1, 1]} : vector<18x16x4xf32> to vector<16x16x4xf32>
    %257 = arith.maximumf %255, %256 : vector<16x16x4xf32>
    %258 = vector.shape_cast %257 : vector<16x16x4xf32> to vector<256x4xf32>
    %c0_270 = arith.constant 0 : index
    %c0_271 = arith.constant 0 : index
    %259 = vector.load %arg8[%c0_270, %c0_271] : memref<4x8xf32, #tpu.memory_space<vmem>>, vector<4x8xf32>
    %cst_272 = arith.constant dense<0.000000e+00> : vector<256x8xf32>
    %260 = tpu.matmul %258, %259, %cst_272 {dimension_numbers = #tpu.dot_dimension_numbers<[1], [0], [0], [1], [0, 0, 1, 1], [], []>} : vector<256x4xf32>, vector<4x8xf32>, vector<256x8xf32> -> vector<256x8xf32>
    %c0_273 = arith.constant 0 : index
    %c0_274 = arith.constant 0 : index
    %261 = vector.load %arg9[%c0_273, %c0_274] : memref<1x8xf32, #tpu.memory_space<vmem>>, vector<1x8xf32>
    %262 = vector.broadcast %261 : vector<1x8xf32> to vector<256x8xf32>
    %263 = arith.addf %260, %262 : vector<256x8xf32>
    %cst_275 = arith.constant 0.000000e+00 : f32
    %264 = vector.broadcast %cst_275 : f32 to vector<256x8xf32>
    %265 = arith.maximumf %263, %264 : vector<256x8xf32>
    %266 = vector.shape_cast %265 : vector<256x8xf32> to vector<16x16x8xf32>
    %c0_276 = arith.constant 0 : index
    %c0_277 = arith.constant 0 : index
    %c0_278 = arith.constant 0 : index
    %c24_279 = arith.constant 24 : index
    %267 = vector.load %arg10[%c0_276, %c0_277, %c0_278, %c24_279] : memref<1x16x16x32xf32, #tpu.memory_space<vmem>>, vector<1x16x16x8xf32>
    %268 = vector.shape_cast %267 : vector<1x16x16x8xf32> to vector<16x16x8xf32>
    %269 = vector.shape_cast %266 : vector<16x16x8xf32> to vector<1x16x16x8xf32>
    tpu.vector_store %arg10[%c0_276, %c0_277, %c0_278, %c24_279], %269 {strides = array<i32>} : memref<1x16x16x32xf32, #tpu.memory_space<vmem>>, vector<1x16x16x8xf32>,
    return
  }
  func.func @transform_0(%arg0: i32) -> (i32, i32, i32, i32) {
    %c0_i32 = arith.constant 0 : i32
    %c0_i32_0 = arith.constant 0 : i32
    %c0_i32_1 = arith.constant 0 : i32
    %c0_i32_2 = arith.constant 0 : i32
    return %arg0, %c0_i32, %c0_i32_0, %c0_i32_1 : i32, i32, i32, i32
  }
  func.func @transform_1(%arg0: i32) -> (i32, i32) {
    %c0_i32 = arith.constant 0 : i32
    %c0_i32_0 = arith.constant 0 : i32
    %c0_i32_1 = arith.constant 0 : i32
    return %c0_i32, %c0_i32_0 : i32, i32
  }
  func.func @transform_2(%arg0: i32) -> (i32, i32) {
    %c0_i32 = arith.constant 0 : i32
    %c0_i32_0 = arith.constant 0 : i32
    %c0_i32_1 = arith.constant 0 : i32
    return %c0_i32, %c0_i32_0 : i32, i32
  }
  func.func @transform_3(%arg0: i32) -> (i32, i32, i32) {
    %c0_i32 = arith.constant 0 : i32
    %c0_i32_0 = arith.constant 0 : i32
    %c0_i32_1 = arith.constant 0 : i32
    %c0_i32_2 = arith.constant 0 : i32
    return %c0_i32, %c0_i32_0, %c0_i32_1 : i32, i32, i32
  }
  func.func @transform_4(%arg0: i32) -> (i32, i32) {
    %c0_i32 = arith.constant 0 : i32
    %c0_i32_0 = arith.constant 0 : i32
    %c0_i32_1 = arith.constant 0 : i32
    return %c0_i32, %c0_i32_0 : i32, i32
  }
  func.func @transform_5(%arg0: i32) -> (i32, i32, i32) {
    %c0_i32 = arith.constant 0 : i32
    %c0_i32_0 = arith.constant 0 : i32
    %c0_i32_1 = arith.constant 0 : i32
    %c0_i32_2 = arith.constant 0 : i32
    return %c0_i32, %c0_i32_0, %c0_i32_1 : i32, i32, i32
  }
  func.func @transform_6(%arg0: i32) -> (i32, i32) {
    %c0_i32 = arith.constant 0 : i32
    %c0_i32_0 = arith.constant 0 : i32
    %c0_i32_1 = arith.constant 0 : i32
    return %c0_i32, %c0_i32_0 : i32, i32
  }
  func.func @transform_7(%arg0: i32) -> (i32, i32) {
    %c0_i32 = arith.constant 0 : i32
    %c0_i32_0 = arith.constant 0 : i32
    %c0_i32_1 = arith.constant 0 : i32
    return %c0_i32, %c0_i32_0 : i32, i32
  }
  func.func @transform_8(%arg0: i32) -> (i32, i32) {
    %c0_i32 = arith.constant 0 : i32
    %c0_i32_0 = arith.constant 0 : i32
    %c0_i32_1 = arith.constant 0 : i32
    return %c0_i32, %c0_i32_0 : i32, i32
  }
  func.func @transform_9(%arg0: i32) -> (i32, i32, i32, i32) {
    %c0_i32 = arith.constant 0 : i32
    %c0_i32_0 = arith.constant 0 : i32
    %c0_i32_1 = arith.constant 0 : i32
    %c0_i32_2 = arith.constant 0 : i32
    return %arg0, %c0_i32, %c0_i32_0, %c0_i32_1 : i32, i32, i32, i32
  }
}

</mosaic_0001>

<bundles_post_ra>
// kernel: inception_block_forward.1
= control target key start
LH: loop header
LB: loop body
LE: loop exit
PB: predicated region body
PF: predicated region fallthrough
CT: control target
= control target key end

     0   :  { %14 = vsyncpa [#allocation6], 0  ;;  %s25658_s0 = inlined_call_operand.vmem [shape: f32[2,16,16,4], index: 0, kind: input, shape index: {}]   ;;  %s25659_s1 = inlined_call_operand.vmem [shape: f32[4,16], index: 1, kind: input, shape index: {}]   ;;  %s25660_s2 = inlined_call_operand.vmem [shape: f32[1,16], index: 2, kind: input, shape index: {}]   ;;  %s25661_s3 = inlined_call_operand.vmem [shape: f32[9,4,8], index: 3, kind: input, shape index: {}]   ;;  %s25662_s4 = inlined_call_operand.vmem [shape: f32[1,8], index: 4, kind: input, shape index: {}]   ;;  %s25663_s5 = inlined_call_operand.vmem [shape: f32[25,4,8], index: 5, kind: input, shape index: {}]   ;;  %s25664_s6 = inlined_call_operand.vmem [shape: f32[1,8], index: 6, kind: input, shape index: {}]   ;;  %s25665_s7 = inlined_call_operand.vmem [shape: f32[4,8], index: 7, kind: input, shape index: {}]   ;;  %s25666_s8 = inlined_call_operand.vmem [shape: f32[1,8], index: 8, kind: input, shape index: {}]   ;;  %s25667_s9 = inlined_call_operand.hbm [shape: f32[2,16,16,32], index: 9, kind: output, shape index: {}]  }
   0x1   :  { %16 = vsyncpa [#allocation6 + $0x1], 0  ;;  %s20094_s30 = smov 0   ;;  %s20096_s10 = smov 0  }
   0x2   :  { %s20098_s11 = smov 0   ;;  %s20100_s12 = smov 0  }
   0x3 LB: > { %s20115_s13 = sadd.s32 4294967295, %s20033_s12   ;;  %s15698_s14 = sadd.s32 4294967294, %s20033_s12   ;;  %s20033_s12 = sphi %s20100_s12, %s26180_s12   ;;  %s20029_s11 = sphi %s20098_s11, %s26179_s11   ;;  %s20025_s10 = sphi %s20096_s10, %s26178_s10   ;;  %s20021_s30 = sphi %s20094_s30, %s26177_s30  }
   0x4   : > { %s20119_s15 = sadd.s32 1, %s20033_s12   ;;  %s223_s16 = sadd.s32 1, %s20029_s11 }
   0x5   : > { %s220_s17 = ssub.s32 %s20033_s12, %s20119_s15  ;;  %p233_p0 = scmp.ne.s32.totalorder %s20029_s11, %s20025_s10 }
   0x6   : > { %p221_p1 = scmp.eq.s32.totalorder %s220_s17, 0  ;;  %p234_p2 = scmp.eq.s32.totalorder %s20115_s13, 1 }
   0x7   : > { %p239_p3 = scmp.ne.s32.totalorder %s20025_s10, %s20021_s30  ;;  %p240_p4 = scmp.eq.s32.totalorder %s15698_s14, 1 }
   0x8   : > { %s20130_s18 = scalar_select %p221_p1, %s20029_s11, %s223_s16  }
   0x9   : > { %p20132_p5 = por %p234_p2, %p233_p0  ;;  %p20136_p6 = por %p240_p4, %p239_p3 }
   0xa   : > { %p15701_p7 = scmp.ge.s32.totalorder %s20033_s12, 1  ;;  %p290_p8 = scmp.lt.s32.totalorder %s20033_s12, 3 }
   0xc   : > { %p291_p9 = pnand %p15701_p7, %p290_p8 }
   0xe   : > { %294 = sbr.rel (%p291_p9) target bundleno = 1830 (0x726), region = 56 }
  0x13   : > { %v363_v0 = vld [vmem:[%s25659_s1] sm:$0xf]  ;;  %vm468_vm0 = vcmask 1043456   ;;  %p326_p10 = scmp.lt.s32.totalorder %s20115_s13, 1  ;;  %vm371_vm1 = vcmask 31744   ;;  %v20035_v1 = vmov -inf  }
  0x14   : > { %18124 = vmatprep.subr.msk.mxu0 %vm468_vm0, %v363_v0  ;;  %14769 = vst.msk [vmem:[#allocation4 + $0x18] sm:$0xff] %vm371_vm1, %v20035_v1  ;;  %14770 = vst.msk [vmem:[#allocation4 + $0x20] sm:$0xff] %vm371_vm1, %v20035_v1  ;;  %vm764_vm2 = vcmask 25600   ;;  %v1010_v34 = vld [vmem:[%s25661_s3] sm:$0xf]  ;;  %v20036_v35 = vmov 0.0  }
  0x15   : > { %14766 = vst.msk [vmem:[#allocation4] sm:$0xff] %vm371_vm1, %v20035_v1  ;;  %14767 = vst.msk [vmem:[#allocation4 + $0x8] sm:$0xff] %vm371_vm1, %v20035_v1  ;;  %18125 = vmatpush3.msk.msra.mxu0 %vm468_vm0, %v363_v0  ;;  %s327_s23 = scalar_select %p326_p10, %s20115_s13, 1  ;;  %v15739_v36 = vld [vmem:[%s25661_s3 + $0x4] sm:$0xf]  ;;  %vm729_vm3 = vcmask 64512  }
  0x16   : > { %14772 = vst.msk [vmem:[#allocation4 + $0x30] sm:$0xff] %vm371_vm1, %v20035_v1  ;;  %14773 = vst.msk [vmem:[#allocation4 + $0x38] sm:$0xff] %vm371_vm1, %v20035_v1  ;;  %18224 = vmatprep.subr.msk.mxu0 %vm468_vm0, %v1010_v34  ;;  %s323_s14 = sand.u32 1, %s20025_s10   ;;  %v20506_v37 = vld [vmem:[%s25660_s2] ss:$0 sm:$0xff]  ;;  %18174 = vmatprep.subr.msk.mxu1 %vm468_vm0, %v15739_v36  ;;  %s20037_s29 = smov 120  }
  0x17   : > { %14775 = vst.msk [vmem:[#allocation4 + $0x48] sm:$0xff] %vm371_vm1, %v20035_v1  ;;  %14776 = vst.msk [vmem:[#allocation4 + $0x50] sm:$0xff] %vm371_vm1, %v20035_v1  ;;  %s16934_s24 = sshll.u32 %s327_s23, 8  ;;  %s15702_s23 = sshll.u32 %s323_s14, 8  ;;  %18175 = vmatpush3.msk.msra.mxu1 %vm468_vm0, %v15739_v36  ;;  %v15806_v42 = vld [vmem:[%s25661_s3 + $0x8] sm:$0xf] }
  0x18   : > { %14778 = vst.msk [vmem:[#allocation4 + $0x60] sm:$0xff] %vm371_vm1, %v20035_v1  ;;  %14779 = vst.msk [vmem:[#allocation4 + $0x68] sm:$0xff] %vm371_vm1, %v20035_v1  ;;  %s20208_s27 = scalar_lea.vmem %s25658_s0, %s16934_s24  ;;  %18274 = vmatprep.subr.msk.mxu1 %vm468_vm0, %v15806_v42  ;;  %v15840_v46 = vld [vmem:[%s25661_s3 + $0xc] sm:$0xf]  ;;  %s20530_s28 = scalar_lea.vmem [#allocation5], %s15702_s23  ;;  %vm4658_vm4 = vcmask 27648  }
  0x19   : > { %14781 = vst.msk [vmem:[#allocation4 + $0x78] sm:$0xff] %vm371_vm1, %v20035_v1  ;;  %14782 = vst.msk [vmem:[#allocation4 + $0x80] sm:$0xff] %vm371_vm1, %v20035_v1  ;;  %v331_v2 = vld [vmem:[%s20208_s27] sm:$0xff]  ;;  %v332_v3 = vld [vmem:[%s20208_s27 + $0x8] sm:$0xff]  ;;  %s20038_s23 = smov 116   ;;  %s20039_s24 = smov 8  }
  0x1a   : > { %14784 = vst.msk [vmem:[#allocation4 + $0x90] sm:$0xff] %vm371_vm1, %v20035_v1  ;;  %14785 = vst.msk [vmem:[#allocation4 + $0x98] sm:$0xff] %vm371_vm1, %v20035_v1  ;;  %v333_v4 = vld [vmem:[%s20208_s27 + $0x10] sm:$0xff]  ;;  %18126 = vmatprep.mubr.msk.f32.mxu0 %vm371_vm1, %v331_v2  ;;  %v334_v5 = vld [vmem:[%s20208_s27 + $0x18] sm:$0xff]  ;;  %vm4623_vm5 = vcmask 130112   ;;  %s20040_s17 = smov 16  }
  0x1b   : > { %14787 = vst.msk [vmem:[#allocation4 + $0xa8] sm:$0xff] %vm371_vm1, %v20035_v1  ;;  %14788 = vst.msk [vmem:[#allocation4 + $0xb0] sm:$0xff] %vm371_vm1, %v20035_v1  ;;  %v335_v6 = vld [vmem:[%s20208_s27 + $0x20] sm:$0xff]  ;;  %v336_v7 = vld [vmem:[%s20208_s27 + $0x28] sm:$0xff]  ;;  %18127 = vmatmul.mubr.msk.f32.vlgmr.msra.gmra.mxu0 %vm371_vm1, %v332_v3  ;;  %vm14733_vm6 = vcmask 195712   ;;  %vm15589_vm7 = vcmask 261312  }
  0x1c   : > { %14790 = vst.msk [vmem:[#allocation4 + $0xc0] sm:$0xff] %vm371_vm1, %v20035_v1  ;;  %14791 = vst.msk [vmem:[#allocation4 + $0xc8] sm:$0xff] %vm371_vm1, %v20035_v1  ;;  %v337_v8 = vld [vmem:[%s20208_s27 + $0x30] sm:$0xff]  ;;  %v338_v9 = vld [vmem:[%s20208_s27 + $0x38] sm:$0xff]  ;;  %18129 = vmatprep.mubr.msk.f32.mxu0 %vm371_vm1, %v333_v4  ;;  %18225 = vmatpush3.msk.msra.mxu0 %vm468_vm0, %v1010_v34  ;;  %s16935_s25 = sshll.u32 %s20115_s13, 12  ;;  %s15636_s26 = sshll.u32 %s20530_s28, 4  ;;  %s25611_s26 = int_to_ptr.vmem [resolvable:$true] %s15636_s26 }
  0x1d   : > { %14793 = vst.msk [vmem:[#allocation4 + $0xd8] sm:$0xff] %vm371_vm1, %v20035_v1  ;;  %14794 = vst.msk [vmem:[#allocation4 + $0xe0] sm:$0xff] %vm371_vm1, %v20035_v1  ;;  %v339_v10 = vld [vmem:[%s20208_s27 + $0x40] sm:$0xff]  ;;  %v340_v11 = vld [vmem:[%s20208_s27 + $0x48] sm:$0xff]  ;;  %18324 = vmatprep.subr.msk.mxu0 %vm468_vm0, %v15840_v46  ;;  %s25607_s16 = scalar_lea.hbm %s25667_s9, %s16935_s25  ;;  %s25617_s13 = scalar_lea.sflag [#allocation6], %s323_s14 }
  0x1e   : > { %14796 = vst.msk [vmem:[#allocation4 + $0xf0] sm:$0xff] %vm371_vm1, %v20035_v1  ;;  %14797 = vst.msk [vmem:[#allocation4 + $0xf8] sm:$0xff] %vm371_vm1, %v20035_v1  ;;  %v341_v12 = vld [vmem:[%s20208_s27 + $0x50] sm:$0xff]  ;;  %v342_v13 = vld [vmem:[%s20208_s27 + $0x58] sm:$0xff]  ;;  %s20042_s21 = smov [#allocation5]  }
  0x1f   : > { %14799 = vst.msk [vmem:[#allocation4 + $0x108] sm:$0xff] %vm371_vm1, %v20035_v1  ;;  %14800 = vst.msk [vmem:[#allocation4 + $0x110] sm:$0xff] %vm371_vm1, %v20035_v1  ;;  %v343_v14 = vld [vmem:[%s20208_s27 + $0x60] sm:$0xff]  ;;  %v344_v15 = vld [vmem:[%s20208_s27 + $0x68] sm:$0xff]  ;;  %18130 = vmatmul.mubr.msk.f32.gmra.mxu0 %vm371_vm1, %v334_v5  ;;  %s19977_s22 = sshll.u32 %s20042_s21, 4  ;;  %s19978_s22 = int_to_ptr.vmem [resolvable:$false] %s19977_s22 }
  0x20   : > { %14802 = vst.msk [vmem:[#allocation4 + $0x120] sm:$0xff] %vm371_vm1, %v20035_v1  ;;  %14803 = vst.msk [vmem:[#allocation4 + $0x128] sm:$0xff] %vm371_vm1, %v20035_v1  ;;  %v345_v16 = vld [vmem:[%s20208_s27 + $0x70] sm:$0xff]  ;;  %v346_v17 = vld [vmem:[%s20208_s27 + $0x78] sm:$0xff]  ;;  %18132 = vmatprep.mubr.msk.f32.mxu0 %vm371_vm1, %v335_v6  ;;  %p19980_p0 = scmp.lt.s32.totalorder %s25611_s26, %s19978_s22 }
  0x21   : > { %14805 = vst.msk [vmem:[#allocation4 + $0x138] sm:$0xff] %vm371_vm1, %v20035_v1  ;;  %14806 = vst.msk [vmem:[#allocation4 + $0x140] sm:$0xff] %vm371_vm1, %v20035_v1  ;;  %v347_v18 = vld [vmem:[%s20208_s27 + $0x80] sm:$0xff]  ;;  %v348_v19 = vld [vmem:[%s20208_s27 + $0x88] sm:$0xff] }
  0x22   : > { %14808 = vst.msk [vmem:[#allocation4 + $0x150] sm:$0xff] %vm371_vm1, %v20035_v1  ;;  %14809 = vst.msk [vmem:[#allocation4 + $0x158] sm:$0xff] %vm371_vm1, %v20035_v1  ;;  %v349_v20 = vld [vmem:[%s20208_s27 + $0x90] sm:$0xff]  ;;  %v350_v21 = vld [vmem:[%s20208_s27 + $0x98] sm:$0xff] }
  0x23   : > { %14811 = vst.msk [vmem:[#allocation4 + $0x168] sm:$0xff] %vm371_vm1, %v20035_v1  ;;  %14812 = vst.msk [vmem:[#allocation4 + $0x170] sm:$0xff] %vm371_vm1, %v20035_v1  ;;  %v351_v22 = vld [vmem:[%s20208_s27 + $0xa0] sm:$0xff]  ;;  %v352_v23 = vld [vmem:[%s20208_s27 + $0xa8] sm:$0xff]  ;;  %18133 = vmatmul.mubr.msk.f32.gmra.mxu0 %vm371_vm1, %v336_v7 }
  0x24   : > { %14814 = vst.msk [vmem:[#allocation4 + $0x180] sm:$0xff] %vm371_vm1, %v20035_v1  ;;  %14815 = vst.msk [vmem:[#allocation4 + $0x188] sm:$0xff] %vm371_vm1, %v20035_v1  ;;  %v353_v24 = vld [vmem:[%s20208_s27 + $0xb0] sm:$0xff]  ;;  %v354_v25 = vld [vmem:[%s20208_s27 + $0xb8] sm:$0xff]  ;;  %18135 = vmatprep.mubr.msk.f32.mxu0 %vm371_vm1, %v337_v8 }
  0x25   : > { %14817 = vst.msk [vmem:[#allocation4 + $0x198] sm:$0xff] %vm371_vm1, %v20035_v1  ;;  %14818 = vst.msk [vmem:[#allocation4 + $0x1a0] sm:$0xff] %vm371_vm1, %v20035_v1  ;;  %v355_v26 = vld [vmem:[%s20208_s27 + $0xc0] sm:$0xff]  ;;  %v356_v27 = vld [vmem:[%s20208_s27 + $0xc8] sm:$0xff] }
  0x26   : > { %14771 = vst.msk [vmem:[#allocation4 + $0x28] sm:$0x3] %vm764_vm2, %v20035_v1  ;;  %14768 = vst.msk [vmem:[#allocation4 + $0x10] sm:$0x3] %vm764_vm2, %v20035_v1  ;;  %v357_v28 = vld [vmem:[%s20208_s27 + $0xd0] sm:$0xff]  ;;  %v358_v29 = vld [vmem:[%s20208_s27 + $0xd8] sm:$0xff] }
  0x27   : > { %14774 = vst.msk [vmem:[#allocation4 + $0x40] sm:$0x3] %vm764_vm2, %v20035_v1  ;;  %14777 = vst.msk [vmem:[#allocation4 + $0x58] sm:$0x3] %vm764_vm2, %v20035_v1  ;;  %v359_v30 = vld [vmem:[%s20208_s27 + $0xe0] sm:$0xff]  ;;  %v360_v31 = vld [vmem:[%s20208_s27 + $0xe8] sm:$0xff]  ;;  %18136 = vmatmul.mubr.msk.f32.gmra.mxu0 %vm371_vm1, %v338_v9 }
  0x28   : > { %14780 = vst.msk [vmem:[#allocation4 + $0x70] sm:$0x3] %vm764_vm2, %v20035_v1  ;;  %14783 = vst.msk [vmem:[#allocation4 + $0x88] sm:$0x3] %vm764_vm2, %v20035_v1  ;;  %v361_v32 = vld [vmem:[%s20208_s27 + $0xf0] sm:$0xff]  ;;  %v362_v33 = vld [vmem:[%s20208_s27 + $0xf8] sm:$0xff]  ;;  %18138 = vmatprep.mubr.msk.f32.mxu0 %vm371_vm1, %v339_v10 }
  0x29   : > { %14786 = vst.msk [vmem:[#allocation4 + $0xa0] sm:$0x3] %vm764_vm2, %v20035_v1  ;;  %14789 = vst.msk [vmem:[#allocation4 + $0xb8] sm:$0x3] %vm764_vm2, %v20035_v1 }
  0x2a   : > { %14792 = vst.msk [vmem:[#allocation4 + $0xd0] sm:$0x3] %vm764_vm2, %v20035_v1  ;;  %14795 = vst.msk [vmem:[#allocation4 + $0xe8] sm:$0x3] %vm764_vm2, %v20035_v1 }
  0x2b   : > { %14798 = vst.msk [vmem:[#allocation4 + $0x100] sm:$0x3] %vm764_vm2, %v20035_v1  ;;  %14801 = vst.msk [vmem:[#allocation4 + $0x118] sm:$0x3] %vm764_vm2, %v20035_v1  ;;  %18139 = vmatmul.mubr.msk.f32.gmra.mxu0 %vm371_vm1, %v340_v11 }
  0x2c   : > { %14804 = vst.msk [vmem:[#allocation4 + $0x130] sm:$0x3] %vm764_vm2, %v20035_v1  ;;  %14807 = vst.msk [vmem:[#allocation4 + $0x148] sm:$0x3] %vm764_vm2, %v20035_v1  ;;  %18141 = vmatprep.mubr.msk.f32.mxu0 %vm371_vm1, %v341_v12 }
  0x2d   : > { %14810 = vst.msk [vmem:[#allocation4 + $0x160] sm:$0x3] %vm764_vm2, %v20035_v1  ;;  %14813 = vst.msk [vmem:[#allocation4 + $0x178] sm:$0x3] %vm764_vm2, %v20035_v1 }
  0x2e   : > { %14816 = vst.msk [vmem:[#allocation4 + $0x190] sm:$0x3] %vm764_vm2, %v20035_v1  ;;  %14819 = vst.msk [vmem:[#allocation4 + $0x1a8] sm:$0x3] %vm764_vm2, %v20035_v1 }
  0x2f   : > { %14821 = vst.msk [vmem:[#allocation4 + $0x19] sm:$0xff] %vm371_vm1, %v331_v2  ;;  %14822 = vst.msk [vmem:[#allocation4 + $0x21] sm:$0xff] %vm371_vm1, %v332_v3  ;;  %18142 = vmatmul.mubr.msk.f32.gmra.mxu0 %vm371_vm1, %v342_v13 }
  0x30   : > { %14823 = vst.msk [vmem:[#allocation4 + $0x31] sm:$0xff] %vm371_vm1, %v333_v4  ;;  %14824 = vst.msk [vmem:[#allocation4 + $0x39] sm:$0xff] %vm371_vm1, %v334_v5  ;;  %18144 = vmatprep.mubr.msk.f32.mxu0 %vm371_vm1, %v343_v14 }
  0x31   : > { %14825 = vst.msk [vmem:[#allocation4 + $0x49] sm:$0xff] %vm371_vm1, %v335_v6  ;;  %14826 = vst.msk [vmem:[#allocation4 + $0x51] sm:$0xff] %vm371_vm1, %v336_v7 }
  0x32   : > { %14827 = vst.msk [vmem:[#allocation4 + $0x61] sm:$0xff] %vm371_vm1, %v337_v8  ;;  %14828 = vst.msk [vmem:[#allocation4 + $0x69] sm:$0xff] %vm371_vm1, %v338_v9 }
  0x33   : > { %14829 = vst.msk [vmem:[#allocation4 + $0x79] sm:$0xff] %vm371_vm1, %v339_v10  ;;  %14830 = vst.msk [vmem:[#allocation4 + $0x81] sm:$0xff] %vm371_vm1, %v340_v11  ;;  %18145 = vmatmul.mubr.msk.f32.gmra.mxu0 %vm371_vm1, %v344_v15 }
  0x34   : > { %14831 = vst.msk [vmem:[#allocation4 + $0x91] sm:$0xff] %vm371_vm1, %v341_v12  ;;  %14832 = vst.msk [vmem:[#allocation4 + $0x99] sm:$0xff] %vm371_vm1, %v342_v13  ;;  %18147 = vmatprep.mubr.msk.f32.mxu0 %vm371_vm1, %v345_v16 }
  0x35   : > { %14833 = vst.msk [vmem:[#allocation4 + $0xa9] sm:$0xff] %vm371_vm1, %v343_v14  ;;  %14834 = vst.msk [vmem:[#allocation4 + $0xb1] sm:$0xff] %vm371_vm1, %v344_v15 }
  0x36   : > { %14835 = vst.msk [vmem:[#allocation4 + $0xc1] sm:$0xff] %vm371_vm1, %v345_v16  ;;  %14836 = vst.msk [vmem:[#allocation4 + $0xc9] sm:$0xff] %vm371_vm1, %v346_v17 }
  0x37   : > { %14837 = vst.msk [vmem:[#allocation4 + $0xd9] sm:$0xff] %vm371_vm1, %v347_v18  ;;  %14838 = vst.msk [vmem:[#allocation4 + $0xe1] sm:$0xff] %vm371_vm1, %v348_v19  ;;  %18148 = vmatmul.mubr.msk.f32.gmra.mxu0 %vm371_vm1, %v346_v17 }
  0x38   : > { %14839 = vst.msk [vmem:[#allocation4 + $0xf1] sm:$0xff] %vm371_vm1, %v349_v20  ;;  %14840 = vst.msk [vmem:[#allocation4 + $0xf9] sm:$0xff] %vm371_vm1, %v350_v21  ;;  %18150 = vmatprep.mubr.msk.f32.mxu0 %vm371_vm1, %v347_v18 }
  0x39   : > { %14841 = vst.msk [vmem:[#allocation4 + $0x109] sm:$0xff] %vm371_vm1, %v351_v22  ;;  %14842 = vst.msk [vmem:[#allocation4 + $0x111] sm:$0xff] %vm371_vm1, %v352_v23 }
  0x3a   : > { %14843 = vst.msk [vmem:[#allocation4 + $0x121] sm:$0xff] %vm371_vm1, %v353_v24  ;;  %14844 = vst.msk [vmem:[#allocation4 + $0x129] sm:$0xff] %vm371_vm1, %v354_v25 }
  0x3b   : > { %14845 = vst.msk [vmem:[#allocation4 + $0x139] sm:$0xff] %vm371_vm1, %v355_v26  ;;  %14846 = vst.msk [vmem:[#allocation4 + $0x141] sm:$0xff] %vm371_vm1, %v356_v27  ;;  %18151 = vmatmul.mubr.msk.f32.gmra.mxu0 %vm371_vm1, %v348_v19 }
  0x3c   : > { %14847 = vst.msk [vmem:[#allocation4 + $0x151] sm:$0xff] %vm371_vm1, %v357_v28  ;;  %14848 = vst.msk [vmem:[#allocation4 + $0x159] sm:$0xff] %vm371_vm1, %v358_v29  ;;  %18153 = vmatprep.mubr.msk.f32.mxu0 %vm371_vm1, %v349_v20 }
  0x3d   : > { %14849 = vst.msk [vmem:[#allocation4 + $0x169] sm:$0xff] %vm371_vm1, %v359_v30  ;;  %14850 = vst.msk [vmem:[#allocation4 + $0x171] sm:$0xff] %vm371_vm1, %v360_v31 }
  0x3e   : > { %14851 = vst.msk [vmem:[#allocation4 + $0x181] sm:$0xff] %vm371_vm1, %v361_v32  ;;  %14852 = vst.msk [vmem:[#allocation4 + $0x189] sm:$0xff] %vm371_vm1, %v362_v33 }
  0x3f   : > { %18154 = vmatmul.mubr.msk.f32.gmra.mxu0 %vm371_vm1, %v350_v21  ;;  %766 = vst.msk [vmem:[#allocation2 + $0x18] sm:$0xff] %vm371_vm1, %v20036_v35  ;;  %767 = vst.msk [vmem:[#allocation2 + $0x20] sm:$0xff] %vm371_vm1, %v20036_v35 }
  0x40   : > { %18156 = vmatprep.mubr.msk.f32.mxu0 %vm371_vm1, %v351_v22  ;;  %762 = vst.msk [vmem:[#allocation2] sm:$0xff] %vm371_vm1, %v20036_v35  ;;  %763 = vst.msk [vmem:[#allocation2 + $0x8] sm:$0xff] %vm371_vm1, %v20036_v35 }
  0x41   : > { %765 = vst.msk [vmem:[#allocation2 + $0x10] sm:$0x3] %vm764_vm2, %v20036_v35  ;;  %768 = vst.msk [vmem:[#allocation2 + $0x28] sm:$0x3] %vm764_vm2, %v20036_v35 }
  0x42   : > { %769 = vst.msk [vmem:[#allocation2 + $0x30] sm:$0xff] %vm371_vm1, %v20036_v35  ;;  %770 = vst.msk [vmem:[#allocation2 + $0x38] sm:$0xff] %vm371_vm1, %v20036_v35 }
  0x43   : > { %18157 = vmatmul.mubr.msk.f32.gmra.mxu0 %vm371_vm1, %v352_v23  ;;  %771 = vst.msk [vmem:[#allocation2 + $0x40] sm:$0x3] %vm764_vm2, %v20036_v35  ;;  %774 = vst.msk [vmem:[#allocation2 + $0x58] sm:$0x3] %vm764_vm2, %v20036_v35 }
  0x44   : > { %18159 = vmatprep.mubr.msk.f32.mxu0 %vm371_vm1, %v353_v24  ;;  %772 = vst.msk [vmem:[#allocation2 + $0x48] sm:$0xff] %vm371_vm1, %v20036_v35  ;;  %773 = vst.msk [vmem:[#allocation2 + $0x50] sm:$0xff] %vm371_vm1, %v20036_v35 }
  0x45   : > { %775 = vst.msk [vmem:[#allocation2 + $0x60] sm:$0xff] %vm371_vm1, %v20036_v35  ;;  %776 = vst.msk [vmem:[#allocation2 + $0x68] sm:$0xff] %vm371_vm1, %v20036_v35 }
  0x46   : > { %777 = vst.msk [vmem:[#allocation2 + $0x70] sm:$0x3] %vm764_vm2, %v20036_v35  ;;  %780 = vst.msk [vmem:[#allocation2 + $0x88] sm:$0x3] %vm764_vm2, %v20036_v35 }
  0x47   : > { %18160 = vmatmul.mubr.msk.f32.gmra.mxu0 %vm371_vm1, %v354_v25  ;;  %778 = vst.msk [vmem:[#allocation2 + $0x78] sm:$0xff] %vm371_vm1, %v20036_v35  ;;  %779 = vst.msk [vmem:[#allocation2 + $0x80] sm:$0xff] %vm371_vm1, %v20036_v35  ;;  %v1011_v38 = vld [vmem:[#allocation2 + $0x1] sm:$0xff] }
  0x48   : > { %18162 = vmatprep.mubr.msk.f32.mxu0 %vm371_vm1, %v355_v26  ;;  %781 = vst.msk [vmem:[#allocation2 + $0x90] sm:$0xff] %vm371_vm1, %v20036_v35  ;;  %782 = vst.msk [vmem:[#allocation2 + $0x98] sm:$0xff] %vm371_vm1, %v20036_v35  ;;  %v978_v39 = vld [vmem:[#allocation2] sm:$0xff]  ;;  %18176 = vmatprep.mubr.msk.f32.mxu1 %vm371_vm1, %v1011_v38  ;;  %v1012_v40 = vld [vmem:[#allocation2 + $0x9] sm:$0xff] }
  0x49   : > { %783 = vst.msk [vmem:[#allocation2 + $0xa0] sm:$0x3] %vm764_vm2, %v20036_v35  ;;  %786 = vst.msk [vmem:[#allocation2 + $0xb8] sm:$0x3] %vm764_vm2, %v20036_v35  ;;  %v979_v41 = vld [vmem:[#allocation2 + $0x8] sm:$0xff]  ;;  %18177 = vmatmul.mubr.msk.f32.vlgmr.msra.gmra.mxu1 %vm371_vm1, %v1012_v40 }
  0x4a   : > { %784 = vst.msk [vmem:[#allocation2 + $0xa8] sm:$0xff] %vm371_vm1, %v20036_v35  ;;  %785 = vst.msk [vmem:[#allocation2 + $0xb0] sm:$0xff] %vm371_vm1, %v20036_v35  ;;  %18275 = vmatpush3.msk.msra.mxu1 %vm468_vm0, %v15806_v42 }
  0x4b   : > { %18163 = vmatmul.mubr.msk.f32.gmra.mxu0 %vm371_vm1, %v356_v27  ;;  %787 = vst.msk [vmem:[#allocation2 + $0xc0] sm:$0xff] %vm371_vm1, %v20036_v35  ;;  %788 = vst.msk [vmem:[#allocation2 + $0xc8] sm:$0xff] %vm371_vm1, %v20036_v35 }
  0x4c   : > { %18165 = vmatprep.mubr.msk.f32.mxu0 %vm371_vm1, %v357_v28  ;;  %789 = vst.msk [vmem:[#allocation2 + $0xd0] sm:$0x3] %vm764_vm2, %v20036_v35  ;;  %792 = vst.msk [vmem:[#allocation2 + $0xe8] sm:$0x3] %vm764_vm2, %v20036_v35 }
  0x4d   : > { %790 = vst.msk [vmem:[#allocation2 + $0xd8] sm:$0xff] %vm371_vm1, %v20036_v35  ;;  %791 = vst.msk [vmem:[#allocation2 + $0xe0] sm:$0xff] %vm371_vm1, %v20036_v35 }
  0x4e   : > { %793 = vst.msk [vmem:[#allocation2 + $0xf0] sm:$0xff] %vm371_vm1, %v20036_v35  ;;  %794 = vst.msk [vmem:[#allocation2 + $0xf8] sm:$0xff] %vm371_vm1, %v20036_v35 }
  0x4f   : > { %18166 = vmatmul.mubr.msk.f32.gmra.mxu0 %vm371_vm1, %v358_v29  ;;  %795 = vst.msk [vmem:[#allocation2 + $0x100] sm:$0x3] %vm764_vm2, %v20036_v35  ;;  %798 = vst.msk [vmem:[#allocation2 + $0x118] sm:$0x3] %vm764_vm2, %v20036_v35 }
  0x50   : > { %18168 = vmatprep.mubr.msk.f32.mxu0 %vm371_vm1, %v359_v30  ;;  %796 = vst.msk [vmem:[#allocation2 + $0x108] sm:$0xff] %vm371_vm1, %v20036_v35  ;;  %797 = vst.msk [vmem:[#allocation2 + $0x110] sm:$0xff] %vm371_vm1, %v20036_v35 }
  0x51   : > { %799 = vst.msk [vmem:[#allocation2 + $0x120] sm:$0xff] %vm371_vm1, %v20036_v35  ;;  %800 = vst.msk [vmem:[#allocation2 + $0x128] sm:$0xff] %vm371_vm1, %v20036_v35 }
  0x52   : > { %801 = vst.msk [vmem:[#allocation2 + $0x130] sm:$0x3] %vm764_vm2, %v20036_v35  ;;  %804 = vst.msk [vmem:[#allocation2 + $0x148] sm:$0x3] %vm764_vm2, %v20036_v35 }
  0x53   : > { %18169 = vmatmul.mubr.msk.f32.gmra.mxu0 %vm371_vm1, %v360_v31  ;;  %802 = vst.msk [vmem:[#allocation2 + $0x138] sm:$0xff] %vm371_vm1, %v20036_v35  ;;  %803 = vst.msk [vmem:[#allocation2 + $0x140] sm:$0xff] %vm371_vm1, %v20036_v35 }
  0x54   : > { %18171 = vmatprep.mubr.msk.f32.mxu0 %vm371_vm1, %v361_v32  ;;  %805 = vst.msk [vmem:[#allocation2 + $0x150] sm:$0xff] %vm371_vm1, %v20036_v35  ;;  %806 = vst.msk [vmem:[#allocation2 + $0x158] sm:$0xff] %vm371_vm1, %v20036_v35 }
  0x55   : > { %807 = vst.msk [vmem:[#allocation2 + $0x160] sm:$0x3] %vm764_vm2, %v20036_v35  ;;  %810 = vst.msk [vmem:[#allocation2 + $0x178] sm:$0x3] %vm764_vm2, %v20036_v35 }
  0x56   : > { %808 = vst.msk [vmem:[#allocation2 + $0x168] sm:$0xff] %vm371_vm1, %v20036_v35  ;;  %809 = vst.msk [vmem:[#allocation2 + $0x170] sm:$0xff] %vm371_vm1, %v20036_v35 }
  0x57   : > { %18172 = vmatmul.mubr.msk.f32.gmra.mxu0 %vm371_vm1, %v362_v33  ;;  %811 = vst.msk [vmem:[#allocation2 + $0x180] sm:$0xff] %vm371_vm1, %v20036_v35  ;;  %812 = vst.msk [vmem:[#allocation2 + $0x188] sm:$0xff] %vm371_vm1, %v20036_v35 }
  0x58   : > { %813 = vst.msk [vmem:[#allocation2 + $0x190] sm:$0x3] %vm764_vm2, %v20036_v35  ;;  %816 = vst.msk [vmem:[#allocation2 + $0x1a8] sm:$0x3] %vm764_vm2, %v20036_v35  ;;  %18226 = vmatprep.mubr.msk.f32.mxu0 %vm371_vm1, %v978_v39 }
  0x59   : > { %814 = vst.msk [vmem:[#allocation2 + $0x198] sm:$0xff] %vm371_vm1, %v20036_v35  ;;  %815 = vst.msk [vmem:[#allocation2 + $0x1a0] sm:$0xff] %vm371_vm1, %v20036_v35 }
  0x5a   : > { %4656 = vst.msk [vmem:[#allocation3] sm:$0xff] %vm371_vm1, %v20036_v35  ;;  %4657 = vst.msk [vmem:[#allocation3 + $0x8] sm:$0xff] %vm371_vm1, %v20036_v35 }
  0x5b   : > { %4660 = vst.msk [vmem:[#allocation3 + $0x18] sm:$0xff] %vm371_vm1, %v20036_v35  ;;  %4661 = vst.msk [vmem:[#allocation3 + $0x20] sm:$0xff] %vm371_vm1, %v20036_v35  ;;  %18227 = vmatmul.mubr.msk.f32.vlgmr.msra.gmra.mxu0 %vm371_vm1, %v979_v41 }
  0x5c   : > { %4663 = vst.msk [vmem:[#allocation3 + $0x30] sm:$0xff] %vm371_vm1, %v20036_v35  ;;  %4664 = vst.msk [vmem:[#allocation3 + $0x38] sm:$0xff] %vm371_vm1, %v20036_v35  ;;  %18325 = vmatpush3.msk.msra.mxu0 %vm468_vm0, %v15840_v46 }
  0x5d   : > { %4666 = vst.msk [vmem:[#allocation3 + $0x48] sm:$0xff] %vm371_vm1, %v20036_v35  ;;  %4667 = vst.msk [vmem:[#allocation3 + $0x50] sm:$0xff] %vm371_vm1, %v20036_v35 }
  0x5e   : > { %4669 = vst.msk [vmem:[#allocation3 + $0x60] sm:$0xff] %vm371_vm1, %v20036_v35  ;;  %4670 = vst.msk [vmem:[#allocation3 + $0x68] sm:$0xff] %vm371_vm1, %v20036_v35 }
  0x5f   : > { %4672 = vst.msk [vmem:[#allocation3 + $0x78] sm:$0xff] %vm371_vm1, %v20036_v35  ;;  %4673 = vst.msk [vmem:[#allocation3 + $0x80] sm:$0xff] %vm371_vm1, %v20036_v35 }
  0x60   : > { %4675 = vst.msk [vmem:[#allocation3 + $0x90] sm:$0xff] %vm371_vm1, %v20036_v35  ;;  %4676 = vst.msk [vmem:[#allocation3 + $0x98] sm:$0xff] %vm371_vm1, %v20036_v35 }
  0x61   : > { %4678 = vst.msk [vmem:[#allocation3 + $0xa8] sm:$0xff] %vm371_vm1, %v20036_v35  ;;  %4679 = vst.msk [vmem:[#allocation3 + $0xb0] sm:$0xff] %vm371_vm1, %v20036_v35 }
  0x62   : > { %4681 = vst.msk [vmem:[#allocation3 + $0xc0] sm:$0xff] %vm371_vm1, %v20036_v35  ;;  %4682 = vst.msk [vmem:[#allocation3 + $0xc8] sm:$0xff] %vm371_vm1, %v20036_v35 }
  0x63   : > { %4684 = vst.msk [vmem:[#allocation3 + $0xd8] sm:$0xff] %vm371_vm1, %v20036_v35  ;;  %4685 = vst.msk [vmem:[#allocation3 + $0xe0] sm:$0xff] %vm371_vm1, %v20036_v35 }
  0x64   : > { %4687 = vst.msk [vmem:[#allocation3 + $0xf0] sm:$0xff] %vm371_vm1, %v20036_v35  ;;  %4688 = vst.msk [vmem:[#allocation3 + $0xf8] sm:$0xff] %vm371_vm1, %v20036_v35 }
  0x65   : > { %4690 = vst.msk [vmem:[#allocation3 + $0x108] sm:$0xff] %vm371_vm1, %v20036_v35  ;;  %4691 = vst.msk [vmem:[#allocation3 + $0x110] sm:$0xff] %vm371_vm1, %v20036_v35 }
  0x66   : > { %4693 = vst.msk [vmem:[#allocation3 + $0x120] sm:$0xff] %vm371_vm1, %v20036_v35  ;;  %4694 = vst.msk [vmem:[#allocation3 + $0x128] sm:$0xff] %vm371_vm1, %v20036_v35 }
  0x67   : > { %4696 = vst.msk [vmem:[#allocation3 + $0x138] sm:$0xff] %vm371_vm1, %v20036_v35  ;;  %4697 = vst.msk [vmem:[#allocation3 + $0x140] sm:$0xff] %vm371_vm1, %v20036_v35 }
  0x68   : > { %4699 = vst.msk [vmem:[#allocation3 + $0x150] sm:$0xff] %vm371_vm1, %v20036_v35  ;;  %4700 = vst.msk [vmem:[#allocation3 + $0x158] sm:$0xff] %vm371_vm1, %v20036_v35 }
  0x69   : > { %4702 = vst.msk [vmem:[#allocation3 + $0x168] sm:$0xff] %vm371_vm1, %v20036_v35  ;;  %4703 = vst.msk [vmem:[#allocation3 + $0x170] sm:$0xff] %vm371_vm1, %v20036_v35 }
  0x6a   : > { %4705 = vst.msk [vmem:[#allocation3 + $0x180] sm:$0xff] %vm371_vm1, %v20036_v35  ;;  %4706 = vst.msk [vmem:[#allocation3 + $0x188] sm:$0xff] %vm371_vm1, %v20036_v35 }
  0x6b   : > { %4708 = vst.msk [vmem:[#allocation3 + $0x198] sm:$0xff] %vm371_vm1, %v20036_v35  ;;  %4709 = vst.msk [vmem:[#allocation3 + $0x1a0] sm:$0xff] %vm371_vm1, %v20036_v35 }
  0x6c   : > { %4711 = vst.msk [vmem:[#allocation3 + $0x1b0] sm:$0xff] %vm371_vm1, %v20036_v35  ;;  %4712 = vst.msk [vmem:[#allocation3 + $0x1b8] sm:$0xff] %vm371_vm1, %v20036_v35 }
  0x6d   : > { %4714 = vst.msk [vmem:[#allocation3 + $0x1c8] sm:$0xff] %vm371_vm1, %v20036_v35  ;;  %4715 = vst.msk [vmem:[#allocation3 + $0x1d0] sm:$0xff] %vm371_vm1, %v20036_v35 }
  0x6e   : > { %4665 = vst.msk [vmem:[#allocation3 + $0x40] sm:$0xf] %vm4658_vm4, %v20036_v35  ;;  %4659 = vst.msk [vmem:[#allocation3 + $0x10] sm:$0xf] %vm4658_vm4, %v20036_v35 }
  0x6f   : > { %4662 = vst.msk [vmem:[#allocation3 + $0x28] sm:$0xf] %vm4658_vm4, %v20036_v35  ;;  %4668 = vst.msk [vmem:[#allocation3 + $0x58] sm:$0xf] %vm4658_vm4, %v20036_v35 }
  0x70   : > { %4671 = vst.msk [vmem:[#allocation3 + $0x70] sm:$0xf] %vm4658_vm4, %v20036_v35  ;;  %4674 = vst.msk [vmem:[#allocation3 + $0x88] sm:$0xf] %vm4658_vm4, %v20036_v35 }
  0x71   : > { %4677 = vst.msk [vmem:[#allocation3 + $0xa0] sm:$0xf] %vm4658_vm4, %v20036_v35  ;;  %4680 = vst.msk [vmem:[#allocation3 + $0xb8] sm:$0xf] %vm4658_vm4, %v20036_v35 }
  0x72   : > { %4683 = vst.msk [vmem:[#allocation3 + $0xd0] sm:$0xf] %vm4658_vm4, %v20036_v35  ;;  %4686 = vst.msk [vmem:[#allocation3 + $0xe8] sm:$0xf] %vm4658_vm4, %v20036_v35 }
  0x73   : > { %4689 = vst.msk [vmem:[#allocation3 + $0x100] sm:$0xf] %vm4658_vm4, %v20036_v35  ;;  %4692 = vst.msk [vmem:[#allocation3 + $0x118] sm:$0xf] %vm4658_vm4, %v20036_v35 }
  0x74   : > { %4695 = vst.msk [vmem:[#allocation3 + $0x130] sm:$0xf] %vm4658_vm4, %v20036_v35  ;;  %4698 = vst.msk [vmem:[#allocation3 + $0x148] sm:$0xf] %vm4658_vm4, %v20036_v35 }
  0x75   : > { %4701 = vst.msk [vmem:[#allocation3 + $0x160] sm:$0xf] %vm4658_vm4, %v20036_v35  ;;  %4704 = vst.msk [vmem:[#allocation3 + $0x178] sm:$0xf] %vm4658_vm4, %v20036_v35 }
  0x76   : > { %4707 = vst.msk [vmem:[#allocation3 + $0x190] sm:$0xf] %vm4658_vm4, %v20036_v35  ;;  %4710 = vst.msk [vmem:[#allocation3 + $0x1a8] sm:$0xf] %vm4658_vm4, %v20036_v35 }
  0x77   : > { %4713 = vst.msk [vmem:[#allocation3 + $0x1c0] sm:$0xf] %vm4658_vm4, %v20036_v35  ;;  %4716 = vst.msk [vmem:[#allocation3 + $0x1d8] sm:$0xf] %vm4658_vm4, %v20036_v35  ;;  %v20809_v35 = vld [vmem:[%s25661_s3 + $0x10] sm:$0xf] }
  0x78   : > { %18374 = vmatprep.subr.msk.mxu1 %vm468_vm0, %v20809_v35 }
  0xdb   : > { %v18128_v43 = vpop.f32.mrf.mxu0 }
  0xdc   : > { %v544_v44 = vadd.f32 %v18128_v43, %v20506_v37 }
  0xdd   : > { %v538_v45 = vpop.f32.mrf.mxu0 }
  0xde   : > { %v20525_v47 = vmax.f32 %v544_v44, 0.0  ;;  %v539_v48 = vadd.f32 %v20506_v37, %v538_v45 }
  0xdf   : > { %v18131_v49 = vpop.f32.mrf.mxu0 }
  0xe0   : > { %731 = vst.msk [vmem:[%s20530_s28 + $0x8] sm:$0xff] %vm729_vm3, %v20525_v47  ;;  %v20535_v50 = vmax.f32 %v539_v48, 0.0  ;;  %v554_v51 = vadd.f32 %v18131_v49, %v20506_v37 }
  0xe1   : > { %v548_v52 = vpop.f32.mrf.mxu0 }
  0xe2   : > { %730 = vst.msk [vmem:[%s20530_s28] sm:$0xff] %vm729_vm3, %v20535_v50  ;;  %v20541_v53 = vmax.f32 %v554_v51, 0.0  ;;  %v549_v54 = vadd.f32 %v20506_v37, %v548_v52  ;;  %849 = vrot.lane.b32.xlu0 %v20535_v50, %s20037_s29 }
  0xe3   : > { %v18134_v55 = vpop.f32.mrf.mxu0 }
  0xe4   : > { %733 = vst.msk [vmem:[%s20530_s28 + $0x18] sm:$0xff] %vm729_vm3, %v20541_v53  ;;  %v20549_v56 = vmax.f32 %v549_v54, 0.0  ;;  %v564_v57 = vadd.f32 %v18134_v55, %v20506_v37 }
  0xe5   : > { %v558_v58 = vpop.f32.mrf.mxu0 }
  0xe6   : > { %732 = vst.msk [vmem:[%s20530_s28 + $0x10] sm:$0xff] %vm729_vm3, %v20549_v56  ;;  %v20555_v59 = vmax.f32 %v564_v57, 0.0  ;;  %v559_v60 = vadd.f32 %v20506_v37, %v558_v58  ;;  %853 = vrot.lane.b32.xlu1 %v20549_v56, %s20037_s29  ;;  %851 = vrot.lane.b32.xlu0 %v20525_v47, %s20037_s29 }
  0xe7   : > { %v18137_v61 = vpop.f32.mrf.mxu0 }
  0xe8   : > { %735 = vst.msk [vmem:[%s20530_s28 + $0x28] sm:$0xff] %vm729_vm3, %v20555_v59  ;;  %v20565_v62 = vmax.f32 %v559_v60, 0.0  ;;  %v574_v63 = vadd.f32 %v18137_v61, %v20506_v37 }
  0xe9   : > { %v568_v0 = vpop.f32.mrf.mxu0 }
  0xea   : > { %734 = vst.msk [vmem:[%s20530_s28 + $0x20] sm:$0xff] %vm729_vm3, %v20565_v62  ;;  %v20571_v1 = vmax.f32 %v574_v63, 0.0  ;;  %v569_v2 = vadd.f32 %v20506_v37, %v568_v0  ;;  %855 = vrot.lane.b32.xlu1 %v20541_v53, %s20037_s29  ;;  %857 = vrot.lane.b32.xlu0 %v20565_v62, %s20037_s29 }
  0xeb   : > { %v18140_v3 = vpop.f32.mrf.mxu0 }
  0xec   : > { %737 = vst.msk [vmem:[%s20530_s28 + $0x38] sm:$0xff] %vm729_vm3, %v20571_v1  ;;  %v20581_v4 = vmax.f32 %v569_v2, 0.0  ;;  %v584_v5 = vadd.f32 %v18140_v3, %v20506_v37 }
  0xed   : > { %v578_v6 = vpop.f32.mrf.mxu0 }
  0xee   : > { %736 = vst.msk [vmem:[%s20530_s28 + $0x30] sm:$0xff] %vm729_vm3, %v20581_v4  ;;  %v20587_v7 = vmax.f32 %v584_v5, 0.0  ;;  %v579_v8 = vadd.f32 %v20506_v37, %v578_v6  ;;  %859 = vrot.lane.b32.xlu1 %v20555_v59, %s20037_s29  ;;  %861 = vrot.lane.b32.xlu0 %v20581_v4, %s20037_s29 }
  0xef   : > { %v18143_v9 = vpop.f32.mrf.mxu0 }
  0xf0   : > { %739 = vst.msk [vmem:[%s20530_s28 + $0x48] sm:$0xff] %vm729_vm3, %v20587_v7  ;;  %v20597_v10 = vmax.f32 %v579_v8, 0.0  ;;  %v594_v11 = vadd.f32 %v18143_v9, %v20506_v37 }
  0xf1   : > { %v588_v12 = vpop.f32.mrf.mxu0 }
  0xf2   : > { %738 = vst.msk [vmem:[%s20530_s28 + $0x40] sm:$0xff] %vm729_vm3, %v20597_v10  ;;  %v20603_v13 = vmax.f32 %v594_v11, 0.0  ;;  %v589_v14 = vadd.f32 %v20506_v37, %v588_v12  ;;  %863 = vrot.lane.b32.xlu1 %v20571_v1, %s20037_s29  ;;  %865 = vrot.lane.b32.xlu0 %v20597_v10, %s20037_s29 }
  0xf3   : > { %v18146_v15 = vpop.f32.mrf.mxu0 }
  0xf4   : > { %741 = vst.msk [vmem:[%s20530_s28 + $0x58] sm:$0xff] %vm729_vm3, %v20603_v13  ;;  %v20613_v16 = vmax.f32 %v589_v14, 0.0  ;;  %v604_v17 = vadd.f32 %v18146_v15, %v20506_v37 }
  0xf5   : > { %v598_v18 = vpop.f32.mrf.mxu0 }
  0xf6   : > { %740 = vst.msk [vmem:[%s20530_s28 + $0x50] sm:$0xff] %vm729_vm3, %v20613_v16  ;;  %v20619_v19 = vmax.f32 %v604_v17, 0.0  ;;  %v599_v20 = vadd.f32 %v20506_v37, %v598_v18  ;;  %867 = vrot.lane.b32.xlu1 %v20587_v7, %s20037_s29  ;;  %869 = vrot.lane.b32.xlu0 %v20613_v16, %s20037_s29 }
  0xf7   : > { %v18149_v21 = vpop.f32.mrf.mxu0 }
  0xf8   : > { %743 = vst.msk [vmem:[%s20530_s28 + $0x68] sm:$0xff] %vm729_vm3, %v20619_v19  ;;  %v20629_v22 = vmax.f32 %v599_v20, 0.0  ;;  %v614_v23 = vadd.f32 %v18149_v21, %v20506_v37 }
  0xf9   : > { %v608_v24 = vpop.f32.mrf.mxu0 }
  0xfa   : > { %742 = vst.msk [vmem:[%s20530_s28 + $0x60] sm:$0xff] %vm729_vm3, %v20629_v22  ;;  %v20635_v25 = vmax.f32 %v614_v23, 0.0  ;;  %v609_v26 = vadd.f32 %v20506_v37, %v608_v24  ;;  %871 = vrot.lane.b32.xlu1 %v20603_v13, %s20037_s29  ;;  %873 = vrot.lane.b32.xlu0 %v20629_v22, %s20037_s29 }
  0xfb   : > { %v18152_v27 = vpop.f32.mrf.mxu0 }
  0xfc   : > { %745 = vst.msk [vmem:[%s20530_s28 + $0x78] sm:$0xff] %vm729_vm3, %v20635_v25  ;;  %v20645_v28 = vmax.f32 %v609_v26, 0.0  ;;  %v624_v29 = vadd.f32 %v18152_v27, %v20506_v37 }
  0xfd   : > { %v618_v30 = vpop.f32.mrf.mxu0 }
  0xfe   : > { %744 = vst.msk [vmem:[%s20530_s28 + $0x70] sm:$0xff] %vm729_vm3, %v20645_v28  ;;  %v20651_v31 = vmax.f32 %v624_v29, 0.0  ;;  %v619_v32 = vadd.f32 %v20506_v37, %v618_v30  ;;  %875 = vrot.lane.b32.xlu1 %v20619_v19, %s20037_s29  ;;  %877 = vrot.lane.b32.xlu0 %v20645_v28, %s20037_s29 }
  0xff   : > { %v18155_v33 = vpop.f32.mrf.mxu0 }
 0x100   : > { %747 = vst.msk [vmem:[%s20530_s28 + $0x88] sm:$0xff] %vm729_vm3, %v20651_v31  ;;  %v20661_v34 = vmax.f32 %v619_v32, 0.0  ;;  %v634_v36 = vadd.f32 %v18155_v33, %v20506_v37 }
 0x101   : > { %v628_v38 = vpop.f32.mrf.mxu0 }
 0x102   : > { %746 = vst.msk [vmem:[%s20530_s28 + $0x80] sm:$0xff] %vm729_vm3, %v20661_v34  ;;  %v20667_v39 = vmax.f32 %v634_v36, 0.0  ;;  %v629_v40 = vadd.f32 %v20506_v37, %v628_v38  ;;  %879 = vrot.lane.b32.xlu1 %v20635_v25, %s20037_s29  ;;  %881 = vrot.lane.b32.xlu0 %v20661_v34, %s20037_s29 }
 0x103   : > { %v18158_v41 = vpop.f32.mrf.mxu0 }
 0x104   : > { %749 = vst.msk [vmem:[%s20530_s28 + $0x98] sm:$0xff] %vm729_vm3, %v20667_v39  ;;  %v20677_v42 = vmax.f32 %v629_v40, 0.0  ;;  %v644_v43 = vadd.f32 %v18158_v41, %v20506_v37 }
 0x105   : > { %v638_v44 = vpop.f32.mrf.mxu0 }
 0x106   : > { %748 = vst.msk [vmem:[%s20530_s28 + $0x90] sm:$0xff] %vm729_vm3, %v20677_v42  ;;  %v20683_v45 = vmax.f32 %v644_v43, 0.0  ;;  %v639_v46 = vadd.f32 %v20506_v37, %v638_v44  ;;  %883 = vrot.lane.b32.xlu1 %v20651_v31, %s20037_s29  ;;  %885 = vrot.lane.b32.xlu0 %v20677_v42, %s20037_s29 }
 0x107   : > { %v18161_v48 = vpop.f32.mrf.mxu0 }
 0x108   : > { %751 = vst.msk [vmem:[%s20530_s28 + $0xa8] sm:$0xff] %vm729_vm3, %v20683_v45  ;;  %v20693_v49 = vmax.f32 %v639_v46, 0.0  ;;  %v654_v51 = vadd.f32 %v18161_v48, %v20506_v37 }
 0x109   : > { %v648_v52 = vpop.f32.mrf.mxu0 }
 0x10a   : > { %750 = vst.msk [vmem:[%s20530_s28 + $0xa0] sm:$0xff] %vm729_vm3, %v20693_v49  ;;  %v20699_v54 = vmax.f32 %v654_v51, 0.0  ;;  %v649_v55 = vadd.f32 %v20506_v37, %v648_v52  ;;  %887 = vrot.lane.b32.xlu1 %v20667_v39, %s20037_s29  ;;  %889 = vrot.lane.b32.xlu0 %v20693_v49, %s20037_s29 }
 0x10b   : > { %v18164_v57 = vpop.f32.mrf.mxu0 }
 0x10c   : > { %753 = vst.msk [vmem:[%s20530_s28 + $0xb8] sm:$0xff] %vm729_vm3, %v20699_v54  ;;  %v20709_v58 = vmax.f32 %v649_v55, 0.0  ;;  %v664_v60 = vadd.f32 %v18164_v57, %v20506_v37 }
 0x10d   : > { %v658_v61 = vpop.f32.mrf.mxu0 }
 0x10e   : > { %752 = vst.msk [vmem:[%s20530_s28 + $0xb0] sm:$0xff] %vm729_vm3, %v20709_v58  ;;  %v20715_v63 = vmax.f32 %v664_v60, 0.0  ;;  %v659_v0 = vadd.f32 %v20506_v37, %v658_v61  ;;  %891 = vrot.lane.b32.xlu1 %v20683_v45, %s20037_s29  ;;  %893 = vrot.lane.b32.xlu0 %v20709_v58, %s20037_s29 }
 0x10f   : > { %v18167_v2 = vpop.f32.mrf.mxu0 }
 0x110   : > { %755 = vst.msk [vmem:[%s20530_s28 + $0xc8] sm:$0xff] %vm729_vm3, %v20715_v63  ;;  %v20725_v3 = vmax.f32 %v659_v0, 0.0  ;;  %v674_v5 = vadd.f32 %v18167_v2, %v20506_v37 }
 0x111   : > { %v668_v6 = vpop.f32.mrf.mxu0 }
 0x112   : > { %754 = vst.msk [vmem:[%s20530_s28 + $0xc0] sm:$0xff] %vm729_vm3, %v20725_v3  ;;  %v20731_v8 = vmax.f32 %v674_v5, 0.0  ;;  %v669_v9 = vadd.f32 %v20506_v37, %v668_v6  ;;  %895 = vrot.lane.b32.xlu1 %v20699_v54, %s20037_s29  ;;  %897 = vrot.lane.b32.xlu0 %v20725_v3, %s20037_s29 }
 0x113   : > { %v18170_v11 = vpop.f32.mrf.mxu0 }
 0x114   : > { %757 = vst.msk [vmem:[%s20530_s28 + $0xd8] sm:$0xff] %vm729_vm3, %v20731_v8  ;;  %v20741_v12 = vmax.f32 %v669_v9, 0.0  ;;  %v684_v14 = vadd.f32 %v18170_v11, %v20506_v37 }
 0x115   : > { %v678_v15 = vpop.f32.mrf.mxu0 }
 0x116   : > { %756 = vst.msk [vmem:[%s20530_s28 + $0xd0] sm:$0xff] %vm729_vm3, %v20741_v12  ;;  %v20747_v17 = vmax.f32 %v684_v14, 0.0  ;;  %v679_v18 = vadd.f32 %v20506_v37, %v678_v15  ;;  %899 = vrot.lane.b32.xlu1 %v20715_v63, %s20037_s29  ;;  %901 = vrot.lane.b32.xlu0 %v20741_v12, %s20037_s29 }
 0x117   : > { %v18173_v20 = vpop.f32.mrf.mxu0 }
 0x118   : > { %759 = vst.msk [vmem:[%s20530_s28 + $0xe8] sm:$0xff] %vm729_vm3, %v20747_v17  ;;  %v725_v21 = vmax.f32 %v679_v18, 0.0  ;;  %v694_v23 = vadd.f32 %v18173_v20, %v20506_v37 }
 0x119   : > { %v688_v24 = vpop.f32.mrf.mxu0 }
 0x11a   : > { %758 = vst.msk [vmem:[%s20530_s28 + $0xe0] sm:$0xff] %vm729_vm3, %v725_v21  ;;  %v20800_v26 = vmax.f32 %v694_v23, 0.0  ;;  %v689_v27 = vadd.f32 %v20506_v37, %v688_v24  ;;  %903 = vrot.lane.b32.xlu1 %v20731_v8, %s20037_s29  ;;  %905 = vrot.lane.b32.xlu0 %v725_v21, %s20037_s29  ;;  %v20824_v37 = vld [vmem:[%s25661_s3 + $0x14] sm:$0xf] }
 0x11b   : > { %18424 = vmatprep.subr.msk.mxu0 %vm468_vm0, %v20824_v37 }
 0x11c   : > { %761 = vst.msk [vmem:[%s20530_s28 + $0xf8] sm:$0xff] %vm729_vm3, %v20800_v26  ;;  %v727_v29 = vmax.f32 %v689_v27, 0.0 }
 0x11e   : > { %760 = vst.msk [vmem:[%s20530_s28 + $0xf0] sm:$0xff] %vm729_vm3, %v727_v29  ;;  %907 = vrot.lane.b32.xlu1 %v20747_v17, %s20037_s29  ;;  %909 = vrot.lane.b32.xlu0 %v727_v29, %s20037_s29 }
 0x122   : > { %911 = vrot.lane.b32.xlu1 %v20800_v26, %s20037_s29  ;;  %4717 = vrot.lane.b32.xlu0 %v20535_v50, %s20038_s23 }
 0x126   : > { %4719 = vrot.lane.b32.xlu1 %v20525_v47, %s20038_s23  ;;  %4721 = vrot.lane.b32.xlu0 %v20549_v56, %s20038_s23 }
 0x12a   : > { %4723 = vrot.lane.b32.xlu1 %v20541_v53, %s20038_s23  ;;  %4725 = vrot.lane.b32.xlu0 %v20565_v62, %s20038_s23 }
 0x12e   : > { %4727 = vrot.lane.b32.xlu1 %v20555_v59, %s20038_s23  ;;  %4729 = vrot.lane.b32.xlu0 %v20581_v4, %s20038_s23 }
 0x132   : > { %4731 = vrot.lane.b32.xlu1 %v20571_v1, %s20038_s23  ;;  %4733 = vrot.lane.b32.xlu0 %v20597_v10, %s20038_s23 }
 0x136   : > { %4735 = vrot.lane.b32.xlu1 %v20587_v7, %s20038_s23  ;;  %4737 = vrot.lane.b32.xlu0 %v20613_v16, %s20038_s23 }
 0x13a   : > { %4739 = vrot.lane.b32.xlu1 %v20603_v13, %s20038_s23  ;;  %4741 = vrot.lane.b32.xlu0 %v20629_v22, %s20038_s23 }
 0x13e   : > { %4743 = vrot.lane.b32.xlu1 %v20619_v19, %s20038_s23  ;;  %4745 = vrot.lane.b32.xlu0 %v20645_v28, %s20038_s23 }
 0x142   : > { %4747 = vrot.lane.b32.xlu1 %v20635_v25, %s20038_s23  ;;  %4749 = vrot.lane.b32.xlu0 %v20661_v34, %s20038_s23 }
 0x146   : > { %4751 = vrot.lane.b32.xlu1 %v20651_v31, %s20038_s23  ;;  %4753 = vrot.lane.b32.xlu0 %v20677_v42, %s20038_s23 }
 0x14a   : > { %4755 = vrot.lane.b32.xlu1 %v20667_v39, %s20038_s23  ;;  %4757 = vrot.lane.b32.xlu0 %v20693_v49, %s20038_s23 }
 0x14e   : > { %4759 = vrot.lane.b32.xlu1 %v20683_v45, %s20038_s23  ;;  %4761 = vrot.lane.b32.xlu0 %v20709_v58, %s20038_s23 }
 0x152   : > { %4763 = vrot.lane.b32.xlu1 %v20699_v54, %s20038_s23  ;;  %4765 = vrot.lane.b32.xlu0 %v20725_v3, %s20038_s23 }
 0x154   : > { %v850_v47 = vpop.permute.xlu0 %849 }
 0x155   : > { %946 = vst.msk [vmem:[#allocation2 + $0x19] sm:$0xff] %vm371_vm1, %v850_v47 }
 0x156   : > { %4767 = vrot.lane.b32.xlu1 %v20715_v63, %s20038_s23  ;;  %4769 = vrot.lane.b32.xlu0 %v20741_v12, %s20038_s23 }
 0x158   : > { %v854_v50 = vpop.permute.xlu1 %853  ;;  %v852_v53 = vpop.permute.xlu0 %851 }
 0x159   : > { %948 = vst.msk [vmem:[#allocation2 + $0x31] sm:$0xff] %vm371_vm1, %v854_v50  ;;  %947 = vst.msk [vmem:[#allocation2 + $0x21] sm:$0xff] %vm371_vm1, %v852_v53 }
 0x15a   : > { %4771 = vrot.lane.b32.xlu1 %v20731_v8, %s20038_s23  ;;  %4773 = vrot.lane.b32.xlu0 %v725_v21, %s20038_s23 }
 0x15c   : > { %v856_v56 = vpop.permute.xlu1 %855  ;;  %v858_v59 = vpop.permute.xlu0 %857  ;;  %v20890_v62 = vld [vmem:[#allocation2 + $0x19] sm:$0xff] }
 0x15d   : > { %v20892_v1 = vld [vmem:[#allocation2 + $0x18] sm:$0xff]  ;;  %949 = vst.msk [vmem:[#allocation2 + $0x39] sm:$0xff] %vm371_vm1, %v856_v56  ;;  %950 = vst.msk [vmem:[#allocation2 + $0x49] sm:$0xff] %vm371_vm1, %v858_v59  ;;  %18179 = vmatprep.mubr.msk.f32.mxu1 %vm371_vm1, %v20890_v62 }
 0x15e   : > { %18229 = vmatprep.mubr.msk.f32.mxu0 %vm371_vm1, %v20892_v1  ;;  %4775 = vrot.lane.b32.xlu1 %v20747_v17, %s20038_s23 }
 0x15f   : > { %4777 = vrot.lane.b32.xlu0 %v727_v29, %s20038_s23 }
 0x160   : > { %v860_v4 = vpop.permute.xlu1 %859  ;;  %v862_v7 = vpop.permute.xlu0 %861  ;;  %v20903_v10 = vld [vmem:[#allocation2 + $0x21] sm:$0xff]  ;;  %v20907_v16 = vld [vmem:[#allocation2 + $0x31] sm:$0xff] }
 0x161   : > { %v20905_v13 = vld [vmem:[#allocation2 + $0x20] sm:$0xff]  ;;  %951 = vst.msk [vmem:[#allocation2 + $0x51] sm:$0xff] %vm371_vm1, %v860_v4  ;;  %952 = vst.msk [vmem:[#allocation2 + $0x61] sm:$0xff] %vm371_vm1, %v862_v7  ;;  %18180 = vmatmul.mubr.msk.f32.gmra.mxu1 %vm371_vm1, %v20903_v10  ;;  %v20915_v19 = vld [vmem:[#allocation2 + $0x30] sm:$0xff] }
 0x162   : > { %18230 = vmatmul.mubr.msk.f32.gmra.mxu0 %vm371_vm1, %v20905_v13  ;;  %4779 = vrot.lane.b32.xlu1 %v20800_v26, %s20038_s23  ;;  %s20041_s23 = smov 24  }
 0x163   : > { %18182 = vmatprep.mubr.msk.f32.mxu1 %vm371_vm1, %v20907_v16  ;;  %18232 = vmatprep.mubr.msk.f32.mxu0 %vm371_vm1, %v20915_v19 }
 0x164   : > { %v864_v22 = vpop.permute.xlu1 %863  ;;  %v866_v25 = vpop.permute.xlu0 %865  ;;  %v20923_v28 = vld [vmem:[#allocation2 + $0x39] sm:$0xff]  ;;  %v20927_v31 = vld [vmem:[#allocation2 + $0x49] sm:$0xff] }
 0x165   : > { %v20925_v30 = vld [vmem:[#allocation2 + $0x38] sm:$0xff]  ;;  %953 = vst.msk [vmem:[#allocation2 + $0x69] sm:$0xff] %vm371_vm1, %v864_v22  ;;  %954 = vst.msk [vmem:[#allocation2 + $0x79] sm:$0xff] %vm371_vm1, %v866_v25  ;;  %18183 = vmatmul.mubr.msk.f32.gmra.mxu1 %vm371_vm1, %v20923_v28  ;;  %v20935_v32 = vld [vmem:[#allocation2 + $0x48] sm:$0xff] }
 0x166   : > { %18233 = vmatmul.mubr.msk.f32.gmra.mxu0 %vm371_vm1, %v20925_v30  ;;  %18185 = vmatprep.mubr.msk.f32.mxu1 %vm371_vm1, %v20927_v31 }
 0x167   : > { %18235 = vmatprep.mubr.msk.f32.mxu0 %vm371_vm1, %v20935_v32 }
 0x168   : > { %v868_v33 = vpop.permute.xlu1 %867  ;;  %v870_v34 = vpop.permute.xlu0 %869  ;;  %v20941_v36 = vld [vmem:[#allocation2 + $0x51] sm:$0xff]  ;;  %v20945_v39 = vld [vmem:[#allocation2 + $0x61] sm:$0xff] }
 0x169   : > { %v20943_v38 = vld [vmem:[#allocation2 + $0x50] sm:$0xff]  ;;  %955 = vst.msk [vmem:[#allocation2 + $0x81] sm:$0xff] %vm371_vm1, %v868_v33  ;;  %956 = vst.msk [vmem:[#allocation2 + $0x91] sm:$0xff] %vm371_vm1, %v870_v34  ;;  %18186 = vmatmul.mubr.msk.f32.gmra.mxu1 %vm371_vm1, %v20941_v36  ;;  %v20953_v40 = vld [vmem:[#allocation2 + $0x60] sm:$0xff] }
 0x16a   : > { %18236 = vmatmul.mubr.msk.f32.gmra.mxu0 %vm371_vm1, %v20943_v38  ;;  %18188 = vmatprep.mubr.msk.f32.mxu1 %vm371_vm1, %v20945_v39 }
 0x16b   : > { %18238 = vmatprep.mubr.msk.f32.mxu0 %vm371_vm1, %v20953_v40 }
 0x16c   : > { %v872_v41 = vpop.permute.xlu1 %871  ;;  %v874_v42 = vpop.permute.xlu0 %873  ;;  %v20959_v43 = vld [vmem:[#allocation2 + $0x69] sm:$0xff]  ;;  %v20963_v45 = vld [vmem:[#allocation2 + $0x79] sm:$0xff] }
 0x16d   : > { %v20961_v44 = vld [vmem:[#allocation2 + $0x68] sm:$0xff]  ;;  %957 = vst.msk [vmem:[#allocation2 + $0x99] sm:$0xff] %vm371_vm1, %v872_v41  ;;  %958 = vst.msk [vmem:[#allocation2 + $0xa9] sm:$0xff] %vm371_vm1, %v874_v42  ;;  %18189 = vmatmul.mubr.msk.f32.gmra.mxu1 %vm371_vm1, %v20959_v43  ;;  %v20971_v46 = vld [vmem:[#allocation2 + $0x78] sm:$0xff] }
 0x16e   : > { %18239 = vmatmul.mubr.msk.f32.gmra.mxu0 %vm371_vm1, %v20961_v44  ;;  %18191 = vmatprep.mubr.msk.f32.mxu1 %vm371_vm1, %v20963_v45 }
 0x16f   : > { %18241 = vmatprep.mubr.msk.f32.mxu0 %vm371_vm1, %v20971_v46 }
 0x170   : > { %v876_v48 = vpop.permute.xlu1 %875  ;;  %v878_v49 = vpop.permute.xlu0 %877  ;;  %v20977_v51 = vld [vmem:[#allocation2 + $0x81] sm:$0xff]  ;;  %v20981_v54 = vld [vmem:[#allocation2 + $0x91] sm:$0xff] }
 0x171   : > { %v20979_v52 = vld [vmem:[#allocation2 + $0x80] sm:$0xff]  ;;  %959 = vst.msk [vmem:[#allocation2 + $0xb1] sm:$0xff] %vm371_vm1, %v876_v48  ;;  %960 = vst.msk [vmem:[#allocation2 + $0xc1] sm:$0xff] %vm371_vm1, %v878_v49  ;;  %18192 = vmatmul.mubr.msk.f32.gmra.mxu1 %vm371_vm1, %v20977_v51  ;;  %v20989_v55 = vld [vmem:[#allocation2 + $0x90] sm:$0xff] }
 0x172   : > { %18242 = vmatmul.mubr.msk.f32.gmra.mxu0 %vm371_vm1, %v20979_v52  ;;  %18194 = vmatprep.mubr.msk.f32.mxu1 %vm371_vm1, %v20981_v54 }
 0x173   : > { %18244 = vmatprep.mubr.msk.f32.mxu0 %vm371_vm1, %v20989_v55 }
 0x174   : > { %v880_v57 = vpop.permute.xlu1 %879  ;;  %v882_v58 = vpop.permute.xlu0 %881  ;;  %v20995_v60 = vld [vmem:[#allocation2 + $0x99] sm:$0xff]  ;;  %v20999_v63 = vld [vmem:[#allocation2 + $0xa9] sm:$0xff] }
 0x175   : > { %v20997_v61 = vld [vmem:[#allocation2 + $0x98] sm:$0xff]  ;;  %961 = vst.msk [vmem:[#allocation2 + $0xc9] sm:$0xff] %vm371_vm1, %v880_v57  ;;  %962 = vst.msk [vmem:[#allocation2 + $0xd9] sm:$0xff] %vm371_vm1, %v882_v58  ;;  %18195 = vmatmul.mubr.msk.f32.gmra.mxu1 %vm371_vm1, %v20995_v60  ;;  %v21007_v0 = vld [vmem:[#allocation2 + $0xa8] sm:$0xff] }
 0x176   : > { %18245 = vmatmul.mubr.msk.f32.gmra.mxu0 %vm371_vm1, %v20997_v61  ;;  %18197 = vmatprep.mubr.msk.f32.mxu1 %vm371_vm1, %v20999_v63 }
 0x177   : > { %18247 = vmatprep.mubr.msk.f32.mxu0 %vm371_vm1, %v21007_v0 }
 0x178   : > { %v884_v2 = vpop.permute.xlu1 %883  ;;  %v886_v3 = vpop.permute.xlu0 %885  ;;  %v21013_v5 = vld [vmem:[#allocation2 + $0xb1] sm:$0xff]  ;;  %v21017_v8 = vld [vmem:[#allocation2 + $0xc1] sm:$0xff] }
 0x179   : > { %v21015_v6 = vld [vmem:[#allocation2 + $0xb0] sm:$0xff]  ;;  %963 = vst.msk [vmem:[#allocation2 + $0xe1] sm:$0xff] %vm371_vm1, %v884_v2  ;;  %964 = vst.msk [vmem:[#allocation2 + $0xf1] sm:$0xff] %vm371_vm1, %v886_v3  ;;  %18198 = vmatmul.mubr.msk.f32.gmra.mxu1 %vm371_vm1, %v21013_v5  ;;  %v21025_v9 = vld [vmem:[#allocation2 + $0xc0] sm:$0xff] }
 0x17a   : > { %18248 = vmatmul.mubr.msk.f32.gmra.mxu0 %vm371_vm1, %v21015_v6  ;;  %18200 = vmatprep.mubr.msk.f32.mxu1 %vm371_vm1, %v21017_v8 }
 0x17b   : > { %18250 = vmatprep.mubr.msk.f32.mxu0 %vm371_vm1, %v21025_v9 }
 0x17c   : > { %v888_v11 = vpop.permute.xlu1 %887  ;;  %v890_v12 = vpop.permute.xlu0 %889  ;;  %v21031_v14 = vld [vmem:[#allocation2 + $0xc9] sm:$0xff]  ;;  %v21035_v17 = vld [vmem:[#allocation2 + $0xd9] sm:$0xff] }
 0x17d   : > { %v21033_v15 = vld [vmem:[#allocation2 + $0xc8] sm:$0xff]  ;;  %965 = vst.msk [vmem:[#allocation2 + $0xf9] sm:$0xff] %vm371_vm1, %v888_v11  ;;  %966 = vst.msk [vmem:[#allocation2 + $0x109] sm:$0xff] %vm371_vm1, %v890_v12  ;;  %18201 = vmatmul.mubr.msk.f32.gmra.mxu1 %vm371_vm1, %v21031_v14  ;;  %v21043_v18 = vld [vmem:[#allocation2 + $0xd8] sm:$0xff] }
 0x17e   : > { %18251 = vmatmul.mubr.msk.f32.gmra.mxu0 %vm371_vm1, %v21033_v15  ;;  %18203 = vmatprep.mubr.msk.f32.mxu1 %vm371_vm1, %v21035_v17 }
 0x17f   : > { %18253 = vmatprep.mubr.msk.f32.mxu0 %vm371_vm1, %v21043_v18 }
 0x180   : > { %v892_v20 = vpop.permute.xlu1 %891  ;;  %v894_v21 = vpop.permute.xlu0 %893  ;;  %v21049_v23 = vld [vmem:[#allocation2 + $0xe1] sm:$0xff]  ;;  %v21053_v26 = vld [vmem:[#allocation2 + $0xf1] sm:$0xff] }
 0x181   : > { %v21051_v24 = vld [vmem:[#allocation2 + $0xe0] sm:$0xff]  ;;  %967 = vst.msk [vmem:[#allocation2 + $0x111] sm:$0xff] %vm371_vm1, %v892_v20  ;;  %968 = vst.msk [vmem:[#allocation2 + $0x121] sm:$0xff] %vm371_vm1, %v894_v21  ;;  %18204 = vmatmul.mubr.msk.f32.gmra.mxu1 %vm371_vm1, %v21049_v23  ;;  %v21061_v27 = vld [vmem:[#allocation2 + $0xf0] sm:$0xff] }
 0x182   : > { %18254 = vmatmul.mubr.msk.f32.gmra.mxu0 %vm371_vm1, %v21051_v24  ;;  %18206 = vmatprep.mubr.msk.f32.mxu1 %vm371_vm1, %v21053_v26 }
 0x183   : > { %18256 = vmatprep.mubr.msk.f32.mxu0 %vm371_vm1, %v21061_v27 }
 0x184   : > { %v896_v29 = vpop.permute.xlu1 %895  ;;  %v898_v47 = vpop.permute.xlu0 %897  ;;  %v21067_v50 = vld [vmem:[#allocation2 + $0xf9] sm:$0xff]  ;;  %v21071_v56 = vld [vmem:[#allocation2 + $0x109] sm:$0xff] }
 0x185   : > { %v21069_v53 = vld [vmem:[#allocation2 + $0xf8] sm:$0xff]  ;;  %969 = vst.msk [vmem:[#allocation2 + $0x129] sm:$0xff] %vm371_vm1, %v896_v29  ;;  %970 = vst.msk [vmem:[#allocation2 + $0x139] sm:$0xff] %vm371_vm1, %v898_v47  ;;  %18207 = vmatmul.mubr.msk.f32.gmra.mxu1 %vm371_vm1, %v21067_v50  ;;  %v21079_v59 = vld [vmem:[#allocation2 + $0x108] sm:$0xff] }
 0x186   : > { %18257 = vmatmul.mubr.msk.f32.gmra.mxu0 %vm371_vm1, %v21069_v53  ;;  %18209 = vmatprep.mubr.msk.f32.mxu1 %vm371_vm1, %v21071_v56 }
 0x187   : > { %18259 = vmatprep.mubr.msk.f32.mxu0 %vm371_vm1, %v21079_v59 }
 0x188   : > { %v900_v4 = vpop.permute.xlu1 %899  ;;  %v902_v7 = vpop.permute.xlu0 %901  ;;  %v21085_v22 = vld [vmem:[#allocation2 + $0x111] sm:$0xff]  ;;  %v21089_v33 = vld [vmem:[#allocation2 + $0x121] sm:$0xff] }
 0x189   : > { %v21087_v25 = vld [vmem:[#allocation2 + $0x110] sm:$0xff]  ;;  %971 = vst.msk [vmem:[#allocation2 + $0x141] sm:$0xff] %vm371_vm1, %v900_v4  ;;  %972 = vst.msk [vmem:[#allocation2 + $0x151] sm:$0xff] %vm371_vm1, %v902_v7  ;;  %18210 = vmatmul.mubr.msk.f32.gmra.mxu1 %vm371_vm1, %v21085_v22  ;;  %v21097_v34 = vld [vmem:[#allocation2 + $0x120] sm:$0xff] }
 0x18a   : > { %18260 = vmatmul.mubr.msk.f32.gmra.mxu0 %vm371_vm1, %v21087_v25  ;;  %18212 = vmatprep.mubr.msk.f32.mxu1 %vm371_vm1, %v21089_v33 }
 0x18b   : > { %18262 = vmatprep.mubr.msk.f32.mxu0 %vm371_vm1, %v21097_v34 }
 0x18c   : > { %v904_v41 = vpop.permute.xlu1 %903  ;;  %v906_v42 = vpop.permute.xlu0 %905  ;;  %v21103_v48 = vld [vmem:[#allocation2 + $0x129] sm:$0xff]  ;;  %v21107_v57 = vld [vmem:[#allocation2 + $0x139] sm:$0xff] }
 0x18d   : > { %v21105_v49 = vld [vmem:[#allocation2 + $0x128] sm:$0xff]  ;;  %973 = vst.msk [vmem:[#allocation2 + $0x159] sm:$0xff] %vm371_vm1, %v904_v41  ;;  %974 = vst.msk [vmem:[#allocation2 + $0x169] sm:$0xff] %vm371_vm1, %v906_v42  ;;  %18213 = vmatmul.mubr.msk.f32.gmra.mxu1 %vm371_vm1, %v21103_v48  ;;  %v21115_v58 = vld [vmem:[#allocation2 + $0x138] sm:$0xff] }
 0x18e   : > { %18263 = vmatmul.mubr.msk.f32.gmra.mxu0 %vm371_vm1, %v21105_v49  ;;  %18215 = vmatprep.mubr.msk.f32.mxu1 %vm371_vm1, %v21107_v57 }
 0x18f   : > { %18265 = vmatprep.mubr.msk.f32.mxu0 %vm371_vm1, %v21115_v58 }
 0x190   : > { %v908_v2 = vpop.permute.xlu1 %907  ;;  %v910_v3 = vpop.permute.xlu0 %909  ;;  %v21121_v11 = vld [vmem:[#allocation2 + $0x141] sm:$0xff]  ;;  %v21125_v20 = vld [vmem:[#allocation2 + $0x151] sm:$0xff] }
 0x191   : > { %25781 = vst [vmem:[#allocation8_spill] sm:$0xff] %v21121_v11  ;;  %v21123_v12 = vld [vmem:[#allocation2 + $0x140] sm:$0xff]  ;;  %25782 = vst [vmem:[#allocation9_spill] sm:$0xff] %v21125_v20  ;;  %18216 = vmatmul.mubr.msk.f32.gmra.mxu1 %vm371_vm1, %v21121_v11  ;;  %v21133_v21 = vld [vmem:[#allocation2 + $0x150] sm:$0xff] }
 0x192   : > { %975 = vst.msk [vmem:[#allocation2 + $0x171] sm:$0xff] %vm371_vm1, %v908_v2  ;;  %976 = vst.msk [vmem:[#allocation2 + $0x181] sm:$0xff] %vm371_vm1, %v910_v3  ;;  %18266 = vmatmul.mubr.msk.f32.gmra.mxu0 %vm371_vm1, %v21123_v12  ;;  %18218 = vmatprep.mubr.msk.f32.mxu1 %vm371_vm1, %v21125_v20  ;;  %v1693_v2 = vld [vmem:[#allocation2 + $0x2] sm:$0xff] }
 0x193   : > { %18268 = vmatprep.mubr.msk.f32.mxu0 %vm371_vm1, %v21133_v21 }
 0x194   : > { %v912_v29 = vpop.permute.xlu1 %911  ;;  %v4718_v47 = vpop.permute.xlu0 %4717  ;;  %v21139_v4 = vld [vmem:[#allocation2 + $0x159] sm:$0xff]  ;;  %v21143_v41 = vld [vmem:[#allocation2 + $0x169] sm:$0xff] }
 0x195   : > { %25783 = vst [vmem:[#allocation10_spill] sm:$0xff] %v21139_v4  ;;  %v21141_v7 = vld [vmem:[#allocation2 + $0x158] sm:$0xff]  ;;  %25784 = vst [vmem:[#allocation11_spill] sm:$0xff] %v21143_v41  ;;  %18219 = vmatmul.mubr.msk.f32.gmra.mxu1 %vm371_vm1, %v21139_v4  ;;  %v21151_v42 = vld [vmem:[#allocation2 + $0x168] sm:$0xff] }
 0x196   : > { %977 = vst.msk [vmem:[#allocation2 + $0x189] sm:$0xff] %vm371_vm1, %v912_v29  ;;  %4814 = vst.msk [vmem:[#allocation3 + $0x32] sm:$0xff] %vm371_vm1, %v4718_v47  ;;  %18269 = vmatmul.mubr.msk.f32.gmra.mxu0 %vm371_vm1, %v21141_v7  ;;  %18221 = vmatprep.mubr.msk.f32.mxu1 %vm371_vm1, %v21143_v41  ;;  %v1694_v41 = vld [vmem:[#allocation2 + $0xa] sm:$0xff] }
 0x197   : > { %18271 = vmatprep.mubr.msk.f32.mxu0 %vm371_vm1, %v21151_v42 }
 0x198   : > { %v4720_v3 = vpop.permute.xlu1 %4719  ;;  %v4722_v20 = vpop.permute.xlu0 %4721 }
 0x199   : > { %v21157_v29 = vld [vmem:[#allocation2 + $0x171] sm:$0xff]  ;;  %4815 = vst.msk [vmem:[#allocation3 + $0x3a] sm:$0xff] %vm371_vm1, %v4720_v3  ;;  %4816 = vst.msk [vmem:[#allocation3 + $0x4a] sm:$0xff] %vm371_vm1, %v4722_v20  ;;  %v21175_v20 = vld [vmem:[#allocation2 + $0x1a] sm:$0xff]  ;;  %v18228_v3 = vpop.f32.mrf.mxu0 }
 0x19a   : > { %25785 = vst [vmem:[#allocation12_spill] sm:$0xff] %v21157_v29  ;;  %v21159_v47 = vld [vmem:[#allocation2 + $0x170] sm:$0xff]  ;;  %18222 = vmatmul.mubr.msk.f32.gmra.mxu1 %vm371_vm1, %v21157_v29  ;;  %v21197_v29 = vld [vmem:[#allocation2 + $0x22] sm:$0xff] }
 0x19b   : > { %18272 = vmatmul.mubr.msk.f32.gmra.mxu0 %vm371_vm1, %v21159_v47  ;;  %18276 = vmatprep.mubr.msk.f32.mxu1 %vm371_vm1, %v1693_v2  ;;  %v21185_v2 = vld [vmem:[%s25661_s3 + $0x1c] sm:$0xf] }
 0x19c   : > { %18326 = vmatprep.mubr.msk.f32.mxu0 %vm371_vm1, %v20892_v1  ;;  %v4724_v4 = vpop.permute.xlu1 %4723  ;;  %v4726_v11 = vpop.permute.xlu0 %4725  ;;  %v21180_v1 = vld [vmem:[%s25661_s3 + $0x18] sm:$0xf] }
 0x19d   : > { %4817 = vst.msk [vmem:[#allocation3 + $0x52] sm:$0xff] %vm371_vm1, %v4724_v4  ;;  %4818 = vst.msk [vmem:[#allocation3 + $0x62] sm:$0xff] %vm371_vm1, %v4726_v11  ;;  %v18178_v4 = vpop.f32.mrf.mxu1 }
 0x19e   : > { %18277 = vmatmul.mubr.msk.f32.vlgmr.msra.gmra.mxu1 %vm371_vm1, %v1694_v41 }
 0x19f   : > { %18327 = vmatmul.mubr.msk.f32.vlgmr.msra.gmra.mxu0 %vm371_vm1, %v20905_v13  ;;  %18375 = vmatpush3.msk.msra.mxu1 %vm468_vm0, %v20809_v35  ;;  %v21191_v13 = vadd.f32 %v18228_v3, %v18178_v4  ;;  %v21209_v35 = vld [vmem:[#allocation2 + $0x32] sm:$0xff]  ;;  %v21215_v4 = vld [vmem:[#allocation2 + $0x3a] sm:$0xff] }
 0x1a0   : > { %18279 = vmatprep.mubr.msk.f32.mxu1 %vm371_vm1, %v21175_v20  ;;  %18329 = vmatprep.mubr.msk.f32.mxu0 %vm371_vm1, %v20915_v19  ;;  %v4728_v11 = vpop.permute.xlu1 %4727  ;;  %v4730_v41 = vpop.permute.xlu0 %4729 }
 0x1a1   : > { %18425 = vmatpush3.msk.msra.mxu0 %vm468_vm0, %v20824_v37  ;;  %18474 = vmatprep.subr.msk.mxu1 %vm468_vm0, %v21180_v1  ;;  %4819 = vst.msk [vmem:[#allocation3 + $0x6a] sm:$0xff] %vm371_vm1, %v4728_v11  ;;  %4820 = vst.msk [vmem:[#allocation3 + $0x7a] sm:$0xff] %vm371_vm1, %v4730_v41  ;;  %v21229_v11 = vld [vmem:[#allocation2 + $0x52] sm:$0xff] }
 0x1a2   : > { %18524 = vmatprep.subr.msk.mxu0 %vm468_vm0, %v21185_v2  ;;  %18280 = vmatmul.mubr.msk.f32.gmra.mxu1 %vm371_vm1, %v21197_v29 }
 0x1a3   : > { %18330 = vmatmul.mubr.msk.f32.gmra.mxu0 %vm371_vm1, %v20925_v30  ;;  %18282 = vmatprep.mubr.msk.f32.mxu1 %vm371_vm1, %v21209_v35  ;;  %v21223_v30 = vld [vmem:[#allocation2 + $0x4a] sm:$0xff] }
 0x1a4   : > { %18332 = vmatprep.mubr.msk.f32.mxu0 %vm371_vm1, %v20935_v32  ;;  %v4732_v37 = vpop.permute.xlu1 %4731  ;;  %v4734_v19 = vpop.permute.xlu0 %4733 }
 0x1a5   : > { %4821 = vst.msk [vmem:[#allocation3 + $0x82] sm:$0xff] %vm371_vm1, %v4732_v37  ;;  %4822 = vst.msk [vmem:[#allocation3 + $0x92] sm:$0xff] %vm371_vm1, %v4734_v19  ;;  %v21243_v37 = vld [vmem:[#allocation2 + $0x6a] sm:$0xff] }
 0x1a6   : > { %18283 = vmatmul.mubr.msk.f32.gmra.mxu1 %vm371_vm1, %v21215_v4 }
 0x1a7   : > { %18333 = vmatmul.mubr.msk.f32.gmra.mxu0 %vm371_vm1, %v20943_v38  ;;  %18285 = vmatprep.mubr.msk.f32.mxu1 %vm371_vm1, %v21223_v30  ;;  %v21237_v38 = vld [vmem:[#allocation2 + $0x62] sm:$0xff] }
 0x1a8   : > { %18335 = vmatprep.mubr.msk.f32.mxu0 %vm371_vm1, %v20953_v40  ;;  %v4736_v32 = vpop.permute.xlu1 %4735  ;;  %v4738_v3 = vpop.permute.xlu0 %4737 }
 0x1a9   : > { %4823 = vst.msk [vmem:[#allocation3 + $0x9a] sm:$0xff] %vm371_vm1, %v4736_v32  ;;  %4824 = vst.msk [vmem:[#allocation3 + $0xaa] sm:$0xff] %vm371_vm1, %v4738_v3  ;;  %v21257_v32 = vld [vmem:[#allocation2 + $0x82] sm:$0xff] }
 0x1aa   : > { %18286 = vmatmul.mubr.msk.f32.gmra.mxu1 %vm371_vm1, %v21229_v11 }
 0x1ab   : > { %18336 = vmatmul.mubr.msk.f32.gmra.mxu0 %vm371_vm1, %v20961_v44  ;;  %18288 = vmatprep.mubr.msk.f32.mxu1 %vm371_vm1, %v21237_v38  ;;  %v21251_v44 = vld [vmem:[#allocation2 + $0x7a] sm:$0xff] }
 0x1ac   : > { %18338 = vmatprep.mubr.msk.f32.mxu0 %vm371_vm1, %v20971_v46  ;;  %v4740_v40 = vpop.permute.xlu1 %4739  ;;  %v4742_v41 = vpop.permute.xlu0 %4741 }
 0x1ad   : > { %4825 = vst.msk [vmem:[#allocation3 + $0xb2] sm:$0xff] %vm371_vm1, %v4740_v40  ;;  %4826 = vst.msk [vmem:[#allocation3 + $0xc2] sm:$0xff] %vm371_vm1, %v4742_v41  ;;  %v21271_v40 = vld [vmem:[#allocation2 + $0x9a] sm:$0xff] }
 0x1ae   : > { %18289 = vmatmul.mubr.msk.f32.gmra.mxu1 %vm371_vm1, %v21243_v37 }
 0x1af   : > { %18339 = vmatmul.mubr.msk.f32.gmra.mxu0 %vm371_vm1, %v20979_v52  ;;  %18291 = vmatprep.mubr.msk.f32.mxu1 %vm371_vm1, %v21251_v44  ;;  %v21265_v52 = vld [vmem:[#allocation2 + $0x92] sm:$0xff] }
 0x1b0   : > { %18341 = vmatprep.mubr.msk.f32.mxu0 %vm371_vm1, %v20989_v55  ;;  %v4744_v46 = vpop.permute.xlu1 %4743  ;;  %v4746_v19 = vpop.permute.xlu0 %4745 }
 0x1b1   : > { %4827 = vst.msk [vmem:[#allocation3 + $0xca] sm:$0xff] %vm371_vm1, %v4744_v46  ;;  %4828 = vst.msk [vmem:[#allocation3 + $0xda] sm:$0xff] %vm371_vm1, %v4746_v19  ;;  %v21285_v46 = vld [vmem:[#allocation2 + $0xb2] sm:$0xff] }
 0x1b2   : > { %18292 = vmatmul.mubr.msk.f32.gmra.mxu1 %vm371_vm1, %v21257_v32 }
 0x1b3   : > { %18342 = vmatmul.mubr.msk.f32.gmra.mxu0 %vm371_vm1, %v20997_v61  ;;  %18294 = vmatprep.mubr.msk.f32.mxu1 %vm371_vm1, %v21265_v52  ;;  %v21279_v61 = vld [vmem:[#allocation2 + $0xaa] sm:$0xff] }
 0x1b4   : > { %18344 = vmatprep.mubr.msk.f32.mxu0 %vm371_vm1, %v21007_v0  ;;  %v4748_v55 = vpop.permute.xlu1 %4747  ;;  %v4750_v3 = vpop.permute.xlu0 %4749 }
 0x1b5   : > { %4829 = vst.msk [vmem:[#allocation3 + $0xe2] sm:$0xff] %vm371_vm1, %v4748_v55  ;;  %4830 = vst.msk [vmem:[#allocation3 + $0xf2] sm:$0xff] %vm371_vm1, %v4750_v3  ;;  %v21299_v55 = vld [vmem:[#allocation2 + $0xca] sm:$0xff] }
 0x1b6   : > { %18295 = vmatmul.mubr.msk.f32.gmra.mxu1 %vm371_vm1, %v21271_v40 }
 0x1b7   : > { %18345 = vmatmul.mubr.msk.f32.gmra.mxu0 %vm371_vm1, %v21015_v6  ;;  %18297 = vmatprep.mubr.msk.f32.mxu1 %vm371_vm1, %v21279_v61  ;;  %v21293_v6 = vld [vmem:[#allocation2 + $0xc2] sm:$0xff] }
 0x1b8   : > { %18347 = vmatprep.mubr.msk.f32.mxu0 %vm371_vm1, %v21025_v9  ;;  %v4752_v0 = vpop.permute.xlu1 %4751  ;;  %v4754_v41 = vpop.permute.xlu0 %4753 }
 0x1b9   : > { %4831 = vst.msk [vmem:[#allocation3 + $0xfa] sm:$0xff] %vm371_vm1, %v4752_v0  ;;  %4832 = vst.msk [vmem:[#allocation3 + $0x10a] sm:$0xff] %vm371_vm1, %v4754_v41  ;;  %v21313_v0 = vld [vmem:[#allocation2 + $0xe2] sm:$0xff] }
 0x1ba   : > { %18298 = vmatmul.mubr.msk.f32.gmra.mxu1 %vm371_vm1, %v21285_v46 }
 0x1bb   : > { %18348 = vmatmul.mubr.msk.f32.gmra.mxu0 %vm371_vm1, %v21033_v15  ;;  %18300 = vmatprep.mubr.msk.f32.mxu1 %vm371_vm1, %v21293_v6  ;;  %v21307_v15 = vld [vmem:[#allocation2 + $0xda] sm:$0xff] }
 0x1bc   : > { %18350 = vmatprep.mubr.msk.f32.mxu0 %vm371_vm1, %v21043_v18  ;;  %v4756_v9 = vpop.permute.xlu1 %4755  ;;  %v4758_v19 = vpop.permute.xlu0 %4757 }
 0x1bd   : > { %4833 = vst.msk [vmem:[#allocation3 + $0x112] sm:$0xff] %vm371_vm1, %v4756_v9  ;;  %4834 = vst.msk [vmem:[#allocation3 + $0x122] sm:$0xff] %vm371_vm1, %v4758_v19  ;;  %v21327_v9 = vld [vmem:[#allocation2 + $0xfa] sm:$0xff] }
 0x1be   : > { %18301 = vmatmul.mubr.msk.f32.gmra.mxu1 %vm371_vm1, %v21299_v55 }
 0x1bf   : > { %18351 = vmatmul.mubr.msk.f32.gmra.mxu0 %vm371_vm1, %v21051_v24  ;;  %18303 = vmatprep.mubr.msk.f32.mxu1 %vm371_vm1, %v21307_v15  ;;  %v21321_v24 = vld [vmem:[#allocation2 + $0xf2] sm:$0xff] }
 0x1c0   : > { %18353 = vmatprep.mubr.msk.f32.mxu0 %vm371_vm1, %v21061_v27  ;;  %v4760_v18 = vpop.permute.xlu1 %4759  ;;  %v4762_v3 = vpop.permute.xlu0 %4761 }
 0x1c1   : > { %4835 = vst.msk [vmem:[#allocation3 + $0x12a] sm:$0xff] %vm371_vm1, %v4760_v18  ;;  %4836 = vst.msk [vmem:[#allocation3 + $0x13a] sm:$0xff] %vm371_vm1, %v4762_v3  ;;  %v21341_v18 = vld [vmem:[#allocation2 + $0x112] sm:$0xff] }
 0x1c2   : > { %18304 = vmatmul.mubr.msk.f32.gmra.mxu1 %vm371_vm1, %v21313_v0 }
 0x1c3   : > { %18354 = vmatmul.mubr.msk.f32.gmra.mxu0 %vm371_vm1, %v21069_v53  ;;  %18306 = vmatprep.mubr.msk.f32.mxu1 %vm371_vm1, %v21321_v24  ;;  %v21335_v53 = vld [vmem:[#allocation2 + $0x10a] sm:$0xff] }
 0x1c4   : > { %18356 = vmatprep.mubr.msk.f32.mxu0 %vm371_vm1, %v21079_v59  ;;  %v4764_v27 = vpop.permute.xlu1 %4763  ;;  %v4766_v41 = vpop.permute.xlu0 %4765 }
 0x1c5   : > { %4837 = vst.msk [vmem:[#allocation3 + $0x142] sm:$0xff] %vm371_vm1, %v4764_v27  ;;  %4838 = vst.msk [vmem:[#allocation3 + $0x152] sm:$0xff] %vm371_vm1, %v4766_v41  ;;  %v21355_v27 = vld [vmem:[#allocation2 + $0x12a] sm:$0xff] }
 0x1c6   : > { %18307 = vmatmul.mubr.msk.f32.gmra.mxu1 %vm371_vm1, %v21327_v9 }
 0x1c7   : > { %18357 = vmatmul.mubr.msk.f32.gmra.mxu0 %vm371_vm1, %v21087_v25  ;;  %18309 = vmatprep.mubr.msk.f32.mxu1 %vm371_vm1, %v21335_v53  ;;  %v21349_v25 = vld [vmem:[#allocation2 + $0x122] sm:$0xff] }
 0x1c8   : > { %18359 = vmatprep.mubr.msk.f32.mxu0 %vm371_vm1, %v21097_v34  ;;  %v4768_v59 = vpop.permute.xlu1 %4767  ;;  %v4770_v19 = vpop.permute.xlu0 %4769 }
 0x1c9   : > { %4839 = vst.msk [vmem:[#allocation3 + $0x15a] sm:$0xff] %vm371_vm1, %v4768_v59  ;;  %4840 = vst.msk [vmem:[#allocation3 + $0x16a] sm:$0xff] %vm371_vm1, %v4770_v19  ;;  %v21369_v59 = vld [vmem:[#allocation2 + $0x142] sm:$0xff] }
 0x1ca   : > { %18310 = vmatmul.mubr.msk.f32.gmra.mxu1 %vm371_vm1, %v21341_v18 }
 0x1cb   : > { %18360 = vmatmul.mubr.msk.f32.gmra.mxu0 %vm371_vm1, %v21105_v49  ;;  %18312 = vmatprep.mubr.msk.f32.mxu1 %vm371_vm1, %v21349_v25  ;;  %v21363_v49 = vld [vmem:[#allocation2 + $0x13a] sm:$0xff] }
 0x1cc   : > { %18362 = vmatprep.mubr.msk.f32.mxu0 %vm371_vm1, %v21115_v58  ;;  %v4772_v34 = vpop.permute.xlu1 %4771  ;;  %v4774_v3 = vpop.permute.xlu0 %4773 }
 0x1cd   : > { %4841 = vst.msk [vmem:[#allocation3 + $0x172] sm:$0xff] %vm371_vm1, %v4772_v34  ;;  %4842 = vst.msk [vmem:[#allocation3 + $0x182] sm:$0xff] %vm371_vm1, %v4774_v3  ;;  %v21385_v34 = vld [vmem:[#allocation2 + $0x15a] sm:$0xff]  ;;  %v21400_v3 = vld [vmem:[#allocation2 + $0x172] sm:$0xff] }
 0x1ce   : > { %18313 = vmatmul.mubr.msk.f32.gmra.mxu1 %vm371_vm1, %v21355_v27 }
 0x1cf   : > { %18363 = vmatmul.mubr.msk.f32.gmra.mxu0 %vm371_vm1, %v21123_v12  ;;  %18315 = vmatprep.mubr.msk.f32.mxu1 %vm371_vm1, %v21363_v49  ;;  %v21377_v12 = vld [vmem:[#allocation2 + $0x152] sm:$0xff] }
 0x1d0   : > { %18365 = vmatprep.mubr.msk.f32.mxu0 %vm371_vm1, %v21133_v21  ;;  %v4776_v58 = vpop.permute.xlu1 %4775  ;;  %v21383_v21 = vld [vmem:[#allocation2 + $0x180] sm:$0xff] }
 0x1d1   : > { %v4778_v41 = vpop.permute.xlu0 %4777  ;;  %4843 = vst.msk [vmem:[#allocation3 + $0x18a] sm:$0xff] %vm371_vm1, %v4776_v58  ;;  %v21422_v58 = vld [vmem:[%s25663_s5 + $0x4] sm:$0xf] }
 0x1d2   : > { %4844 = vst.msk [vmem:[#allocation3 + $0x19a] sm:$0xff] %vm371_vm1, %v4778_v41  ;;  %18316 = vmatmul.mubr.msk.f32.gmra.mxu1 %vm371_vm1, %v21369_v59 }
 0x1d3   : > { %18366 = vmatmul.mubr.msk.f32.gmra.mxu0 %vm371_vm1, %v21141_v7  ;;  %18318 = vmatprep.mubr.msk.f32.mxu1 %vm371_vm1, %v21377_v12  ;;  %v21392_v7 = vld [vmem:[#allocation2 + $0x16a] sm:$0xff] }
 0x1d4   : > { %18368 = vmatprep.mubr.msk.f32.mxu0 %vm371_vm1, %v21151_v42  ;;  %v4780_v19 = vpop.permute.xlu1 %4779  ;;  %v21398_v42 = vld [vmem:[#allocation2 + $0x188] sm:$0xff] }
 0x1d5   : > { %4845 = vst.msk [vmem:[#allocation3 + $0x1a2] sm:$0xff] %vm371_vm1, %v4780_v19 }
 0x1d6   : > { %18319 = vmatmul.mubr.msk.f32.gmra.mxu1 %vm371_vm1, %v21385_v34 }
 0x1d7   : > { %18369 = vmatmul.mubr.msk.f32.gmra.mxu0 %vm371_vm1, %v21159_v47  ;;  %18321 = vmatprep.mubr.msk.f32.mxu1 %vm371_vm1, %v21392_v7  ;;  %v21417_v47 = vld [vmem:[%s25661_s3 + $0x20] sm:$0xf] }
 0x1d8   : > { %18371 = vmatprep.mubr.msk.f32.mxu0 %vm371_vm1, %v21383_v21 }
 0x1da   : > { %18322 = vmatmul.mubr.msk.f32.gmra.mxu1 %vm371_vm1, %v21400_v3 }
 0x1db   : > { %18372 = vmatmul.mubr.msk.f32.gmra.mxu0 %vm371_vm1, %v21398_v42  ;;  %18376 = vmatprep.mubr.msk.f32.mxu1 %vm371_vm1, %v20890_v62  ;;  %v25786_v62 = vld [vmem:[#allocation8_spill] sm:$0xff] }
 0x1dc   : > { %18426 = vmatprep.mubr.msk.f32.mxu0 %vm371_vm1, %v21175_v20 }
 0x1de   : > { %18377 = vmatmul.mubr.msk.f32.vlgmr.msra.gmra.mxu1 %vm371_vm1, %v20903_v10  ;;  %v25787_v10 = vld [vmem:[#allocation9_spill] sm:$0xff] }
 0x1df   : > { %18427 = vmatmul.mubr.msk.f32.vlgmr.msra.gmra.mxu0 %vm371_vm1, %v21197_v29  ;;  %18475 = vmatpush3.msk.msra.mxu1 %vm468_vm0, %v21180_v1 }
 0x1e0   : > { %18379 = vmatprep.mubr.msk.f32.mxu1 %vm371_vm1, %v20907_v16  ;;  %18429 = vmatprep.mubr.msk.f32.mxu0 %vm371_vm1, %v21209_v35  ;;  %v25788_v16 = vld [vmem:[#allocation10_spill] sm:$0xff]  ;;  %v3259_v35 = vld [vmem:[#allocation2 + $0x68] sm:$0xff] }
 0x1e1   : > { %18525 = vmatpush3.msk.msra.mxu0 %vm468_vm0, %v21185_v2  ;;  %18574 = vmatprep.subr.msk.mxu1 %vm468_vm0, %v21417_v47 }
 0x1e2   : > { %18624 = vmatprep.subr.msk.mxu0 %vm468_vm0, %v21422_v58  ;;  %18380 = vmatmul.mubr.msk.f32.gmra.mxu1 %vm371_vm1, %v20923_v28  ;;  %v25789_v28 = vld [vmem:[#allocation11_spill] sm:$0xff] }
 0x1e3   : > { %18430 = vmatmul.mubr.msk.f32.gmra.mxu0 %vm371_vm1, %v21215_v4  ;;  %18382 = vmatprep.mubr.msk.f32.mxu1 %vm371_vm1, %v20927_v31  ;;  %v25790_v31 = vld [vmem:[#allocation12_spill] sm:$0xff]  ;;  %v3649_v4 = vld [vmem:[#allocation2 + $0x69] sm:$0xff] }
 0x1e4   : > { %18432 = vmatprep.mubr.msk.f32.mxu0 %vm371_vm1, %v21223_v30 }
 0x1e6   : > { %18383 = vmatmul.mubr.msk.f32.gmra.mxu1 %vm371_vm1, %v20941_v36  ;;  %v21544_v36 = vld [vmem:[#allocation2 + $0x181] sm:$0xff] }
 0x1e7   : > { %18433 = vmatmul.mubr.msk.f32.gmra.mxu0 %vm371_vm1, %v21229_v11  ;;  %18385 = vmatprep.mubr.msk.f32.mxu1 %vm371_vm1, %v20945_v39  ;;  %v21546_v39 = vld [vmem:[#allocation2 + $0x182] sm:$0xff] }
 0x1e8   : > { %18435 = vmatprep.mubr.msk.f32.mxu0 %vm371_vm1, %v21237_v38  ;;  %v3260_v38 = vld [vmem:[#allocation2 + $0x78] sm:$0xff] }
 0x1ea   : > { %18386 = vmatmul.mubr.msk.f32.gmra.mxu1 %vm371_vm1, %v20959_v43  ;;  %v21552_v43 = vld [vmem:[#allocation2 + $0x189] sm:$0xff] }
 0x1eb   : > { %18436 = vmatmul.mubr.msk.f32.gmra.mxu0 %vm371_vm1, %v21243_v37  ;;  %18388 = vmatprep.mubr.msk.f32.mxu1 %vm371_vm1, %v20963_v45  ;;  %v21554_v45 = vld [vmem:[#allocation2 + $0x18a] sm:$0xff]  ;;  %v3650_v37 = vld [vmem:[#allocation2 + $0x79] sm:$0xff] }
 0x1ec   : > { %18438 = vmatprep.mubr.msk.f32.mxu0 %vm371_vm1, %v21251_v44 }
 0x1ee   : > { %18389 = vmatmul.mubr.msk.f32.gmra.mxu1 %vm371_vm1, %v20977_v51  ;;  %v3254_v51 = vld [vmem:[#allocation2 + $0x30] sm:$0xff] }
 0x1ef   : > { %18439 = vmatmul.mubr.msk.f32.gmra.mxu0 %vm371_vm1, %v21257_v32  ;;  %18391 = vmatprep.mubr.msk.f32.mxu1 %vm371_vm1, %v20981_v54  ;;  %v3644_v54 = vld [vmem:[#allocation2 + $0x31] sm:$0xff] }
 0x1f0   : > { %18441 = vmatprep.mubr.msk.f32.mxu0 %vm371_vm1, %v21265_v52 }
 0x1f2   : > { %18392 = vmatmul.mubr.msk.f32.gmra.mxu1 %vm371_vm1, %v20995_v60  ;;  %v3255_v60 = vld [vmem:[#allocation2 + $0x38] sm:$0xff] }
 0x1f3   : > { %18442 = vmatmul.mubr.msk.f32.gmra.mxu0 %vm371_vm1, %v21271_v40  ;;  %18394 = vmatprep.mubr.msk.f32.mxu1 %vm371_vm1, %v20999_v63  ;;  %v3645_v63 = vld [vmem:[#allocation2 + $0x39] sm:$0xff] }
 0x1f4   : > { %18444 = vmatprep.mubr.msk.f32.mxu0 %vm371_vm1, %v21279_v61  ;;  %v3261_v61 = vld [vmem:[#allocation2 + $0x80] sm:$0xff] }
 0x1f6   : > { %18395 = vmatmul.mubr.msk.f32.gmra.mxu1 %vm371_vm1, %v21013_v5  ;;  %v3256_v5 = vld [vmem:[#allocation2 + $0x48] sm:$0xff] }
 0x1f7   : > { %18445 = vmatmul.mubr.msk.f32.gmra.mxu0 %vm371_vm1, %v21285_v46  ;;  %18397 = vmatprep.mubr.msk.f32.mxu1 %vm371_vm1, %v21017_v8  ;;  %v21567_v8 = vld [vmem:[%s25663_s5] sm:$0xf] }
 0x1f8   : > { %18447 = vmatprep.mubr.msk.f32.mxu0 %vm371_vm1, %v21293_v6  ;;  %v3651_v46 = vld [vmem:[#allocation2 + $0x81] sm:$0xff] }
 0x1fa   : > { %18398 = vmatmul.mubr.msk.f32.gmra.mxu1 %vm371_vm1, %v21031_v14  ;;  %v21572_v14 = vld [vmem:[%s25663_s5 + $0x8] sm:$0xf] }
 0x1fb   : > { %18448 = vmatmul.mubr.msk.f32.gmra.mxu0 %vm371_vm1, %v21299_v55  ;;  %18400 = vmatprep.mubr.msk.f32.mxu1 %vm371_vm1, %v21035_v17  ;;  %v3646_v17 = vld [vmem:[#allocation2 + $0x49] sm:$0xff] }
 0x1fc   : > { %18450 = vmatprep.mubr.msk.f32.mxu0 %vm371_vm1, %v21307_v15  ;;  %v3262_v15 = vld [vmem:[#allocation2 + $0x90] sm:$0xff] }
 0x1fe   : > { %18401 = vmatmul.mubr.msk.f32.gmra.mxu1 %vm371_vm1, %v21049_v23  ;;  %v21577_v23 = vpop.f32.mrf.mxu1 }
 0x1ff   : > { %18451 = vmatmul.mubr.msk.f32.gmra.mxu0 %vm371_vm1, %v21313_v0  ;;  %18403 = vmatprep.mubr.msk.f32.mxu1 %vm371_vm1, %v21053_v26  ;;  %v21579_v26 = vpop.f32.mrf.mxu0  ;;  %v3652_v0 = vld [vmem:[#allocation2 + $0x91] sm:$0xff] }
 0x200   : > { %18453 = vmatprep.mubr.msk.f32.mxu0 %vm371_vm1, %v21321_v24 }
 0x202   : > { %18404 = vmatmul.mubr.msk.f32.gmra.mxu1 %vm371_vm1, %v21067_v50  ;;  %v3257_v50 = vld [vmem:[#allocation2 + $0x50] sm:$0xff] }
 0x203   : > { %18454 = vmatmul.mubr.msk.f32.gmra.mxu0 %vm371_vm1, %v21327_v9  ;;  %18406 = vmatprep.mubr.msk.f32.mxu1 %vm371_vm1, %v21071_v56  ;;  %v3647_v56 = vld [vmem:[#allocation2 + $0x51] sm:$0xff] }
 0x204   : > { %18456 = vmatprep.mubr.msk.f32.mxu0 %vm371_vm1, %v21335_v53 }
 0x206   : > { %18407 = vmatmul.mubr.msk.f32.gmra.mxu1 %vm371_vm1, %v21085_v22 }
 0x207   : > { %18457 = vmatmul.mubr.msk.f32.gmra.mxu0 %vm371_vm1, %v21341_v18  ;;  %18409 = vmatprep.mubr.msk.f32.mxu1 %vm371_vm1, %v21089_v33 }
 0x208   : > { %18459 = vmatprep.mubr.msk.f32.mxu0 %vm371_vm1, %v21349_v25  ;;  %v3263_v25 = vld [vmem:[#allocation2 + $0x98] sm:$0xff] }
 0x20a   : > { %18410 = vmatmul.mubr.msk.f32.gmra.mxu1 %vm371_vm1, %v21103_v48  ;;  %v3258_v48 = vld [vmem:[#allocation2 + $0x60] sm:$0xff] }
 0x20b   : > { %18460 = vmatmul.mubr.msk.f32.gmra.mxu0 %vm371_vm1, %v21355_v27  ;;  %18412 = vmatprep.mubr.msk.f32.mxu1 %vm371_vm1, %v21107_v57  ;;  %v3648_v57 = vld [vmem:[#allocation2 + $0x61] sm:$0xff]  ;;  %v3653_v27 = vld [vmem:[#allocation2 + $0x99] sm:$0xff] }
 0x20c   : > { %18462 = vmatprep.mubr.msk.f32.mxu0 %vm371_vm1, %v21363_v49 }
 0x20e   : > { %18413 = vmatmul.mubr.msk.f32.gmra.mxu1 %vm371_vm1, %v25786_v62 }
 0x20f   : > { %18463 = vmatmul.mubr.msk.f32.gmra.mxu0 %vm371_vm1, %v21369_v59  ;;  %18415 = vmatprep.mubr.msk.f32.mxu1 %vm371_vm1, %v25787_v10  ;;  %v3264_v59 = vld [vmem:[#allocation2 + $0xa8] sm:$0xff] }
 0x210   : > { %18465 = vmatprep.mubr.msk.f32.mxu0 %vm371_vm1, %v21377_v12  ;;  %v3654_v12 = vld [vmem:[#allocation2 + $0xa9] sm:$0xff] }
 0x212   : > { %18416 = vmatmul.mubr.msk.f32.gmra.mxu1 %vm371_vm1, %v25788_v16  ;;  %v3266_v16 = vld [vmem:[#allocation2 + $0xc0] sm:$0xff] }
 0x213   : > { %18466 = vmatmul.mubr.msk.f32.gmra.mxu0 %vm371_vm1, %v21385_v34  ;;  %18418 = vmatprep.mubr.msk.f32.mxu1 %vm371_vm1, %v25789_v28  ;;  %v3656_v28 = vld [vmem:[#allocation2 + $0xc1] sm:$0xff] }
 0x214   : > { %18468 = vmatprep.mubr.msk.f32.mxu0 %vm371_vm1, %v21392_v7 }
 0x216   : > { %18419 = vmatmul.mubr.msk.f32.gmra.mxu1 %vm371_vm1, %v25790_v31 }
 0x217   : > { %18469 = vmatmul.mubr.msk.f32.gmra.mxu0 %vm371_vm1, %v21400_v3  ;;  %18421 = vmatprep.mubr.msk.f32.mxu1 %vm371_vm1, %v21544_v36 }
 0x218   : > { %18471 = vmatprep.mubr.msk.f32.mxu0 %vm371_vm1, %v21546_v39 }
 0x21a   : > { %18422 = vmatmul.mubr.msk.f32.gmra.mxu1 %vm371_vm1, %v21552_v43 }
 0x21b   : > { %18472 = vmatmul.mubr.msk.f32.gmra.mxu0 %vm371_vm1, %v21554_v45  ;;  %18476 = vmatprep.mubr.msk.f32.mxu1 %vm371_vm1, %v3254_v51 }
 0x21c   : > { %18526 = vmatprep.mubr.msk.f32.mxu0 %vm371_vm1, %v3644_v54 }
 0x21e   : > { %18477 = vmatmul.mubr.msk.f32.vlgmr.msra.gmra.mxu1 %vm371_vm1, %v3255_v60 }
 0x21f   : > { %18527 = vmatmul.mubr.msk.f32.vlgmr.msra.gmra.mxu0 %vm371_vm1, %v3645_v63  ;;  %18575 = vmatpush3.msk.msra.mxu1 %vm468_vm0, %v21417_v47  ;;  %v3265_v47 = vld [vmem:[#allocation2 + $0xb0] sm:$0xff]  ;;  %v3267_v63 = vld [vmem:[#allocation2 + $0xc8] sm:$0xff] }
 0x220   : > { %18479 = vmatprep.mubr.msk.f32.mxu1 %vm371_vm1, %v3256_v5  ;;  %18529 = vmatprep.mubr.msk.f32.mxu0 %vm371_vm1, %v3646_v17  ;;  %v3657_v5 = vld [vmem:[#allocation2 + $0xc9] sm:$0xff] }
 0x221   : > { %18625 = vmatpush3.msk.msra.mxu0 %vm468_vm0, %v21422_v58  ;;  %18674 = vmatprep.subr.msk.mxu1 %vm468_vm0, %v21567_v8  ;;  %v18181_v22 = vpop.f32.mrf.mxu1  ;;  %v3655_v58 = vld [vmem:[#allocation2 + $0xb1] sm:$0xff] }
 0x222   : > { %18724 = vmatprep.subr.msk.mxu0 %vm468_vm0, %v21572_v14  ;;  %v18231_v33 = vpop.f32.mrf.mxu0  ;;  %18480 = vmatmul.mubr.msk.f32.gmra.mxu1 %vm371_vm1, %v3257_v50 }
 0x223   : > { %18530 = vmatmul.mubr.msk.f32.gmra.mxu0 %vm371_vm1, %v3647_v56  ;;  %v21590_v29 = vadd.f32 %v18231_v33, %v18181_v22  ;;  %18482 = vmatprep.mubr.msk.f32.mxu1 %vm371_vm1, %v3258_v48  ;;  %v1220_v20 = vpop.f32.mrf.mxu1  ;;  %v3268_v56 = vld [vmem:[#allocation2 + $0xd8] sm:$0xff] }
 0x224   : > { %18532 = vmatprep.mubr.msk.f32.mxu0 %vm371_vm1, %v3648_v57  ;;  %v1544_v1 = vpop.f32.mrf.mxu0  ;;  %v3658_v22 = vld [vmem:[#allocation2 + $0xd9] sm:$0xff] }
 0x225   : > { %v21594_v2 = vadd.f32 %v1544_v1, %v1220_v20  ;;  %v18184_v30 = vpop.f32.mrf.mxu1  ;;  %v3269_v1 = vld [vmem:[#allocation2 + $0xe0] sm:$0xff] }
 0x226   : > { %v18234_v11 = vpop.f32.mrf.mxu0  ;;  %18483 = vmatmul.mubr.msk.f32.gmra.mxu1 %vm371_vm1, %v3259_v35  ;;  %v3659_v35 = vld [vmem:[#allocation2 + $0xe1] sm:$0xff] }
 0x227   : > { %18533 = vmatmul.mubr.msk.f32.gmra.mxu0 %vm371_vm1, %v3649_v4  ;;  %v21598_v44 = vadd.f32 %v18234_v11, %v18184_v30  ;;  %18485 = vmatprep.mubr.msk.f32.mxu1 %vm371_vm1, %v3260_v38  ;;  %v1230_v32 = vpop.f32.mrf.mxu1  ;;  %v3270_v11 = vld [vmem:[#allocation2 + $0xf0] sm:$0xff] }
 0x228   : > { %18535 = vmatprep.mubr.msk.f32.mxu0 %vm371_vm1, %v3650_v37  ;;  %v1554_v52 = vpop.f32.mrf.mxu0  ;;  %v3660_v38 = vld [vmem:[#allocation2 + $0xf1] sm:$0xff] }
 0x229   : > { %v21602_v40 = vadd.f32 %v1554_v52, %v1230_v32  ;;  %v18187_v6 = vpop.f32.mrf.mxu1 }
 0x22a   : > { %v18237_v55 = vpop.f32.mrf.mxu0  ;;  %18486 = vmatmul.mubr.msk.f32.gmra.mxu1 %vm371_vm1, %v3261_v61 }
 0x22b   : > { %18536 = vmatmul.mubr.msk.f32.gmra.mxu0 %vm371_vm1, %v3651_v46  ;;  %v21606_v24 = vadd.f32 %v18237_v55, %v18187_v6  ;;  %18488 = vmatprep.mubr.msk.f32.mxu1 %vm371_vm1, %v3262_v15  ;;  %v1240_v9 = vpop.f32.mrf.mxu1  ;;  %v3271_v46 = vld [vmem:[#allocation2 + $0xf8] sm:$0xff] }
 0x22c   : > { %18538 = vmatprep.mubr.msk.f32.mxu0 %vm371_vm1, %v3652_v0  ;;  %v1564_v53 = vpop.f32.mrf.mxu0  ;;  %v3661_v6 = vld [vmem:[#allocation2 + $0xf9] sm:$0xff]  ;;  %v3272_v0 = vld [vmem:[#allocation2 + $0x108] sm:$0xff] }
 0x22d   : > { %v21610_v18 = vadd.f32 %v1564_v53, %v1240_v9  ;;  %v18190_v49 = vpop.f32.mrf.mxu1  ;;  %v3662_v9 = vld [vmem:[#allocation2 + $0x109] sm:$0xff] }
 0x22e   : > { %v18240_v41 = vpop.f32.mrf.mxu0  ;;  %18489 = vmatmul.mubr.msk.f32.gmra.mxu1 %vm371_vm1, %v3263_v25 }
 0x22f   : > { %18539 = vmatmul.mubr.msk.f32.gmra.mxu0 %vm371_vm1, %v3653_v27  ;;  %v21614_v19 = vadd.f32 %v18240_v41, %v18190_v49  ;;  %18491 = vmatprep.mubr.msk.f32.mxu1 %vm371_vm1, %v3264_v59  ;;  %v1250_v34 = vpop.f32.mrf.mxu1  ;;  %v3273_v41 = vld [vmem:[#allocation2 + $0x110] sm:$0xff] }
 0x230   : > { %18541 = vmatprep.mubr.msk.f32.mxu0 %vm371_vm1, %v3654_v12  ;;  %v1574_v7 = vpop.f32.mrf.mxu0  ;;  %v3663_v59 = vld [vmem:[#allocation2 + $0x111] sm:$0xff] }
 0x231   : > { %v21618_v3 = vadd.f32 %v1574_v7, %v1250_v34  ;;  %v18193_v62 = vpop.f32.mrf.mxu1  ;;  %v3274_v7 = vld [vmem:[#allocation2 + $0x120] sm:$0xff] }
 0x232   : > { %v18243_v10 = vpop.f32.mrf.mxu0  ;;  %18492 = vmatmul.mubr.msk.f32.gmra.mxu1 %vm371_vm1, %v3265_v47  ;;  %v3664_v47 = vld [vmem:[#allocation2 + $0x121] sm:$0xff] }
 0x233   : > { %18542 = vmatmul.mubr.msk.f32.gmra.mxu0 %vm371_vm1, %v3655_v58  ;;  %v21622_v31 = vadd.f32 %v18243_v10, %v18193_v62  ;;  %18494 = vmatprep.mubr.msk.f32.mxu1 %vm371_vm1, %v3266_v16  ;;  %v1260_v51 = vpop.f32.mrf.mxu1 }
 0x234   : > { %18544 = vmatprep.mubr.msk.f32.mxu0 %vm371_vm1, %v3656_v28  ;;  %v1584_v54 = vpop.f32.mrf.mxu0  ;;  %v3275_v28 = vld [vmem:[#allocation2 + $0x128] sm:$0xff] }
 0x235   : > { %v21626_v60 = vadd.f32 %v1584_v54, %v1260_v51  ;;  %v18196_v17 = vpop.f32.mrf.mxu1  ;;  %v3665_v51 = vld [vmem:[#allocation2 + $0x129] sm:$0xff] }
 0x236   : > { %v18246_v50 = vpop.f32.mrf.mxu0  ;;  %18495 = vmatmul.mubr.msk.f32.gmra.mxu1 %vm371_vm1, %v3267_v63 }
 0x237   : > { %18545 = vmatmul.mubr.msk.f32.gmra.mxu0 %vm371_vm1, %v3657_v5  ;;  %v21630_v33 = vadd.f32 %v18246_v50, %v18196_v17  ;;  %18497 = vmatprep.mubr.msk.f32.mxu1 %vm371_vm1, %v3268_v56  ;;  %v1270_v48 = vpop.f32.mrf.mxu1  ;;  %v3276_v5 = vld [vmem:[#allocation2 + $0x138] sm:$0xff] }
 0x238   : > { %18547 = vmatprep.mubr.msk.f32.mxu0 %vm371_vm1, %v3658_v22  ;;  %v1594_v57 = vpop.f32.mrf.mxu0  ;;  %v3666_v17 = vld [vmem:[#allocation2 + $0x139] sm:$0xff] }
 0x239   : > { %v21634_v20 = vadd.f32 %v1594_v57, %v1270_v48  ;;  %v18199_v4 = vpop.f32.mrf.mxu1  ;;  %v3277_v57 = vld [vmem:[#allocation2 + $0x140] sm:$0xff] }
 0x23a   : > { %v18249_v30 = vpop.f32.mrf.mxu0  ;;  %18498 = vmatmul.mubr.msk.f32.gmra.mxu1 %vm371_vm1, %v3269_v1  ;;  %v3667_v1 = vld [vmem:[#allocation2 + $0x141] sm:$0xff] }
 0x23b   : > { %18548 = vmatmul.mubr.msk.f32.gmra.mxu0 %vm371_vm1, %v3659_v35  ;;  %v21638_v37 = vadd.f32 %v18249_v30, %v18199_v4  ;;  %18500 = vmatprep.mubr.msk.f32.mxu1 %vm371_vm1, %v3270_v11  ;;  %v1280_v32 = vpop.f32.mrf.mxu1  ;;  %v3278_v30 = vld [vmem:[#allocation2 + $0x150] sm:$0xff] }
 0x23c   : > { %18550 = vmatprep.mubr.msk.f32.mxu0 %vm371_vm1, %v3660_v38  ;;  %v1604_v52 = vpop.f32.mrf.mxu0  ;;  %v3668_v11 = vld [vmem:[#allocation2 + $0x151] sm:$0xff] }
 0x23d   : > { %v21642_v61 = vadd.f32 %v1604_v52, %v1280_v32  ;;  %v18202_v55 = vpop.f32.mrf.mxu1 }
 0x23e   : > { %v18252_v15 = vpop.f32.mrf.mxu0  ;;  %18501 = vmatmul.mubr.msk.f32.gmra.mxu1 %vm371_vm1, %v3271_v46 }
 0x23f   : > { %18551 = vmatmul.mubr.msk.f32.gmra.mxu0 %vm371_vm1, %v3661_v6  ;;  %v21646_v53 = vadd.f32 %v18252_v15, %v18202_v55  ;;  %18503 = vmatprep.mubr.msk.f32.mxu1 %vm371_vm1, %v3272_v0  ;;  %v1290_v25 = vpop.f32.mrf.mxu1  ;;  %v3279_v6 = vld [vmem:[#allocation2 + $0x158] sm:$0xff] }
 0x240   : > { %18553 = vmatprep.mubr.msk.f32.mxu0 %vm371_vm1, %v3662_v9  ;;  %v1614_v27 = vpop.f32.mrf.mxu0  ;;  %v3669_v55 = vld [vmem:[#allocation2 + $0x159] sm:$0xff]  ;;  %v3280_v9 = vld [vmem:[#allocation2 + $0x168] sm:$0xff] }
 0x241   : > { %v21650_v49 = vadd.f32 %v1614_v27, %v1290_v25  ;;  %v18205_v12 = vpop.f32.mrf.mxu1  ;;  %v3670_v25 = vld [vmem:[#allocation2 + $0x169] sm:$0xff] }
 0x242   : > { %v18255_v34 = vpop.f32.mrf.mxu0  ;;  %18504 = vmatmul.mubr.msk.f32.gmra.mxu1 %vm371_vm1, %v3273_v41 }
 0x243   : > { %18554 = vmatmul.mubr.msk.f32.gmra.mxu0 %vm371_vm1, %v3663_v59  ;;  %v21654_v58 = vadd.f32 %v18255_v34, %v18205_v12  ;;  %18506 = vmatprep.mubr.msk.f32.mxu1 %vm371_vm1, %v3274_v7  ;;  %v1300_v62 = vpop.f32.mrf.mxu1  ;;  %v3281_v34 = vld [vmem:[#allocation2 + $0x170] sm:$0xff] }
 0x244   : > { %18556 = vmatprep.mubr.msk.f32.mxu0 %vm371_vm1, %v3664_v47  ;;  %v1624_v10 = vpop.f32.mrf.mxu0  ;;  %v3671_v7 = vld [vmem:[#allocation2 + $0x171] sm:$0xff] }
 0x245   : > { %v21658_v16 = vadd.f32 %v1624_v10, %v1300_v62  ;;  %v18208_v54 = vpop.f32.mrf.mxu1 }
 0x246   : > { %v18258_v63 = vpop.f32.mrf.mxu0  ;;  %18507 = vmatmul.mubr.msk.f32.gmra.mxu1 %vm371_vm1, %v3275_v28 }
 0x247   : > { %18557 = vmatmul.mubr.msk.f32.gmra.mxu0 %vm371_vm1, %v3665_v51  ;;  %v21662_v50 = vadd.f32 %v18258_v63, %v18208_v54  ;;  %18509 = vmatprep.mubr.msk.f32.mxu1 %vm371_vm1, %v3276_v5  ;;  %v1310_v56 = vpop.f32.mrf.mxu1  ;;  %v3284_v54 = vld [vmem:[#allocation2 + $0x198] sm:$0xff] }
 0x248   : > { %18559 = vmatprep.mubr.msk.f32.mxu0 %vm371_vm1, %v3666_v17  ;;  %v1634_v22 = vpop.f32.mrf.mxu0  ;;  %v3674_v63 = vld [vmem:[#allocation2 + $0x199] sm:$0xff] }
 0x249   : > { %v21666_v48 = vadd.f32 %v1634_v22, %v1310_v56  ;;  %v18211_v35 = vpop.f32.mrf.mxu1 }
 0x24a   : > { %v18261_v4 = vpop.f32.mrf.mxu0  ;;  %18510 = vmatmul.mubr.msk.f32.gmra.mxu1 %vm371_vm1, %v3277_v57 }
 0x24b   : > { %18560 = vmatmul.mubr.msk.f32.gmra.mxu0 %vm371_vm1, %v3667_v1  ;;  %v21670_v38 = vadd.f32 %v18261_v4, %v18211_v35  ;;  %18512 = vmatprep.mubr.msk.f32.mxu1 %vm371_vm1, %v3278_v30  ;;  %v1320_v32 = vpop.f32.mrf.mxu1  ;;  %v4879_v35 = vld [vmem:[#allocation3 + $0x1] sm:$0xff] }
 0x24c   : > { %18562 = vmatprep.mubr.msk.f32.mxu0 %vm371_vm1, %v3668_v11  ;;  %v1644_v52 = vpop.f32.mrf.mxu0 }
 0x24d   : > { %v21674_v46 = vadd.f32 %v1644_v52, %v1320_v32  ;;  %v18214_v15 = vpop.f32.mrf.mxu1  ;;  %v4880_v32 = vld [vmem:[#allocation3 + $0x9] sm:$0xff] }
 0x24e   : > { %v18264_v0 = vpop.f32.mrf.mxu0  ;;  %18513 = vmatmul.mubr.msk.f32.gmra.mxu1 %vm371_vm1, %v3279_v6 }
 0x24f   : > { %18563 = vmatmul.mubr.msk.f32.gmra.mxu0 %vm371_vm1, %v3669_v55  ;;  %v21678_v27 = vadd.f32 %v18264_v0, %v18214_v15  ;;  %18515 = vmatprep.mubr.msk.f32.mxu1 %vm371_vm1, %v3280_v9  ;;  %v1330_v41 = vpop.f32.mrf.mxu1  ;;  %v4035_v15 = vld [vmem:[#allocation2 + $0x3a] sm:$0xff]  ;;  %v4881_v0 = vld [vmem:[#allocation3 + $0x19] sm:$0xff] }
 0x250   : > { %18565 = vmatprep.mubr.msk.f32.mxu0 %vm371_vm1, %v3670_v25  ;;  %v1654_v59 = vpop.f32.mrf.mxu0 }
 0x251   : > { %v21682_v12 = vadd.f32 %v1654_v59, %v1330_v41  ;;  %v18217_v47 = vpop.f32.mrf.mxu1  ;;  %v4036_v41 = vld [vmem:[#allocation2 + $0x4a] sm:$0xff] }
 0x252   : > { %v18267_v62 = vpop.f32.mrf.mxu0  ;;  %18516 = vmatmul.mubr.msk.f32.gmra.mxu1 %vm371_vm1, %v3281_v34  ;;  %v21717_v59 = vld [vmem:[%s25663_s5 + $0xc] sm:$0xf]  ;;  %v21722_v34 = vld [vmem:[%s25663_s5 + $0x10] sm:$0xf] }
 0x253   : > { %18566 = vmatmul.mubr.msk.f32.gmra.mxu0 %vm371_vm1, %v3671_v7  ;;  %v21686_v10 = vadd.f32 %v18267_v62, %v18217_v47  ;;  %18518 = vmatprep.mubr.msk.f32.mxu1 %vm371_vm1, %v21383_v21  ;;  %v1340_v28 = vpop.f32.mrf.mxu1  ;;  %v3285_v21 = vld [vmem:[#allocation2 + $0x1a0] sm:$0xff]  ;;  %v1535_v7 = vadd.f32 %v21579_v26, %v21577_v23  ;;  %v4882_v62 = vld [vmem:[#allocation3 + $0x21] sm:$0xff] }
 0x254   : > { %18568 = vmatprep.mubr.msk.f32.mxu0 %vm371_vm1, %v21544_v36  ;;  %v1664_v51 = vpop.f32.mrf.mxu0  ;;  %v3675_v36 = vld [vmem:[#allocation2 + $0x1a1] sm:$0xff] }
 0x255   : > { %v21692_v5 = vadd.f32 %v1664_v51, %v1340_v28  ;;  %v18220_v17 = vpop.f32.mrf.mxu1  ;;  %v4038_v23 = vld [vmem:[#allocation2 + $0x62] sm:$0xff] }
 0x256   : > { %v18270_v56 = vpop.f32.mrf.mxu0  ;;  %18519 = vmatmul.mubr.msk.f32.gmra.mxu1 %vm371_vm1, %v21398_v42  ;;  %v4034_v42 = vld [vmem:[#allocation2 + $0x32] sm:$0xff] }
 0x257   : > { %18569 = vmatmul.mubr.msk.f32.gmra.mxu0 %vm371_vm1, %v21552_v43  ;;  %v21698_v22 = vadd.f32 %v18270_v56, %v18220_v17  ;;  %18521 = vmatprep.mubr.msk.f32.mxu1 %vm371_vm1, %v3284_v54  ;;  %v1350_v57 = vpop.f32.mrf.mxu1  ;;  %v4037_v17 = vld [vmem:[#allocation2 + $0x52] sm:$0xff] }
 0x258   : > { %18571 = vmatprep.mubr.msk.f32.mxu0 %vm371_vm1, %v3674_v63  ;;  %v1674_v1 = vpop.f32.mrf.mxu0 }
 0x259   : > { %v21702_v4 = vadd.f32 %v1674_v1, %v1350_v57 }
 0x25a   : > { %v18223_v30 = vpop.f32.mrf.mxu1  ;;  %18522 = vmatmul.mubr.msk.f32.gmra.mxu1 %vm371_vm1, %v3285_v21 }
 0x25b   : > { %v18273_v11 = vpop.f32.mrf.mxu0  ;;  %18572 = vmatmul.mubr.msk.f32.gmra.mxu0 %vm371_vm1, %v3675_v36  ;;  %18576 = vmatprep.mubr.msk.f32.mxu1 %vm371_vm1, %v4034_v42 }
 0x25c   : > { %v21706_v43 = vadd.f32 %v18273_v11, %v18223_v30  ;;  %18626 = vmatprep.mubr.msk.f32.mxu0 %vm371_vm1, %v4879_v35  ;;  %v1360_v52 = vpop.f32.mrf.mxu1  ;;  %v4039_v35 = vld [vmem:[#allocation2 + $0x6a] sm:$0xff] }
 0x25d   : > { %v1684_v6 = vpop.f32.mrf.mxu0  ;;  %v4884_v30 = vld [vmem:[#allocation3 + $0x39] sm:$0xff] }
 0x25e   : > { %v21710_v55 = vadd.f32 %v1684_v6, %v1360_v52  ;;  %v18278_v9 = vpop.f32.mrf.mxu1  ;;  %18577 = vmatmul.mubr.msk.f32.vlgmr.msra.gmra.mxu1 %vm371_vm1, %v4035_v15 }
 0x25f   : > { %v18328_v25 = vpop.f32.mrf.mxu0  ;;  %18627 = vmatmul.mubr.msk.f32.vlgmr.msra.gmra.mxu0 %vm371_vm1, %v4880_v32  ;;  %v2052_v47 = vadd.f32 %v18278_v9, %v21191_v13  ;;  %18675 = vmatpush3.msk.msra.mxu1 %vm468_vm0, %v21567_v8  ;;  %v4040_v32 = vld [vmem:[#allocation2 + $0x7a] sm:$0xff] }
 0x260   : > { %18579 = vmatprep.mubr.msk.f32.mxu1 %vm371_vm1, %v4036_v41  ;;  %v1892_v28 = vpop.f32.mrf.mxu1  ;;  %18725 = vmatpush3.msk.msra.mxu0 %vm468_vm0, %v21572_v14  ;;  %v4883_v14 = vld [vmem:[#allocation3 + $0x31] sm:$0xff] }
 0x261   : > { %v2282_v51 = vpop.f32.mrf.mxu0  ;;  %18629 = vmatprep.mubr.msk.f32.mxu0 %vm371_vm1, %v4881_v0  ;;  %v21733_v54 = vadd.f32 %v18328_v25, %v2052_v47  ;;  %v2051_v63 = vadd.f32 %v1892_v28, %v1535_v7  ;;  %18774 = vmatprep.subr.msk.mxu1 %vm468_vm0, %v21717_v59  ;;  %v4041_v25 = vld [vmem:[#allocation2 + $0x82] sm:$0xff] }
 0x262   : > { %18824 = vmatprep.subr.msk.mxu0 %vm468_vm0, %v21722_v34  ;;  %v18281_v13 = vpop.f32.mrf.mxu1  ;;  %18580 = vmatmul.mubr.msk.f32.gmra.mxu1 %vm371_vm1, %v4037_v17  ;;  %v4886_v41 = vld [vmem:[#allocation3 + $0x51] sm:$0xff] }
 0x263   : > { %v18331_v8 = vpop.f32.mrf.mxu0  ;;  %18630 = vmatmul.mubr.msk.f32.gmra.mxu0 %vm371_vm1, %v4882_v62  ;;  %v21741_v26 = vadd.f32 %v2282_v51, %v2051_v63  ;;  %v2054_v56 = vadd.f32 %v18281_v13, %v21590_v29  ;;  %18582 = vmatprep.mubr.msk.f32.mxu1 %vm371_vm1, %v4038_v23  ;;  %v4885_v29 = vld [vmem:[#allocation3 + $0x49] sm:$0xff] }
 0x264   : > { %18632 = vmatprep.mubr.msk.f32.mxu0 %vm371_vm1, %v4883_v14  ;;  %v1902_v21 = vpop.f32.mrf.mxu1  ;;  %v4042_v62 = vld [vmem:[#allocation2 + $0x92] sm:$0xff] }
 0x265   : > { %v2292_v36 = vpop.f32.mrf.mxu0  ;;  %v21746_v57 = vadd.f32 %v18331_v8, %v2054_v56  ;;  %v2053_v1 = vadd.f32 %v1902_v21, %v21594_v2  ;;  %v4043_v8 = vld [vmem:[#allocation2 + $0x9a] sm:$0xff]  ;;  %v4044_v21 = vld [vmem:[#allocation2 + $0xaa] sm:$0xff] }
 0x266   : > { %v18284_v11 = vpop.f32.mrf.mxu1  ;;  %18583 = vmatmul.mubr.msk.f32.gmra.mxu1 %vm371_vm1, %v4039_v35  ;;  %v4888_v23 = vld [vmem:[#allocation3 + $0x69] sm:$0xff] }
 0x267   : > { %v18334_v42 = vpop.f32.mrf.mxu0  ;;  %18633 = vmatmul.mubr.msk.f32.gmra.mxu0 %vm371_vm1, %v4884_v30  ;;  %v21751_v52 = vadd.f32 %v2292_v36, %v2053_v1  ;;  %v2056_v6 = vadd.f32 %v18284_v11, %v21598_v44  ;;  %18585 = vmatprep.mubr.msk.f32.mxu1 %vm371_vm1, %v4040_v32  ;;  %v4887_v44 = vld [vmem:[#allocation3 + $0x61] sm:$0xff] }
 0x268   : > { %18635 = vmatprep.mubr.msk.f32.mxu0 %vm371_vm1, %v4885_v29  ;;  %v1912_v15 = vpop.f32.mrf.mxu1  ;;  %v4890_v32 = vld [vmem:[#allocation3 + $0x81] sm:$0xff] }
 0x269   : > { %v2302_v2 = vpop.f32.mrf.mxu0  ;;  %v21756_v0 = vadd.f32 %v18334_v42, %v2056_v6  ;;  %v2055_v9 = vadd.f32 %v1912_v15, %v21602_v40  ;;  %v4045_v42 = vld [vmem:[#allocation2 + $0xb2] sm:$0xff]  ;;  %v4046_v15 = vld [vmem:[#allocation2 + $0xc2] sm:$0xff] }
 0x26a   : > { %v18287_v7 = vpop.f32.mrf.mxu1  ;;  %18586 = vmatmul.mubr.msk.f32.gmra.mxu1 %vm371_vm1, %v4041_v25 }
 0x26b   : > { %v18337_v47 = vpop.f32.mrf.mxu0  ;;  %18636 = vmatmul.mubr.msk.f32.gmra.mxu0 %vm371_vm1, %v4886_v41  ;;  %v21761_v28 = vadd.f32 %v2302_v2, %v2055_v9  ;;  %v2058_v51 = vadd.f32 %v18287_v7, %v21606_v24  ;;  %18588 = vmatprep.mubr.msk.f32.mxu1 %vm371_vm1, %v4042_v62  ;;  %v4889_v24 = vld [vmem:[#allocation3 + $0x79] sm:$0xff] }
 0x26c   : > { %18638 = vmatprep.mubr.msk.f32.mxu0 %vm371_vm1, %v4887_v44  ;;  %v1922_v63 = vpop.f32.mrf.mxu1  ;;  %v4892_v62 = vld [vmem:[#allocation3 + $0x99] sm:$0xff] }
 0x26d   : > { %v2312_v40 = vpop.f32.mrf.mxu0  ;;  %v21766_v17 = vadd.f32 %v18337_v47, %v2058_v51  ;;  %v2057_v13 = vadd.f32 %v1922_v63, %v21610_v18  ;;  %v4047_v47 = vld [vmem:[#allocation2 + $0xca] sm:$0xff]  ;;  %v4048_v63 = vld [vmem:[#allocation2 + $0xda] sm:$0xff] }
 0x26e   : > { %v18290_v14 = vpop.f32.mrf.mxu1  ;;  %18589 = vmatmul.mubr.msk.f32.gmra.mxu1 %vm371_vm1, %v4043_v8 }
 0x26f   : > { %v18340_v56 = vpop.f32.mrf.mxu0  ;;  %18639 = vmatmul.mubr.msk.f32.gmra.mxu0 %vm371_vm1, %v4888_v23  ;;  %v21771_v36 = vadd.f32 %v2312_v40, %v2057_v13  ;;  %v2060_v1 = vadd.f32 %v18290_v14, %v21614_v19  ;;  %18591 = vmatprep.mubr.msk.f32.mxu1 %vm371_vm1, %v4044_v21  ;;  %v4891_v19 = vld [vmem:[#allocation3 + $0x91] sm:$0xff] }
 0x270   : > { %18641 = vmatprep.mubr.msk.f32.mxu0 %vm371_vm1, %v4889_v24  ;;  %v1932_v35 = vpop.f32.mrf.mxu1  ;;  %v4894_v21 = vld [vmem:[#allocation3 + $0xb1] sm:$0xff] }
 0x271   : > { %v2322_v18 = vpop.f32.mrf.mxu0  ;;  %v21776_v30 = vadd.f32 %v18340_v56, %v2060_v1  ;;  %v2059_v11 = vadd.f32 %v1932_v35, %v21618_v3  ;;  %v4049_v56 = vld [vmem:[#allocation2 + $0xe2] sm:$0xff]  ;;  %v4050_v35 = vld [vmem:[#allocation2 + $0xf2] sm:$0xff] }
 0x272   : > { %v18293_v29 = vpop.f32.mrf.mxu1  ;;  %18592 = vmatmul.mubr.msk.f32.gmra.mxu1 %vm371_vm1, %v4045_v42 }
 0x273   : > { %v18343_v6 = vpop.f32.mrf.mxu0  ;;  %18642 = vmatmul.mubr.msk.f32.gmra.mxu0 %vm371_vm1, %v4890_v32  ;;  %v21781_v2 = vadd.f32 %v2322_v18, %v2059_v11  ;;  %v2062_v9 = vadd.f32 %v18293_v29, %v21622_v31  ;;  %18594 = vmatprep.mubr.msk.f32.mxu1 %vm371_vm1, %v4046_v15  ;;  %v4893_v31 = vld [vmem:[#allocation3 + $0xa9] sm:$0xff] }
 0x274   : > { %18644 = vmatprep.mubr.msk.f32.mxu0 %vm371_vm1, %v4891_v19  ;;  %v1942_v25 = vpop.f32.mrf.mxu1  ;;  %v4896_v15 = vld [vmem:[#allocation3 + $0xc9] sm:$0xff] }
 0x275   : > { %v2332_v3 = vpop.f32.mrf.mxu0  ;;  %v21786_v41 = vadd.f32 %v18343_v6, %v2062_v9  ;;  %v2061_v7 = vadd.f32 %v1942_v25, %v21626_v60  ;;  %v4051_v6 = vld [vmem:[#allocation2 + $0xfa] sm:$0xff]  ;;  %v4052_v25 = vld [vmem:[#allocation2 + $0x10a] sm:$0xff] }
 0x276   : > { %v18296_v44 = vpop.f32.mrf.mxu1  ;;  %18595 = vmatmul.mubr.msk.f32.gmra.mxu1 %vm371_vm1, %v4047_v47 }
 0x277   : > { %v18346_v51 = vpop.f32.mrf.mxu0  ;;  %18645 = vmatmul.mubr.msk.f32.gmra.mxu0 %vm371_vm1, %v4892_v62  ;;  %v21791_v40 = vadd.f32 %v2332_v3, %v2061_v7  ;;  %v2064_v13 = vadd.f32 %v18296_v44, %v21630_v33  ;;  %18597 = vmatprep.mubr.msk.f32.mxu1 %vm371_vm1, %v4048_v63  ;;  %v4895_v33 = vld [vmem:[#allocation3 + $0xc1] sm:$0xff] }
 0x278   : > { %18647 = vmatprep.mubr.msk.f32.mxu0 %vm371_vm1, %v4893_v31  ;;  %v1952_v8 = vpop.f32.mrf.mxu1  ;;  %v4898_v63 = vld [vmem:[#allocation3 + $0xe1] sm:$0xff] }
 0x279   : > { %v2342_v60 = vpop.f32.mrf.mxu0  ;;  %v21796_v23 = vadd.f32 %v18346_v51, %v2064_v13  ;;  %v2063_v14 = vadd.f32 %v1952_v8, %v21634_v20  ;;  %v4053_v51 = vld [vmem:[#allocation2 + $0x112] sm:$0xff]  ;;  %v4054_v8 = vld [vmem:[#allocation2 + $0x122] sm:$0xff] }
 0x27a   : > { %v18299_v24 = vpop.f32.mrf.mxu1  ;;  %18598 = vmatmul.mubr.msk.f32.gmra.mxu1 %vm371_vm1, %v4049_v56 }
 0x27b   : > { %v18349_v1 = vpop.f32.mrf.mxu0  ;;  %18648 = vmatmul.mubr.msk.f32.gmra.mxu0 %vm371_vm1, %v4894_v21  ;;  %v21801_v18 = vadd.f32 %v2342_v60, %v2063_v14  ;;  %v2066_v11 = vadd.f32 %v18299_v24, %v21638_v37  ;;  %18600 = vmatprep.mubr.msk.f32.mxu1 %vm371_vm1, %v4050_v35  ;;  %v4897_v37 = vld [vmem:[#allocation3 + $0xd9] sm:$0xff] }
 0x27c   : > { %18650 = vmatprep.mubr.msk.f32.mxu0 %vm371_vm1, %v4895_v33  ;;  %v1962_v42 = vpop.f32.mrf.mxu1  ;;  %v4900_v35 = vld [vmem:[#allocation3 + $0xf9] sm:$0xff] }
 0x27d   : > { %v2352_v20 = vpop.f32.mrf.mxu0  ;;  %v21806_v32 = vadd.f32 %v18349_v1, %v2066_v11  ;;  %v2065_v29 = vadd.f32 %v1962_v42, %v21642_v61  ;;  %v4055_v1 = vld [vmem:[#allocation2 + $0x12a] sm:$0xff]  ;;  %v4056_v42 = vld [vmem:[#allocation2 + $0x13a] sm:$0xff] }
 0x27e   : > { %v18302_v19 = vpop.f32.mrf.mxu1  ;;  %18601 = vmatmul.mubr.msk.f32.gmra.mxu1 %vm371_vm1, %v4051_v6 }
 0x27f   : > { %v18352_v9 = vpop.f32.mrf.mxu0  ;;  %18651 = vmatmul.mubr.msk.f32.gmra.mxu0 %vm371_vm1, %v4896_v15  ;;  %v21811_v3 = vadd.f32 %v2352_v20, %v2065_v29  ;;  %v2068_v7 = vadd.f32 %v18302_v19, %v21646_v53  ;;  %18603 = vmatprep.mubr.msk.f32.mxu1 %vm371_vm1, %v4052_v25  ;;  %v4899_v53 = vld [vmem:[#allocation3 + $0xf1] sm:$0xff] }
 0x280   : > { %18653 = vmatprep.mubr.msk.f32.mxu0 %vm371_vm1, %v4897_v37  ;;  %v1972_v47 = vpop.f32.mrf.mxu1  ;;  %v4902_v25 = vld [vmem:[#allocation3 + $0x111] sm:$0xff] }
 0x281   : > { %v2362_v61 = vpop.f32.mrf.mxu0  ;;  %v21816_v62 = vadd.f32 %v18352_v9, %v2068_v7  ;;  %v2067_v44 = vadd.f32 %v1972_v47, %v21650_v49  ;;  %v4057_v9 = vld [vmem:[#allocation2 + $0x142] sm:$0xff]  ;;  %v4058_v47 = vld [vmem:[#allocation2 + $0x152] sm:$0xff] }
 0x282   : > { %v18305_v31 = vpop.f32.mrf.mxu1  ;;  %18604 = vmatmul.mubr.msk.f32.gmra.mxu1 %vm371_vm1, %v4053_v51 }
 0x283   : > { %v18355_v13 = vpop.f32.mrf.mxu0  ;;  %18654 = vmatmul.mubr.msk.f32.gmra.mxu0 %vm371_vm1, %v4898_v63  ;;  %v21821_v60 = vadd.f32 %v2362_v61, %v2067_v44  ;;  %v2070_v14 = vadd.f32 %v18305_v31, %v21654_v58  ;;  %18606 = vmatprep.mubr.msk.f32.mxu1 %vm371_vm1, %v4054_v8  ;;  %v4901_v58 = vld [vmem:[#allocation3 + $0x109] sm:$0xff] }
 0x284   : > { %18656 = vmatprep.mubr.msk.f32.mxu0 %vm371_vm1, %v4899_v53  ;;  %v1982_v56 = vpop.f32.mrf.mxu1  ;;  %v4904_v8 = vld [vmem:[#allocation3 + $0x129] sm:$0xff] }
 0x285   : > { %v2372_v49 = vpop.f32.mrf.mxu0  ;;  %v21826_v21 = vadd.f32 %v18355_v13, %v2070_v14  ;;  %v2069_v24 = vadd.f32 %v1982_v56, %v21658_v16  ;;  %v4059_v13 = vld [vmem:[#allocation2 + $0x15a] sm:$0xff]  ;;  %v4060_v56 = vld [vmem:[#allocation2 + $0x16a] sm:$0xff] }
 0x286   : > { %v18308_v33 = vpop.f32.mrf.mxu1  ;;  %18607 = vmatmul.mubr.msk.f32.gmra.mxu1 %vm371_vm1, %v4055_v1 }
 0x287   : > { %v18358_v11 = vpop.f32.mrf.mxu0  ;;  %18657 = vmatmul.mubr.msk.f32.gmra.mxu0 %vm371_vm1, %v4900_v35  ;;  %v21831_v20 = vadd.f32 %v2372_v49, %v2069_v24  ;;  %v2072_v29 = vadd.f32 %v18308_v33, %v21662_v50  ;;  %18609 = vmatprep.mubr.msk.f32.mxu1 %vm371_vm1, %v4056_v42  ;;  %v4903_v50 = vld [vmem:[#allocation3 + $0x121] sm:$0xff] }
 0x288   : > { %18659 = vmatprep.mubr.msk.f32.mxu0 %vm371_vm1, %v4901_v58  ;;  %v1992_v6 = vpop.f32.mrf.mxu1  ;;  %v4906_v42 = vld [vmem:[#allocation3 + $0x141] sm:$0xff] }
 0x289   : > { %v2382_v16 = vpop.f32.mrf.mxu0  ;;  %v21836_v15 = vadd.f32 %v18358_v11, %v2072_v29  ;;  %v2071_v19 = vadd.f32 %v1992_v6, %v21666_v48  ;;  %v4061_v11 = vld [vmem:[#allocation2 + $0x172] sm:$0xff]  ;;  %v4907_v6 = vld [vmem:[#allocation3 + $0x151] sm:$0xff] }
 0x28a   : > { %v18311_v37 = vpop.f32.mrf.mxu1  ;;  %18610 = vmatmul.mubr.msk.f32.gmra.mxu1 %vm371_vm1, %v4057_v9  ;;  %v4064_v9 = vld [vmem:[#allocation2 + $0x19a] sm:$0xff] }
 0x28b   : > { %v18361_v7 = vpop.f32.mrf.mxu0  ;;  %18660 = vmatmul.mubr.msk.f32.gmra.mxu0 %vm371_vm1, %v4902_v25  ;;  %v21841_v61 = vadd.f32 %v2382_v16, %v2071_v19  ;;  %v2074_v44 = vadd.f32 %v18311_v37, %v21670_v38  ;;  %18612 = vmatprep.mubr.msk.f32.mxu1 %vm371_vm1, %v4058_v47  ;;  %v4905_v38 = vld [vmem:[#allocation3 + $0x139] sm:$0xff] }
 0x28c   : > { %18662 = vmatprep.mubr.msk.f32.mxu0 %vm371_vm1, %v4903_v50  ;;  %v2002_v51 = vpop.f32.mrf.mxu1 }
 0x28d   : > { %v2392_v48 = vpop.f32.mrf.mxu0  ;;  %v21846_v63 = vadd.f32 %v18361_v7, %v2074_v44  ;;  %v2073_v31 = vadd.f32 %v2002_v51, %v21674_v46  ;;  %v4908_v7 = vld [vmem:[#allocation3 + $0x159] sm:$0xff] }
 0x28e   : > { %v18314_v53 = vpop.f32.mrf.mxu1  ;;  %18613 = vmatmul.mubr.msk.f32.gmra.mxu1 %vm371_vm1, %v4059_v13  ;;  %v4065_v51 = vld [vmem:[#allocation2 + $0x1a2] sm:$0xff]  ;;  %v5561_v13 = vld [vmem:[#allocation3 + $0x2] sm:$0xff] }
 0x28f   : > { %v18364_v14 = vpop.f32.mrf.mxu0  ;;  %18663 = vmatmul.mubr.msk.f32.gmra.mxu0 %vm371_vm1, %v4904_v8  ;;  %v21851_v49 = vadd.f32 %v2392_v48, %v2073_v31  ;;  %v2076_v24 = vadd.f32 %v18314_v53, %v21678_v27  ;;  %18615 = vmatprep.mubr.msk.f32.mxu1 %vm371_vm1, %v4060_v56  ;;  %v4846_v31 = vld [vmem:[#allocation3] sm:$0xff]  ;;  %v4910_v53 = vld [vmem:[#allocation3 + $0x171] sm:$0xff] }
 0x290   : > { %18665 = vmatprep.mubr.msk.f32.mxu0 %vm371_vm1, %v4905_v38  ;;  %v2012_v1 = vpop.f32.mrf.mxu1 }
 0x291   : > { %v2402_v46 = vpop.f32.mrf.mxu0  ;;  %v21856_v35 = vadd.f32 %v18364_v14, %v2076_v24  ;;  %v2075_v33 = vadd.f32 %v2012_v1, %v21682_v12  ;;  %v4847_v24 = vld [vmem:[#allocation3 + $0x8] sm:$0xff] }
 0x292   : > { %v18317_v58 = vpop.f32.mrf.mxu1  ;;  %18616 = vmatmul.mubr.msk.f32.gmra.mxu1 %vm371_vm1, %v4061_v11  ;;  %v5562_v1 = vld [vmem:[#allocation3 + $0xa] sm:$0xff] }
 0x293   : > { %v18367_v29 = vpop.f32.mrf.mxu0  ;;  %18666 = vmatmul.mubr.msk.f32.gmra.mxu0 %vm371_vm1, %v4906_v42  ;;  %v21861_v27 = vadd.f32 %v2402_v46, %v2075_v33  ;;  %v2078_v16 = vadd.f32 %v18317_v58, %v21686_v10  ;;  %18618 = vmatprep.mubr.msk.f32.mxu1 %vm371_vm1, %v21546_v39  ;;  %v4909_v10 = vld [vmem:[#allocation3 + $0x169] sm:$0xff]  ;;  %v21891_v42 = vld [vmem:[#allocation3 + $0x18] sm:$0xff] }
 0x294   : > { %18668 = vmatprep.mubr.msk.f32.mxu0 %vm371_vm1, %v4907_v6  ;;  %v2022_v19 = vpop.f32.mrf.mxu1  ;;  %v5563_v58 = vld [vmem:[#allocation3 + $0x1a] sm:$0xff] }
 0x295   : > { %v2412_v12 = vpop.f32.mrf.mxu0  ;;  %v21867_v25 = vadd.f32 %v18367_v29, %v2078_v16  ;;  %v2077_v37 = vadd.f32 %v2022_v19, %v21692_v5  ;;  %v21903_v16 = vld [vmem:[%s25663_s5 + $0x18] sm:$0xf] }
 0x296   : > { %v18320_v47 = vpop.f32.mrf.mxu1  ;;  %18619 = vmatmul.mubr.msk.f32.gmra.mxu1 %vm371_vm1, %v21554_v45 }
 0x297   : > { %v18370_v50 = vpop.f32.mrf.mxu0  ;;  %18669 = vmatmul.mubr.msk.f32.gmra.mxu0 %vm371_vm1, %v4908_v7  ;;  %v21873_v44 = vadd.f32 %v2412_v12, %v2077_v37  ;;  %v2080_v39 = vadd.f32 %v18320_v47, %v21698_v22  ;;  %18621 = vmatprep.mubr.msk.f32.mxu1 %vm371_vm1, %v4064_v9  ;;  %v21912_v12 = vld [vmem:[#allocation3 + $0x20] sm:$0xff] }
 0x298   : > { %18671 = vmatprep.mubr.msk.f32.mxu0 %vm371_vm1, %v4909_v10  ;;  %v2032_v48 = vpop.f32.mrf.mxu1  ;;  %v5564_v9 = vld [vmem:[#allocation3 + $0x22] sm:$0xff]  ;;  %v5565_v10 = vld [vmem:[#allocation3 + $0x32] sm:$0xff] }
 0x299   : > { %v2422_v5 = vpop.f32.mrf.mxu0  ;;  %v21878_v8 = vadd.f32 %v18370_v50, %v2080_v39  ;;  %v2079_v45 = vadd.f32 %v2032_v48, %v21702_v4  ;;  %v21927_v50 = vld [vmem:[#allocation3 + $0x30] sm:$0xff] }
 0x29a   : > { %v18323_v14 = vpop.f32.mrf.mxu1  ;;  %18622 = vmatmul.mubr.msk.f32.gmra.mxu1 %vm371_vm1, %v4065_v51 }
 0x29b   : > { %v18373_v56 = vpop.f32.mrf.mxu0  ;;  %18672 = vmatmul.mubr.msk.f32.gmra.mxu0 %vm371_vm1, %v4910_v53  ;;  %v21883_v22 = vadd.f32 %v2422_v5, %v2079_v45  ;;  %v2082_v38 = vadd.f32 %v18323_v14, %v21706_v43  ;;  %18676 = vmatprep.mubr.msk.f32.mxu1 %vm371_vm1, %v4846_v31  ;;  %v21898_v43 = vld [vmem:[%s25663_s5 + $0x14] sm:$0xf]  ;;  %v5566_v45 = vld [vmem:[#allocation3 + $0x3a] sm:$0xff] }
 0x29c   : > { %18726 = vmatprep.mubr.msk.f32.mxu0 %vm371_vm1, %v5561_v13  ;;  %v2042_v46 = vpop.f32.mrf.mxu1  ;;  %v21938_v13 = vld [vmem:[#allocation3 + $0x38] sm:$0xff] }
 0x29d   : > { %v2432_v33 = vpop.f32.mrf.mxu0  ;;  %v21888_v4 = vadd.f32 %v18373_v56, %v2082_v38  ;;  %v2081_v11 = vadd.f32 %v2042_v46, %v21710_v55  ;;  %v5567_v56 = vld [vmem:[#allocation3 + $0x4a] sm:$0xff] }
 0x29e   : > { %v18378_v29 = vpop.f32.mrf.mxu1  ;;  %18677 = vmatmul.mubr.msk.f32.vlgmr.msra.gmra.mxu1 %vm371_vm1, %v4847_v24 }
 0x29f   : > { %v18428_v6 = vpop.f32.mrf.mxu0  ;;  %18727 = vmatmul.mubr.msk.f32.vlgmr.msra.gmra.mxu0 %vm371_vm1, %v5562_v1  ;;  %v21905_v55 = vadd.f32 %v2432_v33, %v2081_v11  ;;  %v2832_v19 = vadd.f32 %v18378_v29, %v21733_v54  ;;  %18775 = vmatpush3.msk.msra.mxu1 %vm468_vm0, %v21717_v59  ;;  %v4853_v11 = vld [vmem:[#allocation3 + $0x50] sm:$0xff] }
 0x2a0   : > { %18825 = vmatpush3.msk.msra.mxu0 %vm468_vm0, %v21722_v34  ;;  %v2672_v37 = vpop.f32.mrf.mxu1  ;;  %18679 = vmatprep.mubr.msk.f32.mxu1 %vm371_vm1, %v21891_v42 }
 0x2a1   : > { %v3062_v7 = vpop.f32.mrf.mxu0  ;;  %18729 = vmatprep.mubr.msk.f32.mxu0 %vm371_vm1, %v5563_v58  ;;  %v21917_v47 = vadd.f32 %v18428_v6, %v2832_v19  ;;  %v2831_v54 = vadd.f32 %v2672_v37, %v21741_v26  ;;  %18874 = vmatprep.subr.msk.mxu1 %vm468_vm0, %v21898_v43  ;;  %v5568_v58 = vld [vmem:[#allocation3 + $0x52] sm:$0xff]  ;;  %v5569_v19 = vld [vmem:[#allocation3 + $0x62] sm:$0xff] }
 0x2a2   : > { %18924 = vmatprep.subr.msk.mxu0 %vm468_vm0, %v21903_v16  ;;  %v18381_v59 = vpop.f32.mrf.mxu1  ;;  %18680 = vmatmul.mubr.msk.f32.gmra.mxu1 %vm371_vm1, %v21912_v12 }
 0x2a3   : > { %v18431_v34 = vpop.f32.mrf.mxu0  ;;  %18730 = vmatmul.mubr.msk.f32.gmra.mxu0 %vm371_vm1, %v5564_v9  ;;  %v21929_v39 = vadd.f32 %v3062_v7, %v2831_v54  ;;  %v2834_v26 = vadd.f32 %v18381_v59, %v21746_v57  ;;  %18682 = vmatprep.mubr.msk.f32.mxu1 %vm371_vm1, %v21927_v50  ;;  %v21943_v57 = vld [vmem:[#allocation3 + $0x48] sm:$0xff] }
 0x2a4   : > { %18732 = vmatprep.mubr.msk.f32.mxu0 %vm371_vm1, %v5565_v10  ;;  %v2682_v51 = vpop.f32.mrf.mxu1  ;;  %v5570_v10 = vld [vmem:[#allocation3 + $0x6a] sm:$0xff] }
 0x2a5   : > { %v3072_v48 = vpop.f32.mrf.mxu0  ;;  %v21935_v5 = vadd.f32 %v18431_v34, %v2834_v26  ;;  %v2833_v31 = vadd.f32 %v2682_v51, %v21751_v52  ;;  %v4855_v34 = vld [vmem:[#allocation3 + $0x68] sm:$0xff] }
 0x2a6   : > { %v18384_v53 = vpop.f32.mrf.mxu1  ;;  %18683 = vmatmul.mubr.msk.f32.gmra.mxu1 %vm371_vm1, %v21938_v13 }
 0x2a7   : > { %v18434_v14 = vpop.f32.mrf.mxu0  ;;  %18733 = vmatmul.mubr.msk.f32.gmra.mxu0 %vm371_vm1, %v5566_v45  ;;  %v21945_v38 = vadd.f32 %v3072_v48, %v2833_v31  ;;  %v2836_v24 = vadd.f32 %v18384_v53, %v21756_v0  ;;  %18685 = vmatprep.mubr.msk.f32.mxu1 %vm371_vm1, %v21943_v57  ;;  %v4854_v0 = vld [vmem:[#allocation3 + $0x60] sm:$0xff]  ;;  %v4856_v48 = vld [vmem:[#allocation3 + $0x78] sm:$0xff] }
 0x2a8   : > { %18735 = vmatprep.mubr.msk.f32.mxu0 %vm371_vm1, %v5567_v56  ;;  %v2692_v52 = vpop.f32.mrf.mxu1 }
 0x2a9   : > { %v3082_v1 = vpop.f32.mrf.mxu0  ;;  %v21951_v46 = vadd.f32 %v18434_v14, %v2836_v24  ;;  %v2835_v33 = vadd.f32 %v2692_v52, %v21761_v28  ;;  %v4857_v24 = vld [vmem:[#allocation3 + $0x80] sm:$0xff] }
 0x2aa   : > { %v18387_v29 = vpop.f32.mrf.mxu1  ;;  %18686 = vmatmul.mubr.msk.f32.gmra.mxu1 %vm371_vm1, %v4853_v11  ;;  %v5572_v52 = vld [vmem:[#allocation3 + $0x82] sm:$0xff]  ;;  %v4858_v11 = vld [vmem:[#allocation3 + $0x90] sm:$0xff] }
 0x2ab   : > { %v18437_v6 = vpop.f32.mrf.mxu0  ;;  %18736 = vmatmul.mubr.msk.f32.gmra.mxu0 %vm371_vm1, %v5568_v58  ;;  %v21956_v9 = vadd.f32 %v3082_v1, %v2835_v33  ;;  %v2838_v37 = vadd.f32 %v18387_v29, %v21766_v17  ;;  %18688 = vmatprep.mubr.msk.f32.mxu1 %vm371_vm1, %v4854_v0  ;;  %v5571_v17 = vld [vmem:[#allocation3 + $0x7a] sm:$0xff] }
 0x2ac   : > { %18738 = vmatprep.mubr.msk.f32.mxu0 %vm371_vm1, %v5569_v19  ;;  %v2702_v7 = vpop.f32.mrf.mxu1 }
 0x2ad   : > { %v3092_v28 = vpop.f32.mrf.mxu0  ;;  %v21961_v54 = vadd.f32 %v18437_v6, %v2838_v37  ;;  %v2837_v59 = vadd.f32 %v2702_v7, %v21771_v36  ;;  %v4859_v37 = vld [vmem:[#allocation3 + $0x98] sm:$0xff] }
 0x2ae   : > { %v18390_v26 = vpop.f32.mrf.mxu1  ;;  %18689 = vmatmul.mubr.msk.f32.gmra.mxu1 %vm371_vm1, %v4855_v34  ;;  %v5574_v7 = vld [vmem:[#allocation3 + $0x9a] sm:$0xff]  ;;  %v4860_v34 = vld [vmem:[#allocation3 + $0xa8] sm:$0xff] }
 0x2af   : > { %v18440_v51 = vpop.f32.mrf.mxu0  ;;  %18739 = vmatmul.mubr.msk.f32.gmra.mxu0 %vm371_vm1, %v5570_v10  ;;  %v21966_v31 = vadd.f32 %v3092_v28, %v2837_v59  ;;  %v2840_v45 = vadd.f32 %v18390_v26, %v21776_v30  ;;  %18691 = vmatprep.mubr.msk.f32.mxu1 %vm371_vm1, %v4856_v48  ;;  %v5573_v30 = vld [vmem:[#allocation3 + $0x92] sm:$0xff] }
 0x2b0   : > { %18741 = vmatprep.mubr.msk.f32.mxu0 %vm371_vm1, %v5571_v17  ;;  %v2712_v53 = vpop.f32.mrf.mxu1 }
 0x2b1   : > { %v3102_v36 = vpop.f32.mrf.mxu0  ;;  %v21971_v14 = vadd.f32 %v18440_v51, %v2840_v45  ;;  %v2839_v56 = vadd.f32 %v2712_v53, %v21781_v2  ;;  %v4861_v45 = vld [vmem:[#allocation3 + $0xb0] sm:$0xff] }
 0x2b2   : > { %v18393_v1 = vpop.f32.mrf.mxu1  ;;  %18692 = vmatmul.mubr.msk.f32.gmra.mxu1 %vm371_vm1, %v4857_v24  ;;  %v5576_v53 = vld [vmem:[#allocation3 + $0xb2] sm:$0xff]  ;;  %v4862_v24 = vld [vmem:[#allocation3 + $0xc0] sm:$0xff] }
 0x2b3   : > { %v18443_v33 = vpop.f32.mrf.mxu0  ;;  %18742 = vmatmul.mubr.msk.f32.gmra.mxu0 %vm371_vm1, %v5572_v52  ;;  %v21976_v58 = vadd.f32 %v3102_v36, %v2839_v56  ;;  %v2842_v29 = vadd.f32 %v18393_v1, %v21786_v41  ;;  %18694 = vmatprep.mubr.msk.f32.mxu1 %vm371_vm1, %v4858_v11  ;;  %v5575_v41 = vld [vmem:[#allocation3 + $0xaa] sm:$0xff] }
 0x2b4   : > { %18744 = vmatprep.mubr.msk.f32.mxu0 %vm371_vm1, %v5573_v30  ;;  %v2722_v6 = vpop.f32.mrf.mxu1 }
 0x2b5   : > { %v3112_v2 = vpop.f32.mrf.mxu0  ;;  %v21981_v0 = vadd.f32 %v18443_v33, %v2842_v29  ;;  %v2841_v19 = vadd.f32 %v2722_v6, %v21791_v40  ;;  %v4863_v29 = vld [vmem:[#allocation3 + $0xc8] sm:$0xff] }
 0x2b6   : > { %v18396_v28 = vpop.f32.mrf.mxu1  ;;  %18695 = vmatmul.mubr.msk.f32.gmra.mxu1 %vm371_vm1, %v4859_v37  ;;  %v5578_v6 = vld [vmem:[#allocation3 + $0xca] sm:$0xff]  ;;  %v4864_v37 = vld [vmem:[#allocation3 + $0xd8] sm:$0xff] }
 0x2b7   : > { %v18446_v59 = vpop.f32.mrf.mxu0  ;;  %18745 = vmatmul.mubr.msk.f32.gmra.mxu0 %vm371_vm1, %v5574_v7  ;;  %v21986_v10 = vadd.f32 %v3112_v2, %v2841_v19  ;;  %v2844_v26 = vadd.f32 %v18396_v28, %v21796_v23  ;;  %18697 = vmatprep.mubr.msk.f32.mxu1 %vm371_vm1, %v4860_v34  ;;  %v5577_v23 = vld [vmem:[#allocation3 + $0xc2] sm:$0xff] }
 0x2b8   : > { %18747 = vmatprep.mubr.msk.f32.mxu0 %vm371_vm1, %v5575_v41  ;;  %v2732_v51 = vpop.f32.mrf.mxu1 }
 0x2b9   : > { %v3122_v40 = vpop.f32.mrf.mxu0  ;;  %v21991_v48 = vadd.f32 %v18446_v59, %v2844_v26  ;;  %v2843_v17 = vadd.f32 %v2732_v51, %v21801_v18  ;;  %v4865_v26 = vld [vmem:[#allocation3 + $0xe0] sm:$0xff] }
 0x2ba   : > { %v18399_v36 = vpop.f32.mrf.mxu1  ;;  %18698 = vmatmul.mubr.msk.f32.gmra.mxu1 %vm371_vm1, %v4861_v45  ;;  %v5580_v51 = vld [vmem:[#allocation3 + $0xe2] sm:$0xff]  ;;  %v4866_v45 = vld [vmem:[#allocation3 + $0xf0] sm:$0xff] }
 0x2bb   : > { %v18449_v56 = vpop.f32.mrf.mxu0  ;;  %18748 = vmatmul.mubr.msk.f32.gmra.mxu0 %vm371_vm1, %v5576_v53  ;;  %v21996_v52 = vadd.f32 %v3122_v40, %v2843_v17  ;;  %v2846_v1 = vadd.f32 %v18399_v36, %v21806_v32  ;;  %18700 = vmatprep.mubr.msk.f32.mxu1 %vm371_vm1, %v4862_v24  ;;  %v5579_v32 = vld [vmem:[#allocation3 + $0xda] sm:$0xff] }
 0x2bc   : > { %18750 = vmatprep.mubr.msk.f32.mxu0 %vm371_vm1, %v5577_v23  ;;  %v2742_v33 = vpop.f32.mrf.mxu1 }
 0x2bd   : > { %v3132_v18 = vpop.f32.mrf.mxu0  ;;  %v22001_v11 = vadd.f32 %v18449_v56, %v2846_v1  ;;  %v2845_v30 = vadd.f32 %v2742_v33, %v21811_v3  ;;  %v4867_v1 = vld [vmem:[#allocation3 + $0xf8] sm:$0xff] }
 0x2be   : > { %v18402_v2 = vpop.f32.mrf.mxu1  ;;  %18701 = vmatmul.mubr.msk.f32.gmra.mxu1 %vm371_vm1, %v4863_v29  ;;  %v5582_v33 = vld [vmem:[#allocation3 + $0xfa] sm:$0xff]  ;;  %v4868_v29 = vld [vmem:[#allocation3 + $0x108] sm:$0xff] }
 0x2bf   : > { %v18452_v19 = vpop.f32.mrf.mxu0  ;;  %18751 = vmatmul.mubr.msk.f32.gmra.mxu0 %vm371_vm1, %v5578_v6  ;;  %v22006_v7 = vadd.f32 %v3132_v18, %v2845_v30  ;;  %v2848_v28 = vadd.f32 %v18402_v2, %v21816_v62  ;;  %18703 = vmatprep.mubr.msk.f32.mxu1 %vm371_vm1, %v4864_v37  ;;  %v5581_v62 = vld [vmem:[#allocation3 + $0xf2] sm:$0xff] }
 0x2c0   : > { %18753 = vmatprep.mubr.msk.f32.mxu0 %vm371_vm1, %v5579_v32  ;;  %v2752_v59 = vpop.f32.mrf.mxu1 }
 0x2c1   : > { %v3142_v3 = vpop.f32.mrf.mxu0  ;;  %v22011_v34 = vadd.f32 %v18452_v19, %v2848_v28  ;;  %v2847_v41 = vadd.f32 %v2752_v59, %v21821_v60  ;;  %v4869_v28 = vld [vmem:[#allocation3 + $0x110] sm:$0xff] }
 0x2c2   : > { %v18405_v40 = vpop.f32.mrf.mxu1  ;;  %18704 = vmatmul.mubr.msk.f32.gmra.mxu1 %vm371_vm1, %v4865_v26  ;;  %v5584_v59 = vld [vmem:[#allocation3 + $0x112] sm:$0xff]  ;;  %v4870_v26 = vld [vmem:[#allocation3 + $0x120] sm:$0xff] }
 0x2c3   : > { %25791 = vst [vmem:[#allocation8_spill] sm:$0xff] %v22011_v34  ;;  %v18455_v17 = vpop.f32.mrf.mxu0  ;;  %18754 = vmatmul.mubr.msk.f32.gmra.mxu0 %vm371_vm1, %v5580_v51  ;;  %v22016_v53 = vadd.f32 %v3142_v3, %v2847_v41  ;;  %v2850_v36 = vadd.f32 %v18405_v40, %v21826_v21  ;;  %18706 = vmatprep.mubr.msk.f32.mxu1 %vm371_vm1, %v4866_v45  ;;  %v5583_v21 = vld [vmem:[#allocation3 + $0x10a] sm:$0xff] }
 0x2c4   : > { %18756 = vmatprep.mubr.msk.f32.mxu0 %vm371_vm1, %v5581_v62  ;;  %v2762_v56 = vpop.f32.mrf.mxu1 }
 0x2c5   : > { %25792 = vst [vmem:[#allocation9_spill] sm:$0xff] %v22016_v53  ;;  %v3152_v60 = vpop.f32.mrf.mxu0  ;;  %v22021_v24 = vadd.f32 %v18455_v17, %v2850_v36  ;;  %v2849_v23 = vadd.f32 %v2762_v56, %v21831_v20  ;;  %v4871_v36 = vld [vmem:[#allocation3 + $0x128] sm:$0xff] }
 0x2c6   : > { %v18408_v18 = vpop.f32.mrf.mxu1  ;;  %18707 = vmatmul.mubr.msk.f32.gmra.mxu1 %vm371_vm1, %v4867_v1  ;;  %v5586_v56 = vld [vmem:[#allocation3 + $0x12a] sm:$0xff]  ;;  %v4872_v1 = vld [vmem:[#allocation3 + $0x138] sm:$0xff] }
 0x2c7   : > { %25793 = vst [vmem:[#allocation10_spill] sm:$0xff] %v22021_v24  ;;  %v18458_v30 = vpop.f32.mrf.mxu0  ;;  %18757 = vmatmul.mubr.msk.f32.gmra.mxu0 %vm371_vm1, %v5582_v33  ;;  %v22026_v6 = vadd.f32 %v3152_v60, %v2849_v23  ;;  %v2852_v2 = vadd.f32 %v18408_v18, %v21836_v15  ;;  %18709 = vmatprep.mubr.msk.f32.mxu1 %vm371_vm1, %v4868_v29  ;;  %v5585_v15 = vld [vmem:[#allocation3 + $0x122] sm:$0xff] }
 0x2c8   : > { %18759 = vmatprep.mubr.msk.f32.mxu0 %vm371_vm1, %v5583_v21  ;;  %v2772_v19 = vpop.f32.mrf.mxu1 }
 0x2c9   : > { %25794 = vst [vmem:[#allocation11_spill] sm:$0xff] %v22026_v6  ;;  %v3162_v20 = vpop.f32.mrf.mxu0  ;;  %v22031_v37 = vadd.f32 %v18458_v30, %v2852_v2  ;;  %v2851_v32 = vadd.f32 %v2772_v19, %v21841_v61  ;;  %v4873_v2 = vld [vmem:[#allocation3 + $0x140] sm:$0xff]  ;;  %v6358_v6 = vld [vmem:[#allocation3 + $0xcc] sm:$0xff] }
 0x2ca   : > { %v18411_v3 = vpop.f32.mrf.mxu1  ;;  %18710 = vmatmul.mubr.msk.f32.gmra.mxu1 %vm371_vm1, %v4869_v28  ;;  %v5588_v19 = vld [vmem:[#allocation3 + $0x142] sm:$0xff]  ;;  %v4874_v28 = vld [vmem:[#allocation3 + $0x150] sm:$0xff] }
 0x2cb   : > { %25795 = vst [vmem:[#allocation12_spill] sm:$0xff] %v22031_v37  ;;  %v18461_v41 = vpop.f32.mrf.mxu0  ;;  %18760 = vmatmul.mubr.msk.f32.gmra.mxu0 %vm371_vm1, %v5584_v59  ;;  %v22036_v51 = vadd.f32 %v3162_v20, %v2851_v32  ;;  %v2854_v40 = vadd.f32 %v18411_v3, %v21846_v63  ;;  %18712 = vmatprep.mubr.msk.f32.mxu1 %vm371_vm1, %v4870_v26  ;;  %v5587_v63 = vld [vmem:[#allocation3 + $0x13a] sm:$0xff]  ;;  %v5968_v37 = vld [vmem:[#allocation3 + $0xcb] sm:$0xff] }
 0x2cc   : > { %18762 = vmatprep.mubr.msk.f32.mxu0 %vm371_vm1, %v5585_v15  ;;  %v2782_v17 = vpop.f32.mrf.mxu1 }
 0x2cd   : > { %25796 = vst [vmem:[#allocation13_spill] sm:$0xff] %v22036_v51  ;;  %v3172_v61 = vpop.f32.mrf.mxu0  ;;  %v22041_v45 = vadd.f32 %v18461_v41, %v2854_v40  ;;  %v2853_v62 = vadd.f32 %v2782_v17, %v21851_v49  ;;  %v4875_v40 = vld [vmem:[#allocation3 + $0x158] sm:$0xff] }
 0x2ce   : > { %v18414_v60 = vpop.f32.mrf.mxu1  ;;  %18713 = vmatmul.mubr.msk.f32.gmra.mxu1 %vm371_vm1, %v4871_v36  ;;  %v5590_v17 = vld [vmem:[#allocation3 + $0x15a] sm:$0xff]  ;;  %v4876_v36 = vld [vmem:[#allocation3 + $0x168] sm:$0xff] }
 0x2cf   : > { %25797 = vst [vmem:[#allocation14_spill] sm:$0xff] %v22041_v45  ;;  %v18464_v23 = vpop.f32.mrf.mxu0  ;;  %18763 = vmatmul.mubr.msk.f32.gmra.mxu0 %vm371_vm1, %v5586_v56  ;;  %v22046_v33 = vadd.f32 %v3172_v61, %v2853_v62  ;;  %v2856_v18 = vadd.f32 %v18414_v60, %v21856_v35  ;;  %18715 = vmatprep.mubr.msk.f32.mxu1 %vm371_vm1, %v4872_v1  ;;  %v5589_v35 = vld [vmem:[#allocation3 + $0x152] sm:$0xff]  ;;  %v5951_v1 = vld [vmem:[#allocation3 + $0x3] sm:$0xff] }
 0x2d0   : > { %18765 = vmatprep.mubr.msk.f32.mxu0 %vm371_vm1, %v5587_v63  ;;  %v2792_v30 = vpop.f32.mrf.mxu1  ;;  %v6341_v63 = vld [vmem:[#allocation3 + $0x4] sm:$0xff] }
 0x2d1   : > { %25798 = vst [vmem:[#allocation15_spill] sm:$0xff] %v22046_v33  ;;  %v3182_v49 = vpop.f32.mrf.mxu0  ;;  %v22051_v29 = vadd.f32 %v18464_v23, %v2856_v18  ;;  %v2855_v21 = vadd.f32 %v2792_v30, %v21861_v27  ;;  %v6356_v33 = vld [vmem:[#allocation3 + $0xb4] sm:$0xff] }
 0x2d2   : > { %v18417_v20 = vpop.f32.mrf.mxu1  ;;  %18716 = vmatmul.mubr.msk.f32.gmra.mxu1 %vm371_vm1, %v4873_v2 }
 0x2d3   : > { %25799 = vst [vmem:[#allocation16_spill] sm:$0xff] %v22051_v29  ;;  %v18467_v32 = vpop.f32.mrf.mxu0  ;;  %18766 = vmatmul.mubr.msk.f32.gmra.mxu0 %vm371_vm1, %v5588_v19  ;;  %v22056_v59 = vadd.f32 %v3182_v49, %v2855_v21  ;;  %v2858_v3 = vadd.f32 %v18417_v20, %v21867_v25  ;;  %18718 = vmatprep.mubr.msk.f32.mxu1 %vm371_vm1, %v4874_v28  ;;  %v5591_v25 = vld [vmem:[#allocation3 + $0x16a] sm:$0xff]  ;;  %v5592_v21 = vld [vmem:[#allocation3 + $0x172] sm:$0xff] }
 0x2d4   : > { %18768 = vmatprep.mubr.msk.f32.mxu0 %vm371_vm1, %v5589_v35  ;;  %v2802_v41 = vpop.f32.mrf.mxu1  ;;  %v4877_v49 = vld [vmem:[#allocation3 + $0x170] sm:$0xff] }
 0x2d5   : > { %25800 = vst [vmem:[#allocation17_spill] sm:$0xff] %v22056_v59  ;;  %v3192_v27 = vpop.f32.mrf.mxu0  ;;  %v22061_v26 = vadd.f32 %v18467_v32, %v2858_v3  ;;  %v2857_v15 = vadd.f32 %v2802_v41, %v21873_v44  ;;  %v5952_v32 = vld [vmem:[#allocation3 + $0xb] sm:$0xff]  ;;  %v5966_v29 = vld [vmem:[#allocation3 + $0xb3] sm:$0xff] }
 0x2d6   : > { %v18420_v61 = vpop.f32.mrf.mxu1  ;;  %18719 = vmatmul.mubr.msk.f32.gmra.mxu1 %vm371_vm1, %v4875_v40  ;;  %v6342_v28 = vld [vmem:[#allocation3 + $0xc] sm:$0xff] }
 0x2d7   : > { %25801 = vst [vmem:[#allocation18_spill] sm:$0xff] %v22061_v26  ;;  %v18470_v62 = vpop.f32.mrf.mxu0  ;;  %18769 = vmatmul.mubr.msk.f32.gmra.mxu0 %vm371_vm1, %v5590_v17  ;;  %v22066_v56 = vadd.f32 %v3192_v27, %v2857_v15  ;;  %v2860_v60 = vadd.f32 %v18420_v61, %v21878_v8  ;;  %18721 = vmatprep.mubr.msk.f32.mxu1 %vm371_vm1, %v4876_v36  ;;  %v5953_v27 = vld [vmem:[#allocation3 + $0x1b] sm:$0xff]  ;;  %v22098_v61 = vld [vmem:[%s25663_s5 + $0x20] sm:$0xf]  ;;  %v6344_v36 = vld [vmem:[#allocation3 + $0x24] sm:$0xff] }
 0x2d8   : > { %18771 = vmatprep.mubr.msk.f32.mxu0 %vm371_vm1, %v5591_v25  ;;  %v2812_v23 = vpop.f32.mrf.mxu1  ;;  %v6343_v15 = vld [vmem:[#allocation3 + $0x1c] sm:$0xff] }
 0x2d9   : > { %25802 = vst [vmem:[#allocation19_spill] sm:$0xff] %v22066_v56  ;;  %v3202_v44 = vpop.f32.mrf.mxu0  ;;  %v22071_v18 = vadd.f32 %v18470_v62, %v2860_v60  ;;  %v2859_v30 = vadd.f32 %v2812_v23, %v21883_v22  ;;  %v5954_v62 = vld [vmem:[#allocation3 + $0x23] sm:$0xff] }
 0x2da   : > { %v18423_v2 = vpop.f32.mrf.mxu1  ;;  %18722 = vmatmul.mubr.msk.f32.gmra.mxu1 %vm371_vm1, %v4877_v49  ;;  %v6346_v49 = vld [vmem:[#allocation3 + $0x3c] sm:$0xff] }
 0x2db   : > { %25803 = vst [vmem:[#allocation20_spill] sm:$0xff] %v22071_v18  ;;  %v18473_v19 = vpop.f32.mrf.mxu0  ;;  %18772 = vmatmul.mubr.msk.f32.gmra.mxu0 %vm371_vm1, %v5592_v21  ;;  %v22076_v8 = vadd.f32 %v3202_v44, %v2859_v30  ;;  %v2862_v20 = vadd.f32 %v18423_v2, %v21888_v4  ;;  %18776 = vmatprep.mubr.msk.f32.mxu1 %vm371_vm1, %v5951_v1  ;;  %v22093_v4 = vld [vmem:[%s25663_s5 + $0x1c] sm:$0xf]  ;;  %v6345_v44 = vld [vmem:[#allocation3 + $0x34] sm:$0xff]  ;;  %v6354_v56 = vld [vmem:[#allocation3 + $0x9c] sm:$0xff] }
 0x2dc   : > { %18826 = vmatprep.mubr.msk.f32.mxu0 %vm371_vm1, %v6341_v63  ;;  %v2822_v35 = vpop.f32.mrf.mxu1  ;;  %v5956_v30 = vld [vmem:[#allocation3 + $0x3b] sm:$0xff] }
 0x2dd   : > { %25804 = vst [vmem:[#allocation21_spill] sm:$0xff] %v22076_v8  ;;  %v3212_v22 = vpop.f32.mrf.mxu0  ;;  %v22081_v3 = vadd.f32 %v18473_v19, %v2862_v20  ;;  %v2861_v41 = vadd.f32 %v2822_v35, %v21905_v55  ;;  %v5957_v19 = vld [vmem:[#allocation3 + $0x4b] sm:$0xff]  ;;  %v5958_v35 = vld [vmem:[#allocation3 + $0x53] sm:$0xff]  ;;  %v5964_v18 = vld [vmem:[#allocation3 + $0x9b] sm:$0xff] }
 0x2de   : > { %v22084_v40 = vpop.f32.mrf.mxu1  ;;  %18777 = vmatmul.mubr.msk.f32.vlgmr.msra.gmra.mxu1 %vm371_vm1, %v5952_v32  ;;  %v6347_v20 = vld [vmem:[#allocation3 + $0x4c] sm:$0xff] }
 0x2df   : > { %25805 = vst [vmem:[#allocation22_spill] sm:$0xff] %v22081_v3  ;;  %v22086_v17 = vpop.f32.mrf.mxu0  ;;  %18827 = vmatmul.mubr.msk.f32.vlgmr.msra.gmra.mxu0 %vm371_vm1, %v6342_v28  ;;  %v22100_v55 = vadd.f32 %v3212_v22, %v2861_v41  ;;  %18875 = vmatpush3.msk.msra.mxu1 %vm468_vm0, %v21898_v43  ;;  %v6348_v22 = vld [vmem:[#allocation3 + $0x54] sm:$0xff] }
 0x2e0   : > { %18925 = vmatpush3.msk.msra.mxu0 %vm468_vm0, %v21903_v16  ;;  %v22106_v25 = vpop.f32.mrf.mxu1  ;;  %18779 = vmatprep.mubr.msk.f32.mxu1 %vm371_vm1, %v5953_v27  ;;  %v5955_v16 = vld [vmem:[#allocation3 + $0x33] sm:$0xff] }
 0x2e1   : > { %25806 = vst [vmem:[#allocation23_spill] sm:$0xff] %v22100_v55  ;;  %v22108_v60 = vpop.f32.mrf.mxu0  ;;  %18829 = vmatprep.mubr.msk.f32.mxu0 %vm371_vm1, %v6343_v15  ;;  %18974 = vmatprep.subr.msk.mxu1 %vm468_vm0, %v22093_v4  ;;  %v5959_v15 = vld [vmem:[#allocation3 + $0x63] sm:$0xff] }
 0x2e2   : > { %19024 = vmatprep.subr.msk.mxu0 %vm468_vm0, %v22098_v61  ;;  %v22116_v43 = vpop.f32.mrf.mxu1  ;;  %18780 = vmatmul.mubr.msk.f32.gmra.mxu1 %vm371_vm1, %v5954_v62  ;;  %v6349_v62 = vld [vmem:[#allocation3 + $0x64] sm:$0xff] }
 0x2e3   : > { %v22118_v23 = vpop.f32.mrf.mxu0  ;;  %18830 = vmatmul.mubr.msk.f32.gmra.mxu0 %vm371_vm1, %v6344_v36  ;;  %18782 = vmatprep.mubr.msk.f32.mxu1 %vm371_vm1, %v5955_v16  ;;  %v6352_v55 = vld [vmem:[#allocation3 + $0x84] sm:$0xff] }
 0x2e4   : > { %18832 = vmatprep.mubr.msk.f32.mxu0 %vm371_vm1, %v6345_v44  ;;  %v22124_v1 = vpop.f32.mrf.mxu1  ;;  %v5960_v44 = vld [vmem:[#allocation3 + $0x6b] sm:$0xff] }
 0x2e5   : > { %v22126_v63 = vpop.f32.mrf.mxu0 }
 0x2e6   : > { %v22128_v21 = vpop.f32.mrf.mxu1  ;;  %18783 = vmatmul.mubr.msk.f32.gmra.mxu1 %vm371_vm1, %v5956_v30  ;;  %v6350_v30 = vld [vmem:[#allocation3 + $0x6c] sm:$0xff] }
 0x2e7   : > { %v22130_v2 = vpop.f32.mrf.mxu0  ;;  %18833 = vmatmul.mubr.msk.f32.gmra.mxu0 %vm371_vm1, %v6346_v49  ;;  %18785 = vmatprep.mubr.msk.f32.mxu1 %vm371_vm1, %v5957_v19 }
 0x2e8   : > { %18835 = vmatprep.mubr.msk.f32.mxu0 %vm371_vm1, %v6347_v20  ;;  %v22136_v32 = vpop.f32.mrf.mxu1  ;;  %v5961_v20 = vld [vmem:[#allocation3 + $0x7b] sm:$0xff] }
 0x2e9   : > { %v22138_v28 = vpop.f32.mrf.mxu0 }
 0x2ea   : > { %v22140_v41 = vpop.f32.mrf.mxu1  ;;  %18786 = vmatmul.mubr.msk.f32.gmra.mxu1 %vm371_vm1, %v5958_v35  ;;  %v6351_v35 = vld [vmem:[#allocation3 + $0x7c] sm:$0xff] }
 0x2eb   : > { %v22142_v27 = vpop.f32.mrf.mxu0  ;;  %18836 = vmatmul.mubr.msk.f32.gmra.mxu0 %vm371_vm1, %v6348_v22  ;;  %18788 = vmatprep.mubr.msk.f32.mxu1 %vm371_vm1, %v5959_v15 }
 0x2ec   : > { %18838 = vmatprep.mubr.msk.f32.mxu0 %vm371_vm1, %v6349_v62  ;;  %v22148_v36 = vpop.f32.mrf.mxu1  ;;  %v5962_v62 = vld [vmem:[#allocation3 + $0x83] sm:$0xff] }
 0x2ed   : > { %v22150_v16 = vpop.f32.mrf.mxu0 }
 0x2ee   : > { %v22152_v49 = vpop.f32.mrf.mxu1  ;;  %18789 = vmatmul.mubr.msk.f32.gmra.mxu1 %vm371_vm1, %v5960_v44  ;;  %v5963_v44 = vld [vmem:[#allocation3 + $0x93] sm:$0xff] }
 0x2ef   : > { %v22154_v19 = vpop.f32.mrf.mxu0  ;;  %18839 = vmatmul.mubr.msk.f32.gmra.mxu0 %vm371_vm1, %v6350_v30  ;;  %18791 = vmatprep.mubr.msk.f32.mxu1 %vm371_vm1, %v5961_v20  ;;  %v6353_v30 = vld [vmem:[#allocation3 + $0x94] sm:$0xff] }
 0x2f0   : > { %18841 = vmatprep.mubr.msk.f32.mxu0 %vm371_vm1, %v6351_v35  ;;  %v22160_v22 = vpop.f32.mrf.mxu1 }
 0x2f1   : > { %v22162_v15 = vpop.f32.mrf.mxu0 }
 0x2f2   : > { %v22164_v3 = vpop.f32.mrf.mxu1  ;;  %18792 = vmatmul.mubr.msk.f32.gmra.mxu1 %vm371_vm1, %v5962_v62  ;;  %v6355_v62 = vld [vmem:[#allocation3 + $0xac] sm:$0xff] }
 0x2f3   : > { %v22166_v8 = vpop.f32.mrf.mxu0  ;;  %18842 = vmatmul.mubr.msk.f32.gmra.mxu0 %vm371_vm1, %v6352_v55  ;;  %18794 = vmatprep.mubr.msk.f32.mxu1 %vm371_vm1, %v5963_v44  ;;  %v5965_v55 = vld [vmem:[#allocation3 + $0xab] sm:$0xff] }
 0x2f4   : > { %18844 = vmatprep.mubr.msk.f32.mxu0 %vm371_vm1, %v6353_v30  ;;  %v22172_v20 = vpop.f32.mrf.mxu1 }
 0x2f5   : > { %v22174_v35 = vpop.f32.mrf.mxu0 }
 0x2f6   : > { %v22176_v26 = vpop.f32.mrf.mxu1  ;;  %18795 = vmatmul.mubr.msk.f32.gmra.mxu1 %vm371_vm1, %v5964_v18  ;;  %v6357_v18 = vld [vmem:[#allocation3 + $0xc4] sm:$0xff] }
 0x2f7   : > { %v22178_v59 = vpop.f32.mrf.mxu0  ;;  %18845 = vmatmul.mubr.msk.f32.gmra.mxu0 %vm371_vm1, %v6354_v56  ;;  %18797 = vmatprep.mubr.msk.f32.mxu1 %vm371_vm1, %v5965_v55  ;;  %v5967_v56 = vld [vmem:[#allocation3 + $0xc3] sm:$0xff] }
 0x2f8   : > { %18847 = vmatprep.mubr.msk.f32.mxu0 %vm371_vm1, %v6355_v62  ;;  %v22184_v44 = vpop.f32.mrf.mxu1 }
 0x2f9   : > { %v22186_v30 = vpop.f32.mrf.mxu0 }
 0x2fa   : > { %v22188_v45 = vpop.f32.mrf.mxu1  ;;  %18798 = vmatmul.mubr.msk.f32.gmra.mxu1 %vm371_vm1, %v5966_v29  ;;  %v6359_v29 = vld [vmem:[#allocation3 + $0xdc] sm:$0xff] }
 0x2fb   : > { %v22190_v51 = vpop.f32.mrf.mxu0  ;;  %18848 = vmatmul.mubr.msk.f32.gmra.mxu0 %vm371_vm1, %v6356_v33  ;;  %18800 = vmatprep.mubr.msk.f32.mxu1 %vm371_vm1, %v5967_v56  ;;  %v5969_v33 = vld [vmem:[#allocation3 + $0xdb] sm:$0xff] }
 0x2fc   : > { %25807 = vst [vmem:[#allocation24_spill] sm:$0xff] %v22190_v51  ;;  %18850 = vmatprep.mubr.msk.f32.mxu0 %vm371_vm1, %v6357_v18  ;;  %v22196_v55 = vpop.f32.mrf.mxu1  ;;  %v6360_v51 = vld [vmem:[#allocation3 + $0xe4] sm:$0xff] }
 0x2fd   : > { %v22198_v62 = vpop.f32.mrf.mxu0 }
 0x2fe   : > { %25808 = vst [vmem:[#allocation25_spill] sm:$0xff] %v22198_v62  ;;  %v22200_v24 = vpop.f32.mrf.mxu1  ;;  %18801 = vmatmul.mubr.msk.f32.gmra.mxu1 %vm371_vm1, %v5968_v37  ;;  %v5970_v62 = vld [vmem:[#allocation3 + $0xe3] sm:$0xff]  ;;  %v6361_v37 = vld [vmem:[#allocation3 + $0xf4] sm:$0xff] }
 0x2ff   : > { %25809 = vst [vmem:[#allocation26_spill] sm:$0xff] %v22200_v24  ;;  %v22202_v53 = vpop.f32.mrf.mxu0  ;;  %18851 = vmatmul.mubr.msk.f32.gmra.mxu0 %vm371_vm1, %v6358_v6  ;;  %18803 = vmatprep.mubr.msk.f32.mxu1 %vm371_vm1, %v5969_v33  ;;  %v5971_v6 = vld [vmem:[#allocation3 + $0xf3] sm:$0xff] }
 0x300   : > { %25810 = vst [vmem:[#allocation27_spill] sm:$0xff] %v22202_v53  ;;  %18853 = vmatprep.mubr.msk.f32.mxu0 %vm371_vm1, %v6359_v29  ;;  %v22208_v56 = vpop.f32.mrf.mxu1  ;;  %v6362_v53 = vld [vmem:[#allocation3 + $0xfc] sm:$0xff] }
 0x301   : > { %25811 = vst [vmem:[#allocation28_spill] sm:$0xff] %v22208_v56  ;;  %v22210_v18 = vpop.f32.mrf.mxu0 }
 0x302   : > { %25812 = vst [vmem:[#allocation29_spill] sm:$0xff] %v22210_v18  ;;  %v22212_v34 = vpop.f32.mrf.mxu1  ;;  %18804 = vmatmul.mubr.msk.f32.gmra.mxu1 %vm371_vm1, %v5970_v62  ;;  %v5972_v18 = vld [vmem:[#allocation3 + $0xfb] sm:$0xff]  ;;  %v6363_v62 = vld [vmem:[#allocation3 + $0x10c] sm:$0xff] }
 0x303   : > { %25813 = vst [vmem:[#allocation30_spill] sm:$0xff] %v22212_v34  ;;  %v22214_v24 = vpop.f32.mrf.mxu0  ;;  %18854 = vmatmul.mubr.msk.f32.gmra.mxu0 %vm371_vm1, %v6360_v51  ;;  %18806 = vmatprep.mubr.msk.f32.mxu1 %vm371_vm1, %v5971_v6  ;;  %v5973_v51 = vld [vmem:[#allocation3 + $0x10b] sm:$0xff] }
 0x304   : > { %25814 = vst [vmem:[#allocation31_spill] sm:$0xff] %v22214_v24  ;;  %18856 = vmatprep.mubr.msk.f32.mxu0 %vm371_vm1, %v6361_v37  ;;  %v22220_v33 = vpop.f32.mrf.mxu1  ;;  %v6364_v24 = vld [vmem:[#allocation3 + $0x114] sm:$0xff] }
 0x305   : > { %25815 = vst [vmem:[#allocation32_spill] sm:$0xff] %v22220_v33  ;;  %v22222_v29 = vpop.f32.mrf.mxu0 }
 0x306   : > { %25816 = vst [vmem:[#allocation33_spill] sm:$0xff] %v22222_v29  ;;  %v22224_v56 = vpop.f32.mrf.mxu1  ;;  %18807 = vmatmul.mubr.msk.f32.gmra.mxu1 %vm371_vm1, %v5972_v18  ;;  %v5974_v29 = vld [vmem:[#allocation3 + $0x113] sm:$0xff]  ;;  %v6365_v18 = vld [vmem:[#allocation3 + $0x124] sm:$0xff] }
 0x307   : > { %25817 = vst [vmem:[#allocation34_spill] sm:$0xff] %v22224_v56  ;;  %v22226_v34 = vpop.f32.mrf.mxu0  ;;  %18857 = vmatmul.mubr.msk.f32.gmra.mxu0 %vm371_vm1, %v6362_v53  ;;  %18809 = vmatprep.mubr.msk.f32.mxu1 %vm371_vm1, %v5973_v51  ;;  %v5975_v53 = vld [vmem:[#allocation3 + $0x123] sm:$0xff] }
 0x308   : > { %25818 = vst [vmem:[#allocation35_spill] sm:$0xff] %v22226_v34  ;;  %18859 = vmatprep.mubr.msk.f32.mxu0 %vm371_vm1, %v6363_v62  ;;  %v22232_v6 = vpop.f32.mrf.mxu1  ;;  %v6366_v34 = vld [vmem:[#allocation3 + $0x12c] sm:$0xff] }
 0x309   : > { %25819 = vst [vmem:[#allocation36_spill] sm:$0xff] %v22232_v6  ;;  %v22234_v37 = vpop.f32.mrf.mxu0 }
 0x30a   : > { %25820 = vst [vmem:[#allocation37_spill] sm:$0xff] %v22234_v37  ;;  %v22236_v33 = vpop.f32.mrf.mxu1  ;;  %18810 = vmatmul.mubr.msk.f32.gmra.mxu1 %vm371_vm1, %v5974_v29  ;;  %v5976_v37 = vld [vmem:[#allocation3 + $0x12b] sm:$0xff]  ;;  %v6367_v29 = vld [vmem:[#allocation3 + $0x13c] sm:$0xff] }
 0x30b   : > { %25821 = vst [vmem:[#allocation38_spill] sm:$0xff] %v22236_v33  ;;  %v22238_v56 = vpop.f32.mrf.mxu0  ;;  %18860 = vmatmul.mubr.msk.f32.gmra.mxu0 %vm371_vm1, %v6364_v24  ;;  %18812 = vmatprep.mubr.msk.f32.mxu1 %vm371_vm1, %v5975_v53  ;;  %v5977_v24 = vld [vmem:[#allocation3 + $0x13b] sm:$0xff] }
 0x30c   : > { %25822 = vst [vmem:[#allocation39_spill] sm:$0xff] %v22238_v56  ;;  %18862 = vmatprep.mubr.msk.f32.mxu0 %vm371_vm1, %v6365_v18  ;;  %v22244_v51 = vpop.f32.mrf.mxu1  ;;  %v6368_v56 = vld [vmem:[#allocation3 + $0x144] sm:$0xff] }
 0x30d   : > { %25823 = vst [vmem:[#allocation40_spill] sm:$0xff] %v22244_v51  ;;  %v22246_v62 = vpop.f32.mrf.mxu0 }
 0x30e   : > { %25824 = vst [vmem:[#allocation41_spill] sm:$0xff] %v22246_v62  ;;  %v22248_v6 = vpop.f32.mrf.mxu1  ;;  %18813 = vmatmul.mubr.msk.f32.gmra.mxu1 %vm371_vm1, %v5976_v37  ;;  %v5978_v62 = vld [vmem:[#allocation3 + $0x143] sm:$0xff]  ;;  %v6369_v37 = vld [vmem:[#allocation3 + $0x154] sm:$0xff] }
 0x30f   : > { %25825 = vst [vmem:[#allocation42_spill] sm:$0xff] %v22248_v6  ;;  %v22250_v33 = vpop.f32.mrf.mxu0  ;;  %18863 = vmatmul.mubr.msk.f32.gmra.mxu0 %vm371_vm1, %v6366_v34  ;;  %18815 = vmatprep.mubr.msk.f32.mxu1 %vm371_vm1, %v5977_v24  ;;  %v5979_v34 = vld [vmem:[#allocation3 + $0x153] sm:$0xff] }
 0x310   : > { %25826 = vst [vmem:[#allocation43_spill] sm:$0xff] %v22250_v33  ;;  %18865 = vmatprep.mubr.msk.f32.mxu0 %vm371_vm1, %v6367_v29  ;;  %v22256_v53 = vpop.f32.mrf.mxu1  ;;  %v6370_v33 = vld [vmem:[#allocation3 + $0x15c] sm:$0xff] }
 0x311   : > { %25827 = vst [vmem:[#allocation44_spill] sm:$0xff] %v22256_v53  ;;  %v22258_v18 = vpop.f32.mrf.mxu0 }
 0x312   : > { %25828 = vst [vmem:[#allocation45_spill] sm:$0xff] %v22258_v18  ;;  %v22260_v51 = vpop.f32.mrf.mxu1  ;;  %18816 = vmatmul.mubr.msk.f32.gmra.mxu1 %vm371_vm1, %v5978_v62  ;;  %v5980_v18 = vld [vmem:[#allocation3 + $0x15b] sm:$0xff]  ;;  %v6371_v62 = vld [vmem:[#allocation3 + $0x16c] sm:$0xff] }
 0x313   : > { %25829 = vst [vmem:[#allocation46_spill] sm:$0xff] %v22260_v51  ;;  %v22262_v6 = vpop.f32.mrf.mxu0  ;;  %18866 = vmatmul.mubr.msk.f32.gmra.mxu0 %vm371_vm1, %v6368_v56  ;;  %18818 = vmatprep.mubr.msk.f32.mxu1 %vm371_vm1, %v5979_v34  ;;  %v5981_v56 = vld [vmem:[#allocation3 + $0x16b] sm:$0xff] }
 0x314   : > { %25830 = vst [vmem:[#allocation47_spill] sm:$0xff] %v22262_v6  ;;  %18868 = vmatprep.mubr.msk.f32.mxu0 %vm371_vm1, %v6369_v37  ;;  %v22268_v24 = vpop.f32.mrf.mxu1  ;;  %v3613_v6 = vadd.f32 %v22084_v40, %v21917_v47 }
 0x315   : > { %25831 = vst [vmem:[#allocation48_spill] sm:$0xff] %v22268_v24  ;;  %v22270_v29 = vpop.f32.mrf.mxu0 }
 0x316   : > { %25832 = vst [vmem:[#allocation49_spill] sm:$0xff] %v22270_v29  ;;  %v22272_v53 = vpop.f32.mrf.mxu1  ;;  %18819 = vmatmul.mubr.msk.f32.gmra.mxu1 %vm371_vm1, %v5980_v18  ;;  %v7122_v29 = vld [vmem:[#allocation3 + $0x19] sm:$0xff] }
 0x317   : > { %25833 = vst [vmem:[#allocation50_spill] sm:$0xff] %v22272_v53  ;;  %v22274_v51 = vpop.f32.mrf.mxu0  ;;  %18869 = vmatmul.mubr.msk.f32.gmra.mxu0 %vm371_vm1, %v6370_v33  ;;  %18821 = vmatprep.mubr.msk.f32.mxu1 %vm371_vm1, %v5981_v56  ;;  %v5982_v53 = vld [vmem:[#allocation3 + $0x173] sm:$0xff]  ;;  %v3612_v33 = vadd.f32 %v22106_v25, %v21929_v39  ;;  %v7123_v56 = vld [vmem:[#allocation3 + $0x21] sm:$0xff]  ;;  %v22307_v39 = vld [vmem:[%s25662_s4] ss:$0 sm:$0xff] }
 0x318   : > { %25834 = vst [vmem:[#allocation51_spill] sm:$0xff] %v22274_v51  ;;  %18871 = vmatprep.mubr.msk.f32.mxu0 %vm371_vm1, %v6371_v62  ;;  %v22280_v34 = vpop.f32.mrf.mxu1  ;;  %v6372_v51 = vld [vmem:[#allocation3 + $0x174] sm:$0xff]  ;;  %v4003_v62 = vadd.f32 %v22086_v17, %v3613_v6 }
 0x319   : > { %v22282_v37 = vpop.f32.mrf.mxu0  ;;  %v4002_v17 = vadd.f32 %v22108_v60, %v3612_v33 }
 0x31a   : > { %v22286_v24 = vpop.f32.mrf.mxu1  ;;  %18822 = vmatmul.mubr.msk.f32.gmra.mxu1 %vm371_vm1, %v5982_v53  ;;  %v3615_v53 = vadd.f32 %v22116_v43, %v21935_v5  ;;  %v22322_v5 = vld [vmem:[%s25663_s5 + $0x28] sm:$0xf]  ;;  %v3614_v43 = vadd.f32 %v22124_v1, %v21945_v38 }
 0x31b   : > { %v22288_v18 = vpop.f32.mrf.mxu0  ;;  %18872 = vmatmul.mubr.msk.f32.gmra.mxu0 %vm371_vm1, %v6372_v51  ;;  %18876 = vmatprep.mubr.msk.f32.mxu1 %vm371_vm1, %v21891_v42  ;;  %v22317_v42 = vld [vmem:[%s25663_s5 + $0x24] sm:$0xf]  ;;  %v3617_v51 = vadd.f32 %v22128_v21, %v21951_v46  ;;  %v7125_v1 = vld [vmem:[#allocation3 + $0x39] sm:$0xff] }
 0x31c   : > { %25835 = vst [vmem:[#allocation52_spill] sm:$0xff] %v22288_v18  ;;  %18926 = vmatprep.mubr.msk.f32.mxu0 %vm371_vm1, %v7122_v29  ;;  %v22297_v47 = vpop.f32.mrf.mxu1  ;;  %v4005_v38 = vadd.f32 %v22118_v23, %v3615_v53  ;;  %v4004_v23 = vadd.f32 %v22126_v63, %v3614_v43  ;;  %v6737_v43 = vld [vmem:[#allocation3 + $0x50] sm:$0xff] }
 0x31d   : > { %v22299_v40 = vpop.f32.mrf.mxu0 }
 0x31e   : > { %v18578_v18 = vpop.f32.mrf.mxu1  ;;  %18877 = vmatmul.mubr.msk.f32.vlgmr.msra.gmra.mxu1 %vm371_vm1, %v21912_v12  ;;  %v7124_v12 = vld [vmem:[#allocation3 + $0x31] sm:$0xff] }
 0x31f   : > { %v22309_v25 = vpop.f32.mrf.mxu0  ;;  %18927 = vmatmul.mubr.msk.f32.vlgmr.msra.gmra.mxu0 %vm371_vm1, %v7123_v56  ;;  %v4393_v6 = vadd.f32 %v18578_v18, %v4003_v62  ;;  %18975 = vmatpush3.msk.msra.mxu1 %vm468_vm0, %v22093_v4 }
 0x320   : > { %18879 = vmatprep.mubr.msk.f32.mxu1 %vm371_vm1, %v21927_v50  ;;  %18929 = vmatprep.mubr.msk.f32.mxu0 %vm371_vm1, %v7124_v12  ;;  %v4233_v29 = vpop.f32.mrf.mxu1  ;;  %v3616_v50 = vadd.f32 %v22136_v32, %v21956_v9  ;;  %v4007_v9 = vadd.f32 %v22130_v2, %v3617_v51  ;;  %v6738_v2 = vld [vmem:[#allocation3 + $0x60] sm:$0xff] }
 0x321   : > { %v22334_v56 = vpop.f32.mrf.mxu0  ;;  %19025 = vmatpush3.msk.msra.mxu0 %vm468_vm0, %v22098_v61  ;;  %v4432_v60 = vadd.f32 %v22307_v39, %v4393_v6  ;;  %v4392_v4 = vadd.f32 %v4233_v29, %v4002_v17  ;;  %19074 = vmatprep.subr.msk.mxu1 %vm468_vm0, %v22317_v42  ;;  %v7126_v61 = vld [vmem:[#allocation3 + $0x49] sm:$0xff]  ;;  %v7127_v6 = vld [vmem:[#allocation3 + $0x51] sm:$0xff] }
 0x322   : > { %19124 = vmatprep.subr.msk.mxu0 %vm468_vm0, %v22322_v5  ;;  %v18581_v46 = vpop.f32.mrf.mxu1  ;;  %18880 = vmatmul.mubr.msk.f32.gmra.mxu1 %vm371_vm1, %v21938_v13  ;;  %v3619_v13 = vadd.f32 %v22140_v41, %v21961_v54  ;;  %v3618_v54 = vadd.f32 %v22148_v36, %v21966_v31 }
 0x323   : > { %v22346_v21 = vpop.f32.mrf.mxu0  ;;  %18930 = vmatmul.mubr.msk.f32.gmra.mxu0 %vm371_vm1, %v7125_v1  ;;  %v4464_v18 = vmax.f32 %v4432_v60, 0.0  ;;  %v4431_v33 = vadd.f32 %v22307_v39, %v4392_v4  ;;  %v4395_v62 = vadd.f32 %v18581_v46, %v4005_v38  ;;  %18882 = vmatprep.mubr.msk.f32.mxu1 %vm371_vm1, %v21943_v57  ;;  %v4006_v57 = vadd.f32 %v22138_v28, %v3616_v50  ;;  %v7128_v28 = vld [vmem:[#allocation3 + $0x61] sm:$0xff] }
 0x324   : > { %18932 = vmatprep.mubr.msk.f32.mxu0 %vm371_vm1, %v7126_v61  ;;  %v4243_v32 = vpop.f32.mrf.mxu1  ;;  %v3621_v4 = vadd.f32 %v22152_v49, %v21971_v14  ;;  %v4009_v46 = vadd.f32 %v22142_v27, %v3619_v13  ;;  %v6739_v61 = vld [vmem:[#allocation3 + $0x68] sm:$0xff]  ;;  %v6740_v49 = vld [vmem:[#allocation3 + $0x78] sm:$0xff]  ;;  %v4008_v27 = vadd.f32 %v22150_v16, %v3618_v54 }
 0x325   : > { %v22357_v53 = vpop.f32.mrf.mxu0  ;;  %v4434_v17 = vadd.f32 %v22307_v39, %v4395_v62  ;;  %v4394_v63 = vadd.f32 %v4243_v32, %v4004_v23  ;;  %4529 = vrot.lane.b32.xlu1 %v4464_v18, %s20039_s24  ;;  %v4463_v12 = vmax.f32 %v4431_v33, 0.0  ;;  %v7129_v23 = vld [vmem:[#allocation3 + $0x69] sm:$0xff]  ;;  %v3620_v33 = vadd.f32 %v22160_v22, %v21976_v58 }
 0x326   : > { %v18584_v29 = vpop.f32.mrf.mxu1  ;;  %18883 = vmatmul.mubr.msk.f32.gmra.mxu1 %vm371_vm1, %v6737_v43  ;;  %v4011_v58 = vadd.f32 %v22154_v19, %v3621_v4  ;;  %v3623_v43 = vadd.f32 %v22164_v3, %v21981_v0  ;;  %v3622_v0 = vadd.f32 %v22172_v20, %v21986_v10 }
 0x327   : > { %v22364_v38 = vpop.f32.mrf.mxu0  ;;  %18933 = vmatmul.mubr.msk.f32.gmra.mxu0 %vm371_vm1, %v7127_v6  ;;  %v4466_v41 = vmax.f32 %v4434_v17, 0.0  ;;  %v4433_v51 = vadd.f32 %v22307_v39, %v4394_v63  ;;  %v4397_v60 = vadd.f32 %v18584_v29, %v4007_v9  ;;  %4527 = vrot.lane.b32.xlu0 %v4463_v12, %s20039_s24  ;;  %v7130_v17 = vld [vmem:[#allocation3 + $0x79] sm:$0xff] }
 0x328   : > { %18885 = vmatprep.mubr.msk.f32.mxu1 %vm371_vm1, %v6738_v2  ;;  %18935 = vmatprep.mubr.msk.f32.mxu0 %vm371_vm1, %v7128_v28  ;;  %v4253_v1 = vpop.f32.mrf.mxu1  ;;  %v6741_v12 = vld [vmem:[#allocation3 + $0x80] sm:$0xff]  ;;  %v4010_v2 = vadd.f32 %v22162_v15, %v3620_v33  ;;  %v7132_v15 = vld [vmem:[#allocation3 + $0x91] sm:$0xff]  ;;  %v3625_v28 = vadd.f32 %v22176_v26, %v21991_v48  ;;  %v6744_v26 = vld [vmem:[#allocation3 + $0xa8] sm:$0xff] }
 0x329   : > { %v22376_v50 = vpop.f32.mrf.mxu0  ;;  %v4436_v31 = vadd.f32 %v22307_v39, %v4397_v60  ;;  %v4396_v36 = vadd.f32 %v4253_v1, %v4006_v57  ;;  %4533 = vrot.lane.b32.xlu1 %v4466_v41, %s20039_s24  ;;  %v4465_v18 = vmax.f32 %v4433_v51, 0.0  ;;  %v7131_v57 = vld [vmem:[#allocation3 + $0x81] sm:$0xff]  ;;  %v6742_v41 = vld [vmem:[#allocation3 + $0x90] sm:$0xff] }
 0x32a   : > { %v18587_v62 = vpop.f32.mrf.mxu1  ;;  %18886 = vmatmul.mubr.msk.f32.gmra.mxu1 %vm371_vm1, %v6739_v61 }
 0x32b   : > { %v22383_v14 = vpop.f32.mrf.mxu0  ;;  %18936 = vmatmul.mubr.msk.f32.gmra.mxu0 %vm371_vm1, %v7129_v23  ;;  %v4468_v9 = vmax.f32 %v4436_v31, 0.0  ;;  %v4435_v32 = vadd.f32 %v22307_v39, %v4396_v36  ;;  %v4399_v13 = vadd.f32 %v18587_v62, %v4009_v46  ;;  %4531 = vrot.lane.b32.xlu0 %v4465_v18, %s20039_s24  ;;  %v4013_v46 = vadd.f32 %v22166_v8, %v3623_v43  ;;  %v6743_v31 = vld [vmem:[#allocation3 + $0x98] sm:$0xff] }
 0x32c   : > { %18888 = vmatprep.mubr.msk.f32.mxu1 %vm371_vm1, %v6740_v49  ;;  %18938 = vmatprep.mubr.msk.f32.mxu0 %vm371_vm1, %v7130_v17  ;;  %v4263_v22 = vpop.f32.mrf.mxu1  ;;  %v7133_v36 = vld [vmem:[#allocation3 + $0x99] sm:$0xff]  ;;  %v3624_v23 = vadd.f32 %v22184_v44, %v21996_v52  ;;  %v4012_v8 = vadd.f32 %v22174_v35, %v3622_v0  ;;  %v4015_v52 = vadd.f32 %v22178_v59, %v3625_v28  ;;  %v6745_v17 = vld [vmem:[#allocation3 + $0xb0] sm:$0xff] }
 0x32d   : > { %v22393_v63 = vpop.f32.mrf.mxu0  ;;  %v4438_v16 = vadd.f32 %v22307_v39, %v4399_v13  ;;  %v4398_v6 = vadd.f32 %v4263_v22, %v4008_v27  ;;  %4537 = vrot.lane.b32.xlu1 %v4468_v9, %s20039_s24  ;;  %v4467_v29 = vmax.f32 %v4435_v32, 0.0  ;;  %v7134_v27 = vld [vmem:[#allocation3 + $0xa9] sm:$0xff]  ;;  %v3627_v32 = vadd.f32 %v22188_v45, %v22001_v11 }
 0x32e   : > { %v18590_v54 = vpop.f32.mrf.mxu1  ;;  %18889 = vmatmul.mubr.msk.f32.gmra.mxu1 %vm371_vm1, %v6741_v12  ;;  %v4014_v43 = vadd.f32 %v22186_v30, %v3624_v23  ;;  %v3626_v11 = vadd.f32 %v22196_v55, %v22006_v7  ;;  %v7136_v30 = vld [vmem:[#allocation3 + $0xc1] sm:$0xff] }
 0x32f   : > { %v22400_v19 = vpop.f32.mrf.mxu0  ;;  %18939 = vmatmul.mubr.msk.f32.gmra.mxu0 %vm371_vm1, %v7131_v57  ;;  %v4470_v3 = vmax.f32 %v4438_v16, 0.0  ;;  %v4437_v51 = vadd.f32 %v22307_v39, %v4398_v6  ;;  %v4401_v60 = vadd.f32 %v18590_v54, %v4011_v58  ;;  %4535 = vrot.lane.b32.xlu0 %v4467_v29, %s20039_s24  ;;  %v7135_v58 = vld [vmem:[#allocation3 + $0xb1] sm:$0xff]  ;;  %v6746_v6 = vld [vmem:[#allocation3 + $0xc0] sm:$0xff] }
 0x330   : > { %18891 = vmatprep.mubr.msk.f32.mxu1 %vm371_vm1, %v6742_v41  ;;  %18941 = vmatprep.mubr.msk.f32.mxu0 %vm371_vm1, %v7132_v15  ;;  %v4273_v4 = vpop.f32.mrf.mxu1  ;;  %v25836_v29 = vld [vmem:[#allocation8_spill] sm:$0xff] }
 0x331   : > { %v22412_v1 = vpop.f32.mrf.mxu0  ;;  %v4440_v10 = vadd.f32 %v22307_v39, %v4401_v60  ;;  %v4400_v20 = vadd.f32 %v4273_v4, %v4010_v2  ;;  %4541 = vrot.lane.b32.xlu1 %v4470_v3, %s20039_s24  ;;  %v4469_v61 = vmax.f32 %v4437_v51, 0.0  ;;  %v25837_v2 = vld [vmem:[#allocation26_spill] sm:$0xff]  ;;  %v25838_v3 = vld [vmem:[#allocation24_spill] sm:$0xff]  ;;  %v6747_v60 = vld [vmem:[#allocation3 + $0xc8] sm:$0xff] }
 0x332   : > { %v18593_v18 = vpop.f32.mrf.mxu1  ;;  %18892 = vmatmul.mubr.msk.f32.gmra.mxu1 %vm371_vm1, %v6743_v31  ;;  %v3629_v54 = vadd.f32 %v25837_v2, %v25836_v29  ;;  %v4017_v51 = vadd.f32 %v25838_v3, %v3627_v32  ;;  %v7137_v15 = vld [vmem:[#allocation3 + $0xc9] sm:$0xff]  ;;  %v25839_v4 = vld [vmem:[#allocation9_spill] sm:$0xff]  ;;  %v25844_v32 = vld [vmem:[#allocation30_spill] sm:$0xff] }
 0x333   : > { %v22419_v48 = vpop.f32.mrf.mxu0  ;;  %18942 = vmatmul.mubr.msk.f32.gmra.mxu0 %vm371_vm1, %v7133_v36  ;;  %v4472_v33 = vmax.f32 %v4440_v10, 0.0  ;;  %v4439_v62 = vadd.f32 %v22307_v39, %v4400_v20  ;;  %v4403_v49 = vadd.f32 %v18593_v18, %v4013_v46  ;;  %4539 = vrot.lane.b32.xlu0 %v4469_v61, %s20039_s24  ;;  %v25840_v46 = vld [vmem:[#allocation28_spill] sm:$0xff]  ;;  %v6748_v36 = vld [vmem:[#allocation3 + $0xd8] sm:$0xff] }
 0x334   : > { %18894 = vmatprep.mubr.msk.f32.mxu1 %vm371_vm1, %v6744_v26  ;;  %18944 = vmatprep.mubr.msk.f32.mxu0 %vm371_vm1, %v7134_v27  ;;  %v4283_v44 = vpop.f32.mrf.mxu1  ;;  %v3628_v10 = vadd.f32 %v25840_v46, %v25839_v4  ;;  %v25841_v61 = vld [vmem:[#allocation25_spill] sm:$0xff] }
 0x335   : > { %v22429_v9 = vpop.f32.mrf.mxu0  ;;  %v4442_v35 = vadd.f32 %v22307_v39, %v4403_v49  ;;  %v4402_v13 = vadd.f32 %v4283_v44, %v4012_v8  ;;  %4545 = vrot.lane.b32.xlu1 %v4472_v33, %s20039_s24  ;;  %v4471_v22 = vmax.f32 %v4439_v62, 0.0  ;;  %v4016_v23 = vadd.f32 %v25841_v61, %v3626_v11  ;;  %v7138_v33 = vld [vmem:[#allocation3 + $0xd9] sm:$0xff]  ;;  %v25842_v62 = vld [vmem:[#allocation27_spill] sm:$0xff]  ;;  %v7140_v3 = vld [vmem:[#allocation3 + $0xf1] sm:$0xff] }
 0x336   : > { %v18596_v16 = vpop.f32.mrf.mxu1  ;;  %18895 = vmatmul.mubr.msk.f32.gmra.mxu1 %vm371_vm1, %v6745_v17  ;;  %v4019_v49 = vadd.f32 %v25842_v62, %v3629_v54  ;;  %v25843_v44 = vld [vmem:[#allocation10_spill] sm:$0xff]  ;;  %v6752_v62 = vld [vmem:[#allocation3 + $0x108] sm:$0xff] }
 0x337   : > { %v22436_v59 = vpop.f32.mrf.mxu0  ;;  %18945 = vmatmul.mubr.msk.f32.gmra.mxu0 %vm371_vm1, %v7135_v58  ;;  %v4474_v45 = vmax.f32 %v4442_v35, 0.0  ;;  %v4441_v12 = vadd.f32 %v22307_v39, %v4402_v13  ;;  %v4405_v57 = vadd.f32 %v18596_v16, %v4015_v52  ;;  %4543 = vrot.lane.b32.xlu0 %v4471_v22, %s20039_s24  ;;  %v3631_v35 = vadd.f32 %v25844_v32, %v25843_v44  ;;  %v6749_v58 = vld [vmem:[#allocation3 + $0xe0] sm:$0xff]  ;;  %v25845_v16 = vld [vmem:[#allocation29_spill] sm:$0xff] }
 0x338   : > { %18897 = vmatprep.mubr.msk.f32.mxu1 %vm371_vm1, %v6746_v6  ;;  %18947 = vmatprep.mubr.msk.f32.mxu0 %vm371_vm1, %v7136_v30  ;;  %v4293_v41 = vpop.f32.mrf.mxu1  ;;  %v7139_v22 = vld [vmem:[#allocation3 + $0xe1] sm:$0xff]  ;;  %v4018_v6 = vadd.f32 %v25845_v16, %v3628_v10  ;;  %v25847_v30 = vld [vmem:[#allocation32_spill] sm:$0xff] }
 0x339   : > { %v22448_v0 = vpop.f32.mrf.mxu0  ;;  %v4444_v7 = vadd.f32 %v22307_v39, %v4405_v57  ;;  %v4404_v55 = vadd.f32 %v4293_v41, %v4014_v43  ;;  %4549 = vrot.lane.b32.xlu1 %v4474_v45, %s20039_s24  ;;  %v4473_v28 = vmax.f32 %v4441_v12, 0.0  ;;  %v6750_v12 = vld [vmem:[#allocation3 + $0xf0] sm:$0xff]  ;;  %v25846_v57 = vld [vmem:[#allocation11_spill] sm:$0xff]  ;;  %v25855_v16 = vld [vmem:[#allocation14_spill] sm:$0xff] }
 0x33a   : > { %v18599_v20 = vpop.f32.mrf.mxu1  ;;  %18898 = vmatmul.mubr.msk.f32.gmra.mxu1 %vm371_vm1, %v6747_v60  ;;  %v3630_v29 = vadd.f32 %v25847_v30, %v25846_v57  ;;  %v6753_v30 = vld [vmem:[#allocation3 + $0x110] sm:$0xff] }
 0x33b   : > { %v22455_v31 = vpop.f32.mrf.mxu0  ;;  %18948 = vmatmul.mubr.msk.f32.gmra.mxu0 %vm371_vm1, %v7137_v15  ;;  %v4476_v18 = vmax.f32 %v4444_v7, 0.0  ;;  %v4443_v26 = vadd.f32 %v22307_v39, %v4404_v55  ;;  %v4407_v8 = vadd.f32 %v18599_v20, %v4017_v51  ;;  %4547 = vrot.lane.b32.xlu0 %v4473_v28, %s20039_s24  ;;  %v25848_v51 = vld [vmem:[#allocation12_spill] sm:$0xff]  ;;  %v25849_v7 = vld [vmem:[#allocation34_spill] sm:$0xff]  ;;  %v25850_v28 = vld [vmem:[#allocation31_spill] sm:$0xff] }
 0x33c   : > { %18900 = vmatprep.mubr.msk.f32.mxu1 %vm371_vm1, %v6748_v36  ;;  %18950 = vmatprep.mubr.msk.f32.mxu0 %vm371_vm1, %v7138_v33  ;;  %v4303_v27 = vpop.f32.mrf.mxu1  ;;  %v3633_v55 = vadd.f32 %v25849_v7, %v25848_v51  ;;  %v4021_v4 = vadd.f32 %v25850_v28, %v3631_v35  ;;  %v6751_v20 = vld [vmem:[#allocation3 + $0xf8] sm:$0xff]  ;;  %v6754_v7 = vld [vmem:[#allocation3 + $0x120] sm:$0xff] }
 0x33d   : > { %v22465_v52 = vpop.f32.mrf.mxu0  ;;  %v4446_v13 = vadd.f32 %v22307_v39, %v4407_v8  ;;  %v4406_v17 = vadd.f32 %v4303_v27, %v4016_v23  ;;  %4553 = vrot.lane.b32.xlu1 %v4476_v18, %s20039_s24  ;;  %v4475_v43 = vmax.f32 %v4443_v26, 0.0  ;;  %v7141_v36 = vld [vmem:[#allocation3 + $0xf9] sm:$0xff]  ;;  %v25852_v18 = vld [vmem:[#allocation36_spill] sm:$0xff] }
 0x33e   : > { %v18602_v11 = vpop.f32.mrf.mxu1  ;;  %18901 = vmatmul.mubr.msk.f32.gmra.mxu1 %vm371_vm1, %v6749_v58  ;;  %v25851_v23 = vld [vmem:[#allocation13_spill] sm:$0xff] }
 0x33f   : > { %v22472_v45 = vpop.f32.mrf.mxu0  ;;  %18951 = vmatmul.mubr.msk.f32.gmra.mxu0 %vm371_vm1, %v7139_v22  ;;  %v4478_v2 = vmax.f32 %v4446_v13, 0.0  ;;  %v4445_v54 = vadd.f32 %v22307_v39, %v4406_v17  ;;  %v4409_v41 = vadd.f32 %v18602_v11, %v4019_v49  ;;  %4551 = vrot.lane.b32.xlu0 %v4475_v43, %s20039_s24  ;;  %v3632_v26 = vadd.f32 %v25852_v18, %v25851_v23  ;;  %v25853_v49 = vld [vmem:[#allocation33_spill] sm:$0xff]  ;;  %v7142_v13 = vld [vmem:[#allocation3 + $0x109] sm:$0xff] }
 0x340   : > { %18903 = vmatprep.mubr.msk.f32.mxu1 %vm371_vm1, %v6750_v12  ;;  %18953 = vmatprep.mubr.msk.f32.mxu0 %vm371_vm1, %v7140_v3  ;;  %v4313_v60 = vpop.f32.mrf.mxu1  ;;  %v4020_v27 = vadd.f32 %v25853_v49, %v3630_v29  ;;  %v25854_v17 = vld [vmem:[#allocation35_spill] sm:$0xff]  ;;  %v7143_v29 = vld [vmem:[#allocation3 + $0x111] sm:$0xff] }
 0x341   : > { %v22484_v15 = vpop.f32.mrf.mxu0  ;;  %v4448_v46 = vadd.f32 %v22307_v39, %v4409_v41  ;;  %v4408_v10 = vadd.f32 %v4313_v60, %v4018_v6  ;;  %4557 = vrot.lane.b32.xlu1 %v4478_v2, %s20039_s24  ;;  %v4477_v61 = vmax.f32 %v4445_v54, 0.0  ;;  %v4023_v58 = vadd.f32 %v25854_v17, %v3633_v55  ;;  %v25856_v6 = vld [vmem:[#allocation38_spill] sm:$0xff]  ;;  %v25857_v54 = vld [vmem:[#allocation37_spill] sm:$0xff]  ;;  %v25858_v55 = vld [vmem:[#allocation15_spill] sm:$0xff] }
 0x342   : > { %v18605_v8 = vpop.f32.mrf.mxu1  ;;  %18904 = vmatmul.mubr.msk.f32.gmra.mxu1 %vm371_vm1, %v6751_v20  ;;  %v3635_v11 = vadd.f32 %v25856_v6, %v25855_v16  ;;  %v4022_v41 = vadd.f32 %v25857_v54, %v3632_v26  ;;  %v25859_v60 = vld [vmem:[#allocation40_spill] sm:$0xff]  ;;  %v7144_v20 = vld [vmem:[#allocation3 + $0x121] sm:$0xff]  ;;  %v6756_v6 = vld [vmem:[#allocation3 + $0x138] sm:$0xff] }
 0x343   : > { %v22491_v33 = vpop.f32.mrf.mxu0  ;;  %18954 = vmatmul.mubr.msk.f32.gmra.mxu0 %vm371_vm1, %v7141_v36  ;;  %v4480_v44 = vmax.f32 %v4448_v46, 0.0  ;;  %v4447_v32 = vadd.f32 %v22307_v39, %v4408_v10  ;;  %v4411_v35 = vadd.f32 %v18605_v8, %v4021_v4  ;;  %4555 = vrot.lane.b32.xlu0 %v4477_v61, %s20039_s24  ;;  %v3634_v28 = vadd.f32 %v25859_v60, %v25858_v55  ;;  %v25860_v36 = vld [vmem:[#allocation16_spill] sm:$0xff]  ;;  %v25861_v61 = vld [vmem:[#allocation42_spill] sm:$0xff]  ;;  %v25862_v8 = vld [vmem:[#allocation39_spill] sm:$0xff] }
 0x344   : > { %18906 = vmatprep.mubr.msk.f32.mxu1 %vm371_vm1, %v6752_v62  ;;  %18956 = vmatprep.mubr.msk.f32.mxu0 %vm371_vm1, %v7142_v13  ;;  %v4323_v22 = vpop.f32.mrf.mxu1  ;;  %v3637_v23 = vadd.f32 %v25861_v61, %v25860_v36  ;;  %v4025_v62 = vadd.f32 %v25862_v8, %v3635_v11  ;;  %v25863_v13 = vld [vmem:[#allocation17_spill] sm:$0xff]  ;;  %v25864_v17 = vld [vmem:[#allocation44_spill] sm:$0xff]  ;;  %v25866_v54 = vld [vmem:[#allocation43_spill] sm:$0xff] }
 0x345   : > { %v22501_v43 = vpop.f32.mrf.mxu0  ;;  %v4450_v12 = vadd.f32 %v22307_v39, %v4411_v35  ;;  %v4410_v57 = vadd.f32 %v4323_v22, %v4020_v27  ;;  %4561 = vrot.lane.b32.xlu1 %v4480_v44, %s20039_s24  ;;  %v4479_v2 = vmax.f32 %v4447_v32, 0.0  ;;  %v6755_v44 = vld [vmem:[#allocation3 + $0x128] sm:$0xff]  ;;  %v25865_v11 = vld [vmem:[#allocation41_spill] sm:$0xff]  ;;  %v25867_v55 = vld [vmem:[#allocation18_spill] sm:$0xff] }
 0x346   : > { %v18608_v3 = vpop.f32.mrf.mxu1  ;;  %18907 = vmatmul.mubr.msk.f32.gmra.mxu1 %vm371_vm1, %v6753_v30  ;;  %v7145_v32 = vld [vmem:[#allocation3 + $0x129] sm:$0xff]  ;;  %v25868_v60 = vld [vmem:[#allocation46_spill] sm:$0xff]  ;;  %v25869_v61 = vld [vmem:[#allocation45_spill] sm:$0xff] }
 0x347   : > { %v22508_v51 = vpop.f32.mrf.mxu0  ;;  %18957 = vmatmul.mubr.msk.f32.gmra.mxu0 %vm371_vm1, %v7143_v29  ;;  %v4482_v4 = vmax.f32 %v4450_v12, 0.0  ;;  %v4449_v46 = vadd.f32 %v22307_v39, %v4410_v57  ;;  %v4413_v10 = vadd.f32 %v18608_v3, %v4023_v58  ;;  %4559 = vrot.lane.b32.xlu0 %v4479_v2, %s20039_s24  ;;  %v3636_v58 = vadd.f32 %v25864_v17, %v25863_v13  ;;  %v7146_v2 = vld [vmem:[#allocation3 + $0x139] sm:$0xff]  ;;  %v7148_v17 = vld [vmem:[#allocation3 + $0x151] sm:$0xff] }
 0x348   : > { %18909 = vmatprep.mubr.msk.f32.mxu1 %vm371_vm1, %v6754_v7  ;;  %18959 = vmatprep.mubr.msk.f32.mxu0 %vm371_vm1, %v7144_v20  ;;  %v4333_v18 = vpop.f32.mrf.mxu1  ;;  %v4024_v12 = vadd.f32 %v25865_v11, %v3634_v28  ;;  %v7147_v20 = vld [vmem:[#allocation3 + $0x141] sm:$0xff] }
 0x349   : > { %v22520_v26 = vpop.f32.mrf.mxu0  ;;  %v4452_v49 = vadd.f32 %v22307_v39, %v4413_v10  ;;  %v4412_v27 = vadd.f32 %v4333_v18, %v4022_v41  ;;  %4565 = vrot.lane.b32.xlu1 %v4482_v4, %s20039_s24  ;;  %v4481_v35 = vmax.f32 %v4449_v46, 0.0  ;;  %v4027_v41 = vadd.f32 %v25866_v54, %v3637_v23  ;;  %v6757_v10 = vld [vmem:[#allocation3 + $0x140] sm:$0xff]  ;;  %v6759_v54 = vld [vmem:[#allocation3 + $0x158] sm:$0xff] }
 0x34a   : > { %v18611_v22 = vpop.f32.mrf.mxu1  ;;  %18910 = vmatmul.mubr.msk.f32.gmra.mxu1 %vm371_vm1, %v6755_v44  ;;  %v3639_v4 = vadd.f32 %v25868_v60, %v25867_v55  ;;  %v4026_v18 = vadd.f32 %v25869_v61, %v3636_v58  ;;  %v25872_v58 = vld [vmem:[#allocation20_spill] sm:$0xff]  ;;  %v25875_v55 = vld [vmem:[#allocation21_spill] sm:$0xff] }
 0x34b   : > { %v22527_v16 = vpop.f32.mrf.mxu0  ;;  %18960 = vmatmul.mubr.msk.f32.gmra.mxu0 %vm371_vm1, %v7145_v32  ;;  %v4484_v57 = vmax.f32 %v4452_v49, 0.0  ;;  %v4451_v30 = vadd.f32 %v22307_v39, %v4412_v27  ;;  %v4415_v29 = vadd.f32 %v18611_v22, %v4025_v62  ;;  %4563 = vrot.lane.b32.xlu0 %v4481_v35, %s20039_s24  ;;  %v6758_v62 = vld [vmem:[#allocation3 + $0x150] sm:$0xff]  ;;  %v25870_v49 = vld [vmem:[#allocation19_spill] sm:$0xff]  ;;  %v25873_v22 = vld [vmem:[#allocation50_spill] sm:$0xff]  ;;  %v3640_v60 = vadd.f32 %v22280_v34, %v25875_v55 }
 0x34c   : > { %18912 = vmatprep.mubr.msk.f32.mxu1 %vm371_vm1, %v6756_v6  ;;  %18962 = vmatprep.mubr.msk.f32.mxu0 %vm371_vm1, %v7146_v2  ;;  %v4343_v3 = vpop.f32.mrf.mxu1  ;;  %v25871_v27 = vld [vmem:[#allocation48_spill] sm:$0xff]  ;;  %v3641_v6 = vadd.f32 %v25873_v22, %v25872_v58  ;;  %v25877_v34 = vld [vmem:[#allocation51_spill] sm:$0xff] }
 0x34d   : > { %v22537_v7 = vpop.f32.mrf.mxu0  ;;  %v4454_v28 = vadd.f32 %v22307_v39, %v4415_v29  ;;  %v4414_v46 = vadd.f32 %v4343_v3, %v4024_v12  ;;  %4569 = vrot.lane.b32.xlu1 %v4484_v57, %s20039_s24  ;;  %v4483_v36 = vmax.f32 %v4451_v30, 0.0  ;;  %v3638_v44 = vadd.f32 %v25871_v27, %v25870_v49  ;;  %v25874_v57 = vld [vmem:[#allocation47_spill] sm:$0xff]  ;;  %v7151_v58 = vld [vmem:[#allocation3 + $0x171] sm:$0xff] }
 0x34e   : > { %v18614_v8 = vpop.f32.mrf.mxu1  ;;  %18913 = vmatmul.mubr.msk.f32.gmra.mxu1 %vm371_vm1, %v6757_v10  ;;  %v4029_v30 = vadd.f32 %v25874_v57, %v3639_v4  ;;  %v6760_v10 = vld [vmem:[#allocation3 + $0x168] sm:$0xff]  ;;  %v25876_v4 = vld [vmem:[#allocation49_spill] sm:$0xff] }
 0x34f   : > { %v22544_v23 = vpop.f32.mrf.mxu0  ;;  %18963 = vmatmul.mubr.msk.f32.gmra.mxu0 %vm371_vm1, %v7147_v20  ;;  %v4486_v32 = vmax.f32 %v4454_v28, 0.0  ;;  %v4453_v35 = vadd.f32 %v22307_v39, %v4414_v46  ;;  %v4417_v13 = vadd.f32 %v18614_v8, %v4027_v41  ;;  %4567 = vrot.lane.b32.xlu0 %v4483_v36, %s20039_s24  ;;  %v7149_v41 = vld [vmem:[#allocation3 + $0x159] sm:$0xff]  ;;  %v4028_v20 = vadd.f32 %v25876_v4, %v3638_v44  ;;  %v7150_v8 = vld [vmem:[#allocation3 + $0x169] sm:$0xff] }
 0x350   : > { %18915 = vmatprep.mubr.msk.f32.mxu1 %vm371_vm1, %v6758_v62  ;;  %18965 = vmatprep.mubr.msk.f32.mxu0 %vm371_vm1, %v7148_v17  ;;  %v4353_v11 = vpop.f32.mrf.mxu1  ;;  %v4031_v62 = vadd.f32 %v25877_v34, %v3641_v6  ;;  %v6761_v17 = vld [vmem:[#allocation3 + $0x170] sm:$0xff] }
 0x351   : > { %v22556_v12 = vpop.f32.mrf.mxu0  ;;  %v4456_v29 = vadd.f32 %v22307_v39, %v4417_v13  ;;  %v4416_v2 = vadd.f32 %v4353_v11, %v4026_v18  ;;  %4573 = vrot.lane.b32.xlu1 %v4486_v32, %s20039_s24  ;;  %v4485_v3 = vmax.f32 %v4453_v35, 0.0  ;;  %v25878_v32 = vld [vmem:[#allocation22_spill] sm:$0xff]  ;;  %v4030_v11 = vadd.f32 %v22282_v37, %v3640_v60 }
 0x352   : > { %v18617_v28 = vpop.f32.mrf.mxu1  ;;  %18916 = vmatmul.mubr.msk.f32.gmra.mxu1 %vm371_vm1, %v6759_v54  ;;  %v3643_v35 = vadd.f32 %v22286_v24, %v25878_v32  ;;  %v7152_v37 = vld [vmem:[#allocation3 + $0x181] sm:$0xff] }
 0x353   : > { %v22563_v46 = vpop.f32.mrf.mxu0  ;;  %18966 = vmatmul.mubr.msk.f32.gmra.mxu0 %vm371_vm1, %v7149_v41  ;;  %v4488_v36 = vmax.f32 %v4456_v29, 0.0  ;;  %v4455_v61 = vadd.f32 %v22307_v39, %v4416_v2  ;;  %v4419_v18 = vadd.f32 %v18617_v28, %v4029_v30  ;;  %4571 = vrot.lane.b32.xlu0 %v4485_v3, %s20039_s24  ;;  %v6762_v30 = vld [vmem:[#allocation3 + $0x180] sm:$0xff]  ;;  %v25879_v29 = vld [vmem:[#allocation23_spill] sm:$0xff]  ;;  %v25880_v28 = vld [vmem:[#allocation52_spill] sm:$0xff] }
 0x354   : > { %18918 = vmatprep.mubr.msk.f32.mxu1 %vm371_vm1, %v6760_v10  ;;  %18968 = vmatprep.mubr.msk.f32.mxu0 %vm371_vm1, %v7150_v8  ;;  %v4363_v49 = vpop.f32.mrf.mxu1  ;;  %v3642_v24 = vadd.f32 %v22297_v47, %v25879_v29  ;;  %v7512_v60 = vld [vmem:[#allocation3 + $0x1a] sm:$0xff]  ;;  %v4033_v10 = vadd.f32 %v25880_v28, %v3643_v35 }
 0x355   : > { %v22573_v27 = vpop.f32.mrf.mxu0  ;;  %v4458_v44 = vadd.f32 %v22307_v39, %v4419_v18  ;;  %v4418_v13 = vadd.f32 %v4363_v49, %v4028_v20  ;;  %4577 = vrot.lane.b32.xlu1 %v4488_v36, %s20039_s24  ;;  %v4487_v22 = vmax.f32 %v4455_v61, 0.0  ;;  %v6763_v20 = vld [vmem:[#allocation3 + $0x188] sm:$0xff]  ;;  %v7902_v18 = vld [vmem:[#allocation3 + $0x1b] sm:$0xff] }
 0x356   : > { %v18620_v57 = vpop.f32.mrf.mxu1  ;;  %18919 = vmatmul.mubr.msk.f32.gmra.mxu1 %vm371_vm1, %v6761_v17  ;;  %v7153_v36 = vld [vmem:[#allocation3 + $0x189] sm:$0xff] }
 0x357   : > { %v22580_v6 = vpop.f32.mrf.mxu0  ;;  %18969 = vmatmul.mubr.msk.f32.gmra.mxu0 %vm371_vm1, %v7151_v58  ;;  %v4490_v2 = vmax.f32 %v4458_v44, 0.0  ;;  %v4457_v54 = vadd.f32 %v22307_v39, %v4418_v13  ;;  %v4421_v41 = vadd.f32 %v18620_v57, %v4031_v62  ;;  %4575 = vrot.lane.b32.xlu0 %v4487_v22, %s20039_s24  ;;  %v4032_v62 = vadd.f32 %v22299_v40, %v3642_v24  ;;  %v7513_v44 = vld [vmem:[#allocation3 + $0x22] sm:$0xff] }
 0x358   : > { %18921 = vmatprep.mubr.msk.f32.mxu1 %vm371_vm1, %v6762_v30  ;;  %18971 = vmatprep.mubr.msk.f32.mxu0 %vm371_vm1, %v7152_v37  ;;  %v4373_v3 = vpop.f32.mrf.mxu1  ;;  %v7903_v13 = vld [vmem:[#allocation3 + $0x23] sm:$0xff] }
 0x359   : > { %v22590_v55 = vpop.f32.mrf.mxu0  ;;  %v4460_v4 = vadd.f32 %v22307_v39, %v4421_v41  ;;  %v4420_v47 = vadd.f32 %v4373_v3, %v4030_v11  ;;  %4581 = vrot.lane.b32.xlu1 %v4490_v2, %s20039_s24  ;;  %v4489_v61 = vmax.f32 %v4457_v54, 0.0  ;;  %v7514_v54 = vld [vmem:[#allocation3 + $0x32] sm:$0xff] }
 0x35a   : > { %v18623_v8 = vpop.f32.mrf.mxu1  ;;  %18922 = vmatmul.mubr.msk.f32.gmra.mxu1 %vm371_vm1, %v6763_v20  ;;  %v7904_v41 = vld [vmem:[#allocation3 + $0x33] sm:$0xff] }
 0x35b   : > { %v22595_v34 = vpop.f32.mrf.mxu0  ;;  %18972 = vmatmul.mubr.msk.f32.gmra.mxu0 %vm371_vm1, %v7153_v36  ;;  %v4492_v49 = vmax.f32 %v4460_v4, 0.0  ;;  %v4459_v32 = vadd.f32 %v22307_v39, %v4420_v47  ;;  %v4423_v35 = vadd.f32 %v18623_v8, %v4033_v10  ;;  %4579 = vrot.lane.b32.xlu0 %v4489_v61, %s20039_s24  ;;  %v22626_v10 = vld [vmem:[%s25663_s5 + $0x2c] sm:$0xf]  ;;  %v7906_v61 = vld [vmem:[#allocation3 + $0x4b] sm:$0xff] }
 0x35c   : > { %18976 = vmatprep.mubr.msk.f32.mxu1 %vm371_vm1, %v7512_v60  ;;  %v4383_v17 = vpop.f32.mrf.mxu1  ;;  %19026 = vmatprep.mubr.msk.f32.mxu0 %vm371_vm1, %v7902_v18 }
 0x35d   : > { %v22603_v58 = vpop.f32.mrf.mxu0  ;;  %v4462_v22 = vadd.f32 %v22307_v39, %v4423_v35  ;;  %v4422_v11 = vadd.f32 %v4383_v17, %v4032_v62  ;;  %4585 = vrot.lane.b32.xlu1 %v4492_v49, %s20039_s24  ;;  %v4491_v40 = vmax.f32 %v4459_v32, 0.0  ;;  %v7517_v32 = vld [vmem:[#allocation3 + $0x52] sm:$0xff]  ;;  %v7908_v17 = vld [vmem:[#allocation3 + $0x63] sm:$0xff] }
 0x35e   : > { %v18678_v57 = vpop.f32.mrf.mxu1  ;;  %18977 = vmatmul.mubr.msk.f32.vlgmr.msra.gmra.mxu1 %vm371_vm1, %v7513_v44  ;;  %v7907_v35 = vld [vmem:[#allocation3 + $0x53] sm:$0xff] }
 0x35f   : > { %v18728_v30 = vpop.f32.mrf.mxu0  ;;  %19027 = vmatmul.mubr.msk.f32.vlgmr.msra.gmra.mxu0 %vm371_vm1, %v7903_v13  ;;  %v4494_v29 = vmax.f32 %v4462_v22, 0.0  ;;  %v4461_v24 = vadd.f32 %v22307_v39, %v4422_v11  ;;  %v5408_v2 = vadd.f32 %v18678_v57, %v22309_v25  ;;  %19075 = vmatpush3.msk.msra.mxu1 %vm468_vm0, %v22317_v42  ;;  %v7515_v39 = vld [vmem:[#allocation3 + $0x3a] sm:$0xff]  ;;  %v7518_v13 = vld [vmem:[#allocation3 + $0x62] sm:$0xff] }
 0x360   : > { %4583 = vrot.lane.b32.xlu0 %v4491_v40, %s20039_s24  ;;  %18979 = vmatprep.mubr.msk.f32.mxu1 %vm371_vm1, %v7514_v54  ;;  %v5402_v37 = vpop.f32.mrf.mxu1  ;;  %v7905_v25 = vld [vmem:[#allocation3 + $0x3b] sm:$0xff] }
 0x361   : > { %19029 = vmatprep.mubr.msk.f32.mxu0 %vm371_vm1, %v7904_v41  ;;  %v5760_v3 = vpop.f32.mrf.mxu0  ;;  %v22617_v60 = vadd.f32 %v18728_v30, %v5408_v2  ;;  %v5403_v28 = vadd.f32 %v5402_v37, %v22334_v56  ;;  %19125 = vmatpush3.msk.msra.mxu0 %vm468_vm0, %v22322_v5  ;;  %v4493_v42 = vmax.f32 %v4461_v24, 0.0  ;;  %v7516_v56 = vld [vmem:[#allocation3 + $0x4a] sm:$0xff]  ;;  %v22633_v5 = vld [vmem:[%s25663_s5 + $0x30] sm:$0xf] }
 0x362   : > { %4589 = vrot.lane.b32.xlu1 %v4494_v29, %s20039_s24  ;;  %v18681_v4 = vpop.f32.mrf.mxu1  ;;  %18980 = vmatmul.mubr.msk.f32.gmra.mxu1 %vm371_vm1, %v7515_v39  ;;  %v7519_v29 = vld [vmem:[#allocation3 + $0x6a] sm:$0xff]  ;;  %v7520_v41 = vld [vmem:[#allocation3 + $0x7a] sm:$0xff] }
 0x363   : > { %v18731_v47 = vpop.f32.mrf.mxu0  ;;  %19030 = vmatmul.mubr.msk.f32.gmra.mxu0 %vm371_vm1, %v7905_v25  ;;  %v22635_v20 = vadd.f32 %v5760_v3, %v5403_v28  ;;  %v5418_v36 = vadd.f32 %v18681_v4, %v22346_v21  ;;  %18982 = vmatprep.mubr.msk.f32.mxu1 %vm371_vm1, %v7516_v56  ;;  %v7909_v24 = vld [vmem:[#allocation3 + $0x6b] sm:$0xff]  ;;  %v7911_v4 = vld [vmem:[#allocation3 + $0x83] sm:$0xff] }
 0x364   : > { %4587 = vrot.lane.b32.xlu0 %v4493_v42, %s20039_s24  ;;  %19032 = vmatprep.mubr.msk.f32.mxu0 %vm371_vm1, %v7906_v61  ;;  %v5412_v18 = vpop.f32.mrf.mxu1  ;;  %v7521_v42 = vld [vmem:[#allocation3 + $0x82] sm:$0xff] }
 0x365   : > { %v5770_v8 = vpop.f32.mrf.mxu0  ;;  %19174 = vmatprep.subr.msk.mxu1 %vm468_vm0, %v22626_v10  ;;  %v22643_v62 = vadd.f32 %v18731_v47, %v5418_v36  ;;  %v5413_v49 = vadd.f32 %v5412_v18, %v22357_v53  ;;  %19224 = vmatprep.subr.msk.mxu0 %vm468_vm0, %v22633_v5  ;;  %v7522_v36 = vld [vmem:[#allocation3 + $0x92] sm:$0xff] }
 0x366   : > { %v18684_v21 = vpop.f32.mrf.mxu1  ;;  %18983 = vmatmul.mubr.msk.f32.gmra.mxu1 %vm371_vm1, %v7517_v32 }
 0x367   : > { %v18734_v44 = vpop.f32.mrf.mxu0  ;;  %19033 = vmatmul.mubr.msk.f32.gmra.mxu0 %vm371_vm1, %v7907_v35  ;;  %v22650_v22 = vadd.f32 %v5770_v8, %v5413_v49  ;;  %v5428_v11 = vadd.f32 %v18684_v21, %v22364_v38  ;;  %18985 = vmatprep.mubr.msk.f32.mxu1 %vm371_vm1, %v7518_v13  ;;  %v7910_v38 = vld [vmem:[#allocation3 + $0x7b] sm:$0xff] }
 0x368   : > { %19035 = vmatprep.mubr.msk.f32.mxu0 %vm371_vm1, %v7908_v17  ;;  %v5422_v53 = vpop.f32.mrf.mxu1  ;;  %v7523_v35 = vld [vmem:[#allocation3 + $0x9a] sm:$0xff]  ;;  %v7524_v17 = vld [vmem:[#allocation3 + $0xaa] sm:$0xff] }
 0x369   : > { %v5780_v40 = vpop.f32.mrf.mxu0  ;;  %v22655_v57 = vadd.f32 %v18734_v44, %v5428_v11  ;;  %v5423_v30 = vadd.f32 %v5422_v53, %v22376_v50  ;;  %v7913_v21 = vld [vmem:[#allocation3 + $0x9b] sm:$0xff] }
 0x36a   : > { %v18687_v2 = vpop.f32.mrf.mxu1  ;;  %18986 = vmatmul.mubr.msk.f32.gmra.mxu1 %vm371_vm1, %v7519_v29 }
 0x36b   : > { %v18737_v54 = vpop.f32.mrf.mxu0  ;;  %19036 = vmatmul.mubr.msk.f32.gmra.mxu0 %vm371_vm1, %v7909_v24  ;;  %v22660_v37 = vadd.f32 %v5780_v40, %v5423_v30  ;;  %v5438_v3 = vadd.f32 %v18687_v2, %v22383_v14  ;;  %18988 = vmatprep.mubr.msk.f32.mxu1 %vm371_vm1, %v7520_v41  ;;  %v7912_v14 = vld [vmem:[#allocation3 + $0x93] sm:$0xff] }
 0x36c   : > { %19038 = vmatprep.mubr.msk.f32.mxu0 %vm371_vm1, %v7910_v38  ;;  %v5432_v28 = vpop.f32.mrf.mxu1  ;;  %v7525_v24 = vld [vmem:[#allocation3 + $0xb2] sm:$0xff]  ;;  %v7526_v38 = vld [vmem:[#allocation3 + $0xc2] sm:$0xff] }
 0x36d   : > { %v5790_v50 = vpop.f32.mrf.mxu0  ;;  %v22665_v39 = vadd.f32 %v18737_v54, %v5438_v3  ;;  %v5433_v25 = vadd.f32 %v5432_v28, %v22393_v63  ;;  %v7915_v2 = vld [vmem:[#allocation3 + $0xb3] sm:$0xff] }
 0x36e   : > { %v18690_v47 = vpop.f32.mrf.mxu1  ;;  %18989 = vmatmul.mubr.msk.f32.gmra.mxu1 %vm371_vm1, %v7521_v42 }
 0x36f   : > { %v18740_v56 = vpop.f32.mrf.mxu0  ;;  %19039 = vmatmul.mubr.msk.f32.gmra.mxu0 %vm371_vm1, %v7911_v4  ;;  %v22670_v61 = vadd.f32 %v5790_v50, %v5433_v25  ;;  %v5448_v18 = vadd.f32 %v18690_v47, %v22400_v19  ;;  %18991 = vmatprep.mubr.msk.f32.mxu1 %vm371_vm1, %v7522_v36  ;;  %v7914_v19 = vld [vmem:[#allocation3 + $0xab] sm:$0xff] }
 0x370   : > { %19041 = vmatprep.mubr.msk.f32.mxu0 %vm371_vm1, %v7912_v14  ;;  %v5442_v8 = vpop.f32.mrf.mxu1  ;;  %v7527_v4 = vld [vmem:[#allocation3 + $0xca] sm:$0xff]  ;;  %v7528_v14 = vld [vmem:[#allocation3 + $0xda] sm:$0xff] }
 0x371   : > { %v5800_v63 = vpop.f32.mrf.mxu0  ;;  %v22675_v49 = vadd.f32 %v18740_v56, %v5448_v18  ;;  %v5443_v32 = vadd.f32 %v5442_v8, %v22412_v1  ;;  %v7917_v47 = vld [vmem:[#allocation3 + $0xcb] sm:$0xff] }
 0x372   : > { %v18693_v44 = vpop.f32.mrf.mxu1  ;;  %18992 = vmatmul.mubr.msk.f32.gmra.mxu1 %vm371_vm1, %v7523_v35 }
 0x373   : > { %v18743_v13 = vpop.f32.mrf.mxu0  ;;  %19042 = vmatmul.mubr.msk.f32.gmra.mxu0 %vm371_vm1, %v7913_v21  ;;  %v22680_v11 = vadd.f32 %v5800_v63, %v5443_v32  ;;  %v5458_v53 = vadd.f32 %v18693_v44, %v22419_v48  ;;  %18994 = vmatprep.mubr.msk.f32.mxu1 %vm371_vm1, %v7524_v17  ;;  %v7916_v48 = vld [vmem:[#allocation3 + $0xc3] sm:$0xff] }
 0x374   : > { %19044 = vmatprep.mubr.msk.f32.mxu0 %vm371_vm1, %v7914_v19  ;;  %v5452_v40 = vpop.f32.mrf.mxu1  ;;  %v7529_v21 = vld [vmem:[#allocation3 + $0xe2] sm:$0xff]  ;;  %v7530_v19 = vld [vmem:[#allocation3 + $0xf2] sm:$0xff] }
 0x375   : > { %v5810_v1 = vpop.f32.mrf.mxu0  ;;  %v22685_v30 = vadd.f32 %v18743_v13, %v5458_v53  ;;  %v5453_v29 = vadd.f32 %v5452_v40, %v22429_v9  ;;  %v7919_v44 = vld [vmem:[#allocation3 + $0xe3] sm:$0xff] }
 0x376   : > { %v18696_v54 = vpop.f32.mrf.mxu1  ;;  %18995 = vmatmul.mubr.msk.f32.gmra.mxu1 %vm371_vm1, %v7525_v24 }
 0x377   : > { %v18746_v41 = vpop.f32.mrf.mxu0  ;;  %19045 = vmatmul.mubr.msk.f32.gmra.mxu0 %vm371_vm1, %v7915_v2  ;;  %v22690_v3 = vadd.f32 %v5810_v1, %v5453_v29  ;;  %v5468_v28 = vadd.f32 %v18696_v54, %v22436_v59  ;;  %18997 = vmatprep.mubr.msk.f32.mxu1 %vm371_vm1, %v7526_v38  ;;  %v7918_v59 = vld [vmem:[#allocation3 + $0xdb] sm:$0xff] }
 0x378   : > { %19047 = vmatprep.mubr.msk.f32.mxu0 %vm371_vm1, %v7916_v48  ;;  %v5462_v50 = vpop.f32.mrf.mxu1  ;;  %v7531_v2 = vld [vmem:[#allocation3 + $0xfa] sm:$0xff]  ;;  %v7532_v48 = vld [vmem:[#allocation3 + $0x10a] sm:$0xff] }
 0x379   : > { %v5820_v9 = vpop.f32.mrf.mxu0  ;;  %v22695_v25 = vadd.f32 %v18746_v41, %v5468_v28  ;;  %v5463_v42 = vadd.f32 %v5462_v50, %v22448_v0  ;;  %v7921_v54 = vld [vmem:[#allocation3 + $0xfb] sm:$0xff] }
 0x37a   : > { %v18699_v56 = vpop.f32.mrf.mxu1  ;;  %18998 = vmatmul.mubr.msk.f32.gmra.mxu1 %vm371_vm1, %v7527_v4 }
 0x37b   : > { %v18749_v36 = vpop.f32.mrf.mxu0  ;;  %19048 = vmatmul.mubr.msk.f32.gmra.mxu0 %vm371_vm1, %v7917_v47  ;;  %v22700_v18 = vadd.f32 %v5820_v9, %v5463_v42  ;;  %v5478_v8 = vadd.f32 %v18699_v56, %v22455_v31  ;;  %19000 = vmatprep.mubr.msk.f32.mxu1 %vm371_vm1, %v7528_v14  ;;  %v7920_v31 = vld [vmem:[#allocation3 + $0xf3] sm:$0xff] }
 0x37c   : > { %19050 = vmatprep.mubr.msk.f32.mxu0 %vm371_vm1, %v7918_v59  ;;  %v5472_v63 = vpop.f32.mrf.mxu1  ;;  %v7533_v47 = vld [vmem:[#allocation3 + $0x112] sm:$0xff]  ;;  %v7534_v59 = vld [vmem:[#allocation3 + $0x122] sm:$0xff] }
 0x37d   : > { %v5830_v0 = vpop.f32.mrf.mxu0  ;;  %v22705_v32 = vadd.f32 %v18749_v36, %v5478_v8  ;;  %v5473_v35 = vadd.f32 %v5472_v63, %v22465_v52  ;;  %v7923_v56 = vld [vmem:[#allocation3 + $0x113] sm:$0xff] }
 0x37e   : > { %v18702_v13 = vpop.f32.mrf.mxu1  ;;  %19001 = vmatmul.mubr.msk.f32.gmra.mxu1 %vm371_vm1, %v7529_v21 }
 0x37f   : > { %v18752_v17 = vpop.f32.mrf.mxu0  ;;  %19051 = vmatmul.mubr.msk.f32.gmra.mxu0 %vm371_vm1, %v7919_v44  ;;  %v22710_v53 = vadd.f32 %v5830_v0, %v5473_v35  ;;  %v5488_v40 = vadd.f32 %v18702_v13, %v22472_v45  ;;  %19003 = vmatprep.mubr.msk.f32.mxu1 %vm371_vm1, %v7530_v19  ;;  %v7922_v45 = vld [vmem:[#allocation3 + $0x10b] sm:$0xff] }
 0x380   : > { %19053 = vmatprep.mubr.msk.f32.mxu0 %vm371_vm1, %v7920_v31  ;;  %v5482_v1 = vpop.f32.mrf.mxu1  ;;  %v7535_v44 = vld [vmem:[#allocation3 + $0x12a] sm:$0xff]  ;;  %v7536_v31 = vld [vmem:[#allocation3 + $0x13a] sm:$0xff] }
 0x381   : > { %v5840_v52 = vpop.f32.mrf.mxu0  ;;  %v22715_v29 = vadd.f32 %v18752_v17, %v5488_v40  ;;  %v5483_v24 = vadd.f32 %v5482_v1, %v22484_v15  ;;  %v7925_v13 = vld [vmem:[#allocation3 + $0x12b] sm:$0xff] }
 0x382   : > { %v18705_v41 = vpop.f32.mrf.mxu1  ;;  %19004 = vmatmul.mubr.msk.f32.gmra.mxu1 %vm371_vm1, %v7531_v2 }
 0x383   : > { %v18755_v38 = vpop.f32.mrf.mxu0  ;;  %19054 = vmatmul.mubr.msk.f32.gmra.mxu0 %vm371_vm1, %v7921_v54  ;;  %v22720_v28 = vadd.f32 %v5840_v52, %v5483_v24  ;;  %v5498_v50 = vadd.f32 %v18705_v41, %v22491_v33  ;;  %19006 = vmatprep.mubr.msk.f32.mxu1 %vm371_vm1, %v7532_v48  ;;  %v7924_v33 = vld [vmem:[#allocation3 + $0x123] sm:$0xff] }
 0x384   : > { %19056 = vmatprep.mubr.msk.f32.mxu0 %vm371_vm1, %v7922_v45  ;;  %v5492_v9 = vpop.f32.mrf.mxu1  ;;  %v7537_v54 = vld [vmem:[#allocation3 + $0x142] sm:$0xff]  ;;  %v7538_v45 = vld [vmem:[#allocation3 + $0x152] sm:$0xff] }
 0x385   : > { %v5850_v15 = vpop.f32.mrf.mxu0  ;;  %v22725_v42 = vadd.f32 %v18755_v38, %v5498_v50  ;;  %v5493_v4 = vadd.f32 %v5492_v9, %v22501_v43  ;;  %v7927_v41 = vld [vmem:[#allocation3 + $0x143] sm:$0xff] }
 0x386   : > { %v18708_v36 = vpop.f32.mrf.mxu1  ;;  %19007 = vmatmul.mubr.msk.f32.gmra.mxu1 %vm371_vm1, %v7533_v47 }
 0x387   : > { %v18758_v14 = vpop.f32.mrf.mxu0  ;;  %19057 = vmatmul.mubr.msk.f32.gmra.mxu0 %vm371_vm1, %v7923_v56  ;;  %v22730_v8 = vadd.f32 %v5850_v15, %v5493_v4  ;;  %v5508_v63 = vadd.f32 %v18708_v36, %v22508_v51  ;;  %19009 = vmatprep.mubr.msk.f32.mxu1 %vm371_vm1, %v7534_v59  ;;  %v7926_v51 = vld [vmem:[#allocation3 + $0x13b] sm:$0xff] }
 0x388   : > { %19059 = vmatprep.mubr.msk.f32.mxu0 %vm371_vm1, %v7924_v33  ;;  %v5502_v0 = vpop.f32.mrf.mxu1  ;;  %v7539_v56 = vld [vmem:[#allocation3 + $0x15a] sm:$0xff]  ;;  %v7540_v33 = vld [vmem:[#allocation3 + $0x16a] sm:$0xff] }
 0x389   : > { %v5860_v43 = vpop.f32.mrf.mxu0  ;;  %v22735_v35 = vadd.f32 %v18758_v14, %v5508_v63  ;;  %v5503_v21 = vadd.f32 %v5502_v0, %v22520_v26  ;;  %v7929_v36 = vld [vmem:[#allocation3 + $0x15b] sm:$0xff] }
 0x38a   : > { %v18711_v17 = vpop.f32.mrf.mxu1  ;;  %19010 = vmatmul.mubr.msk.f32.gmra.mxu1 %vm371_vm1, %v7535_v44 }
 0x38b   : > { %v18761_v19 = vpop.f32.mrf.mxu0  ;;  %19060 = vmatmul.mubr.msk.f32.gmra.mxu0 %vm371_vm1, %v7925_v13  ;;  %v22740_v40 = vadd.f32 %v5860_v43, %v5503_v21  ;;  %v5518_v1 = vadd.f32 %v18711_v17, %v22527_v16  ;;  %19012 = vmatprep.mubr.msk.f32.mxu1 %vm371_vm1, %v7536_v31  ;;  %v7928_v16 = vld [vmem:[#allocation3 + $0x153] sm:$0xff] }
 0x38c   : > { %19062 = vmatprep.mubr.msk.f32.mxu0 %vm371_vm1, %v7926_v51  ;;  %v5512_v52 = vpop.f32.mrf.mxu1  ;;  %v7541_v13 = vld [vmem:[#allocation3 + $0x172] sm:$0xff]  ;;  %v7932_v51 = vld [vmem:[#allocation3 + $0x183] sm:$0xff] }
 0x38d   : > { %v5870_v26 = vpop.f32.mrf.mxu0  ;;  %v22745_v24 = vadd.f32 %v18761_v19, %v5518_v1  ;;  %v5513_v2 = vadd.f32 %v5512_v52, %v22537_v7  ;;  %v7931_v17 = vld [vmem:[#allocation3 + $0x173] sm:$0xff] }
 0x38e   : > { %v18714_v38 = vpop.f32.mrf.mxu1  ;;  %19013 = vmatmul.mubr.msk.f32.gmra.mxu1 %vm371_vm1, %v7537_v54  ;;  %v8292_v54 = vld [vmem:[#allocation3 + $0x1c] sm:$0xff] }
 0x38f   : > { %v18764_v48 = vpop.f32.mrf.mxu0  ;;  %19063 = vmatmul.mubr.msk.f32.gmra.mxu0 %vm371_vm1, %v7927_v41  ;;  %v22750_v50 = vadd.f32 %v5870_v26, %v5513_v2  ;;  %v5528_v9 = vadd.f32 %v18714_v38, %v22544_v23  ;;  %19015 = vmatprep.mubr.msk.f32.mxu1 %vm371_vm1, %v7538_v45  ;;  %v7930_v23 = vld [vmem:[#allocation3 + $0x16b] sm:$0xff] }
 0x390   : > { %19065 = vmatprep.mubr.msk.f32.mxu0 %vm371_vm1, %v7928_v16  ;;  %v5522_v15 = vpop.f32.mrf.mxu1  ;;  %v7543_v45 = vld [vmem:[#allocation3 + $0x18a] sm:$0xff] }
 0x391   : > { %v5880_v7 = vpop.f32.mrf.mxu0  ;;  %v22755_v4 = vadd.f32 %v18764_v48, %v5528_v9  ;;  %v5523_v47 = vadd.f32 %v5522_v15, %v22556_v12  ;;  %v7933_v16 = vld [vmem:[#allocation3 + $0x18b] sm:$0xff] }
 0x392   : > { %v18717_v14 = vpop.f32.mrf.mxu1  ;;  %19016 = vmatmul.mubr.msk.f32.gmra.mxu1 %vm371_vm1, %v7539_v56  ;;  %v8682_v15 = vld [vmem:[#allocation3 + $0x30] sm:$0xff] }
 0x393   : > { %v18767_v59 = vpop.f32.mrf.mxu0  ;;  %19066 = vmatmul.mubr.msk.f32.gmra.mxu0 %vm371_vm1, %v7929_v36  ;;  %v22760_v63 = vadd.f32 %v5880_v7, %v5523_v47  ;;  %v5538_v0 = vadd.f32 %v18717_v14, %v22563_v46  ;;  %19018 = vmatprep.mubr.msk.f32.mxu1 %vm371_vm1, %v7540_v33  ;;  %v7542_v46 = vld [vmem:[#allocation3 + $0x182] sm:$0xff] }
 0x394   : > { %19068 = vmatprep.mubr.msk.f32.mxu0 %vm371_vm1, %v7930_v23  ;;  %v5532_v43 = vpop.f32.mrf.mxu1 }
 0x395   : > { %v5890_v12 = vpop.f32.mrf.mxu0  ;;  %v22765_v21 = vadd.f32 %v18767_v59, %v5538_v0  ;;  %v5533_v44 = vadd.f32 %v5532_v43, %v22573_v27  ;;  %v8683_v0 = vld [vmem:[#allocation3 + $0x38] sm:$0xff] }
 0x396   : > { %v18720_v19 = vpop.f32.mrf.mxu1  ;;  %19019 = vmatmul.mubr.msk.f32.gmra.mxu1 %vm371_vm1, %v7541_v13 }
 0x397   : > { %v18770_v31 = vpop.f32.mrf.mxu0  ;;  %19069 = vmatmul.mubr.msk.f32.gmra.mxu0 %vm371_vm1, %v7931_v17  ;;  %v22770_v1 = vadd.f32 %v5890_v12, %v5533_v44  ;;  %v5548_v52 = vadd.f32 %v18720_v19, %v22580_v6  ;;  %v4530_v26 = vpop.permute.xlu1 %4529  ;;  %19021 = vmatprep.mubr.msk.f32.mxu1 %vm371_vm1, %v7542_v46  ;;  %v8294_v12 = vld [vmem:[#allocation3 + $0x34] sm:$0xff]  ;;  %v22801_v44 = vld [vmem:[%s25663_s5 + $0x34] sm:$0xf] }
 0x398   : > { %19071 = vmatprep.mubr.msk.f32.mxu0 %vm371_vm1, %v7932_v51  ;;  %4625 = vst.msk [vmem:[%s20530_s28 + $0x8] sm:$0xff] %vm4623_vm5, %v4530_v26  ;;  %v5542_v27 = vpop.f32.mrf.mxu1 }
 0x399   : > { %v5900_v2 = vpop.f32.mrf.mxu0  ;;  %v22777_v41 = vadd.f32 %v18770_v31, %v5548_v52  ;;  %v5543_v38 = vadd.f32 %v5542_v27, %v22590_v55  ;;  %v4528_v48 = vpop.permute.xlu0 %4527  ;;  %v8293_v55 = vld [vmem:[#allocation3 + $0x24] sm:$0xff]  ;;  %v8685_v27 = vld [vmem:[#allocation3 + $0x50] sm:$0xff] }
 0x39a   : > { %4624 = vst.msk [vmem:[%s20530_s28] sm:$0xff] %vm4623_vm5, %v4528_v48  ;;  %v18723_v6 = vpop.f32.mrf.mxu1  ;;  %19022 = vmatmul.mubr.msk.f32.gmra.mxu1 %vm371_vm1, %v7543_v45  ;;  %v8684_v31 = vld [vmem:[#allocation3 + $0x48] sm:$0xff] }
 0x39b   : > { %v18773_v9 = vpop.f32.mrf.mxu0  ;;  %19072 = vmatmul.mubr.msk.f32.gmra.mxu0 %vm371_vm1, %v7933_v16  ;;  %v22784_v7 = vadd.f32 %v5900_v2, %v5543_v38  ;;  %v5558_v47 = vadd.f32 %v18723_v6, %v22595_v34  ;;  %v4534_v56 = vpop.permute.xlu1 %4533  ;;  %19076 = vmatprep.mubr.msk.f32.mxu1 %vm371_vm1, %v8292_v54 }
 0x39c   : > { %19126 = vmatprep.mubr.msk.f32.mxu0 %vm371_vm1, %v8682_v15  ;;  %4627 = vst.msk [vmem:[%s20530_s28 + $0x18] sm:$0xff] %vm4623_vm5, %v4534_v56  ;;  %v5552_v36 = vpop.f32.mrf.mxu1  ;;  %v8297_v56 = vld [vmem:[#allocation3 + $0x54] sm:$0xff] }
 0x39d   : > { %v5910_v14 = vpop.f32.mrf.mxu0  ;;  %v22791_v59 = vadd.f32 %v18773_v9, %v5558_v47  ;;  %v5553_v33 = vadd.f32 %v5552_v36, %v22603_v58  ;;  %v4532_v23 = vpop.permute.xlu0 %4531  ;;  %v22806_v58 = vld [vmem:[%s25663_s5 + $0x38] sm:$0xf] }
 0x39e   : > { %4626 = vst.msk [vmem:[%s20530_s28 + $0x10] sm:$0xff] %vm4623_vm5, %v4532_v23  ;;  %v18778_v34 = vpop.f32.mrf.mxu1  ;;  %19077 = vmatmul.mubr.msk.f32.vlgmr.msra.gmra.mxu1 %vm371_vm1, %v8293_v55  ;;  %v8687_v55 = vld [vmem:[#allocation3 + $0x68] sm:$0xff] }
 0x39f   : > { %v18828_v43 = vpop.f32.mrf.mxu0  ;;  %19127 = vmatmul.mubr.msk.f32.vlgmr.msra.gmra.mxu0 %vm371_vm1, %v8683_v0  ;;  %v22808_v13 = vadd.f32 %v5910_v14, %v5553_v33  ;;  %v6310_v17 = vadd.f32 %v18778_v34, %v22617_v60  ;;  %19175 = vmatpush3.msk.msra.mxu1 %vm468_vm0, %v22626_v10  ;;  %v4538_v19 = vpop.permute.xlu1 %4537  ;;  %v8295_v10 = vld [vmem:[#allocation3 + $0x3c] sm:$0xff]  ;;  %v8298_v14 = vld [vmem:[#allocation3 + $0x64] sm:$0xff] }
 0x3a0   : > { %19079 = vmatprep.mubr.msk.f32.mxu1 %vm371_vm1, %v8294_v12  ;;  %4629 = vst.msk [vmem:[%s20530_s28 + $0x28] sm:$0xff] %vm4623_vm5, %v4538_v19  ;;  %19129 = vmatprep.mubr.msk.f32.mxu0 %vm371_vm1, %v8684_v31  ;;  %v6150_v46 = vpop.f32.mrf.mxu1  ;;  %v8688_v33 = vld [vmem:[#allocation3 + $0x78] sm:$0xff]  ;;  %v8299_v31 = vld [vmem:[#allocation3 + $0x6c] sm:$0xff] }
 0x3a1   : > { %v6540_v51 = vpop.f32.mrf.mxu0  ;;  %19225 = vmatpush3.msk.msra.mxu0 %vm468_vm0, %v22633_v5  ;;  %v22819_v52 = vadd.f32 %v18828_v43, %v6310_v17  ;;  %v6309_v60 = vadd.f32 %v6150_v46, %v22635_v20  ;;  %v4536_v26 = vpop.permute.xlu0 %4535  ;;  %19274 = vmatprep.subr.msk.mxu1 %vm468_vm0, %v22801_v44  ;;  %v8296_v5 = vld [vmem:[#allocation3 + $0x4c] sm:$0xff]  ;;  %v8686_v20 = vld [vmem:[#allocation3 + $0x60] sm:$0xff] }
 0x3a2   : > { %19324 = vmatprep.subr.msk.mxu0 %vm468_vm0, %v22806_v58  ;;  %4628 = vst.msk [vmem:[%s20530_s28 + $0x20] sm:$0xff] %vm4623_vm5, %v4536_v26  ;;  %v18781_v2 = vpop.f32.mrf.mxu1  ;;  %19080 = vmatmul.mubr.msk.f32.gmra.mxu1 %vm371_vm1, %v8295_v10  ;;  %v8689_v46 = vld [vmem:[#allocation3 + $0x80] sm:$0xff]  ;;  %v8690_v26 = vld [vmem:[#allocation3 + $0x90] sm:$0xff] }
 0x3a3   : > { %v18831_v54 = vpop.f32.mrf.mxu0  ;;  %19130 = vmatmul.mubr.msk.f32.gmra.mxu0 %vm371_vm1, %v8685_v27  ;;  %v22830_v38 = vadd.f32 %v6540_v51, %v6309_v60  ;;  %v6312_v48 = vadd.f32 %v18781_v2, %v22643_v62  ;;  %v4542_v45 = vpop.permute.xlu1 %4541  ;;  %19082 = vmatprep.mubr.msk.f32.mxu1 %vm371_vm1, %v8296_v5  ;;  %v8300_v60 = vld [vmem:[#allocation3 + $0x7c] sm:$0xff] }
 0x3a4   : > { %19132 = vmatprep.mubr.msk.f32.mxu0 %vm371_vm1, %v8686_v20  ;;  %4631 = vst.msk [vmem:[%s20530_s28 + $0x38] sm:$0xff] %vm4623_vm5, %v4542_v45  ;;  %v6160_v16 = vpop.f32.mrf.mxu1  ;;  %v8301_v45 = vld [vmem:[#allocation3 + $0x84] sm:$0xff] }
 0x3a5   : > { %v6550_v6 = vpop.f32.mrf.mxu0  ;;  %v22837_v9 = vadd.f32 %v18831_v54, %v6312_v48  ;;  %v6311_v15 = vadd.f32 %v6160_v16, %v22650_v22  ;;  %v4540_v47 = vpop.permute.xlu0 %4539  ;;  %v8691_v16 = vld [vmem:[#allocation3 + $0x98] sm:$0xff] }
 0x3a6   : > { %4630 = vst.msk [vmem:[%s20530_s28 + $0x30] sm:$0xff] %vm4623_vm5, %v4540_v47  ;;  %v18784_v62 = vpop.f32.mrf.mxu1  ;;  %19083 = vmatmul.mubr.msk.f32.gmra.mxu1 %vm371_vm1, %v8297_v56  ;;  %v8692_v47 = vld [vmem:[#allocation3 + $0xa8] sm:$0xff] }
 0x3a7   : > { %v18834_v36 = vpop.f32.mrf.mxu0  ;;  %19133 = vmatmul.mubr.msk.f32.gmra.mxu0 %vm371_vm1, %v8687_v55  ;;  %v22844_v23 = vadd.f32 %v6550_v6, %v6311_v15  ;;  %v6314_v0 = vadd.f32 %v18784_v62, %v22655_v57  ;;  %v4546_v22 = vpop.permute.xlu1 %4545  ;;  %19085 = vmatprep.mubr.msk.f32.mxu1 %vm371_vm1, %v8298_v14  ;;  %v8302_v15 = vld [vmem:[#allocation3 + $0x94] sm:$0xff] }
 0x3a8   : > { %19135 = vmatprep.mubr.msk.f32.mxu0 %vm371_vm1, %v8688_v33  ;;  %4633 = vst.msk [vmem:[%s20530_s28 + $0x48] sm:$0xff] %vm4623_vm5, %v4546_v22  ;;  %v6170_v34 = vpop.f32.mrf.mxu1  ;;  %v8303_v22 = vld [vmem:[#allocation3 + $0x9c] sm:$0xff] }
 0x3a9   : > { %v6560_v43 = vpop.f32.mrf.mxu0  ;;  %v22851_v12 = vadd.f32 %v18834_v36, %v6314_v0  ;;  %v6313_v17 = vadd.f32 %v6170_v34, %v22660_v37  ;;  %v4544_v19 = vpop.permute.xlu0 %4543  ;;  %v8693_v34 = vld [vmem:[#allocation3 + $0xb0] sm:$0xff] }
 0x3aa   : > { %4632 = vst.msk [vmem:[%s20530_s28 + $0x40] sm:$0xff] %vm4623_vm5, %v4544_v19  ;;  %v18787_v57 = vpop.f32.mrf.mxu1  ;;  %19086 = vmatmul.mubr.msk.f32.gmra.mxu1 %vm371_vm1, %v8299_v31  ;;  %v8694_v19 = vld [vmem:[#allocation3 + $0xc0] sm:$0xff] }
 0x3ab   : > { %v18837_v51 = vpop.f32.mrf.mxu0  ;;  %19136 = vmatmul.mubr.msk.f32.gmra.mxu0 %vm371_vm1, %v8689_v46  ;;  %v22858_v10 = vadd.f32 %v6560_v43, %v6313_v17  ;;  %v6316_v27 = vadd.f32 %v18787_v57, %v22665_v39  ;;  %v4550_v37 = vpop.permute.xlu1 %4549  ;;  %19088 = vmatprep.mubr.msk.f32.mxu1 %vm371_vm1, %v8300_v60  ;;  %v8304_v17 = vld [vmem:[#allocation3 + $0xac] sm:$0xff] }
 0x3ac   : > { %19138 = vmatprep.mubr.msk.f32.mxu0 %vm371_vm1, %v8690_v26  ;;  %4635 = vst.msk [vmem:[%s20530_s28 + $0x58] sm:$0xff] %vm4623_vm5, %v4550_v37  ;;  %v6180_v2 = vpop.f32.mrf.mxu1  ;;  %v8305_v37 = vld [vmem:[#allocation3 + $0xb4] sm:$0xff] }
 0x3ad   : > { %v6570_v54 = vpop.f32.mrf.mxu0  ;;  %v22865_v5 = vadd.f32 %v18837_v51, %v6316_v27  ;;  %v6315_v20 = vadd.f32 %v6180_v2, %v22670_v61  ;;  %v4548_v48 = vpop.permute.xlu0 %4547  ;;  %v8695_v2 = vld [vmem:[#allocation3 + $0xc8] sm:$0xff] }
 0x3ae   : > { %4634 = vst.msk [vmem:[%s20530_s28 + $0x50] sm:$0xff] %vm4623_vm5, %v4548_v48  ;;  %v18790_v39 = vpop.f32.mrf.mxu1  ;;  %19089 = vmatmul.mubr.msk.f32.gmra.mxu1 %vm371_vm1, %v8301_v45  ;;  %v8696_v48 = vld [vmem:[#allocation3 + $0xd8] sm:$0xff] }
 0x3af   : > { %v18840_v6 = vpop.f32.mrf.mxu0  ;;  %19139 = vmatmul.mubr.msk.f32.gmra.mxu0 %vm371_vm1, %v8691_v16  ;;  %v22872_v56 = vadd.f32 %v6570_v54, %v6315_v20  ;;  %v6318_v55 = vadd.f32 %v18790_v39, %v22675_v49  ;;  %v4554_v61 = vpop.permute.xlu1 %4553  ;;  %19091 = vmatprep.mubr.msk.f32.mxu1 %vm371_vm1, %v8302_v15  ;;  %v8306_v20 = vld [vmem:[#allocation3 + $0xc4] sm:$0xff] }
 0x3b0   : > { %19141 = vmatprep.mubr.msk.f32.mxu0 %vm371_vm1, %v8692_v47  ;;  %4637 = vst.msk [vmem:[%s20530_s28 + $0x68] sm:$0xff] %vm4623_vm5, %v4554_v61  ;;  %v6190_v62 = vpop.f32.mrf.mxu1  ;;  %v8307_v61 = vld [vmem:[#allocation3 + $0xcc] sm:$0xff] }
 0x3b1   : > { %v6580_v36 = vpop.f32.mrf.mxu0  ;;  %v22879_v14 = vadd.f32 %v18840_v6, %v6318_v55  ;;  %v6317_v33 = vadd.f32 %v6190_v62, %v22680_v11  ;;  %v4552_v0 = vpop.permute.xlu0 %4551  ;;  %v8697_v62 = vld [vmem:[#allocation3 + $0xe0] sm:$0xff] }
 0x3b2   : > { %4636 = vst.msk [vmem:[%s20530_s28 + $0x60] sm:$0xff] %vm4623_vm5, %v4552_v0  ;;  %v18793_v49 = vpop.f32.mrf.mxu1  ;;  %19092 = vmatmul.mubr.msk.f32.gmra.mxu1 %vm371_vm1, %v8303_v22  ;;  %v8698_v0 = vld [vmem:[#allocation3 + $0xf0] sm:$0xff] }
 0x3b3   : > { %v18843_v43 = vpop.f32.mrf.mxu0  ;;  %19142 = vmatmul.mubr.msk.f32.gmra.mxu0 %vm371_vm1, %v8693_v34  ;;  %v22886_v31 = vadd.f32 %v6580_v36, %v6317_v33  ;;  %v6320_v46 = vadd.f32 %v18793_v49, %v22685_v30  ;;  %v4558_v11 = vpop.permute.xlu1 %4557  ;;  %19094 = vmatprep.mubr.msk.f32.mxu1 %vm371_vm1, %v8304_v17  ;;  %v8308_v33 = vld [vmem:[#allocation3 + $0xdc] sm:$0xff] }
 0x3b4   : > { %19144 = vmatprep.mubr.msk.f32.mxu0 %vm371_vm1, %v8694_v19  ;;  %4639 = vst.msk [vmem:[%s20530_s28 + $0x78] sm:$0xff] %vm4623_vm5, %v4558_v11  ;;  %v6200_v57 = vpop.f32.mrf.mxu1  ;;  %v8309_v11 = vld [vmem:[#allocation3 + $0xe4] sm:$0xff] }
 0x3b5   : > { %v6590_v51 = vpop.f32.mrf.mxu0  ;;  %v22893_v60 = vadd.f32 %v18843_v43, %v6320_v46  ;;  %v6319_v26 = vadd.f32 %v6200_v57, %v22690_v3  ;;  %v4556_v27 = vpop.permute.xlu0 %4555  ;;  %v8699_v57 = vld [vmem:[#allocation3 + $0xf8] sm:$0xff] }
 0x3b6   : > { %4638 = vst.msk [vmem:[%s20530_s28 + $0x70] sm:$0xff] %vm4623_vm5, %v4556_v27  ;;  %v18796_v30 = vpop.f32.mrf.mxu1  ;;  %19095 = vmatmul.mubr.msk.f32.gmra.mxu1 %vm371_vm1, %v8305_v37  ;;  %v8700_v27 = vld [vmem:[#allocation3 + $0x108] sm:$0xff] }
 0x3b7   : > { %v18846_v54 = vpop.f32.mrf.mxu0  ;;  %19145 = vmatmul.mubr.msk.f32.gmra.mxu0 %vm371_vm1, %v8695_v2  ;;  %v22900_v45 = vadd.f32 %v6590_v51, %v6319_v26  ;;  %v6322_v16 = vadd.f32 %v18796_v30, %v22695_v25  ;;  %v4562_v3 = vpop.permute.xlu1 %4561  ;;  %19097 = vmatprep.mubr.msk.f32.mxu1 %vm371_vm1, %v8306_v20  ;;  %v8310_v26 = vld [vmem:[#allocation3 + $0xf4] sm:$0xff] }
 0x3b8   : > { %19147 = vmatprep.mubr.msk.f32.mxu0 %vm371_vm1, %v8696_v48  ;;  %4641 = vst.msk [vmem:[%s20530_s28 + $0x88] sm:$0xff] %vm4623_vm5, %v4562_v3  ;;  %v6210_v39 = vpop.f32.mrf.mxu1  ;;  %v8311_v3 = vld [vmem:[#allocation3 + $0xfc] sm:$0xff] }
 0x3b9   : > { %v6600_v6 = vpop.f32.mrf.mxu0  ;;  %v22907_v15 = vadd.f32 %v18846_v54, %v6322_v16  ;;  %v6321_v47 = vadd.f32 %v6210_v39, %v22700_v18  ;;  %v4560_v55 = vpop.permute.xlu0 %4559  ;;  %v8701_v39 = vld [vmem:[#allocation3 + $0x110] sm:$0xff] }
 0x3ba   : > { %4640 = vst.msk [vmem:[%s20530_s28 + $0x80] sm:$0xff] %vm4623_vm5, %v4560_v55  ;;  %v18799_v25 = vpop.f32.mrf.mxu1  ;;  %19098 = vmatmul.mubr.msk.f32.gmra.mxu1 %vm371_vm1, %v8307_v61  ;;  %v8702_v55 = vld [vmem:[#allocation3 + $0x120] sm:$0xff] }
 0x3bb   : > { %v18849_v36 = vpop.f32.mrf.mxu0  ;;  %19148 = vmatmul.mubr.msk.f32.gmra.mxu0 %vm371_vm1, %v8697_v62  ;;  %v22914_v22 = vadd.f32 %v6600_v6, %v6321_v47  ;;  %v6324_v34 = vadd.f32 %v18799_v25, %v22705_v32  ;;  %v4566_v18 = vpop.permute.xlu1 %4565  ;;  %19100 = vmatprep.mubr.msk.f32.mxu1 %vm371_vm1, %v8308_v33  ;;  %v8312_v47 = vld [vmem:[#allocation3 + $0x10c] sm:$0xff] }
 0x3bc   : > { %19150 = vmatprep.mubr.msk.f32.mxu0 %vm371_vm1, %v8698_v0  ;;  %4643 = vst.msk [vmem:[%s20530_s28 + $0x98] sm:$0xff] %vm4623_vm5, %v4566_v18  ;;  %v6220_v49 = vpop.f32.mrf.mxu1  ;;  %v8313_v18 = vld [vmem:[#allocation3 + $0x114] sm:$0xff] }
 0x3bd   : > { %v6610_v43 = vpop.f32.mrf.mxu0  ;;  %v22921_v17 = vadd.f32 %v18849_v36, %v6324_v34  ;;  %v6323_v19 = vadd.f32 %v6220_v49, %v22710_v53  ;;  %v4564_v46 = vpop.permute.xlu0 %4563  ;;  %v8703_v49 = vld [vmem:[#allocation3 + $0x128] sm:$0xff] }
 0x3be   : > { %4642 = vst.msk [vmem:[%s20530_s28 + $0x90] sm:$0xff] %vm4623_vm5, %v4564_v46  ;;  %v18802_v32 = vpop.f32.mrf.mxu1  ;;  %19101 = vmatmul.mubr.msk.f32.gmra.mxu1 %vm371_vm1, %v8309_v11  ;;  %v8704_v46 = vld [vmem:[#allocation3 + $0x138] sm:$0xff] }
 0x3bf   : > { %v18852_v51 = vpop.f32.mrf.mxu0  ;;  %19151 = vmatmul.mubr.msk.f32.gmra.mxu0 %vm371_vm1, %v8699_v57  ;;  %v22928_v37 = vadd.f32 %v6610_v43, %v6323_v19  ;;  %v6326_v2 = vadd.f32 %v18802_v32, %v22715_v29  ;;  %v4570_v53 = vpop.permute.xlu1 %4569  ;;  %19103 = vmatprep.mubr.msk.f32.mxu1 %vm371_vm1, %v8310_v26  ;;  %v8314_v19 = vld [vmem:[#allocation3 + $0x124] sm:$0xff] }
 0x3c0   : > { %19153 = vmatprep.mubr.msk.f32.mxu0 %vm371_vm1, %v8700_v27  ;;  %4645 = vst.msk [vmem:[%s20530_s28 + $0xa8] sm:$0xff] %vm4623_vm5, %v4570_v53  ;;  %v6230_v30 = vpop.f32.mrf.mxu1  ;;  %v8315_v53 = vld [vmem:[#allocation3 + $0x12c] sm:$0xff] }
 0x3c1   : > { %v6620_v54 = vpop.f32.mrf.mxu0  ;;  %v22935_v20 = vadd.f32 %v18852_v51, %v6326_v2  ;;  %v6325_v48 = vadd.f32 %v6230_v30, %v22720_v28  ;;  %v4568_v16 = vpop.permute.xlu0 %4567  ;;  %v8705_v30 = vld [vmem:[#allocation3 + $0x140] sm:$0xff] }
 0x3c2   : > { %4644 = vst.msk [vmem:[%s20530_s28 + $0xa0] sm:$0xff] %vm4623_vm5, %v4568_v16  ;;  %v18805_v29 = vpop.f32.mrf.mxu1  ;;  %19104 = vmatmul.mubr.msk.f32.gmra.mxu1 %vm371_vm1, %v8311_v3  ;;  %v8706_v16 = vld [vmem:[#allocation3 + $0x150] sm:$0xff] }
 0x3c3   : > { %v18855_v6 = vpop.f32.mrf.mxu0  ;;  %19154 = vmatmul.mubr.msk.f32.gmra.mxu0 %vm371_vm1, %v8701_v39  ;;  %v22942_v61 = vadd.f32 %v6620_v54, %v6325_v48  ;;  %v6328_v62 = vadd.f32 %v18805_v29, %v22725_v42  ;;  %v4574_v28 = vpop.permute.xlu1 %4573  ;;  %19106 = vmatprep.mubr.msk.f32.mxu1 %vm371_vm1, %v8312_v47  ;;  %v8316_v48 = vld [vmem:[#allocation3 + $0x13c] sm:$0xff] }
 0x3c4   : > { %19156 = vmatprep.mubr.msk.f32.mxu0 %vm371_vm1, %v8702_v55  ;;  %4647 = vst.msk [vmem:[%s20530_s28 + $0xb8] sm:$0xff] %vm4623_vm5, %v4574_v28  ;;  %v6240_v25 = vpop.f32.mrf.mxu1  ;;  %v8317_v28 = vld [vmem:[#allocation3 + $0x144] sm:$0xff] }
 0x3c5   : > { %v6630_v36 = vpop.f32.mrf.mxu0  ;;  %v22949_v33 = vadd.f32 %v18855_v6, %v6328_v62  ;;  %v6327_v0 = vadd.f32 %v6240_v25, %v22730_v8  ;;  %v4572_v34 = vpop.permute.xlu0 %4571  ;;  %v8707_v25 = vld [vmem:[#allocation3 + $0x158] sm:$0xff] }
 0x3c6   : > { %4646 = vst.msk [vmem:[%s20530_s28 + $0xb0] sm:$0xff] %vm4623_vm5, %v4572_v34  ;;  %v18808_v42 = vpop.f32.mrf.mxu1  ;;  %19107 = vmatmul.mubr.msk.f32.gmra.mxu1 %vm371_vm1, %v8313_v18  ;;  %v8708_v34 = vld [vmem:[#allocation3 + $0x168] sm:$0xff] }
 0x3c7   : > { %v18858_v43 = vpop.f32.mrf.mxu0  ;;  %19157 = vmatmul.mubr.msk.f32.gmra.mxu0 %vm371_vm1, %v8703_v49  ;;  %v22956_v11 = vadd.f32 %v6630_v36, %v6327_v0  ;;  %v6330_v57 = vadd.f32 %v18808_v42, %v22735_v35  ;;  %v4578_v8 = vpop.permute.xlu1 %4577  ;;  %19109 = vmatprep.mubr.msk.f32.mxu1 %vm371_vm1, %v8314_v19  ;;  %v8318_v0 = vld [vmem:[#allocation3 + $0x154] sm:$0xff] }
 0x3c8   : > { %19159 = vmatprep.mubr.msk.f32.mxu0 %vm371_vm1, %v8704_v46  ;;  %4649 = vst.msk [vmem:[%s20530_s28 + $0xc8] sm:$0xff] %vm4623_vm5, %v4578_v8  ;;  %v6250_v32 = vpop.f32.mrf.mxu1  ;;  %v8319_v8 = vld [vmem:[#allocation3 + $0x15c] sm:$0xff] }
 0x3c9   : > { %v6640_v51 = vpop.f32.mrf.mxu0  ;;  %v22963_v26 = vadd.f32 %v18858_v43, %v6330_v57  ;;  %v6329_v27 = vadd.f32 %v6250_v32, %v22740_v40  ;;  %v4576_v2 = vpop.permute.xlu0 %4575  ;;  %v8709_v32 = vld [vmem:[#allocation3 + $0x170] sm:$0xff] }
 0x3ca   : > { %4648 = vst.msk [vmem:[%s20530_s28 + $0xc0] sm:$0xff] %vm4623_vm5, %v4576_v2  ;;  %v18811_v35 = vpop.f32.mrf.mxu1  ;;  %19110 = vmatmul.mubr.msk.f32.gmra.mxu1 %vm371_vm1, %v8315_v53  ;;  %v8710_v2 = vld [vmem:[#allocation3 + $0x180] sm:$0xff] }
 0x3cb   : > { %v18861_v54 = vpop.f32.mrf.mxu0  ;;  %19160 = vmatmul.mubr.msk.f32.gmra.mxu0 %vm371_vm1, %v8705_v30  ;;  %v22970_v3 = vadd.f32 %v6640_v51, %v6329_v27  ;;  %v6332_v39 = vadd.f32 %v18811_v35, %v22745_v24  ;;  %v4582_v40 = vpop.permute.xlu1 %4581  ;;  %19112 = vmatprep.mubr.msk.f32.mxu1 %vm371_vm1, %v8316_v48  ;;  %v8320_v27 = vld [vmem:[#allocation3 + $0x16c] sm:$0xff] }
 0x3cc   : > { %19162 = vmatprep.mubr.msk.f32.mxu0 %vm371_vm1, %v8706_v16  ;;  %4651 = vst.msk [vmem:[%s20530_s28 + $0xd8] sm:$0xff] %vm4623_vm5, %v4582_v40  ;;  %v6260_v29 = vpop.f32.mrf.mxu1  ;;  %v8321_v40 = vld [vmem:[#allocation3 + $0x174] sm:$0xff] }
 0x3cd   : > { %v6650_v6 = vpop.f32.mrf.mxu0  ;;  %v22977_v47 = vadd.f32 %v18861_v54, %v6332_v39  ;;  %v6331_v55 = vadd.f32 %v6260_v29, %v22750_v50  ;;  %v4580_v62 = vpop.permute.xlu0 %4579  ;;  %v8711_v29 = vld [vmem:[#allocation3 + $0x188] sm:$0xff] }
 0x3ce   : > { %4650 = vst.msk [vmem:[%s20530_s28 + $0xd0] sm:$0xff] %vm4623_vm5, %v4580_v62  ;;  %v18814_v24 = vpop.f32.mrf.mxu1  ;;  %19113 = vmatmul.mubr.msk.f32.gmra.mxu1 %vm371_vm1, %v8317_v28  ;;  %v8712_v62 = vld [vmem:[#allocation3 + $0x198] sm:$0xff] }
 0x3cf   : > { %v18864_v36 = vpop.f32.mrf.mxu0  ;;  %19163 = vmatmul.mubr.msk.f32.gmra.mxu0 %vm371_vm1, %v8707_v25  ;;  %v22984_v18 = vadd.f32 %v6650_v6, %v6331_v55  ;;  %v6334_v49 = vadd.f32 %v18814_v24, %v22755_v4  ;;  %v4586_v50 = vpop.permute.xlu1 %4585  ;;  %19115 = vmatprep.mubr.msk.f32.mxu1 %vm371_vm1, %v8318_v0  ;;  %v23012_v55 = vld [vmem:[#allocation3 + $0x184] sm:$0xff] }
 0x3d0   : > { %19165 = vmatprep.mubr.msk.f32.mxu0 %vm371_vm1, %v8708_v34  ;;  %4653 = vst.msk [vmem:[%s20530_s28 + $0xe8] sm:$0xff] %vm4623_vm5, %v4586_v50  ;;  %v6270_v42 = vpop.f32.mrf.mxu1  ;;  %v23023_v34 = vld [vmem:[#allocation3 + $0x18c] sm:$0xff] }
 0x3d1   : > { %v6660_v43 = vpop.f32.mrf.mxu0  ;;  %v22991_v19 = vadd.f32 %v18864_v36, %v6334_v49  ;;  %v6333_v46 = vadd.f32 %v6270_v42, %v22760_v63  ;;  %v8713_v49 = vld [vmem:[#allocation3 + $0x1a0] sm:$0xff] }
 0x3d2   : > { %v4584_v57 = vpop.permute.xlu0 %4583  ;;  %v18817_v4 = vpop.f32.mrf.mxu1  ;;  %19116 = vmatmul.mubr.msk.f32.gmra.mxu1 %vm371_vm1, %v8319_v8 }
 0x3d3   : > { %4652 = vst.msk [vmem:[%s20530_s28 + $0xe0] sm:$0xff] %vm4623_vm5, %v4584_v57  ;;  %v18867_v51 = vpop.f32.mrf.mxu0  ;;  %19166 = vmatmul.mubr.msk.f32.gmra.mxu0 %vm371_vm1, %v8709_v32  ;;  %v22998_v53 = vadd.f32 %v6660_v43, %v6333_v46  ;;  %v6336_v30 = vadd.f32 %v18817_v4, %v22765_v21  ;;  %19118 = vmatprep.mubr.msk.f32.mxu1 %vm371_vm1, %v8320_v27  ;;  %v9462_v43 = vld [vmem:[#allocation3 + $0x32] sm:$0xff]  ;;  %v9463_v27 = vld [vmem:[#allocation3 + $0x3a] sm:$0xff] }
 0x3d4   : > { %v4590_v63 = vpop.permute.xlu1 %4589  ;;  %19168 = vmatprep.mubr.msk.f32.mxu0 %vm371_vm1, %v8710_v2  ;;  %v6280_v35 = vpop.f32.mrf.mxu1 }
 0x3d5   : > { %4655 = vst.msk [vmem:[%s20530_s28 + $0xf8] sm:$0xff] %vm4623_vm5, %v4590_v63  ;;  %v6670_v54 = vpop.f32.mrf.mxu0  ;;  %v23005_v48 = vadd.f32 %v18867_v51, %v6336_v30  ;;  %v6335_v16 = vadd.f32 %v6280_v35, %v22770_v1  ;;  %v9073_v51 = vld [vmem:[#allocation3 + $0x39] sm:$0xff]  ;;  %v23038_v63 = vld [vmem:[#allocation3 + $0x49] sm:$0xff] }
 0x3d6   : > { %v4588_v39 = vpop.permute.xlu0 %4587  ;;  %v18820_v6 = vpop.f32.mrf.mxu1  ;;  %19119 = vmatmul.mubr.msk.f32.gmra.mxu1 %vm371_vm1, %v8321_v40  ;;  %v23048_v35 = vld [vmem:[%s25663_s5 + $0x40] sm:$0xf] }
 0x3d7   : > { %4654 = vst.msk [vmem:[%s20530_s28 + $0xf0] sm:$0xff] %vm4623_vm5, %v4588_v39  ;;  %v18870_v21 = vpop.f32.mrf.mxu0  ;;  %19169 = vmatmul.mubr.msk.f32.gmra.mxu0 %vm371_vm1, %v8711_v29  ;;  %v23014_v28 = vadd.f32 %v6670_v54, %v6335_v16  ;;  %v6338_v25 = vadd.f32 %v18820_v6, %v22777_v41  ;;  %19121 = vmatprep.mubr.msk.f32.mxu1 %vm371_vm1, %v23012_v55  ;;  %v9072_v41 = vld [vmem:[#allocation3 + $0x31] sm:$0xff] }
 0x3d8   : > { %19171 = vmatprep.mubr.msk.f32.mxu0 %vm371_vm1, %v8712_v62  ;;  %v6290_v1 = vpop.f32.mrf.mxu1  ;;  %v9464_v16 = vld [vmem:[#allocation3 + $0x4a] sm:$0xff] }
 0x3d9   : > { %v6680_v24 = vpop.f32.mrf.mxu0  ;;  %v23020_v36 = vadd.f32 %v18870_v21, %v6338_v25  ;;  %v6337_v0 = vadd.f32 %v6290_v1, %v22784_v7  ;;  %v23063_v21 = vld [vmem:[#allocation3 + $0x51] sm:$0xff]  ;;  %v9466_v25 = vld [vmem:[#allocation3 + $0x62] sm:$0xff] }
 0x3da   : > { %v18823_v50 = vpop.f32.mrf.mxu1  ;;  %19122 = vmatmul.mubr.msk.f32.gmra.mxu1 %vm371_vm1, %v23023_v34 }
 0x3db   : > { %v18873_v42 = vpop.f32.mrf.mxu0  ;;  %19172 = vmatmul.mubr.msk.f32.gmra.mxu0 %vm371_vm1, %v8713_v49  ;;  %v23028_v46 = vadd.f32 %v6680_v24, %v6337_v0  ;;  %v6340_v57 = vadd.f32 %v18823_v50, %v22791_v59  ;;  %19176 = vmatprep.mubr.msk.f32.mxu1 %vm371_vm1, %v9072_v41  ;;  %v23043_v59 = vld [vmem:[%s25663_s5 + $0x3c] sm:$0xf] }
 0x3dc   : > { %19226 = vmatprep.mubr.msk.f32.mxu0 %vm371_vm1, %v9462_v43  ;;  %v6300_v7 = vpop.f32.mrf.mxu1  ;;  %v9467_v41 = vld [vmem:[#allocation3 + $0x6a] sm:$0xff] }
 0x3dd   : > { %v6690_v8 = vpop.f32.mrf.mxu0  ;;  %v23033_v32 = vadd.f32 %v18873_v42, %v6340_v57  ;;  %v6339_v4 = vadd.f32 %v6300_v7, %v22808_v13  ;;  %v23083_v42 = vld [vmem:[#allocation3 + $0x69] sm:$0xff]  ;;  %v9468_v7 = vld [vmem:[#allocation3 + $0x7a] sm:$0xff] }
 0x3de   : > { %v18878_v2 = vpop.f32.mrf.mxu1  ;;  %19177 = vmatmul.mubr.msk.f32.vlgmr.msra.gmra.mxu1 %vm371_vm1, %v9073_v51 }
 0x3df   : > { %v18928_v30 = vpop.f32.mrf.mxu0  ;;  %19227 = vmatmul.mubr.msk.f32.vlgmr.msra.gmra.mxu0 %vm371_vm1, %v9463_v27  ;;  %v23050_v13 = vadd.f32 %v6690_v8, %v6339_v4  ;;  %v7091_v54 = vadd.f32 %v18878_v2, %v22819_v52  ;;  %19275 = vmatpush3.msk.msra.mxu1 %vm468_vm0, %v22801_v44  ;;  %v9465_v52 = vld [vmem:[#allocation3 + $0x52] sm:$0xff] }
 0x3e0   : > { %19179 = vmatprep.mubr.msk.f32.mxu1 %vm371_vm1, %v23038_v63  ;;  %19229 = vmatprep.mubr.msk.f32.mxu0 %vm371_vm1, %v9464_v16  ;;  %v6931_v39 = vpop.f32.mrf.mxu1 }
 0x3e1   : > { %v7321_v40 = vpop.f32.mrf.mxu0  ;;  %19325 = vmatpush3.msk.msra.mxu0 %vm468_vm0, %v22806_v58  ;;  %v23060_v29 = vadd.f32 %v18928_v30, %v7091_v54  ;;  %v7090_v6 = vadd.f32 %v6931_v39, %v22830_v38  ;;  %19374 = vmatprep.subr.msk.mxu1 %vm468_vm0, %v23043_v59  ;;  %v23072_v58 = vld [vmem:[#allocation3 + $0x61] sm:$0xff] }
 0x3e2   : > { %19424 = vmatprep.subr.msk.mxu0 %vm468_vm0, %v23048_v35  ;;  %v18881_v44 = vpop.f32.mrf.mxu1  ;;  %19180 = vmatmul.mubr.msk.f32.gmra.mxu1 %vm371_vm1, %v23063_v21  ;;  %v23099_v30 = vld [vmem:[#allocation3 + $0x81] sm:$0xff] }
 0x3e3   : > { %v18931_v62 = vpop.f32.mrf.mxu0  ;;  %19230 = vmatmul.mubr.msk.f32.gmra.mxu0 %vm371_vm1, %v9465_v52  ;;  %v23074_v38 = vadd.f32 %v7321_v40, %v7090_v6  ;;  %v7093_v1 = vadd.f32 %v18881_v44, %v22837_v9  ;;  %19182 = vmatprep.mubr.msk.f32.mxu1 %vm371_vm1, %v23072_v58  ;;  %v23088_v9 = vld [vmem:[#allocation3 + $0x79] sm:$0xff]  ;;  %v9469_v54 = vld [vmem:[#allocation3 + $0x82] sm:$0xff] }
 0x3e4   : > { %19232 = vmatprep.mubr.msk.f32.mxu0 %vm371_vm1, %v9466_v25  ;;  %v6941_v24 = vpop.f32.mrf.mxu1  ;;  %v9470_v40 = vld [vmem:[#allocation3 + $0x92] sm:$0xff] }
 0x3e5   : > { %v7331_v0 = vpop.f32.mrf.mxu0  ;;  %v23080_v49 = vadd.f32 %v18931_v62, %v7093_v1  ;;  %v7092_v50 = vadd.f32 %v6941_v24, %v22844_v23  ;;  %v23115_v1 = vld [vmem:[#allocation3 + $0x99] sm:$0xff] }
 0x3e6   : > { %v18884_v43 = vpop.f32.mrf.mxu1  ;;  %19183 = vmatmul.mubr.msk.f32.gmra.mxu1 %vm371_vm1, %v23083_v42  ;;  %v9471_v24 = vld [vmem:[#allocation3 + $0x9a] sm:$0xff] }
 0x3e7   : > { %v18934_v57 = vpop.f32.mrf.mxu0  ;;  %19233 = vmatmul.mubr.msk.f32.gmra.mxu0 %vm371_vm1, %v9467_v41  ;;  %v23090_v8 = vadd.f32 %v7331_v0, %v7092_v50  ;;  %v7095_v4 = vadd.f32 %v18884_v43, %v22851_v12  ;;  %19185 = vmatprep.mubr.msk.f32.mxu1 %vm371_vm1, %v23088_v9  ;;  %v23104_v12 = vld [vmem:[#allocation3 + $0x91] sm:$0xff] }
 0x3e8   : > { %19235 = vmatprep.mubr.msk.f32.mxu0 %vm371_vm1, %v9468_v7  ;;  %v6951_v23 = vpop.f32.mrf.mxu1  ;;  %v9472_v41 = vld [vmem:[#allocation3 + $0xaa] sm:$0xff] }
 0x3e9   : > { %v7341_v51 = vpop.f32.mrf.mxu0  ;;  %v23096_v27 = vadd.f32 %v18934_v57, %v7095_v4  ;;  %v7094_v2 = vadd.f32 %v6951_v23, %v22858_v10 }
 0x3ea   : > { %v18887_v16 = vpop.f32.mrf.mxu1  ;;  %19186 = vmatmul.mubr.msk.f32.gmra.mxu1 %vm371_vm1, %v23099_v30 }
 0x3eb   : > { %v18937_v39 = vpop.f32.mrf.mxu0  ;;  %19236 = vmatmul.mubr.msk.f32.gmra.mxu0 %vm371_vm1, %v9469_v54  ;;  %v23106_v6 = vadd.f32 %v7341_v51, %v7094_v2  ;;  %v7097_v52 = vadd.f32 %v18887_v16, %v22865_v5  ;;  %19188 = vmatprep.mubr.msk.f32.mxu1 %vm371_vm1, %v23104_v12  ;;  %v23120_v5 = vld [vmem:[#allocation3 + $0xa9] sm:$0xff]  ;;  %v23131_v51 = vld [vmem:[#allocation3 + $0xb1] sm:$0xff] }
 0x3ec   : > { %19238 = vmatprep.mubr.msk.f32.mxu0 %vm371_vm1, %v9470_v40  ;;  %v6961_v10 = vpop.f32.mrf.mxu1  ;;  %v9473_v2 = vld [vmem:[#allocation3 + $0xb2] sm:$0xff] }
 0x3ed   : > { %v7351_v44 = vpop.f32.mrf.mxu0  ;;  %v23112_v62 = vadd.f32 %v18937_v39, %v7097_v52  ;;  %v7096_v25 = vadd.f32 %v6961_v10, %v22872_v56  ;;  %v9474_v39 = vld [vmem:[#allocation3 + $0xc2] sm:$0xff] }
 0x3ee   : > { %v18890_v0 = vpop.f32.mrf.mxu1  ;;  %19189 = vmatmul.mubr.msk.f32.gmra.mxu1 %vm371_vm1, %v23115_v1 }
 0x3ef   : > { %v18940_v50 = vpop.f32.mrf.mxu0  ;;  %19239 = vmatmul.mubr.msk.f32.gmra.mxu0 %vm371_vm1, %v9471_v24  ;;  %v23122_v43 = vadd.f32 %v7351_v44, %v7096_v25  ;;  %v7099_v57 = vadd.f32 %v18890_v0, %v22879_v14  ;;  %19191 = vmatprep.mubr.msk.f32.mxu1 %vm371_vm1, %v23120_v5  ;;  %v23136_v14 = vld [vmem:[#allocation3 + $0xc1] sm:$0xff]  ;;  %v23147_v24 = vld [vmem:[#allocation3 + $0xc9] sm:$0xff] }
 0x3f0   : > { %19241 = vmatprep.mubr.msk.f32.mxu0 %vm371_vm1, %v9472_v41  ;;  %v6971_v56 = vpop.f32.mrf.mxu1  ;;  %v9475_v0 = vld [vmem:[#allocation3 + $0xca] sm:$0xff] }
 0x3f1   : > { %v7361_v7 = vpop.f32.mrf.mxu0  ;;  %v23128_v4 = vadd.f32 %v18940_v50, %v7099_v57  ;;  %v7098_v23 = vadd.f32 %v6971_v56, %v22886_v31  ;;  %v9476_v57 = vld [vmem:[#allocation3 + $0xda] sm:$0xff] }
 0x3f2   : > { %v18893_v54 = vpop.f32.mrf.mxu1  ;;  %19192 = vmatmul.mubr.msk.f32.gmra.mxu1 %vm371_vm1, %v23131_v51 }
 0x3f3   : > { %v18943_v16 = vpop.f32.mrf.mxu0  ;;  %19242 = vmatmul.mubr.msk.f32.gmra.mxu0 %vm371_vm1, %v9473_v2  ;;  %v23138_v40 = vadd.f32 %v7361_v7, %v7098_v23  ;;  %v7101_v52 = vadd.f32 %v18893_v54, %v22893_v60  ;;  %19194 = vmatprep.mubr.msk.f32.mxu1 %vm371_vm1, %v23136_v14  ;;  %v23152_v60 = vld [vmem:[#allocation3 + $0xd9] sm:$0xff] }
 0x3f4   : > { %19244 = vmatprep.mubr.msk.f32.mxu0 %vm371_vm1, %v9474_v39  ;;  %v6981_v31 = vpop.f32.mrf.mxu1  ;;  %v9477_v39 = vld [vmem:[#allocation3 + $0xe2] sm:$0xff] }
 0x3f5   : > { %v7371_v10 = vpop.f32.mrf.mxu0  ;;  %v23144_v44 = vadd.f32 %v18943_v16, %v7101_v52  ;;  %v7100_v25 = vadd.f32 %v6981_v31, %v22900_v45  ;;  %v23163_v16 = vld [vmem:[#allocation3 + $0xe1] sm:$0xff] }
 0x3f6   : > { %v18896_v50 = vpop.f32.mrf.mxu1  ;;  %19195 = vmatmul.mubr.msk.f32.gmra.mxu1 %vm371_vm1, %v23147_v24  ;;  %25881 = vst [vmem:[#allocation8_spill] sm:$0xff] %v23163_v16 }
 0x3f7   : > { %v18946_v41 = vpop.f32.mrf.mxu0  ;;  %19245 = vmatmul.mubr.msk.f32.gmra.mxu0 %vm371_vm1, %v9475_v0  ;;  %v23154_v56 = vadd.f32 %v7371_v10, %v7100_v25  ;;  %v7103_v7 = vadd.f32 %v18896_v50, %v22907_v15  ;;  %19197 = vmatprep.mubr.msk.f32.mxu1 %vm371_vm1, %v23152_v60  ;;  %v23168_v15 = vld [vmem:[#allocation3 + $0xf1] sm:$0xff] }
 0x3f8   : > { %19247 = vmatprep.mubr.msk.f32.mxu0 %vm371_vm1, %v9476_v57  ;;  %v6991_v45 = vpop.f32.mrf.mxu1  ;;  %25882 = vst [vmem:[#allocation26_spill] sm:$0xff] %v23168_v15  ;;  %v9478_v10 = vld [vmem:[#allocation3 + $0xf2] sm:$0xff] }
 0x3f9   : > { %v7381_v23 = vpop.f32.mrf.mxu0  ;;  %v23160_v2 = vadd.f32 %v18946_v41, %v7103_v7  ;;  %v7102_v54 = vadd.f32 %v6991_v45, %v22914_v22  ;;  %v23179_v7 = vld [vmem:[#allocation3 + $0xf9] sm:$0xff] }
 0x3fa   : > { %v18899_v52 = vpop.f32.mrf.mxu1  ;;  %19198 = vmatmul.mubr.msk.f32.gmra.mxu1 %vm371_vm1, %v23163_v16  ;;  %25883 = vst [vmem:[#allocation24_spill] sm:$0xff] %v23179_v7  ;;  %v9479_v45 = vld [vmem:[#allocation3 + $0xfa] sm:$0xff] }
 0x3fb   : > { %v18949_v31 = vpop.f32.mrf.mxu0  ;;  %19248 = vmatmul.mubr.msk.f32.gmra.mxu0 %vm371_vm1, %v9477_v39  ;;  %v23170_v25 = vadd.f32 %v7381_v23, %v7102_v54  ;;  %v7105_v0 = vadd.f32 %v18899_v52, %v22921_v17  ;;  %19200 = vmatprep.mubr.msk.f32.mxu1 %vm371_vm1, %v23168_v15  ;;  %v23184_v17 = vld [vmem:[#allocation3 + $0x109] sm:$0xff] }
 0x3fc   : > { %19250 = vmatprep.mubr.msk.f32.mxu0 %vm371_vm1, %v9478_v10  ;;  %v7001_v22 = vpop.f32.mrf.mxu1  ;;  %25884 = vst [vmem:[#allocation9_spill] sm:$0xff] %v23184_v17  ;;  %v9480_v23 = vld [vmem:[#allocation3 + $0x10a] sm:$0xff] }
 0x3fd   : > { %v7391_v50 = vpop.f32.mrf.mxu0  ;;  %v23176_v41 = vadd.f32 %v18949_v31, %v7105_v0  ;;  %v7104_v57 = vadd.f32 %v7001_v22, %v22928_v37  ;;  %v23195_v22 = vld [vmem:[#allocation3 + $0x111] sm:$0xff] }
 0x3fe   : > { %v18902_v39 = vpop.f32.mrf.mxu1  ;;  %19201 = vmatmul.mubr.msk.f32.gmra.mxu1 %vm371_vm1, %v23179_v7  ;;  %25885 = vst [vmem:[#allocation28_spill] sm:$0xff] %v23195_v22 }
 0x3ff   : > { %v18952_v16 = vpop.f32.mrf.mxu0  ;;  %19251 = vmatmul.mubr.msk.f32.gmra.mxu0 %vm371_vm1, %v9479_v45  ;;  %v23186_v54 = vadd.f32 %v7391_v50, %v7104_v57  ;;  %v7107_v52 = vadd.f32 %v18902_v39, %v22935_v20  ;;  %19203 = vmatprep.mubr.msk.f32.mxu1 %vm371_vm1, %v23184_v17  ;;  %v9481_v45 = vld [vmem:[#allocation3 + $0x112] sm:$0xff]  ;;  %v23200_v20 = vld [vmem:[#allocation3 + $0x121] sm:$0xff] }
 0x400   : > { %19253 = vmatprep.mubr.msk.f32.mxu0 %vm371_vm1, %v9480_v23  ;;  %v7011_v37 = vpop.f32.mrf.mxu1  ;;  %25886 = vst [vmem:[#allocation25_spill] sm:$0xff] %v23200_v20  ;;  %v9482_v50 = vld [vmem:[#allocation3 + $0x122] sm:$0xff] }
 0x401   : > { %v7401_v31 = vpop.f32.mrf.mxu0  ;;  %v23192_v10 = vadd.f32 %v18952_v16, %v7107_v52  ;;  %v7106_v0 = vadd.f32 %v7011_v37, %v22942_v61  ;;  %v23211_v37 = vld [vmem:[#allocation3 + $0x129] sm:$0xff] }
 0x402   : > { %v18905_v7 = vpop.f32.mrf.mxu1  ;;  %19204 = vmatmul.mubr.msk.f32.gmra.mxu1 %vm371_vm1, %v23195_v22  ;;  %25887 = vst [vmem:[#allocation27_spill] sm:$0xff] %v23211_v37 }
 0x403   : > { %v18955_v15 = vpop.f32.mrf.mxu0  ;;  %19254 = vmatmul.mubr.msk.f32.gmra.mxu0 %vm371_vm1, %v9481_v45  ;;  %v23202_v57 = vadd.f32 %v7401_v31, %v7106_v0  ;;  %v7109_v16 = vadd.f32 %v18905_v7, %v22949_v33  ;;  %19206 = vmatprep.mubr.msk.f32.mxu1 %vm371_vm1, %v23200_v20  ;;  %v9483_v45 = vld [vmem:[#allocation3 + $0x12a] sm:$0xff]  ;;  %v23216_v33 = vld [vmem:[#allocation3 + $0x139] sm:$0xff] }
 0x404   : > { %19256 = vmatprep.mubr.msk.f32.mxu0 %vm371_vm1, %v9482_v50  ;;  %v7021_v61 = vpop.f32.mrf.mxu1  ;;  %25888 = vst [vmem:[#allocation10_spill] sm:$0xff] %v23216_v33  ;;  %v9484_v7 = vld [vmem:[#allocation3 + $0x13a] sm:$0xff] }
 0x405   : > { %v7411_v39 = vpop.f32.mrf.mxu0  ;;  %v23208_v23 = vadd.f32 %v18955_v15, %v7109_v16  ;;  %v7108_v52 = vadd.f32 %v7021_v61, %v22956_v11  ;;  %v23227_v61 = vld [vmem:[#allocation3 + $0x141] sm:$0xff] }
 0x406   : > { %v18908_v22 = vpop.f32.mrf.mxu1  ;;  %19207 = vmatmul.mubr.msk.f32.gmra.mxu1 %vm371_vm1, %v23211_v37  ;;  %25889 = vst [vmem:[#allocation30_spill] sm:$0xff] %v23227_v61 }
 0x407   : > { %v18958_v17 = vpop.f32.mrf.mxu0  ;;  %19257 = vmatmul.mubr.msk.f32.gmra.mxu0 %vm371_vm1, %v9483_v45  ;;  %v23218_v31 = vadd.f32 %v7411_v39, %v7108_v52  ;;  %v7111_v15 = vadd.f32 %v18908_v22, %v22963_v26  ;;  %19209 = vmatprep.mubr.msk.f32.mxu1 %vm371_vm1, %v23216_v33  ;;  %v9485_v45 = vld [vmem:[#allocation3 + $0x142] sm:$0xff]  ;;  %v23232_v26 = vld [vmem:[#allocation3 + $0x151] sm:$0xff] }
 0x408   : > { %19259 = vmatprep.mubr.msk.f32.mxu0 %vm371_vm1, %v9484_v7  ;;  %v7031_v11 = vpop.f32.mrf.mxu1  ;;  %25890 = vst [vmem:[#allocation29_spill] sm:$0xff] %v23232_v26  ;;  %v9486_v22 = vld [vmem:[#allocation3 + $0x152] sm:$0xff] }
 0x409   : > { %v7421_v0 = vpop.f32.mrf.mxu0  ;;  %v23224_v50 = vadd.f32 %v18958_v17, %v7111_v15  ;;  %v7110_v16 = vadd.f32 %v7031_v11, %v22970_v3  ;;  %v23243_v11 = vld [vmem:[#allocation3 + $0x159] sm:$0xff] }
 0x40a   : > { %v18911_v37 = vpop.f32.mrf.mxu1  ;;  %19210 = vmatmul.mubr.msk.f32.gmra.mxu1 %vm371_vm1, %v23227_v61  ;;  %25891 = vst [vmem:[#allocation11_spill] sm:$0xff] %v23243_v11 }
 0x40b   : > { %v18961_v20 = vpop.f32.mrf.mxu0  ;;  %19260 = vmatmul.mubr.msk.f32.gmra.mxu0 %vm371_vm1, %v9485_v45  ;;  %v23234_v39 = vadd.f32 %v7421_v0, %v7110_v16  ;;  %v7113_v17 = vadd.f32 %v18911_v37, %v22977_v47  ;;  %19212 = vmatprep.mubr.msk.f32.mxu1 %vm371_vm1, %v23232_v26  ;;  %v9487_v45 = vld [vmem:[#allocation3 + $0x15a] sm:$0xff]  ;;  %v23248_v47 = vld [vmem:[#allocation3 + $0x169] sm:$0xff] }
 0x40c   : > { %19262 = vmatprep.mubr.msk.f32.mxu0 %vm371_vm1, %v9486_v22  ;;  %v7041_v3 = vpop.f32.mrf.mxu1  ;;  %25892 = vst [vmem:[#allocation32_spill] sm:$0xff] %v23248_v47  ;;  %v9488_v37 = vld [vmem:[#allocation3 + $0x16a] sm:$0xff] }
 0x40d   : > { %v7431_v52 = vpop.f32.mrf.mxu0  ;;  %v23240_v7 = vadd.f32 %v18961_v20, %v7113_v17  ;;  %v7112_v15 = vadd.f32 %v7041_v3, %v22984_v18  ;;  %v23259_v3 = vld [vmem:[#allocation3 + $0x171] sm:$0xff] }
 0x40e   : > { %v18914_v61 = vpop.f32.mrf.mxu1  ;;  %19213 = vmatmul.mubr.msk.f32.gmra.mxu1 %vm371_vm1, %v23243_v11  ;;  %25893 = vst [vmem:[#allocation12_spill] sm:$0xff] %v23259_v3 }
 0x40f   : > { %v18964_v33 = vpop.f32.mrf.mxu0  ;;  %19263 = vmatmul.mubr.msk.f32.gmra.mxu0 %vm371_vm1, %v9487_v45  ;;  %v23250_v0 = vadd.f32 %v7431_v52, %v7112_v15  ;;  %v7115_v20 = vadd.f32 %v18914_v61, %v22991_v19  ;;  %19215 = vmatprep.mubr.msk.f32.mxu1 %vm371_vm1, %v23248_v47  ;;  %v9489_v45 = vld [vmem:[#allocation3 + $0x172] sm:$0xff]  ;;  %v23264_v19 = vld [vmem:[#allocation3 + $0x181] sm:$0xff] }
 0x410   : > { %19265 = vmatprep.mubr.msk.f32.mxu0 %vm371_vm1, %v9488_v37  ;;  %v7051_v18 = vpop.f32.mrf.mxu1  ;;  %25894 = vst [vmem:[#allocation34_spill] sm:$0xff] %v23264_v19  ;;  %v9490_v61 = vld [vmem:[#allocation3 + $0x182] sm:$0xff] }
 0x411   : > { %v7441_v16 = vpop.f32.mrf.mxu0  ;;  %v23256_v22 = vadd.f32 %v18964_v33, %v7115_v20  ;;  %v7114_v17 = vadd.f32 %v7051_v18, %v22998_v53  ;;  %v23275_v18 = vld [vmem:[#allocation3 + $0x189] sm:$0xff] }
 0x412   : > { %v18917_v11 = vpop.f32.mrf.mxu1  ;;  %19216 = vmatmul.mubr.msk.f32.gmra.mxu1 %vm371_vm1, %v23259_v3  ;;  %25895 = vst [vmem:[#allocation31_spill] sm:$0xff] %v23275_v18 }
 0x413   : > { %v18967_v26 = vpop.f32.mrf.mxu0  ;;  %19266 = vmatmul.mubr.msk.f32.gmra.mxu0 %vm371_vm1, %v9489_v45  ;;  %v23266_v52 = vadd.f32 %v7441_v16, %v7114_v17  ;;  %v7117_v33 = vadd.f32 %v18917_v11, %v23005_v48  ;;  %19218 = vmatprep.mubr.msk.f32.mxu1 %vm371_vm1, %v23264_v19  ;;  %v9491_v45 = vld [vmem:[#allocation3 + $0x18a] sm:$0xff]  ;;  %v23280_v48 = vld [vmem:[#allocation3 + $0x199] sm:$0xff] }
 0x414   : > { %19268 = vmatprep.mubr.msk.f32.mxu0 %vm371_vm1, %v9490_v61  ;;  %v7061_v53 = vpop.f32.mrf.mxu1  ;;  %25896 = vst [vmem:[#allocation13_spill] sm:$0xff] %v23280_v48  ;;  %v9492_v11 = vld [vmem:[#allocation3 + $0x19a] sm:$0xff] }
 0x415   : > { %v7451_v15 = vpop.f32.mrf.mxu0  ;;  %v23272_v37 = vadd.f32 %v18967_v26, %v7117_v33  ;;  %v7116_v20 = vadd.f32 %v7061_v53, %v23014_v28  ;;  %v23291_v53 = vld [vmem:[#allocation3 + $0x1a1] sm:$0xff] }
 0x416   : > { %v18920_v3 = vpop.f32.mrf.mxu1  ;;  %19219 = vmatmul.mubr.msk.f32.gmra.mxu1 %vm371_vm1, %v23275_v18  ;;  %25897 = vst [vmem:[#allocation36_spill] sm:$0xff] %v23291_v53 }
 0x417   : > { %v18970_v47 = vpop.f32.mrf.mxu0  ;;  %19269 = vmatmul.mubr.msk.f32.gmra.mxu0 %vm371_vm1, %v9491_v45  ;;  %v23282_v16 = vadd.f32 %v7451_v15, %v7116_v20  ;;  %v7119_v26 = vadd.f32 %v18920_v3, %v23020_v36  ;;  %19221 = vmatprep.mubr.msk.f32.mxu1 %vm371_vm1, %v23280_v48  ;;  %v9493_v45 = vld [vmem:[#allocation3 + $0x1a2] sm:$0xff]  ;;  %v9852_v36 = vld [vmem:[#allocation3 + $0x33] sm:$0xff] }
 0x418   : > { %19271 = vmatprep.mubr.msk.f32.mxu0 %vm371_vm1, %v9492_v11  ;;  %v7071_v28 = vpop.f32.mrf.mxu1  ;;  %v10242_v3 = vld [vmem:[#allocation3 + $0x34] sm:$0xff] }
 0x419   : > { %v7461_v17 = vpop.f32.mrf.mxu0  ;;  %v23288_v61 = vadd.f32 %v18970_v47, %v7119_v26  ;;  %v7118_v33 = vadd.f32 %v7071_v28, %v23028_v46  ;;  %v9853_v28 = vld [vmem:[#allocation3 + $0x3b] sm:$0xff] }
 0x41a   : > { %v18923_v18 = vpop.f32.mrf.mxu1  ;;  %19222 = vmatmul.mubr.msk.f32.gmra.mxu1 %vm371_vm1, %v23291_v53  ;;  %v10243_v53 = vld [vmem:[#allocation3 + $0x3c] sm:$0xff] }
 0x41b   : > { %v18973_v19 = vpop.f32.mrf.mxu0  ;;  %19272 = vmatmul.mubr.msk.f32.gmra.mxu0 %vm371_vm1, %v9493_v45  ;;  %v23296_v15 = vadd.f32 %v7461_v17, %v7118_v33  ;;  %v7121_v20 = vadd.f32 %v18923_v18, %v23033_v32  ;;  %19276 = vmatprep.mubr.msk.f32.mxu1 %vm371_vm1, %v9852_v36  ;;  %v23306_v17 = vld [vmem:[#allocation3 + $0x4b] sm:$0xff]  ;;  %v23311_v32 = vld [vmem:[%s25663_s5 + $0x44] sm:$0xf] }
 0x41c   : > { %19326 = vmatprep.mubr.msk.f32.mxu0 %vm371_vm1, %v10242_v3  ;;  %v7081_v46 = vpop.f32.mrf.mxu1  ;;  %25898 = vst [vmem:[#allocation33_spill] sm:$0xff] %v23306_v17  ;;  %v10244_v33 = vld [vmem:[#allocation3 + $0x4c] sm:$0xff] }
 0x41d   : > { %v7471_v47 = vpop.f32.mrf.mxu0  ;;  %v23301_v11 = vadd.f32 %v18973_v19, %v7121_v20  ;;  %v7120_v26 = vadd.f32 %v7081_v46, %v23050_v13  ;;  %v23316_v19 = vld [vmem:[%s25663_s5 + $0x48] sm:$0xf] }
 0x41e   : > { %v18978_v48 = vpop.f32.mrf.mxu1  ;;  %19277 = vmatmul.mubr.msk.f32.vlgmr.msra.gmra.mxu1 %vm371_vm1, %v9853_v28  ;;  %v23331_v46 = vld [vmem:[#allocation3 + $0x53] sm:$0xff] }
 0x41f   : > { %v19028_v45 = vpop.f32.mrf.mxu0  ;;  %19327 = vmatmul.mubr.msk.f32.vlgmr.msra.gmra.mxu0 %vm371_vm1, %v10243_v53  ;;  %v23318_v13 = vadd.f32 %v7471_v47, %v7120_v26  ;;  %v7871_v18 = vadd.f32 %v18978_v48, %v23060_v29  ;;  %19375 = vmatpush3.msk.msra.mxu1 %vm468_vm0, %v23043_v59  ;;  %25899 = vst [vmem:[#allocation35_spill] sm:$0xff] %v23331_v46  ;;  %v10245_v29 = vld [vmem:[#allocation3 + $0x54] sm:$0xff]  ;;  %v10246_v47 = vld [vmem:[#allocation3 + $0x64] sm:$0xff] }
 0x420   : > { %19279 = vmatprep.mubr.msk.f32.mxu1 %vm371_vm1, %v23306_v17  ;;  %19329 = vmatprep.mubr.msk.f32.mxu0 %vm371_vm1, %v10244_v33  ;;  %v7711_v53 = vpop.f32.mrf.mxu1 }
 0x421   : > { %v8101_v36 = vpop.f32.mrf.mxu0  ;;  %19425 = vmatpush3.msk.msra.mxu0 %vm468_vm0, %v23048_v35  ;;  %v23328_v3 = vadd.f32 %v19028_v45, %v7871_v18  ;;  %v7870_v20 = vadd.f32 %v7711_v53, %v23074_v38  ;;  %19474 = vmatprep.subr.msk.mxu1 %vm468_vm0, %v23311_v32  ;;  %v23340_v35 = vld [vmem:[#allocation3 + $0x63] sm:$0xff]  ;;  %v23351_v53 = vld [vmem:[#allocation3 + $0x6b] sm:$0xff] }
 0x422   : > { %19524 = vmatprep.subr.msk.mxu0 %vm468_vm0, %v23316_v19  ;;  %v18981_v59 = vpop.f32.mrf.mxu1  ;;  %19280 = vmatmul.mubr.msk.f32.gmra.mxu1 %vm371_vm1, %v23331_v46  ;;  %25900 = vst [vmem:[#allocation14_spill] sm:$0xff] %v23340_v35  ;;  %25901 = vst [vmem:[#allocation38_spill] sm:$0xff] %v23351_v53 }
 0x423   : > { %v19031_v48 = vpop.f32.mrf.mxu0  ;;  %19330 = vmatmul.mubr.msk.f32.gmra.mxu0 %vm371_vm1, %v10245_v29  ;;  %v23342_v38 = vadd.f32 %v8101_v36, %v7870_v20  ;;  %v7873_v26 = vadd.f32 %v18981_v59, %v23080_v49  ;;  %19282 = vmatprep.mubr.msk.f32.mxu1 %vm371_vm1, %v23340_v35  ;;  %v10247_v29 = vld [vmem:[#allocation3 + $0x6c] sm:$0xff]  ;;  %v23356_v49 = vld [vmem:[#allocation3 + $0x7b] sm:$0xff] }
 0x424   : > { %19332 = vmatprep.mubr.msk.f32.mxu0 %vm371_vm1, %v10246_v47  ;;  %v7721_v28 = vpop.f32.mrf.mxu1  ;;  %25902 = vst [vmem:[#allocation37_spill] sm:$0xff] %v23356_v49  ;;  %v10248_v36 = vld [vmem:[#allocation3 + $0x7c] sm:$0xff] }
 0x425   : > { %v8111_v45 = vpop.f32.mrf.mxu0  ;;  %v23348_v18 = vadd.f32 %v19031_v48, %v7873_v26  ;;  %v7872_v33 = vadd.f32 %v7721_v28, %v23090_v8  ;;  %v23367_v28 = vld [vmem:[#allocation3 + $0x83] sm:$0xff] }
 0x426   : > { %v18984_v46 = vpop.f32.mrf.mxu1  ;;  %19283 = vmatmul.mubr.msk.f32.gmra.mxu1 %vm371_vm1, %v23351_v53  ;;  %25903 = vst [vmem:[#allocation15_spill] sm:$0xff] %v23367_v28 }
 0x427   : > { %v19034_v17 = vpop.f32.mrf.mxu0  ;;  %19333 = vmatmul.mubr.msk.f32.gmra.mxu0 %vm371_vm1, %v10247_v29  ;;  %v23358_v20 = vadd.f32 %v8111_v45, %v7872_v33  ;;  %v7875_v59 = vadd.f32 %v18984_v46, %v23096_v27  ;;  %19285 = vmatprep.mubr.msk.f32.mxu1 %vm371_vm1, %v23356_v49  ;;  %v10249_v29 = vld [vmem:[#allocation3 + $0x84] sm:$0xff]  ;;  %v23372_v27 = vld [vmem:[#allocation3 + $0x93] sm:$0xff] }
 0x428   : > { %19335 = vmatprep.mubr.msk.f32.mxu0 %vm371_vm1, %v10248_v36  ;;  %v7731_v8 = vpop.f32.mrf.mxu1  ;;  %25904 = vst [vmem:[#allocation40_spill] sm:$0xff] %v23372_v27  ;;  %v10250_v46 = vld [vmem:[#allocation3 + $0x94] sm:$0xff] }
 0x429   : > { %v8121_v48 = vpop.f32.mrf.mxu0  ;;  %v23364_v47 = vadd.f32 %v19034_v17, %v7875_v59  ;;  %v7874_v26 = vadd.f32 %v7731_v8, %v23106_v6  ;;  %v23383_v8 = vld [vmem:[#allocation3 + $0x9b] sm:$0xff] }
 0x42a   : > { %v18987_v53 = vpop.f32.mrf.mxu1  ;;  %19286 = vmatmul.mubr.msk.f32.gmra.mxu1 %vm371_vm1, %v23367_v28  ;;  %25905 = vst [vmem:[#allocation16_spill] sm:$0xff] %v23383_v8 }
 0x42b   : > { %v19037_v35 = vpop.f32.mrf.mxu0  ;;  %19336 = vmatmul.mubr.msk.f32.gmra.mxu0 %vm371_vm1, %v10249_v29  ;;  %v23374_v45 = vadd.f32 %v8121_v48, %v7874_v26  ;;  %v7877_v17 = vadd.f32 %v18987_v53, %v23112_v62  ;;  %19288 = vmatprep.mubr.msk.f32.mxu1 %vm371_vm1, %v23372_v27  ;;  %v10251_v29 = vld [vmem:[#allocation3 + $0x9c] sm:$0xff]  ;;  %v23388_v62 = vld [vmem:[#allocation3 + $0xab] sm:$0xff] }
 0x42c   : > { %19338 = vmatprep.mubr.msk.f32.mxu0 %vm371_vm1, %v10250_v46  ;;  %v7741_v6 = vpop.f32.mrf.mxu1  ;;  %25906 = vst [vmem:[#allocation42_spill] sm:$0xff] %v23388_v62  ;;  %v10252_v53 = vld [vmem:[#allocation3 + $0xac] sm:$0xff] }
 0x42d   : > { %v8131_v33 = vpop.f32.mrf.mxu0  ;;  %v23380_v36 = vadd.f32 %v19037_v35, %v7877_v17  ;;  %v7876_v59 = vadd.f32 %v7741_v6, %v23122_v43  ;;  %v23399_v6 = vld [vmem:[#allocation3 + $0xb3] sm:$0xff] }
 0x42e   : > { %v18990_v28 = vpop.f32.mrf.mxu1  ;;  %19289 = vmatmul.mubr.msk.f32.gmra.mxu1 %vm371_vm1, %v23383_v8  ;;  %25907 = vst [vmem:[#allocation39_spill] sm:$0xff] %v23399_v6 }
 0x42f   : > { %v19040_v49 = vpop.f32.mrf.mxu0  ;;  %19339 = vmatmul.mubr.msk.f32.gmra.mxu0 %vm371_vm1, %v10251_v29  ;;  %v23390_v48 = vadd.f32 %v8131_v33, %v7876_v59  ;;  %v7879_v35 = vadd.f32 %v18990_v28, %v23128_v4  ;;  %19291 = vmatprep.mubr.msk.f32.mxu1 %vm371_vm1, %v23388_v62  ;;  %v10253_v29 = vld [vmem:[#allocation3 + $0xb4] sm:$0xff]  ;;  %v23404_v4 = vld [vmem:[#allocation3 + $0xc3] sm:$0xff] }
 0x430   : > { %19341 = vmatprep.mubr.msk.f32.mxu0 %vm371_vm1, %v10252_v53  ;;  %v7751_v43 = vpop.f32.mrf.mxu1  ;;  %25908 = vst [vmem:[#allocation17_spill] sm:$0xff] %v23404_v4  ;;  %v10254_v28 = vld [vmem:[#allocation3 + $0xc4] sm:$0xff] }
 0x431   : > { %v8141_v26 = vpop.f32.mrf.mxu0  ;;  %v23396_v46 = vadd.f32 %v19040_v49, %v7879_v35  ;;  %v7878_v17 = vadd.f32 %v7751_v43, %v23138_v40  ;;  %v23415_v43 = vld [vmem:[#allocation3 + $0xcb] sm:$0xff] }
 0x432   : > { %v18993_v8 = vpop.f32.mrf.mxu1  ;;  %19292 = vmatmul.mubr.msk.f32.gmra.mxu1 %vm371_vm1, %v23399_v6  ;;  %25909 = vst [vmem:[#allocation44_spill] sm:$0xff] %v23415_v43 }
 0x433   : > { %v19043_v27 = vpop.f32.mrf.mxu0  ;;  %19342 = vmatmul.mubr.msk.f32.gmra.mxu0 %vm371_vm1, %v10253_v29  ;;  %v23406_v33 = vadd.f32 %v8141_v26, %v7878_v17  ;;  %v7881_v49 = vadd.f32 %v18993_v8, %v23144_v44  ;;  %19294 = vmatprep.mubr.msk.f32.mxu1 %vm371_vm1, %v23404_v4  ;;  %v10255_v29 = vld [vmem:[#allocation3 + $0xcc] sm:$0xff]  ;;  %v23420_v44 = vld [vmem:[#allocation3 + $0xdb] sm:$0xff] }
 0x434   : > { %19344 = vmatprep.mubr.msk.f32.mxu0 %vm371_vm1, %v10254_v28  ;;  %v7761_v40 = vpop.f32.mrf.mxu1  ;;  %25910 = vst [vmem:[#allocation41_spill] sm:$0xff] %v23420_v44  ;;  %v10256_v8 = vld [vmem:[#allocation3 + $0xdc] sm:$0xff] }
 0x435   : > { %v8151_v59 = vpop.f32.mrf.mxu0  ;;  %v23412_v53 = vadd.f32 %v19043_v27, %v7881_v49  ;;  %v7880_v35 = vadd.f32 %v7761_v40, %v23154_v56  ;;  %v23431_v40 = vld [vmem:[#allocation3 + $0xe3] sm:$0xff] }
 0x436   : > { %v18996_v6 = vpop.f32.mrf.mxu1  ;;  %19295 = vmatmul.mubr.msk.f32.gmra.mxu1 %vm371_vm1, %v23415_v43  ;;  %25911 = vst [vmem:[#allocation43_spill] sm:$0xff] %v23431_v40 }
 0x437   : > { %v19046_v62 = vpop.f32.mrf.mxu0  ;;  %19345 = vmatmul.mubr.msk.f32.gmra.mxu0 %vm371_vm1, %v10255_v29  ;;  %v23422_v26 = vadd.f32 %v8151_v59, %v7880_v35  ;;  %v7883_v27 = vadd.f32 %v18996_v6, %v23160_v2  ;;  %19297 = vmatprep.mubr.msk.f32.mxu1 %vm371_vm1, %v23420_v44  ;;  %v10257_v29 = vld [vmem:[#allocation3 + $0xe4] sm:$0xff]  ;;  %v23436_v2 = vld [vmem:[#allocation3 + $0xf3] sm:$0xff] }
 0x438   : > { %19347 = vmatprep.mubr.msk.f32.mxu0 %vm371_vm1, %v10256_v8  ;;  %v7771_v56 = vpop.f32.mrf.mxu1  ;;  %25912 = vst [vmem:[#allocation18_spill] sm:$0xff] %v23436_v2  ;;  %v10258_v6 = vld [vmem:[#allocation3 + $0xf4] sm:$0xff] }
 0x439   : > { %v8161_v17 = vpop.f32.mrf.mxu0  ;;  %v23428_v28 = vadd.f32 %v19046_v62, %v7883_v27  ;;  %v7882_v49 = vadd.f32 %v7771_v56, %v23170_v25  ;;  %v23447_v56 = vld [vmem:[#allocation3 + $0xfb] sm:$0xff] }
 0x43a   : > { %v18999_v43 = vpop.f32.mrf.mxu1  ;;  %19298 = vmatmul.mubr.msk.f32.gmra.mxu1 %vm371_vm1, %v23431_v40  ;;  %25913 = vst [vmem:[#allocation46_spill] sm:$0xff] %v23447_v56 }
 0x43b   : > { %v19049_v4 = vpop.f32.mrf.mxu0  ;;  %19348 = vmatmul.mubr.msk.f32.gmra.mxu0 %vm371_vm1, %v10257_v29  ;;  %v23438_v59 = vadd.f32 %v8161_v17, %v7882_v49  ;;  %v7885_v62 = vadd.f32 %v18999_v43, %v23176_v41  ;;  %19300 = vmatprep.mubr.msk.f32.mxu1 %vm371_vm1, %v23436_v2  ;;  %v10259_v29 = vld [vmem:[#allocation3 + $0xfc] sm:$0xff]  ;;  %v23452_v41 = vld [vmem:[#allocation3 + $0x10b] sm:$0xff] }
 0x43c   : > { %19350 = vmatprep.mubr.msk.f32.mxu0 %vm371_vm1, %v10258_v6  ;;  %v7781_v25 = vpop.f32.mrf.mxu1  ;;  %25914 = vst [vmem:[#allocation45_spill] sm:$0xff] %v23452_v41  ;;  %v10260_v43 = vld [vmem:[#allocation3 + $0x10c] sm:$0xff] }
 0x43d   : > { %v8171_v35 = vpop.f32.mrf.mxu0  ;;  %v23444_v8 = vadd.f32 %v19049_v4, %v7885_v62  ;;  %v7884_v27 = vadd.f32 %v7781_v25, %v23186_v54  ;;  %v23463_v25 = vld [vmem:[#allocation3 + $0x113] sm:$0xff] }
 0x43e   : > { %v19002_v40 = vpop.f32.mrf.mxu1  ;;  %19301 = vmatmul.mubr.msk.f32.gmra.mxu1 %vm371_vm1, %v23447_v56  ;;  %25915 = vst [vmem:[#allocation19_spill] sm:$0xff] %v23463_v25 }
 0x43f   : > { %v19052_v44 = vpop.f32.mrf.mxu0  ;;  %19351 = vmatmul.mubr.msk.f32.gmra.mxu0 %vm371_vm1, %v10259_v29  ;;  %v23454_v17 = vadd.f32 %v8171_v35, %v7884_v27  ;;  %v7887_v4 = vadd.f32 %v19002_v40, %v23192_v10  ;;  %19303 = vmatprep.mubr.msk.f32.mxu1 %vm371_vm1, %v23452_v41  ;;  %v10261_v29 = vld [vmem:[#allocation3 + $0x114] sm:$0xff]  ;;  %v23468_v10 = vld [vmem:[#allocation3 + $0x123] sm:$0xff] }
 0x440   : > { %19353 = vmatprep.mubr.msk.f32.mxu0 %vm371_vm1, %v10260_v43  ;;  %v7791_v54 = vpop.f32.mrf.mxu1  ;;  %25916 = vst [vmem:[#allocation48_spill] sm:$0xff] %v23468_v10  ;;  %v10262_v40 = vld [vmem:[#allocation3 + $0x124] sm:$0xff] }
 0x441   : > { %v8181_v49 = vpop.f32.mrf.mxu0  ;;  %v23460_v6 = vadd.f32 %v19052_v44, %v7887_v4  ;;  %v7886_v62 = vadd.f32 %v7791_v54, %v23202_v57  ;;  %v23479_v54 = vld [vmem:[#allocation3 + $0x12b] sm:$0xff] }
 0x442   : > { %v19005_v56 = vpop.f32.mrf.mxu1  ;;  %19304 = vmatmul.mubr.msk.f32.gmra.mxu1 %vm371_vm1, %v23463_v25  ;;  %25917 = vst [vmem:[#allocation20_spill] sm:$0xff] %v23479_v54 }
 0x443   : > { %v19055_v2 = vpop.f32.mrf.mxu0  ;;  %19354 = vmatmul.mubr.msk.f32.gmra.mxu0 %vm371_vm1, %v10261_v29  ;;  %v23470_v35 = vadd.f32 %v8181_v49, %v7886_v62  ;;  %v7889_v44 = vadd.f32 %v19005_v56, %v23208_v23  ;;  %19306 = vmatprep.mubr.msk.f32.mxu1 %vm371_vm1, %v23468_v10  ;;  %v10263_v29 = vld [vmem:[#allocation3 + $0x12c] sm:$0xff]  ;;  %v23484_v23 = vld [vmem:[#allocation3 + $0x13b] sm:$0xff] }
 0x444   : > { %19356 = vmatprep.mubr.msk.f32.mxu0 %vm371_vm1, %v10262_v40  ;;  %v7801_v57 = vpop.f32.mrf.mxu1  ;;  %25918 = vst [vmem:[#allocation50_spill] sm:$0xff] %v23484_v23  ;;  %v10264_v56 = vld [vmem:[#allocation3 + $0x13c] sm:$0xff] }
 0x445   : > { %v8191_v27 = vpop.f32.mrf.mxu0  ;;  %v23476_v43 = vadd.f32 %v19055_v2, %v7889_v44  ;;  %v7888_v4 = vadd.f32 %v7801_v57, %v23218_v31  ;;  %v23495_v57 = vld [vmem:[#allocation3 + $0x143] sm:$0xff] }
 0x446   : > { %v19008_v25 = vpop.f32.mrf.mxu1  ;;  %19307 = vmatmul.mubr.msk.f32.gmra.mxu1 %vm371_vm1, %v23479_v54  ;;  %25919 = vst [vmem:[#allocation47_spill] sm:$0xff] %v23495_v57 }
 0x447   : > { %v19058_v41 = vpop.f32.mrf.mxu0  ;;  %19357 = vmatmul.mubr.msk.f32.gmra.mxu0 %vm371_vm1, %v10263_v29  ;;  %v23486_v49 = vadd.f32 %v8191_v27, %v7888_v4  ;;  %v7891_v2 = vadd.f32 %v19008_v25, %v23224_v50  ;;  %19309 = vmatprep.mubr.msk.f32.mxu1 %vm371_vm1, %v23484_v23  ;;  %v10265_v29 = vld [vmem:[#allocation3 + $0x144] sm:$0xff]  ;;  %v23500_v50 = vld [vmem:[#allocation3 + $0x153] sm:$0xff] }
 0x448   : > { %19359 = vmatprep.mubr.msk.f32.mxu0 %vm371_vm1, %v10264_v56  ;;  %v7811_v31 = vpop.f32.mrf.mxu1  ;;  %v10266_v25 = vld [vmem:[#allocation3 + $0x154] sm:$0xff] }
 0x449   : > { %v8201_v62 = vpop.f32.mrf.mxu0  ;;  %v23492_v40 = vadd.f32 %v19058_v41, %v7891_v2  ;;  %v7890_v44 = vadd.f32 %v7811_v31, %v23234_v39  ;;  %v23511_v31 = vld [vmem:[#allocation3 + $0x15b] sm:$0xff] }
 0x44a   : > { %v19011_v54 = vpop.f32.mrf.mxu1  ;;  %19310 = vmatmul.mubr.msk.f32.gmra.mxu1 %vm371_vm1, %v23495_v57  ;;  %25920 = vst [vmem:[#allocation21_spill] sm:$0xff] %v23511_v31 }
 0x44b   : > { %v19061_v10 = vpop.f32.mrf.mxu0  ;;  %19360 = vmatmul.mubr.msk.f32.gmra.mxu0 %vm371_vm1, %v10265_v29  ;;  %v23502_v27 = vadd.f32 %v8201_v62, %v7890_v44  ;;  %v7893_v41 = vadd.f32 %v19011_v54, %v23240_v7  ;;  %19312 = vmatprep.mubr.msk.f32.mxu1 %vm371_vm1, %v23500_v50  ;;  %v10267_v29 = vld [vmem:[#allocation3 + $0x15c] sm:$0xff]  ;;  %v23516_v7 = vld [vmem:[#allocation3 + $0x16b] sm:$0xff] }
 0x44c   : > { %19362 = vmatprep.mubr.msk.f32.mxu0 %vm371_vm1, %v10266_v25  ;;  %v7821_v39 = vpop.f32.mrf.mxu1 }
 0x44d   : > { %v8211_v4 = vpop.f32.mrf.mxu0  ;;  %v23508_v56 = vadd.f32 %v19061_v10, %v7893_v41  ;;  %v7892_v2 = vadd.f32 %v7821_v39, %v23250_v0  ;;  %v19971_v0 = vld [vmem:[#allocation3 + $0x16c] sm:$0xff] }
 0x44e   : > { %v19014_v57 = vpop.f32.mrf.mxu1  ;;  %19313 = vmatmul.mubr.msk.f32.gmra.mxu1 %vm371_vm1, %v23511_v31  ;;  %v23527_v39 = vld [vmem:[#allocation3 + $0x173] sm:$0xff] }
 0x44f   : > { %v19064_v23 = vpop.f32.mrf.mxu0  ;;  %19363 = vmatmul.mubr.msk.f32.gmra.mxu0 %vm371_vm1, %v10267_v29  ;;  %v23518_v54 = vadd.f32 %v8211_v4, %v7892_v2  ;;  %v7895_v62 = vadd.f32 %v19014_v57, %v23256_v22  ;;  %19315 = vmatprep.mubr.msk.f32.mxu1 %vm371_vm1, %v23516_v7  ;;  %25921 = vst [vmem:[#allocation49_spill] sm:$0xff] %v23527_v39  ;;  %v19972_v22 = vld [vmem:[#allocation3 + $0x174] sm:$0xff]  ;;  %v23532_v57 = vld [vmem:[#allocation3 + $0x183] sm:$0xff] }
 0x450   : > { %19365 = vmatprep.mubr.msk.f32.mxu0 %vm371_vm1, %v19971_v0  ;;  %v7831_v10 = vpop.f32.mrf.mxu1  ;;  %25922 = vst [vmem:[#allocation51_spill] sm:$0xff] %v23532_v57 }
 0x451   : > { %v8221_v44 = vpop.f32.mrf.mxu0  ;;  %v23524_v25 = vadd.f32 %v19064_v23, %v7895_v62  ;;  %v7894_v41 = vadd.f32 %v7831_v10, %v23266_v52  ;;  %v23544_v10 = vld [vmem:[#allocation3 + $0x18b] sm:$0xff] }
 0x452   : > { %v19017_v29 = vpop.f32.mrf.mxu1  ;;  %19316 = vmatmul.mubr.msk.f32.gmra.mxu1 %vm371_vm1, %v23527_v39  ;;  %25923 = vst [vmem:[#allocation22_spill] sm:$0xff] %v23544_v10 }
 0x453   : > { %v19067_v31 = vpop.f32.mrf.mxu0  ;;  %19366 = vmatmul.mubr.msk.f32.gmra.mxu0 %vm371_vm1, %v19972_v22  ;;  %v23534_v4 = vadd.f32 %v8221_v44, %v7894_v41  ;;  %v7897_v2 = vadd.f32 %v19017_v29, %v23272_v37  ;;  %19318 = vmatprep.mubr.msk.f32.mxu1 %vm371_vm1, %v23532_v57  ;;  %v23550_v37 = vld [vmem:[#allocation3 + $0x19b] sm:$0xff] }
 0x454   : > { %19368 = vmatprep.mubr.msk.f32.mxu0 %vm371_vm1, %v23012_v55  ;;  %v7841_v52 = vpop.f32.mrf.mxu1  ;;  %v10272_v44 = vld [vmem:[#allocation3 + $0x19c] sm:$0xff] }
 0x455   : > { %v8231_v23 = vpop.f32.mrf.mxu0  ;;  %v23541_v62 = vadd.f32 %v19067_v31, %v7897_v2  ;;  %v7896_v0 = vadd.f32 %v7841_v52, %v23282_v16  ;;  %v23561_v52 = vld [vmem:[#allocation3 + $0x1a3] sm:$0xff] }
 0x456   : > { %v19020_v22 = vpop.f32.mrf.mxu1  ;;  %19319 = vmatmul.mubr.msk.f32.gmra.mxu1 %vm371_vm1, %v23544_v10  ;;  %25924 = vst [vmem:[#allocation23_spill] sm:$0xff] %v23561_v52 }
 0x457   : > { %v19070_v39 = vpop.f32.mrf.mxu0  ;;  %19369 = vmatmul.mubr.msk.f32.gmra.mxu0 %vm371_vm1, %v23023_v34  ;;  %v23552_v55 = vadd.f32 %v8231_v23, %v7896_v0  ;;  %v7899_v31 = vadd.f32 %v19020_v22, %v23288_v61  ;;  %19321 = vmatprep.mubr.msk.f32.mxu1 %vm371_vm1, %v23550_v37  ;;  %v10273_v34 = vld [vmem:[#allocation3 + $0x1a4] sm:$0xff] }
 0x458   : > { %19371 = vmatprep.mubr.msk.f32.mxu0 %vm371_vm1, %v10272_v44  ;;  %v7851_v16 = vpop.f32.mrf.mxu1  ;;  %v10633_v61 = vld [vmem:[#allocation3 + $0x48] sm:$0xff] }
 0x459   : > { %v8241_v41 = vpop.f32.mrf.mxu0  ;;  %v23558_v29 = vadd.f32 %v19070_v39, %v7899_v31  ;;  %v7898_v2 = vadd.f32 %v7851_v16, %v23296_v15  ;;  %v10634_v31 = vld [vmem:[#allocation3 + $0x50] sm:$0xff] }
 0x45a   : > { %v19023_v10 = vpop.f32.mrf.mxu1  ;;  %19322 = vmatmul.mubr.msk.f32.gmra.mxu1 %vm371_vm1, %v23561_v52 }
 0x45b   : > { %v19073_v57 = vpop.f32.mrf.mxu0  ;;  %19372 = vmatmul.mubr.msk.f32.gmra.mxu0 %vm371_vm1, %v10273_v34  ;;  %v23566_v23 = vadd.f32 %v8241_v41, %v7898_v2  ;;  %v7901_v0 = vadd.f32 %v19023_v10, %v23301_v11  ;;  %19376 = vmatprep.mubr.msk.f32.mxu1 %vm371_vm1, %v10633_v61  ;;  %v23578_v11 = vld [vmem:[#allocation3 + $0x60] sm:$0xff]  ;;  %v23604_v61 = vld [vmem:[#allocation3 + $0x68] sm:$0xff] }
 0x45c   : > { %19426 = vmatprep.mubr.msk.f32.mxu0 %vm371_vm1, %v23038_v63  ;;  %v7861_v15 = vpop.f32.mrf.mxu1  ;;  %v23583_v63 = vld [vmem:[%s25663_s5 + $0x4c] sm:$0xf] }
 0x45d   : > { %v8251_v39 = vpop.f32.mrf.mxu0  ;;  %v23572_v22 = vadd.f32 %v19073_v57, %v7901_v0  ;;  %v7900_v44 = vadd.f32 %v7861_v15, %v23318_v13  ;;  %v23588_v57 = vld [vmem:[%s25663_s5 + $0x50] sm:$0xf] }
 0x45e   : > { %v19078_v16 = vpop.f32.mrf.mxu1  ;;  %19377 = vmatmul.mubr.msk.f32.vlgmr.msra.gmra.mxu1 %vm371_vm1, %v10634_v31 }
 0x45f   : > { %v19128_v52 = vpop.f32.mrf.mxu0  ;;  %19427 = vmatmul.mubr.msk.f32.vlgmr.msra.gmra.mxu0 %vm371_vm1, %v23063_v21  ;;  %v23590_v13 = vadd.f32 %v8251_v39, %v7900_v44  ;;  %v8651_v10 = vadd.f32 %v19078_v16, %v23328_v3  ;;  %19475 = vmatpush3.msk.msra.mxu1 %vm468_vm0, %v23311_v32  ;;  %v23626_v44 = vld [vmem:[#allocation3 + $0x80] sm:$0xff] }
 0x460   : > { %19379 = vmatprep.mubr.msk.f32.mxu1 %vm371_vm1, %v23578_v11  ;;  %19429 = vmatprep.mubr.msk.f32.mxu0 %vm371_vm1, %v23072_v58  ;;  %v8491_v21 = vpop.f32.mrf.mxu1  ;;  %v23614_v58 = vld [vmem:[#allocation3 + $0x78] sm:$0xff] }
 0x461   : > { %v8881_v41 = vpop.f32.mrf.mxu0  ;;  %19525 = vmatpush3.msk.msra.mxu0 %vm468_vm0, %v23316_v19  ;;  %v23601_v2 = vadd.f32 %v19128_v52, %v8651_v10  ;;  %v8650_v34 = vadd.f32 %v8491_v21, %v23342_v38  ;;  %19574 = vmatprep.subr.msk.mxu1 %vm468_vm0, %v23583_v63 }
 0x462   : > { %19624 = vmatprep.subr.msk.mxu0 %vm468_vm0, %v23588_v57  ;;  %v19081_v32 = vpop.f32.mrf.mxu1  ;;  %19380 = vmatmul.mubr.msk.f32.gmra.mxu1 %vm371_vm1, %v23604_v61 }
 0x463   : > { %v19131_v3 = vpop.f32.mrf.mxu0  ;;  %19430 = vmatmul.mubr.msk.f32.gmra.mxu0 %vm371_vm1, %v23083_v42  ;;  %v23616_v19 = vadd.f32 %v8881_v41, %v8650_v34  ;;  %v8653_v38 = vadd.f32 %v19081_v32, %v23348_v18  ;;  %19382 = vmatprep.mubr.msk.f32.mxu1 %vm371_vm1, %v23614_v58  ;;  %v23632_v18 = vld [vmem:[#allocation3 + $0x90] sm:$0xff]  ;;  %v23644_v34 = vld [vmem:[#allocation3 + $0x98] sm:$0xff] }
 0x464   : > { %19432 = vmatprep.mubr.msk.f32.mxu0 %vm371_vm1, %v23088_v9  ;;  %v8501_v52 = vpop.f32.mrf.mxu1 }
 0x465   : > { %v8891_v0 = vpop.f32.mrf.mxu0  ;;  %v23623_v15 = vadd.f32 %v19131_v3, %v8653_v38  ;;  %v8652_v39 = vadd.f32 %v8501_v52, %v23358_v20 }
 0x466   : > { %v19084_v42 = vpop.f32.mrf.mxu1  ;;  %19383 = vmatmul.mubr.msk.f32.gmra.mxu1 %vm371_vm1, %v23626_v44 }
 0x467   : > { %v19134_v31 = vpop.f32.mrf.mxu0  ;;  %19433 = vmatmul.mubr.msk.f32.gmra.mxu0 %vm371_vm1, %v23099_v30  ;;  %v23634_v16 = vadd.f32 %v8891_v0, %v8652_v39  ;;  %v8655_v9 = vadd.f32 %v19084_v42, %v23364_v47  ;;  %19385 = vmatprep.mubr.msk.f32.mxu1 %vm371_vm1, %v23632_v18  ;;  %v23650_v47 = vld [vmem:[#allocation3 + $0xa8] sm:$0xff]  ;;  %v23662_v39 = vld [vmem:[#allocation3 + $0xb0] sm:$0xff] }
 0x468   : > { %19435 = vmatprep.mubr.msk.f32.mxu0 %vm371_vm1, %v23104_v12  ;;  %v8511_v20 = vpop.f32.mrf.mxu1 }
 0x469   : > { %v8901_v10 = vpop.f32.mrf.mxu0  ;;  %v23641_v21 = vadd.f32 %v19134_v31, %v8655_v9  ;;  %v8654_v41 = vadd.f32 %v8511_v20, %v23374_v45 }
 0x46a   : > { %v19087_v30 = vpop.f32.mrf.mxu1  ;;  %19386 = vmatmul.mubr.msk.f32.gmra.mxu1 %vm371_vm1, %v23644_v34 }
 0x46b   : > { %v19137_v32 = vpop.f32.mrf.mxu0  ;;  %19436 = vmatmul.mubr.msk.f32.gmra.mxu0 %vm371_vm1, %v23115_v1  ;;  %v23652_v3 = vadd.f32 %v8901_v10, %v8654_v41  ;;  %v8657_v12 = vadd.f32 %v19087_v30, %v23380_v36  ;;  %19388 = vmatprep.mubr.msk.f32.mxu1 %vm371_vm1, %v23650_v47  ;;  %v23668_v36 = vld [vmem:[#allocation3 + $0xc0] sm:$0xff]  ;;  %v23680_v41 = vld [vmem:[#allocation3 + $0xc8] sm:$0xff] }
 0x46c   : > { %19438 = vmatprep.mubr.msk.f32.mxu0 %vm371_vm1, %v23120_v5  ;;  %v8521_v45 = vpop.f32.mrf.mxu1 }
 0x46d   : > { %v8911_v38 = vpop.f32.mrf.mxu0  ;;  %v23659_v52 = vadd.f32 %v19137_v32, %v8657_v12  ;;  %v8656_v0 = vadd.f32 %v8521_v45, %v23390_v48 }
 0x46e   : > { %v19090_v1 = vpop.f32.mrf.mxu1  ;;  %19389 = vmatmul.mubr.msk.f32.gmra.mxu1 %vm371_vm1, %v23662_v39 }
 0x46f   : > { %v19140_v42 = vpop.f32.mrf.mxu0  ;;  %19439 = vmatmul.mubr.msk.f32.gmra.mxu0 %vm371_vm1, %v23131_v51  ;;  %v23670_v31 = vadd.f32 %v8911_v38, %v8656_v0  ;;  %v8659_v5 = vadd.f32 %v19090_v1, %v23396_v46  ;;  %19391 = vmatprep.mubr.msk.f32.mxu1 %vm371_vm1, %v23668_v36  ;;  %v23686_v46 = vld [vmem:[#allocation3 + $0xd8] sm:$0xff]  ;;  %v23698_v0 = vld [vmem:[#allocation3 + $0xe0] sm:$0xff] }
 0x470   : > { %19441 = vmatprep.mubr.msk.f32.mxu0 %vm371_vm1, %v23136_v14  ;;  %v8531_v48 = vpop.f32.mrf.mxu1 }
 0x471   : > { %v8921_v9 = vpop.f32.mrf.mxu0  ;;  %v23677_v20 = vadd.f32 %v19140_v42, %v8659_v5  ;;  %v8658_v10 = vadd.f32 %v8531_v48, %v23406_v33  ;;  %v23704_v42 = vld [vmem:[#allocation3 + $0xf0] sm:$0xff] }
 0x472   : > { %v19093_v51 = vpop.f32.mrf.mxu1  ;;  %19392 = vmatmul.mubr.msk.f32.gmra.mxu1 %vm371_vm1, %v23680_v41  ;;  %25926 = vst [vmem:[#allocation52_spill] sm:$0xff] %v23704_v42 }
 0x473   : > { %v19143_v30 = vpop.f32.mrf.mxu0  ;;  %19442 = vmatmul.mubr.msk.f32.gmra.mxu0 %vm371_vm1, %v23147_v24  ;;  %v23688_v32 = vadd.f32 %v8921_v9, %v8658_v10  ;;  %v8661_v14 = vadd.f32 %v19093_v51, %v23412_v53  ;;  %19394 = vmatprep.mubr.msk.f32.mxu1 %vm371_vm1, %v23686_v46  ;;  %v25925_v53 = vld [vmem:[#allocation8_spill] sm:$0xff] }
 0x474   : > { %19444 = vmatprep.mubr.msk.f32.mxu0 %vm371_vm1, %v23152_v60  ;;  %v8541_v33 = vpop.f32.mrf.mxu1 }
 0x475   : > { %v8931_v12 = vpop.f32.mrf.mxu0  ;;  %v23695_v45 = vadd.f32 %v19143_v30, %v8661_v14  ;;  %v8660_v38 = vadd.f32 %v8541_v33, %v23422_v26  ;;  %v25927_v26 = vld [vmem:[#allocation26_spill] sm:$0xff]  ;;  %v23716_v30 = vld [vmem:[#allocation3 + $0xf8] sm:$0xff] }
 0x476   : > { %v19096_v24 = vpop.f32.mrf.mxu1  ;;  %19395 = vmatmul.mubr.msk.f32.gmra.mxu1 %vm371_vm1, %v23698_v0  ;;  %25928 = vst [vmem:[#allocation8_spill] sm:$0xff] %v23716_v30 }
 0x477   : > { %v19146_v1 = vpop.f32.mrf.mxu0  ;;  %19445 = vmatmul.mubr.msk.f32.gmra.mxu0 %vm371_vm1, %v25925_v53  ;;  %v23706_v5 = vadd.f32 %v8931_v12, %v8660_v38  ;;  %v8663_v60 = vadd.f32 %v19096_v24, %v23428_v28  ;;  %19397 = vmatprep.mubr.msk.f32.mxu1 %vm371_vm1, %v23704_v42  ;;  %v25929_v28 = vld [vmem:[#allocation24_spill] sm:$0xff]  ;;  %v23722_v12 = vld [vmem:[#allocation3 + $0x108] sm:$0xff] }
 0x478   : > { %19447 = vmatprep.mubr.msk.f32.mxu0 %vm371_vm1, %v25927_v26  ;;  %v8551_v48 = vpop.f32.mrf.mxu1  ;;  %25930 = vst [vmem:[#allocation26_spill] sm:$0xff] %v23722_v12 }
 0x479   : > { %v8941_v9 = vpop.f32.mrf.mxu0  ;;  %v23713_v10 = vadd.f32 %v19146_v1, %v8663_v60  ;;  %v8662_v51 = vadd.f32 %v8551_v48, %v23438_v59  ;;  %v25931_v59 = vld [vmem:[#allocation9_spill] sm:$0xff]  ;;  %v23734_v48 = vld [vmem:[#allocation3 + $0x110] sm:$0xff] }
 0x47a   : > { %v19099_v14 = vpop.f32.mrf.mxu1  ;;  %19398 = vmatmul.mubr.msk.f32.gmra.mxu1 %vm371_vm1, %v23716_v30  ;;  %25932 = vst [vmem:[#allocation24_spill] sm:$0xff] %v23734_v48 }
 0x47b   : > { %v19149_v33 = vpop.f32.mrf.mxu0  ;;  %19448 = vmatmul.mubr.msk.f32.gmra.mxu0 %vm371_vm1, %v25929_v28  ;;  %v23724_v38 = vadd.f32 %v8941_v9, %v8662_v51  ;;  %v8665_v24 = vadd.f32 %v19099_v14, %v23444_v8  ;;  %19400 = vmatprep.mubr.msk.f32.mxu1 %vm371_vm1, %v23722_v12  ;;  %v25933_v8 = vld [vmem:[#allocation28_spill] sm:$0xff]  ;;  %v23740_v9 = vld [vmem:[#allocation3 + $0x120] sm:$0xff] }
 0x47c   : > { %19450 = vmatprep.mubr.msk.f32.mxu0 %vm371_vm1, %v25931_v59  ;;  %v8561_v1 = vpop.f32.mrf.mxu1  ;;  %25934 = vst [vmem:[#allocation9_spill] sm:$0xff] %v23740_v9 }
 0x47d   : > { %v8951_v53 = vpop.f32.mrf.mxu0  ;;  %v23731_v60 = vadd.f32 %v19149_v33, %v8665_v24  ;;  %v8664_v26 = vadd.f32 %v8561_v1, %v23454_v17  ;;  %v25935_v17 = vld [vmem:[#allocation25_spill] sm:$0xff] }
 0x47e   : > { %v19102_v28 = vpop.f32.mrf.mxu1  ;;  %19401 = vmatmul.mubr.msk.f32.gmra.mxu1 %vm371_vm1, %v23734_v48  ;;  %v23752_v48 = vld [vmem:[#allocation3 + $0x128] sm:$0xff] }
 0x47f   : > { %v19152_v30 = vpop.f32.mrf.mxu0  ;;  %19451 = vmatmul.mubr.msk.f32.gmra.mxu0 %vm371_vm1, %v25933_v8  ;;  %v23742_v51 = vadd.f32 %v8951_v53, %v8664_v26  ;;  %v8667_v14 = vadd.f32 %v19102_v28, %v23460_v6  ;;  %19403 = vmatprep.mubr.msk.f32.mxu1 %vm371_vm1, %v23740_v9  ;;  %25936 = vst [vmem:[#allocation28_spill] sm:$0xff] %v23752_v48  ;;  %v25937_v6 = vld [vmem:[#allocation27_spill] sm:$0xff]  ;;  %v23758_v53 = vld [vmem:[#allocation3 + $0x138] sm:$0xff] }
 0x480   : > { %19453 = vmatprep.mubr.msk.f32.mxu0 %vm371_vm1, %v25935_v17  ;;  %v8571_v33 = vpop.f32.mrf.mxu1  ;;  %25938 = vst [vmem:[#allocation25_spill] sm:$0xff] %v23758_v53 }
 0x481   : > { %v8961_v24 = vpop.f32.mrf.mxu0  ;;  %v23749_v59 = vadd.f32 %v19152_v30, %v8667_v14  ;;  %v8666_v1 = vadd.f32 %v8571_v33, %v23470_v35  ;;  %v25939_v35 = vld [vmem:[#allocation10_spill] sm:$0xff] }
 0x482   : > { %v19105_v8 = vpop.f32.mrf.mxu1  ;;  %19404 = vmatmul.mubr.msk.f32.gmra.mxu1 %vm371_vm1, %v23752_v48  ;;  %v23770_v48 = vld [vmem:[#allocation3 + $0x140] sm:$0xff] }
 0x483   : > { %v19155_v12 = vpop.f32.mrf.mxu0  ;;  %19454 = vmatmul.mubr.msk.f32.gmra.mxu0 %vm371_vm1, %v25937_v6  ;;  %v23760_v26 = vadd.f32 %v8961_v24, %v8666_v1  ;;  %v8669_v28 = vadd.f32 %v19105_v8, %v23476_v43  ;;  %19406 = vmatprep.mubr.msk.f32.mxu1 %vm371_vm1, %v23758_v53  ;;  %25940 = vst [vmem:[#allocation27_spill] sm:$0xff] %v23770_v48  ;;  %v25941_v43 = vld [vmem:[#allocation30_spill] sm:$0xff]  ;;  %v23776_v24 = vld [vmem:[#allocation3 + $0x150] sm:$0xff] }
 0x484   : > { %19456 = vmatprep.mubr.msk.f32.mxu0 %vm371_vm1, %v25939_v35  ;;  %v8581_v30 = vpop.f32.mrf.mxu1  ;;  %25942 = vst [vmem:[#allocation10_spill] sm:$0xff] %v23776_v24 }
 0x485   : > { %v8971_v14 = vpop.f32.mrf.mxu0  ;;  %v23767_v17 = vadd.f32 %v19155_v12, %v8669_v28  ;;  %v8668_v33 = vadd.f32 %v8581_v30, %v23486_v49  ;;  %v25943_v49 = vld [vmem:[#allocation29_spill] sm:$0xff] }
 0x486   : > { %v19108_v6 = vpop.f32.mrf.mxu1  ;;  %19407 = vmatmul.mubr.msk.f32.gmra.mxu1 %vm371_vm1, %v23770_v48  ;;  %v23788_v48 = vld [vmem:[#allocation3 + $0x158] sm:$0xff] }
 0x487   : > { %v19158_v9 = vpop.f32.mrf.mxu0  ;;  %19457 = vmatmul.mubr.msk.f32.gmra.mxu0 %vm371_vm1, %v25941_v43  ;;  %v23778_v1 = vadd.f32 %v8971_v14, %v8668_v33  ;;  %v8671_v8 = vadd.f32 %v19108_v6, %v23492_v40  ;;  %19409 = vmatprep.mubr.msk.f32.mxu1 %vm371_vm1, %v23776_v24  ;;  %25944 = vst [vmem:[#allocation30_spill] sm:$0xff] %v23788_v48  ;;  %v25945_v40 = vld [vmem:[#allocation11_spill] sm:$0xff] }
 0x488   : > { %19459 = vmatprep.mubr.msk.f32.mxu0 %vm371_vm1, %v25943_v49  ;;  %v8591_v12 = vpop.f32.mrf.mxu1  ;;  %v23794_v14 = vld [vmem:[#allocation3 + $0x168] sm:$0xff] }
 0x489   : > { %v8981_v28 = vpop.f32.mrf.mxu0  ;;  %v23785_v35 = vadd.f32 %v19158_v9, %v8671_v8  ;;  %v8670_v30 = vadd.f32 %v8591_v12, %v23502_v27  ;;  %25946 = vst [vmem:[#allocation29_spill] sm:$0xff] %v23794_v14  ;;  %v25947_v27 = vld [vmem:[#allocation32_spill] sm:$0xff] }
 0x48a   : > { %v19111_v43 = vpop.f32.mrf.mxu1  ;;  %19410 = vmatmul.mubr.msk.f32.gmra.mxu1 %vm371_vm1, %v23788_v48  ;;  %v23806_v48 = vld [vmem:[#allocation3 + $0x170] sm:$0xff] }
 0x48b   : > { %v19161_v53 = vpop.f32.mrf.mxu0  ;;  %19460 = vmatmul.mubr.msk.f32.gmra.mxu0 %vm371_vm1, %v25945_v40  ;;  %v23796_v33 = vadd.f32 %v8981_v28, %v8670_v30  ;;  %v8673_v6 = vadd.f32 %v19111_v43, %v23508_v56  ;;  %19412 = vmatprep.mubr.msk.f32.mxu1 %vm371_vm1, %v23794_v14  ;;  %25948 = vst [vmem:[#allocation11_spill] sm:$0xff] %v23806_v48  ;;  %v25949_v56 = vld [vmem:[#allocation12_spill] sm:$0xff]  ;;  %v23812_v28 = vld [vmem:[#allocation3 + $0x180] sm:$0xff] }
 0x48c   : > { %19462 = vmatprep.mubr.msk.f32.mxu0 %vm371_vm1, %v25947_v27  ;;  %v8601_v9 = vpop.f32.mrf.mxu1  ;;  %25950 = vst [vmem:[#allocation32_spill] sm:$0xff] %v23812_v28 }
 0x48d   : > { %v8991_v8 = vpop.f32.mrf.mxu0  ;;  %v23803_v49 = vadd.f32 %v19161_v53, %v8673_v6  ;;  %v8672_v12 = vadd.f32 %v8601_v9, %v23518_v54  ;;  %v25951_v54 = vld [vmem:[#allocation34_spill] sm:$0xff] }
 0x48e   : > { %v19114_v40 = vpop.f32.mrf.mxu1  ;;  %19413 = vmatmul.mubr.msk.f32.gmra.mxu1 %vm371_vm1, %v23806_v48  ;;  %v23824_v48 = vld [vmem:[#allocation3 + $0x188] sm:$0xff] }
 0x48f   : > { %v19164_v24 = vpop.f32.mrf.mxu0  ;;  %19463 = vmatmul.mubr.msk.f32.gmra.mxu0 %vm371_vm1, %v25949_v56  ;;  %v23814_v30 = vadd.f32 %v8991_v8, %v8672_v12  ;;  %v8675_v43 = vadd.f32 %v19114_v40, %v23524_v25  ;;  %19415 = vmatprep.mubr.msk.f32.mxu1 %vm371_vm1, %v23812_v28  ;;  %25952 = vst [vmem:[#allocation12_spill] sm:$0xff] %v23824_v48  ;;  %v25953_v25 = vld [vmem:[#allocation31_spill] sm:$0xff]  ;;  %v23830_v8 = vld [vmem:[#allocation3 + $0x198] sm:$0xff]  ;;  %v23844_v28 = vld [vmem:[#allocation3 + $0x1a0] sm:$0xff] }
 0x490   : > { %19465 = vmatprep.mubr.msk.f32.mxu0 %vm371_vm1, %v25951_v54  ;;  %v8611_v53 = vpop.f32.mrf.mxu1  ;;  %25954 = vst [vmem:[#allocation34_spill] sm:$0xff] %v23830_v8  ;;  %v23839_v54 = vld [vmem:[#allocation3 + $0x1b0] sm:$0xff] }
 0x491   : > { %v9001_v6 = vpop.f32.mrf.mxu0  ;;  %v23821_v27 = vadd.f32 %v19164_v24, %v8675_v43  ;;  %v8674_v9 = vadd.f32 %v8611_v53, %v23534_v4  ;;  %v25955_v4 = vld [vmem:[#allocation13_spill] sm:$0xff]  ;;  %25956 = vst [vmem:[#allocation31_spill] sm:$0xff] %v23839_v54 }
 0x492   : > { %v19117_v56 = vpop.f32.mrf.mxu1  ;;  %19416 = vmatmul.mubr.msk.f32.gmra.mxu1 %vm371_vm1, %v23824_v48  ;;  %v11053_v53 = vld [vmem:[#allocation3 + $0x1b1] sm:$0xff]  ;;  %25957 = vst [vmem:[#allocation13_spill] sm:$0xff] %v23844_v28 }
 0x493   : > { %v19167_v14 = vpop.f32.mrf.mxu0  ;;  %19466 = vmatmul.mubr.msk.f32.gmra.mxu0 %vm371_vm1, %v25953_v25  ;;  %v23832_v12 = vadd.f32 %v9001_v6, %v8674_v9  ;;  %v8677_v40 = vadd.f32 %v19117_v56, %v23541_v62  ;;  %19418 = vmatprep.mubr.msk.f32.mxu1 %vm371_vm1, %v23830_v8  ;;  %v25958_v62 = vld [vmem:[#allocation36_spill] sm:$0xff] }
 0x494   : > { %19468 = vmatprep.mubr.msk.f32.mxu0 %vm371_vm1, %v25955_v4  ;;  %v8621_v24 = vpop.f32.mrf.mxu1 }
 0x495   : > { %v9011_v43 = vpop.f32.mrf.mxu0  ;;  %v23841_v48 = vadd.f32 %v19167_v14, %v8677_v40  ;;  %v8676_v25 = vadd.f32 %v8621_v24, %v23552_v55  ;;  %v23856_v55 = vld [vmem:[#allocation3 + $0x1b8] sm:$0xff] }
 0x496   : > { %v19120_v6 = vpop.f32.mrf.mxu1  ;;  %19419 = vmatmul.mubr.msk.f32.gmra.mxu1 %vm371_vm1, %v23844_v28  ;;  %25959 = vst [vmem:[#allocation36_spill] sm:$0xff] %v23856_v55  ;;  %v11054_v14 = vld [vmem:[#allocation3 + $0x1b9] sm:$0xff] }
 0x497   : > { %v19170_v9 = vpop.f32.mrf.mxu0  ;;  %19469 = vmatmul.mubr.msk.f32.gmra.mxu0 %vm371_vm1, %v25958_v62  ;;  %v23850_v56 = vadd.f32 %v9011_v43, %v8676_v25  ;;  %v8679_v4 = vadd.f32 %v19120_v6, %v23558_v29  ;;  %19421 = vmatprep.mubr.msk.f32.mxu1 %vm371_vm1, %v23839_v54  ;;  %v11413_v29 = vld [vmem:[#allocation3 + $0x4a] sm:$0xff]  ;;  %v25960_v25 = vld [vmem:[#allocation33_spill] sm:$0xff] }
 0x498   : > { %19471 = vmatprep.mubr.msk.f32.mxu0 %vm371_vm1, %v11053_v53  ;;  %v8631_v40 = vpop.f32.mrf.mxu1 }
 0x499   : > { %v9021_v24 = vpop.f32.mrf.mxu0  ;;  %v23858_v8 = vadd.f32 %v19170_v9, %v8679_v4  ;;  %v8678_v28 = vadd.f32 %v8631_v40, %v23566_v23  ;;  %v11414_v40 = vld [vmem:[#allocation3 + $0x52] sm:$0xff] }
 0x49a   : > { %v19123_v42 = vpop.f32.mrf.mxu1  ;;  %19422 = vmatmul.mubr.msk.f32.gmra.mxu1 %vm371_vm1, %v23856_v55 }
 0x49b   : > { %v19173_v62 = vpop.f32.mrf.mxu0  ;;  %19472 = vmatmul.mubr.msk.f32.gmra.mxu0 %vm371_vm1, %v11054_v14  ;;  %v23864_v43 = vadd.f32 %v9021_v24, %v8678_v28  ;;  %v8681_v53 = vadd.f32 %v19123_v42, %v23572_v22  ;;  %19476 = vmatprep.mubr.msk.f32.mxu1 %vm371_vm1, %v11413_v29  ;;  %v25961_v28 = vld [vmem:[#allocation35_spill] sm:$0xff]  ;;  %v23881_v42 = vld [vmem:[%s25663_s5 + $0x54] sm:$0xf] }
 0x49c   : > { %19526 = vmatprep.mubr.msk.f32.mxu0 %vm371_vm1, %v25960_v25  ;;  %v8641_v6 = vpop.f32.mrf.mxu1  ;;  %v23876_v22 = vld [vmem:[#allocation3 + $0x62] sm:$0xff] }
 0x49d   : > { %v9031_v9 = vpop.f32.mrf.mxu0  ;;  %v23870_v23 = vadd.f32 %v19173_v62, %v8681_v53  ;;  %v8680_v4 = vadd.f32 %v8641_v6, %v23590_v13  ;;  %v23886_v14 = vld [vmem:[%s25663_s5 + $0x58] sm:$0xf]  ;;  %v25962_v62 = vld [vmem:[#allocation14_spill] sm:$0xff] }
 0x49e   : > { %v19178_v55 = vpop.f32.mrf.mxu1  ;;  %19477 = vmatmul.mubr.msk.f32.vlgmr.msra.gmra.mxu1 %vm371_vm1, %v11414_v40 }
 0x49f   : > { %v19228_v54 = vpop.f32.mrf.mxu0  ;;  %19527 = vmatmul.mubr.msk.f32.vlgmr.msra.gmra.mxu0 %vm371_vm1, %v25961_v28  ;;  %v23888_v13 = vadd.f32 %v9031_v9, %v8680_v4  ;;  %v9431_v24 = vadd.f32 %v19178_v55, %v23601_v2  ;;  %19575 = vmatpush3.msk.msra.mxu1 %vm468_vm0, %v23583_v63  ;;  %v23902_v9 = vld [vmem:[#allocation3 + $0x6a] sm:$0xff]  ;;  %v25964_v55 = vld [vmem:[#allocation38_spill] sm:$0xff]  ;;  %v25966_v4 = vld [vmem:[#allocation37_spill] sm:$0xff] }
 0x4a0   : > { %19479 = vmatprep.mubr.msk.f32.mxu1 %vm371_vm1, %v23876_v22  ;;  %19529 = vmatprep.mubr.msk.f32.mxu0 %vm371_vm1, %v25962_v62  ;;  %v9271_v29 = vpop.f32.mrf.mxu1  ;;  %25963 = vst [vmem:[#allocation33_spill] sm:$0xff] %v23902_v9 }
 0x4a1   : > { %v9661_v53 = vpop.f32.mrf.mxu0  ;;  %19625 = vmatpush3.msk.msra.mxu0 %vm468_vm0, %v23588_v57  ;;  %v23899_v25 = vadd.f32 %v19228_v54, %v9431_v24  ;;  %v9430_v6 = vadd.f32 %v9271_v29, %v23616_v19  ;;  %19674 = vmatprep.subr.msk.mxu1 %vm468_vm0, %v23881_v42  ;;  %v23912_v57 = vld [vmem:[#allocation3 + $0x7a] sm:$0xff]  ;;  %v23924_v29 = vld [vmem:[#allocation3 + $0x82] sm:$0xff] }
 0x4a2   : > { %19724 = vmatprep.subr.msk.mxu0 %vm468_vm0, %v23886_v14  ;;  %v19181_v63 = vpop.f32.mrf.mxu1  ;;  %19480 = vmatmul.mubr.msk.f32.gmra.mxu1 %vm371_vm1, %v23902_v9  ;;  %25965 = vst [vmem:[#allocation35_spill] sm:$0xff] %v23912_v57  ;;  %25967 = vst [vmem:[#allocation14_spill] sm:$0xff] %v23924_v29 }
 0x4a3   : > { %v19231_v2 = vpop.f32.mrf.mxu0  ;;  %19530 = vmatmul.mubr.msk.f32.gmra.mxu0 %vm371_vm1, %v25964_v55  ;;  %v23914_v54 = vadd.f32 %v9661_v53, %v9430_v6  ;;  %v9433_v19 = vadd.f32 %v19181_v63, %v23623_v15  ;;  %19482 = vmatprep.mubr.msk.f32.mxu1 %vm371_vm1, %v23912_v57  ;;  %v25968_v15 = vld [vmem:[#allocation15_spill] sm:$0xff]  ;;  %v23930_v53 = vld [vmem:[#allocation3 + $0x92] sm:$0xff] }
 0x4a4   : > { %19532 = vmatprep.mubr.msk.f32.mxu0 %vm371_vm1, %v25966_v4  ;;  %v9281_v40 = vpop.f32.mrf.mxu1  ;;  %25969 = vst [vmem:[#allocation38_spill] sm:$0xff] %v23930_v53 }
 0x4a5   : > { %v9671_v28 = vpop.f32.mrf.mxu0  ;;  %v23921_v24 = vadd.f32 %v19231_v2, %v9433_v19  ;;  %v9432_v62 = vadd.f32 %v9281_v40, %v23634_v16  ;;  %v25970_v16 = vld [vmem:[#allocation40_spill] sm:$0xff] }
 0x4a6   : > { %v19184_v55 = vpop.f32.mrf.mxu1  ;;  %19483 = vmatmul.mubr.msk.f32.gmra.mxu1 %vm371_vm1, %v23924_v29  ;;  %v23942_v29 = vld [vmem:[#allocation3 + $0x9a] sm:$0xff] }
 0x4a7   : > { %v19234_v9 = vpop.f32.mrf.mxu0  ;;  %19533 = vmatmul.mubr.msk.f32.gmra.mxu0 %vm371_vm1, %v25968_v15  ;;  %v23932_v6 = vadd.f32 %v9671_v28, %v9432_v62  ;;  %v9435_v63 = vadd.f32 %v19184_v55, %v23641_v21  ;;  %19485 = vmatprep.mubr.msk.f32.mxu1 %vm371_vm1, %v23930_v53  ;;  %25971 = vst [vmem:[#allocation37_spill] sm:$0xff] %v23942_v29  ;;  %v25972_v21 = vld [vmem:[#allocation16_spill] sm:$0xff] }
 0x4a8   : > { %19535 = vmatprep.mubr.msk.f32.mxu0 %vm371_vm1, %v25970_v16  ;;  %v9291_v2 = vpop.f32.mrf.mxu1  ;;  %v23948_v28 = vld [vmem:[#allocation3 + $0xaa] sm:$0xff] }
 0x4a9   : > { %v9681_v19 = vpop.f32.mrf.mxu0  ;;  %v23939_v4 = vadd.f32 %v19234_v9, %v9435_v63  ;;  %v9434_v40 = vadd.f32 %v9291_v2, %v23652_v3  ;;  %25973 = vst [vmem:[#allocation15_spill] sm:$0xff] %v23948_v28  ;;  %v25974_v3 = vld [vmem:[#allocation42_spill] sm:$0xff] }
 0x4aa   : > { %v19187_v15 = vpop.f32.mrf.mxu1  ;;  %19486 = vmatmul.mubr.msk.f32.gmra.mxu1 %vm371_vm1, %v23942_v29  ;;  %v23960_v29 = vld [vmem:[#allocation3 + $0xb2] sm:$0xff] }
 0x4ab   : > { %v19237_v57 = vpop.f32.mrf.mxu0  ;;  %19536 = vmatmul.mubr.msk.f32.gmra.mxu0 %vm371_vm1, %v25972_v21  ;;  %v23950_v62 = vadd.f32 %v9681_v19, %v9434_v40  ;;  %v9437_v55 = vadd.f32 %v19187_v15, %v23659_v52  ;;  %19488 = vmatprep.mubr.msk.f32.mxu1 %vm371_vm1, %v23948_v28  ;;  %25975 = vst [vmem:[#allocation40_spill] sm:$0xff] %v23960_v29  ;;  %v25976_v52 = vld [vmem:[#allocation39_spill] sm:$0xff] }
 0x4ac   : > { %19538 = vmatprep.mubr.msk.f32.mxu0 %vm371_vm1, %v25974_v3  ;;  %v9301_v9 = vpop.f32.mrf.mxu1  ;;  %v23966_v19 = vld [vmem:[#allocation3 + $0xc2] sm:$0xff] }
 0x4ad   : > { %v9691_v63 = vpop.f32.mrf.mxu0  ;;  %v23957_v16 = vadd.f32 %v19237_v57, %v9437_v55  ;;  %v9436_v2 = vadd.f32 %v9301_v9, %v23670_v31  ;;  %25977 = vst [vmem:[#allocation16_spill] sm:$0xff] %v23966_v19  ;;  %v25978_v31 = vld [vmem:[#allocation17_spill] sm:$0xff] }
 0x4ae   : > { %v19190_v21 = vpop.f32.mrf.mxu1  ;;  %19489 = vmatmul.mubr.msk.f32.gmra.mxu1 %vm371_vm1, %v23960_v29  ;;  %v23978_v29 = vld [vmem:[#allocation3 + $0xca] sm:$0xff] }
 0x4af   : > { %v19240_v53 = vpop.f32.mrf.mxu0  ;;  %19539 = vmatmul.mubr.msk.f32.gmra.mxu0 %vm371_vm1, %v25976_v52  ;;  %v23968_v40 = vadd.f32 %v9691_v63, %v9436_v2  ;;  %v9439_v15 = vadd.f32 %v19190_v21, %v23677_v20  ;;  %19491 = vmatprep.mubr.msk.f32.mxu1 %vm371_vm1, %v23966_v19  ;;  %25979 = vst [vmem:[#allocation42_spill] sm:$0xff] %v23978_v29  ;;  %v25980_v20 = vld [vmem:[#allocation44_spill] sm:$0xff]  ;;  %v23984_v63 = vld [vmem:[#allocation3 + $0xda] sm:$0xff] }
 0x4b0   : > { %19541 = vmatprep.mubr.msk.f32.mxu0 %vm371_vm1, %v25978_v31  ;;  %v9311_v57 = vpop.f32.mrf.mxu1  ;;  %25981 = vst [vmem:[#allocation39_spill] sm:$0xff] %v23984_v63 }
 0x4b1   : > { %v9701_v55 = vpop.f32.mrf.mxu0  ;;  %v23975_v3 = vadd.f32 %v19240_v53, %v9439_v15  ;;  %v9438_v9 = vadd.f32 %v9311_v57, %v23688_v32  ;;  %v25982_v32 = vld [vmem:[#allocation41_spill] sm:$0xff] }
 0x4b2   : > { %v19193_v52 = vpop.f32.mrf.mxu1  ;;  %19492 = vmatmul.mubr.msk.f32.gmra.mxu1 %vm371_vm1, %v23978_v29  ;;  %v23996_v29 = vld [vmem:[#allocation3 + $0xe2] sm:$0xff] }
 0x4b3   : > { %v19243_v28 = vpop.f32.mrf.mxu0  ;;  %19542 = vmatmul.mubr.msk.f32.gmra.mxu0 %vm371_vm1, %v25980_v20  ;;  %v23986_v2 = vadd.f32 %v9701_v55, %v9438_v9  ;;  %v9441_v21 = vadd.f32 %v19193_v52, %v23695_v45  ;;  %19494 = vmatprep.mubr.msk.f32.mxu1 %vm371_vm1, %v23984_v63  ;;  %25983 = vst [vmem:[#allocation17_spill] sm:$0xff] %v23996_v29  ;;  %v25984_v45 = vld [vmem:[#allocation43_spill] sm:$0xff]  ;;  %v24002_v55 = vld [vmem:[#allocation3 + $0xf2] sm:$0xff] }
 0x4b4   : > { %19544 = vmatprep.mubr.msk.f32.mxu0 %vm371_vm1, %v25982_v32  ;;  %v9321_v53 = vpop.f32.mrf.mxu1  ;;  %25985 = vst [vmem:[#allocation44_spill] sm:$0xff] %v24002_v55 }
 0x4b5   : > { %v9711_v15 = vpop.f32.mrf.mxu0  ;;  %v23993_v31 = vadd.f32 %v19243_v28, %v9441_v21  ;;  %v9440_v57 = vadd.f32 %v9321_v53, %v23706_v5  ;;  %v25986_v5 = vld [vmem:[#allocation18_spill] sm:$0xff] }
 0x4b6   : > { %v19196_v20 = vpop.f32.mrf.mxu1  ;;  %19495 = vmatmul.mubr.msk.f32.gmra.mxu1 %vm371_vm1, %v23996_v29  ;;  %v24014_v29 = vld [vmem:[#allocation3 + $0xfa] sm:$0xff] }
 0x4b7   : > { %v19246_v19 = vpop.f32.mrf.mxu0  ;;  %19545 = vmatmul.mubr.msk.f32.gmra.mxu0 %vm371_vm1, %v25984_v45  ;;  %v24004_v9 = vadd.f32 %v9711_v15, %v9440_v57  ;;  %v9443_v52 = vadd.f32 %v19196_v20, %v23713_v10  ;;  %19497 = vmatprep.mubr.msk.f32.mxu1 %vm371_vm1, %v24002_v55  ;;  %25987 = vst [vmem:[#allocation41_spill] sm:$0xff] %v24014_v29  ;;  %v25988_v10 = vld [vmem:[#allocation46_spill] sm:$0xff]  ;;  %v24020_v15 = vld [vmem:[#allocation3 + $0x10a] sm:$0xff] }
 0x4b8   : > { %19547 = vmatprep.mubr.msk.f32.mxu0 %vm371_vm1, %v25986_v5  ;;  %v9331_v28 = vpop.f32.mrf.mxu1  ;;  %25989 = vst [vmem:[#allocation43_spill] sm:$0xff] %v24020_v15 }
 0x4b9   : > { %v9721_v21 = vpop.f32.mrf.mxu0  ;;  %v24011_v32 = vadd.f32 %v19246_v19, %v9443_v52  ;;  %v9442_v53 = vadd.f32 %v9331_v28, %v23724_v38  ;;  %v25990_v38 = vld [vmem:[#allocation45_spill] sm:$0xff] }
 0x4ba   : > { %v19199_v45 = vpop.f32.mrf.mxu1  ;;  %19498 = vmatmul.mubr.msk.f32.gmra.mxu1 %vm371_vm1, %v24014_v29  ;;  %v24032_v29 = vld [vmem:[#allocation3 + $0x112] sm:$0xff] }
 0x4bb   : > { %v19249_v63 = vpop.f32.mrf.mxu0  ;;  %19548 = vmatmul.mubr.msk.f32.gmra.mxu0 %vm371_vm1, %v25988_v10  ;;  %v24022_v57 = vadd.f32 %v9721_v21, %v9442_v53  ;;  %v9445_v20 = vadd.f32 %v19199_v45, %v23731_v60  ;;  %19500 = vmatprep.mubr.msk.f32.mxu1 %vm371_vm1, %v24020_v15  ;;  %25991 = vst [vmem:[#allocation18_spill] sm:$0xff] %v24032_v29  ;;  %v25992_v60 = vld [vmem:[#allocation19_spill] sm:$0xff] }
 0x4bc   : > { %19550 = vmatprep.mubr.msk.f32.mxu0 %vm371_vm1, %v25990_v38  ;;  %v9341_v19 = vpop.f32.mrf.mxu1  ;;  %v24038_v21 = vld [vmem:[#allocation3 + $0x122] sm:$0xff] }
 0x4bd   : > { %v9731_v52 = vpop.f32.mrf.mxu0  ;;  %v24029_v5 = vadd.f32 %v19249_v63, %v9445_v20  ;;  %v9444_v28 = vadd.f32 %v9341_v19, %v23742_v51  ;;  %25993 = vst [vmem:[#allocation46_spill] sm:$0xff] %v24038_v21  ;;  %v25994_v51 = vld [vmem:[#allocation48_spill] sm:$0xff] }
 0x4be   : > { %v19202_v10 = vpop.f32.mrf.mxu1  ;;  %19501 = vmatmul.mubr.msk.f32.gmra.mxu1 %vm371_vm1, %v24032_v29  ;;  %v24050_v29 = vld [vmem:[#allocation3 + $0x12a] sm:$0xff] }
 0x4bf   : > { %v19252_v55 = vpop.f32.mrf.mxu0  ;;  %19551 = vmatmul.mubr.msk.f32.gmra.mxu0 %vm371_vm1, %v25992_v60  ;;  %v24040_v53 = vadd.f32 %v9731_v52, %v9444_v28  ;;  %v9447_v45 = vadd.f32 %v19202_v10, %v23749_v59  ;;  %19503 = vmatprep.mubr.msk.f32.mxu1 %vm371_vm1, %v24038_v21  ;;  %25995 = vst [vmem:[#allocation45_spill] sm:$0xff] %v24050_v29  ;;  %v25996_v59 = vld [vmem:[#allocation20_spill] sm:$0xff]  ;;  %v24056_v52 = vld [vmem:[#allocation3 + $0x13a] sm:$0xff] }
 0x4c0   : > { %19553 = vmatprep.mubr.msk.f32.mxu0 %vm371_vm1, %v25994_v51  ;;  %v9351_v63 = vpop.f32.mrf.mxu1 }
 0x4c1   : > { %v9741_v20 = vpop.f32.mrf.mxu0  ;;  %v24047_v38 = vadd.f32 %v19252_v55, %v9447_v45  ;;  %v9446_v19 = vadd.f32 %v9351_v63, %v23760_v26  ;;  %v25997_v26 = vld [vmem:[#allocation50_spill] sm:$0xff] }
 0x4c2   : > { %v19205_v60 = vpop.f32.mrf.mxu1  ;;  %19504 = vmatmul.mubr.msk.f32.gmra.mxu1 %vm371_vm1, %v24050_v29  ;;  %v24068_v29 = vld [vmem:[#allocation3 + $0x142] sm:$0xff] }
 0x4c3   : > { %v19255_v15 = vpop.f32.mrf.mxu0  ;;  %19554 = vmatmul.mubr.msk.f32.gmra.mxu0 %vm371_vm1, %v25996_v59  ;;  %v24058_v28 = vadd.f32 %v9741_v20, %v9446_v19  ;;  %v9449_v10 = vadd.f32 %v19205_v60, %v23767_v17  ;;  %19506 = vmatprep.mubr.msk.f32.mxu1 %vm371_vm1, %v24056_v52  ;;  %25998 = vst [vmem:[#allocation19_spill] sm:$0xff] %v24068_v29  ;;  %v25999_v17 = vld [vmem:[#allocation47_spill] sm:$0xff]  ;;  %v24074_v20 = vld [vmem:[#allocation3 + $0x152] sm:$0xff] }
 0x4c4   : > { %19556 = vmatprep.mubr.msk.f32.mxu0 %vm371_vm1, %v25997_v26  ;;  %v9361_v55 = vpop.f32.mrf.mxu1 }
 0x4c5   : > { %v9751_v45 = vpop.f32.mrf.mxu0  ;;  %v24065_v51 = vadd.f32 %v19255_v15, %v9449_v10  ;;  %v9448_v63 = vadd.f32 %v9361_v55, %v23778_v1  ;;  %v24086_v55 = vld [vmem:[#allocation3 + $0x15a] sm:$0xff] }
 0x4c6   : > { %v19208_v59 = vpop.f32.mrf.mxu1  ;;  %19507 = vmatmul.mubr.msk.f32.gmra.mxu1 %vm371_vm1, %v24068_v29  ;;  %26000 = vst [vmem:[#allocation48_spill] sm:$0xff] %v24086_v55 }
 0x4c7   : > { %v19258_v21 = vpop.f32.mrf.mxu0  ;;  %19557 = vmatmul.mubr.msk.f32.gmra.mxu0 %vm371_vm1, %v25999_v17  ;;  %v24076_v19 = vadd.f32 %v9751_v45, %v9448_v63  ;;  %v9451_v60 = vadd.f32 %v19208_v59, %v23785_v35  ;;  %19509 = vmatprep.mubr.msk.f32.mxu1 %vm371_vm1, %v24074_v20  ;;  %v26001_v35 = vld [vmem:[#allocation21_spill] sm:$0xff]  ;;  %v24092_v45 = vld [vmem:[#allocation3 + $0x16a] sm:$0xff] }
 0x4c8   : > { %19559 = vmatprep.mubr.msk.f32.mxu0 %vm371_vm1, %v23500_v50  ;;  %v9371_v1 = vpop.f32.mrf.mxu1  ;;  %26002 = vst [vmem:[#allocation20_spill] sm:$0xff] %v24092_v45 }
 0x4c9   : > { %v9761_v15 = vpop.f32.mrf.mxu0  ;;  %v24083_v10 = vadd.f32 %v19258_v21, %v9451_v60  ;;  %v9450_v26 = vadd.f32 %v9371_v1, %v23796_v33  ;;  %v24104_v1 = vld [vmem:[#allocation3 + $0x172] sm:$0xff] }
 0x4ca   : > { %v19211_v17 = vpop.f32.mrf.mxu1  ;;  %19510 = vmatmul.mubr.msk.f32.gmra.mxu1 %vm371_vm1, %v24086_v55  ;;  %26003 = vst [vmem:[#allocation50_spill] sm:$0xff] %v24104_v1 }
 0x4cb   : > { %v19261_v29 = vpop.f32.mrf.mxu0  ;;  %19560 = vmatmul.mubr.msk.f32.gmra.mxu0 %vm371_vm1, %v26001_v35  ;;  %v24094_v63 = vadd.f32 %v9761_v15, %v9450_v26  ;;  %v9453_v50 = vadd.f32 %v19211_v17, %v23803_v49  ;;  %19512 = vmatprep.mubr.msk.f32.mxu1 %vm371_vm1, %v24092_v45  ;;  %v26004_v49 = vld [vmem:[#allocation49_spill] sm:$0xff]  ;;  %v24110_v15 = vld [vmem:[#allocation3 + $0x182] sm:$0xff] }
 0x4cc   : > { %19562 = vmatprep.mubr.msk.f32.mxu0 %vm371_vm1, %v23516_v7  ;;  %v9381_v33 = vpop.f32.mrf.mxu1  ;;  %26005 = vst [vmem:[#allocation47_spill] sm:$0xff] %v24110_v15 }
 0x4cd   : > { %v9771_v21 = vpop.f32.mrf.mxu0  ;;  %v24101_v59 = vadd.f32 %v19261_v29, %v9453_v50  ;;  %v9452_v60 = vadd.f32 %v9381_v33, %v23814_v30  ;;  %v26006_v30 = vld [vmem:[#allocation51_spill] sm:$0xff] }
 0x4ce   : > { %v19214_v35 = vpop.f32.mrf.mxu1  ;;  %19513 = vmatmul.mubr.msk.f32.gmra.mxu1 %vm371_vm1, %v24104_v1  ;;  %v24122_v1 = vld [vmem:[#allocation3 + $0x18a] sm:$0xff] }
 0x4cf   : > { %v19264_v55 = vpop.f32.mrf.mxu0  ;;  %19563 = vmatmul.mubr.msk.f32.gmra.mxu0 %vm371_vm1, %v26004_v49  ;;  %v24112_v26 = vadd.f32 %v9771_v21, %v9452_v60  ;;  %v9455_v7 = vadd.f32 %v19214_v35, %v23821_v27  ;;  %19515 = vmatprep.mubr.msk.f32.mxu1 %vm371_vm1, %v24110_v15  ;;  %26007 = vst [vmem:[#allocation21_spill] sm:$0xff] %v24122_v1  ;;  %v26008_v27 = vld [vmem:[#allocation22_spill] sm:$0xff] }
 0x4d0   : > { %19565 = vmatprep.mubr.msk.f32.mxu0 %vm371_vm1, %v26006_v30  ;;  %v9391_v29 = vpop.f32.mrf.mxu1  ;;  %v24128_v21 = vld [vmem:[#allocation3 + $0x19a] sm:$0xff] }
 0x4d1   : > { %v9781_v17 = vpop.f32.mrf.mxu0  ;;  %v24119_v50 = vadd.f32 %v19264_v55, %v9455_v7  ;;  %v9454_v33 = vadd.f32 %v9391_v29, %v23832_v12  ;;  %26009 = vst [vmem:[#allocation49_spill] sm:$0xff] %v24128_v21  ;;  %v24137_v7 = vld [vmem:[#allocation3 + $0x1b2] sm:$0xff] }
 0x4d2   : > { %v19217_v49 = vpop.f32.mrf.mxu1  ;;  %19516 = vmatmul.mubr.msk.f32.gmra.mxu1 %vm371_vm1, %v24122_v1  ;;  %v11833_v30 = vld [vmem:[#allocation3 + $0x1b3] sm:$0xff]  ;;  %v24142_v1 = vld [vmem:[#allocation3 + $0x1a2] sm:$0xff] }
 0x4d3   : > { %v19267_v45 = vpop.f32.mrf.mxu0  ;;  %19566 = vmatmul.mubr.msk.f32.gmra.mxu0 %vm371_vm1, %v26008_v27  ;;  %v24130_v60 = vadd.f32 %v9781_v17, %v9454_v33  ;;  %v9457_v35 = vadd.f32 %v19217_v49, %v23841_v48  ;;  %19518 = vmatprep.mubr.msk.f32.mxu1 %vm371_vm1, %v24128_v21  ;;  %26010 = vst [vmem:[#allocation51_spill] sm:$0xff] %v24142_v1  ;;  %v26011_v48 = vld [vmem:[#allocation23_spill] sm:$0xff] }
 0x4d4   : > { %19568 = vmatprep.mubr.msk.f32.mxu0 %vm371_vm1, %v23550_v37  ;;  %v9401_v12 = vpop.f32.mrf.mxu1 }
 0x4d5   : > { %v9791_v55 = vpop.f32.mrf.mxu0  ;;  %v24139_v29 = vadd.f32 %v19267_v45, %v9457_v35  ;;  %v9456_v27 = vadd.f32 %v9401_v12, %v23850_v56  ;;  %v24154_v56 = vld [vmem:[#allocation3 + $0x1ba] sm:$0xff] }
 0x4d6   : > { %v19220_v17 = vpop.f32.mrf.mxu1  ;;  %19519 = vmatmul.mubr.msk.f32.gmra.mxu1 %vm371_vm1, %v24142_v1  ;;  %26012 = vst [vmem:[#allocation22_spill] sm:$0xff] %v24154_v56  ;;  %v11834_v45 = vld [vmem:[#allocation3 + $0x1bb] sm:$0xff] }
 0x4d7   : > { %v19270_v33 = vpop.f32.mrf.mxu0  ;;  %19569 = vmatmul.mubr.msk.f32.gmra.mxu0 %vm371_vm1, %v26011_v48  ;;  %v24148_v37 = vadd.f32 %v9791_v55, %v9456_v27  ;;  %v9459_v49 = vadd.f32 %v19220_v17, %v23858_v8  ;;  %19521 = vmatprep.mubr.msk.f32.mxu1 %vm371_vm1, %v24137_v7  ;;  %v12193_v8 = vld [vmem:[#allocation3 + $0x4c] sm:$0xff] }
 0x4d8   : > { %19571 = vmatprep.mubr.msk.f32.mxu0 %vm371_vm1, %v11833_v30  ;;  %v9411_v35 = vpop.f32.mrf.mxu1 }
 0x4d9   : > { %v9801_v12 = vpop.f32.mrf.mxu0  ;;  %v24156_v21 = vadd.f32 %v19270_v33, %v9459_v49  ;;  %v9458_v1 = vadd.f32 %v9411_v35, %v23864_v43  ;;  %v12194_v49 = vld [vmem:[#allocation3 + $0x54] sm:$0xff] }
 0x4da   : > { %v19223_v15 = vpop.f32.mrf.mxu1  ;;  %19522 = vmatmul.mubr.msk.f32.gmra.mxu1 %vm371_vm1, %v24154_v56 }
 0x4db   : > { %v19273_v48 = vpop.f32.mrf.mxu0  ;;  %19572 = vmatmul.mubr.msk.f32.gmra.mxu0 %vm371_vm1, %v11834_v45  ;;  %v24162_v55 = vadd.f32 %v9801_v12, %v9458_v1  ;;  %v9461_v30 = vadd.f32 %v19223_v15, %v23870_v23  ;;  %19576 = vmatprep.mubr.msk.f32.mxu1 %vm371_vm1, %v12193_v8  ;;  %v24174_v23 = vld [vmem:[#allocation3 + $0x64] sm:$0xff]  ;;  %v24184_v1 = vld [vmem:[%s25663_s5 + $0x60] sm:$0xf] }
 0x4dc   : > { %19626 = vmatprep.mubr.msk.f32.mxu0 %vm371_vm1, %v23578_v11  ;;  %v9421_v27 = vpop.f32.mrf.mxu1  ;;  %v24179_v11 = vld [vmem:[%s25663_s5 + $0x5c] sm:$0xf] }
 0x4dd   : > { %v9811_v17 = vpop.f32.mrf.mxu0  ;;  %v24168_v43 = vadd.f32 %v19273_v48, %v9461_v30  ;;  %v9460_v33 = vadd.f32 %v9421_v27, %v23888_v13  ;;  %v24200_v8 = vld [vmem:[#allocation3 + $0x6c] sm:$0xff] }
 0x4de   : > { %v19278_v35 = vpop.f32.mrf.mxu1  ;;  %19577 = vmatmul.mubr.msk.f32.vlgmr.msra.gmra.mxu1 %vm371_vm1, %v12194_v49 }
 0x4df   : > { %v19328_v56 = vpop.f32.mrf.mxu0  ;;  %19627 = vmatmul.mubr.msk.f32.vlgmr.msra.gmra.mxu0 %vm371_vm1, %v23604_v61  ;;  %v24186_v13 = vadd.f32 %v9811_v17, %v9460_v33  ;;  %v10211_v15 = vadd.f32 %v19278_v35, %v23899_v25  ;;  %19675 = vmatpush3.msk.msra.mxu1 %vm468_vm0, %v23881_v42  ;;  %v24222_v33 = vld [vmem:[#allocation3 + $0x84] sm:$0xff] }
 0x4e0   : > { %19579 = vmatprep.mubr.msk.f32.mxu1 %vm371_vm1, %v24174_v23  ;;  %19629 = vmatprep.mubr.msk.f32.mxu0 %vm371_vm1, %v23614_v58  ;;  %v10051_v61 = vpop.f32.mrf.mxu1  ;;  %v24210_v58 = vld [vmem:[#allocation3 + $0x7c] sm:$0xff] }
 0x4e1   : > { %v10441_v45 = vpop.f32.mrf.mxu0  ;;  %19725 = vmatpush3.msk.msra.mxu0 %vm468_vm0, %v23886_v14  ;;  %v24197_v12 = vadd.f32 %v19328_v56, %v10211_v15  ;;  %v10210_v48 = vadd.f32 %v10051_v61, %v23914_v54  ;;  %19774 = vmatprep.subr.msk.mxu1 %vm468_vm0, %v24179_v11 }
 0x4e2   : > { %19824 = vmatprep.subr.msk.mxu0 %vm468_vm0, %v24184_v1  ;;  %v19281_v42 = vpop.f32.mrf.mxu1  ;;  %19580 = vmatmul.mubr.msk.f32.gmra.mxu1 %vm371_vm1, %v24200_v8 }
 0x4e3   : > { %v19331_v25 = vpop.f32.mrf.mxu0  ;;  %19630 = vmatmul.mubr.msk.f32.gmra.mxu0 %vm371_vm1, %v23626_v44  ;;  %v24212_v14 = vadd.f32 %v10441_v45, %v10210_v48  ;;  %v10213_v54 = vadd.f32 %v19281_v42, %v23921_v24  ;;  %19582 = vmatprep.mubr.msk.f32.mxu1 %vm371_vm1, %v24210_v58  ;;  %v24228_v24 = vld [vmem:[#allocation3 + $0x94] sm:$0xff]  ;;  %v24240_v48 = vld [vmem:[#allocation3 + $0x9c] sm:$0xff] }
 0x4e4   : > { %19632 = vmatprep.mubr.msk.f32.mxu0 %vm371_vm1, %v23632_v18  ;;  %v10061_v56 = vpop.f32.mrf.mxu1 }
 0x4e5   : > { %v10451_v30 = vpop.f32.mrf.mxu0  ;;  %v24219_v27 = vadd.f32 %v19331_v25, %v10213_v54  ;;  %v10212_v17 = vadd.f32 %v10061_v56, %v23932_v6 }
 0x4e6   : > { %v19284_v44 = vpop.f32.mrf.mxu1  ;;  %19583 = vmatmul.mubr.msk.f32.gmra.mxu1 %vm371_vm1, %v24222_v33 }
 0x4e7   : > { %v19334_v49 = vpop.f32.mrf.mxu0  ;;  %19633 = vmatmul.mubr.msk.f32.gmra.mxu0 %vm371_vm1, %v23644_v34  ;;  %v24230_v35 = vadd.f32 %v10451_v30, %v10212_v17  ;;  %v10215_v18 = vadd.f32 %v19284_v44, %v23939_v4  ;;  %19585 = vmatprep.mubr.msk.f32.mxu1 %vm371_vm1, %v24228_v24  ;;  %v24246_v4 = vld [vmem:[#allocation3 + $0xac] sm:$0xff]  ;;  %v24258_v17 = vld [vmem:[#allocation3 + $0xb4] sm:$0xff] }
 0x4e8   : > { %19635 = vmatprep.mubr.msk.f32.mxu0 %vm371_vm1, %v23650_v47  ;;  %v10071_v6 = vpop.f32.mrf.mxu1 }
 0x4e9   : > { %v10461_v15 = vpop.f32.mrf.mxu0  ;;  %v24237_v61 = vadd.f32 %v19334_v49, %v10215_v18  ;;  %v10214_v45 = vadd.f32 %v10071_v6, %v23950_v62 }
 0x4ea   : > { %v19287_v34 = vpop.f32.mrf.mxu1  ;;  %19586 = vmatmul.mubr.msk.f32.gmra.mxu1 %vm371_vm1, %v24240_v48 }
 0x4eb   : > { %v19337_v42 = vpop.f32.mrf.mxu0  ;;  %19636 = vmatmul.mubr.msk.f32.gmra.mxu0 %vm371_vm1, %v23662_v39  ;;  %v24248_v25 = vadd.f32 %v10461_v15, %v10214_v45  ;;  %v10217_v47 = vadd.f32 %v19287_v34, %v23957_v16  ;;  %19588 = vmatprep.mubr.msk.f32.mxu1 %vm371_vm1, %v24246_v4  ;;  %v24264_v16 = vld [vmem:[#allocation3 + $0xc4] sm:$0xff]  ;;  %v24276_v45 = vld [vmem:[#allocation3 + $0xcc] sm:$0xff] }
 0x4ec   : > { %19638 = vmatprep.mubr.msk.f32.mxu0 %vm371_vm1, %v23668_v36  ;;  %v10081_v62 = vpop.f32.mrf.mxu1 }
 0x4ed   : > { %v10471_v54 = vpop.f32.mrf.mxu0  ;;  %v24255_v56 = vadd.f32 %v19337_v42, %v10217_v47  ;;  %v10216_v30 = vadd.f32 %v10081_v62, %v23968_v40 }
 0x4ee   : > { %v19290_v39 = vpop.f32.mrf.mxu1  ;;  %19589 = vmatmul.mubr.msk.f32.gmra.mxu1 %vm371_vm1, %v24258_v17 }
 0x4ef   : > { %v19340_v44 = vpop.f32.mrf.mxu0  ;;  %19639 = vmatmul.mubr.msk.f32.gmra.mxu0 %vm371_vm1, %v23680_v41  ;;  %v24266_v49 = vadd.f32 %v10471_v54, %v10216_v30  ;;  %v10219_v36 = vadd.f32 %v19290_v39, %v23975_v3  ;;  %19591 = vmatprep.mubr.msk.f32.mxu1 %vm371_vm1, %v24264_v16  ;;  %v24282_v3 = vld [vmem:[#allocation3 + $0xdc] sm:$0xff]  ;;  %v24294_v39 = vld [vmem:[#allocation3 + $0xe4] sm:$0xff] }
 0x4f0   : > { %19641 = vmatprep.mubr.msk.f32.mxu0 %vm371_vm1, %v23686_v46  ;;  %v10091_v40 = vpop.f32.mrf.mxu1  ;;  %26014 = vst [vmem:[#allocation23_spill] sm:$0xff] %v24294_v39 }
 0x4f1   : > { %v10481_v18 = vpop.f32.mrf.mxu0  ;;  %v24273_v6 = vadd.f32 %v19340_v44, %v10219_v36  ;;  %v10218_v15 = vadd.f32 %v10091_v40, %v23986_v2  ;;  %v26013_v2 = vld [vmem:[#allocation52_spill] sm:$0xff] }
 0x4f2   : > { %v19293_v41 = vpop.f32.mrf.mxu1  ;;  %19592 = vmatmul.mubr.msk.f32.gmra.mxu1 %vm371_vm1, %v24276_v45  ;;  %v24300_v36 = vld [vmem:[#allocation3 + $0xf4] sm:$0xff] }
 0x4f3   : > { %v19343_v34 = vpop.f32.mrf.mxu0  ;;  %19642 = vmatmul.mubr.msk.f32.gmra.mxu0 %vm371_vm1, %v23698_v0  ;;  %v24284_v42 = vadd.f32 %v10481_v18, %v10218_v15  ;;  %v10221_v46 = vadd.f32 %v19293_v41, %v23993_v31  ;;  %19594 = vmatprep.mubr.msk.f32.mxu1 %vm371_vm1, %v24282_v3  ;;  %v26015_v31 = vld [vmem:[#allocation8_spill] sm:$0xff]  ;;  %26016 = vst [vmem:[#allocation52_spill] sm:$0xff] %v24300_v36 }
 0x4f4   : > { %19644 = vmatprep.mubr.msk.f32.mxu0 %vm371_vm1, %v26013_v2  ;;  %v10101_v47 = vpop.f32.mrf.mxu1  ;;  %v24312_v2 = vld [vmem:[#allocation3 + $0xfc] sm:$0xff] }
 0x4f5   : > { %v10491_v62 = vpop.f32.mrf.mxu0  ;;  %v24291_v54 = vadd.f32 %v19343_v34, %v10221_v46  ;;  %v10220_v30 = vadd.f32 %v10101_v47, %v24004_v9  ;;  %v26017_v9 = vld [vmem:[#allocation26_spill] sm:$0xff]  ;;  %26018 = vst [vmem:[#allocation8_spill] sm:$0xff] %v24312_v2 }
 0x4f6   : > { %v19296_v0 = vpop.f32.mrf.mxu1  ;;  %19595 = vmatmul.mubr.msk.f32.gmra.mxu1 %vm371_vm1, %v24294_v39 }
 0x4f7   : > { %v19346_v44 = vpop.f32.mrf.mxu0  ;;  %19645 = vmatmul.mubr.msk.f32.gmra.mxu0 %vm371_vm1, %v26015_v31  ;;  %v24302_v40 = vadd.f32 %v10491_v62, %v10220_v30  ;;  %v10223_v18 = vadd.f32 %v19296_v0, %v24011_v32  ;;  %19597 = vmatprep.mubr.msk.f32.mxu1 %vm371_vm1, %v24300_v36  ;;  %v26019_v32 = vld [vmem:[#allocation24_spill] sm:$0xff] }
 0x4f8   : > { %19647 = vmatprep.mubr.msk.f32.mxu0 %vm371_vm1, %v26017_v9  ;;  %v10111_v15 = vpop.f32.mrf.mxu1  ;;  %v24318_v62 = vld [vmem:[#allocation3 + $0x10c] sm:$0xff] }
 0x4f9   : > { %v10501_v41 = vpop.f32.mrf.mxu0  ;;  %v24309_v34 = vadd.f32 %v19346_v44, %v10223_v18  ;;  %v10222_v46 = vadd.f32 %v10111_v15, %v24022_v57  ;;  %26020 = vst [vmem:[#allocation26_spill] sm:$0xff] %v24318_v62  ;;  %v26021_v57 = vld [vmem:[#allocation9_spill] sm:$0xff] }
 0x4fa   : > { %v19299_v47 = vpop.f32.mrf.mxu1  ;;  %19598 = vmatmul.mubr.msk.f32.gmra.mxu1 %vm371_vm1, %v24312_v2  ;;  %v24330_v2 = vld [vmem:[#allocation3 + $0x114] sm:$0xff] }
 0x4fb   : > { %v19349_v31 = vpop.f32.mrf.mxu0  ;;  %19648 = vmatmul.mubr.msk.f32.gmra.mxu0 %vm371_vm1, %v26019_v32  ;;  %v24320_v30 = vadd.f32 %v10501_v41, %v10222_v46  ;;  %v10225_v0 = vadd.f32 %v19299_v47, %v24029_v5  ;;  %19600 = vmatprep.mubr.msk.f32.mxu1 %vm371_vm1, %v24318_v62  ;;  %26022 = vst [vmem:[#allocation24_spill] sm:$0xff] %v24330_v2  ;;  %v26023_v5 = vld [vmem:[#allocation28_spill] sm:$0xff]  ;;  %v24336_v41 = vld [vmem:[#allocation3 + $0x124] sm:$0xff] }
 0x4fc   : > { %19650 = vmatprep.mubr.msk.f32.mxu0 %vm371_vm1, %v26021_v57  ;;  %v10121_v44 = vpop.f32.mrf.mxu1  ;;  %26024 = vst [vmem:[#allocation9_spill] sm:$0xff] %v24336_v41 }
 0x4fd   : > { %v10511_v18 = vpop.f32.mrf.mxu0  ;;  %v24327_v9 = vadd.f32 %v19349_v31, %v10225_v0  ;;  %v10224_v15 = vadd.f32 %v10121_v44, %v24040_v53  ;;  %v26025_v53 = vld [vmem:[#allocation25_spill] sm:$0xff] }
 0x4fe   : > { %v19302_v32 = vpop.f32.mrf.mxu1  ;;  %19601 = vmatmul.mubr.msk.f32.gmra.mxu1 %vm371_vm1, %v24330_v2  ;;  %v24348_v2 = vld [vmem:[#allocation3 + $0x12c] sm:$0xff] }
 0x4ff   : > { %v19352_v36 = vpop.f32.mrf.mxu0  ;;  %19651 = vmatmul.mubr.msk.f32.gmra.mxu0 %vm371_vm1, %v26023_v5  ;;  %v24338_v46 = vadd.f32 %v10511_v18, %v10224_v15  ;;  %v10227_v47 = vadd.f32 %v19302_v32, %v24047_v38  ;;  %19603 = vmatprep.mubr.msk.f32.mxu1 %vm371_vm1, %v24336_v41  ;;  %26026 = vst [vmem:[#allocation28_spill] sm:$0xff] %v24348_v2  ;;  %v26027_v38 = vld [vmem:[#allocation27_spill] sm:$0xff]  ;;  %v24354_v18 = vld [vmem:[#allocation3 + $0x13c] sm:$0xff] }
 0x500   : > { %19653 = vmatprep.mubr.msk.f32.mxu0 %vm371_vm1, %v26025_v53  ;;  %v10131_v31 = vpop.f32.mrf.mxu1  ;;  %26028 = vst [vmem:[#allocation25_spill] sm:$0xff] %v24354_v18 }
 0x501   : > { %v10521_v0 = vpop.f32.mrf.mxu0  ;;  %v24345_v57 = vadd.f32 %v19352_v36, %v10227_v47  ;;  %v10226_v44 = vadd.f32 %v10131_v31, %v24058_v28  ;;  %v26029_v28 = vld [vmem:[#allocation10_spill] sm:$0xff] }
 0x502   : > { %v19305_v5 = vpop.f32.mrf.mxu1  ;;  %19604 = vmatmul.mubr.msk.f32.gmra.mxu1 %vm371_vm1, %v24348_v2  ;;  %v24366_v2 = vld [vmem:[#allocation3 + $0x144] sm:$0xff] }
 0x503   : > { %v19355_v62 = vpop.f32.mrf.mxu0  ;;  %19654 = vmatmul.mubr.msk.f32.gmra.mxu0 %vm371_vm1, %v26027_v38  ;;  %v24356_v15 = vadd.f32 %v10521_v0, %v10226_v44  ;;  %v10229_v32 = vadd.f32 %v19305_v5, %v24065_v51  ;;  %19606 = vmatprep.mubr.msk.f32.mxu1 %vm371_vm1, %v24354_v18  ;;  %26030 = vst [vmem:[#allocation27_spill] sm:$0xff] %v24366_v2  ;;  %v26031_v51 = vld [vmem:[#allocation30_spill] sm:$0xff]  ;;  %v24372_v0 = vld [vmem:[#allocation3 + $0x154] sm:$0xff] }
 0x504   : > { %19656 = vmatprep.mubr.msk.f32.mxu0 %vm371_vm1, %v26029_v28  ;;  %v10141_v36 = vpop.f32.mrf.mxu1  ;;  %26032 = vst [vmem:[#allocation10_spill] sm:$0xff] %v24372_v0 }
 0x505   : > { %v10531_v47 = vpop.f32.mrf.mxu0  ;;  %v24363_v53 = vadd.f32 %v19355_v62, %v10229_v32  ;;  %v10228_v31 = vadd.f32 %v10141_v36, %v24076_v19  ;;  %v26033_v19 = vld [vmem:[#allocation29_spill] sm:$0xff] }
 0x506   : > { %v19308_v38 = vpop.f32.mrf.mxu1  ;;  %19607 = vmatmul.mubr.msk.f32.gmra.mxu1 %vm371_vm1, %v24366_v2  ;;  %v24384_v2 = vld [vmem:[#allocation3 + $0x15c] sm:$0xff] }
 0x507   : > { %v19358_v41 = vpop.f32.mrf.mxu0  ;;  %19657 = vmatmul.mubr.msk.f32.gmra.mxu0 %vm371_vm1, %v26031_v51  ;;  %v24374_v44 = vadd.f32 %v10531_v47, %v10228_v31  ;;  %v10231_v5 = vadd.f32 %v19308_v38, %v24083_v10  ;;  %19609 = vmatprep.mubr.msk.f32.mxu1 %vm371_vm1, %v24372_v0  ;;  %26034 = vst [vmem:[#allocation30_spill] sm:$0xff] %v24384_v2  ;;  %v26035_v10 = vld [vmem:[#allocation11_spill] sm:$0xff] }
 0x508   : > { %19659 = vmatprep.mubr.msk.f32.mxu0 %vm371_vm1, %v26033_v19  ;;  %v10151_v62 = vpop.f32.mrf.mxu1  ;;  %v24390_v47 = vld [vmem:[#allocation3 + $0x16c] sm:$0xff] }
 0x509   : > { %v10541_v32 = vpop.f32.mrf.mxu0  ;;  %v24381_v28 = vadd.f32 %v19358_v41, %v10231_v5  ;;  %v10230_v36 = vadd.f32 %v10151_v62, %v24094_v63  ;;  %26036 = vst [vmem:[#allocation29_spill] sm:$0xff] %v24390_v47  ;;  %v26037_v63 = vld [vmem:[#allocation32_spill] sm:$0xff] }
 0x50a   : > { %v19311_v51 = vpop.f32.mrf.mxu1  ;;  %19610 = vmatmul.mubr.msk.f32.gmra.mxu1 %vm371_vm1, %v24384_v2  ;;  %v24402_v2 = vld [vmem:[#allocation3 + $0x174] sm:$0xff] }
 0x50b   : > { %v19361_v18 = vpop.f32.mrf.mxu0  ;;  %19660 = vmatmul.mubr.msk.f32.gmra.mxu0 %vm371_vm1, %v26035_v10  ;;  %v24392_v31 = vadd.f32 %v10541_v32, %v10230_v36  ;;  %v10233_v38 = vadd.f32 %v19311_v51, %v24101_v59  ;;  %19612 = vmatprep.mubr.msk.f32.mxu1 %vm371_vm1, %v24390_v47  ;;  %26038 = vst [vmem:[#allocation11_spill] sm:$0xff] %v24402_v2  ;;  %v26039_v59 = vld [vmem:[#allocation12_spill] sm:$0xff]  ;;  %v24408_v32 = vld [vmem:[#allocation3 + $0x184] sm:$0xff] }
 0x50c   : > { %19662 = vmatprep.mubr.msk.f32.mxu0 %vm371_vm1, %v26037_v63  ;;  %v10161_v41 = vpop.f32.mrf.mxu1  ;;  %26040 = vst [vmem:[#allocation32_spill] sm:$0xff] %v24408_v32 }
 0x50d   : > { %v10551_v5 = vpop.f32.mrf.mxu0  ;;  %v24399_v19 = vadd.f32 %v19361_v18, %v10233_v38  ;;  %v10232_v62 = vadd.f32 %v10161_v41, %v24112_v26  ;;  %v26041_v26 = vld [vmem:[#allocation34_spill] sm:$0xff] }
 0x50e   : > { %v19314_v10 = vpop.f32.mrf.mxu1  ;;  %19613 = vmatmul.mubr.msk.f32.gmra.mxu1 %vm371_vm1, %v24402_v2  ;;  %v24420_v2 = vld [vmem:[#allocation3 + $0x18c] sm:$0xff] }
 0x50f   : > { %v19364_v0 = vpop.f32.mrf.mxu0  ;;  %19663 = vmatmul.mubr.msk.f32.gmra.mxu0 %vm371_vm1, %v26039_v59  ;;  %v24410_v36 = vadd.f32 %v10551_v5, %v10232_v62  ;;  %v10235_v51 = vadd.f32 %v19314_v10, %v24119_v50  ;;  %19615 = vmatprep.mubr.msk.f32.mxu1 %vm371_vm1, %v24408_v32  ;;  %26042 = vst [vmem:[#allocation12_spill] sm:$0xff] %v24420_v2  ;;  %v26043_v50 = vld [vmem:[#allocation13_spill] sm:$0xff]  ;;  %v24440_v32 = vld [vmem:[#allocation3 + $0x1a4] sm:$0xff] }
 0x510   : > { %19665 = vmatprep.mubr.msk.f32.mxu0 %vm371_vm1, %v26041_v26  ;;  %v10171_v18 = vpop.f32.mrf.mxu1  ;;  %v24426_v5 = vld [vmem:[#allocation3 + $0x19c] sm:$0xff]  ;;  %v24435_v26 = vld [vmem:[#allocation3 + $0x1b4] sm:$0xff]  ;;  %26046 = vst [vmem:[#allocation13_spill] sm:$0xff] %v24440_v32 }
 0x511   : > { %v10561_v38 = vpop.f32.mrf.mxu0  ;;  %v24417_v63 = vadd.f32 %v19364_v0, %v10235_v51  ;;  %v10234_v41 = vadd.f32 %v10171_v18, %v24130_v60  ;;  %26044 = vst [vmem:[#allocation34_spill] sm:$0xff] %v24426_v5  ;;  %v26045_v60 = vld [vmem:[#allocation31_spill] sm:$0xff] }
 0x512   : > { %v19317_v59 = vpop.f32.mrf.mxu1  ;;  %19616 = vmatmul.mubr.msk.f32.gmra.mxu1 %vm371_vm1, %v24420_v2  ;;  %v12614_v18 = vld [vmem:[#allocation3 + $0x1c8] sm:$0xff] }
 0x513   : > { %v19367_v47 = vpop.f32.mrf.mxu0  ;;  %19666 = vmatmul.mubr.msk.f32.gmra.mxu0 %vm371_vm1, %v26043_v50  ;;  %v24428_v62 = vadd.f32 %v10561_v38, %v10234_v41  ;;  %v10237_v10 = vadd.f32 %v19317_v59, %v24139_v29  ;;  %19618 = vmatprep.mubr.msk.f32.mxu1 %vm371_vm1, %v24426_v5  ;;  %v26047_v29 = vld [vmem:[#allocation36_spill] sm:$0xff] }
 0x514   : > { %19668 = vmatprep.mubr.msk.f32.mxu0 %vm371_vm1, %v26045_v60  ;;  %v10181_v0 = vpop.f32.mrf.mxu1 }
 0x515   : > { %v10571_v51 = vpop.f32.mrf.mxu0  ;;  %v24437_v2 = vadd.f32 %v19367_v47, %v10237_v10  ;;  %v10236_v50 = vadd.f32 %v10181_v0, %v24148_v37  ;;  %v24452_v37 = vld [vmem:[#allocation3 + $0x1bc] sm:$0xff]  ;;  %v12615_v47 = vld [vmem:[#allocation3 + $0x1d0] sm:$0xff] }
 0x516   : > { %v19320_v38 = vpop.f32.mrf.mxu1  ;;  %19619 = vmatmul.mubr.msk.f32.gmra.mxu1 %vm371_vm1, %v24440_v32  ;;  %26048 = vst [vmem:[#allocation31_spill] sm:$0xff] %v24452_v37 }
 0x517   : > { %v19370_v41 = vpop.f32.mrf.mxu0  ;;  %19669 = vmatmul.mubr.msk.f32.gmra.mxu0 %vm371_vm1, %v26047_v29  ;;  %v24446_v59 = vadd.f32 %v10571_v51, %v10236_v50  ;;  %v10239_v60 = vadd.f32 %v19320_v38, %v24156_v21  ;;  %19621 = vmatprep.mubr.msk.f32.mxu1 %vm371_vm1, %v24435_v26  ;;  %v12974_v21 = vld [vmem:[#allocation3 + $0x61] sm:$0xff] }
 0x518   : > { %19671 = vmatprep.mubr.msk.f32.mxu0 %vm371_vm1, %v12614_v18  ;;  %v10191_v10 = vpop.f32.mrf.mxu1 }
 0x519   : > { %v10581_v0 = vpop.f32.mrf.mxu0  ;;  %v24454_v5 = vadd.f32 %v19370_v41, %v10239_v60  ;;  %v10238_v32 = vadd.f32 %v10191_v10, %v24162_v55  ;;  %v12975_v60 = vld [vmem:[#allocation3 + $0x69] sm:$0xff] }
 0x51a   : > { %v19323_v39 = vpop.f32.mrf.mxu1  ;;  %19622 = vmatmul.mubr.msk.f32.gmra.mxu1 %vm371_vm1, %v24452_v37 }
 0x51b   : > { %v19373_v29 = vpop.f32.mrf.mxu0  ;;  %19672 = vmatmul.mubr.msk.f32.gmra.mxu0 %vm371_vm1, %v12615_v47  ;;  %v24460_v51 = vadd.f32 %v10581_v0, %v10238_v32  ;;  %v10241_v18 = vadd.f32 %v19323_v39, %v24168_v43  ;;  %19676 = vmatprep.mubr.msk.f32.mxu1 %vm371_vm1, %v12974_v21  ;;  %v26049_v32 = vld [vmem:[#allocation33_spill] sm:$0xff]  ;;  %v24475_v39 = vld [vmem:[%s25665_s7] sm:$0xf] }
 0x51c   : > { %19726 = vmatprep.mubr.msk.f32.mxu0 %vm371_vm1, %v23876_v22  ;;  %v10201_v50 = vpop.f32.mrf.mxu1  ;;  %v12976_v43 = vld [vmem:[#allocation3 + $0x79] sm:$0xff] }
 0x51d   : > { %v10591_v38 = vpop.f32.mrf.mxu0  ;;  %v24466_v55 = vadd.f32 %v19373_v29, %v10241_v18  ;;  %v10240_v41 = vadd.f32 %v10201_v50, %v24186_v13  ;;  %v26050_v13 = vld [vmem:[#allocation35_spill] sm:$0xff] }
 0x51e   : > { %v19378_v10 = vpop.f32.mrf.mxu1  ;;  %19677 = vmatmul.mubr.msk.f32.vlgmr.msra.gmra.mxu1 %vm371_vm1, %v12975_v60  ;;  %v12977_v50 = vld [vmem:[#allocation3 + $0x81] sm:$0xff] }
 0x51f   : > { %v19428_v37 = vpop.f32.mrf.mxu0  ;;  %19727 = vmatmul.mubr.msk.f32.vlgmr.msra.gmra.mxu0 %vm371_vm1, %v26049_v32  ;;  %v24477_v22 = vadd.f32 %v10591_v38, %v10240_v41  ;;  %v10992_v47 = vadd.f32 %v19378_v10, %v24197_v12  ;;  %19775 = vmatpush3.msk.msra.mxu1 %vm468_vm0, %v24179_v11  ;;  %v26051_v38 = vld [vmem:[#allocation14_spill] sm:$0xff]  ;;  %v12978_v41 = vld [vmem:[#allocation3 + $0x91] sm:$0xff] }
 0x520   : > { %19679 = vmatprep.mubr.msk.f32.mxu1 %vm371_vm1, %v12976_v43  ;;  %19729 = vmatprep.mubr.msk.f32.mxu0 %vm371_vm1, %v26050_v13  ;;  %v10832_v0 = vpop.f32.mrf.mxu1 }
 0x521   : > { %v11222_v29 = vpop.f32.mrf.mxu0  ;;  %19825 = vmatpush3.msk.msra.mxu0 %vm468_vm0, %v24184_v1  ;;  %v24487_v21 = vadd.f32 %v19428_v37, %v10992_v47  ;;  %v10991_v18 = vadd.f32 %v10832_v0, %v24212_v14  ;;  %19874 = vmatprep.subr.msk.mxu1 %vm468_vm0, %v24475_v39  ;;  %v26052_v37 = vld [vmem:[#allocation38_spill] sm:$0xff] }
 0x522   : > { %v19381_v12 = vpop.f32.mrf.mxu1  ;;  %19680 = vmatmul.mubr.msk.f32.gmra.mxu1 %vm371_vm1, %v12977_v50  ;;  %v12979_v47 = vld [vmem:[#allocation3 + $0x99] sm:$0xff] }
 0x523   : > { %v19431_v11 = vpop.f32.mrf.mxu0  ;;  %19730 = vmatmul.mubr.msk.f32.gmra.mxu0 %vm371_vm1, %v26051_v38  ;;  %v24495_v60 = vadd.f32 %v11222_v29, %v10991_v18  ;;  %v10994_v1 = vadd.f32 %v19381_v12, %v24219_v27  ;;  %19682 = vmatprep.mubr.msk.f32.mxu1 %vm371_vm1, %v12978_v41  ;;  %v26053_v29 = vld [vmem:[#allocation37_spill] sm:$0xff]  ;;  %v12980_v27 = vld [vmem:[#allocation3 + $0xa9] sm:$0xff] }
 0x524   : > { %19732 = vmatprep.mubr.msk.f32.mxu0 %vm371_vm1, %v26052_v37  ;;  %v10842_v14 = vpop.f32.mrf.mxu1  ;;  %v26054_v12 = vld [vmem:[#allocation15_spill] sm:$0xff] }
 0x525   : > { %v11232_v10 = vpop.f32.mrf.mxu0  ;;  %v24501_v32 = vadd.f32 %v19431_v11, %v10994_v1  ;;  %v10993_v43 = vadd.f32 %v10842_v14, %v24230_v35  ;;  %v12981_v1 = vld [vmem:[#allocation3 + $0xb1] sm:$0xff] }
 0x526   : > { %v19384_v13 = vpop.f32.mrf.mxu1  ;;  %19683 = vmatmul.mubr.msk.f32.gmra.mxu1 %vm371_vm1, %v12979_v47 }
 0x527   : > { %v19434_v0 = vpop.f32.mrf.mxu0  ;;  %19733 = vmatmul.mubr.msk.f32.gmra.mxu0 %vm371_vm1, %v26053_v29  ;;  %v24507_v18 = vadd.f32 %v11232_v10, %v10993_v43  ;;  %v10996_v50 = vadd.f32 %v19384_v13, %v24237_v61  ;;  %19685 = vmatprep.mubr.msk.f32.mxu1 %vm371_vm1, %v12980_v27  ;;  %v26055_v10 = vld [vmem:[#allocation40_spill] sm:$0xff]  ;;  %v12982_v61 = vld [vmem:[#allocation3 + $0xc1] sm:$0xff] }
 0x528   : > { %19735 = vmatprep.mubr.msk.f32.mxu0 %vm371_vm1, %v26054_v12  ;;  %v10852_v11 = vpop.f32.mrf.mxu1  ;;  %v26056_v13 = vld [vmem:[#allocation16_spill] sm:$0xff] }
 0x529   : > { %v11242_v35 = vpop.f32.mrf.mxu0  ;;  %v24513_v38 = vadd.f32 %v19434_v0, %v10996_v50  ;;  %v10995_v41 = vadd.f32 %v10852_v11, %v24248_v25  ;;  %v12983_v50 = vld [vmem:[#allocation3 + $0xc9] sm:$0xff] }
 0x52a   : > { %v19387_v37 = vpop.f32.mrf.mxu1  ;;  %19686 = vmatmul.mubr.msk.f32.gmra.mxu1 %vm371_vm1, %v12981_v1 }
 0x52b   : > { %v19437_v14 = vpop.f32.mrf.mxu0  ;;  %19736 = vmatmul.mubr.msk.f32.gmra.mxu0 %vm371_vm1, %v26055_v10  ;;  %v24519_v43 = vadd.f32 %v11242_v35, %v10995_v41  ;;  %v10998_v47 = vadd.f32 %v19387_v37, %v24255_v56  ;;  %19688 = vmatprep.mubr.msk.f32.mxu1 %vm371_vm1, %v12982_v61  ;;  %v26057_v35 = vld [vmem:[#allocation42_spill] sm:$0xff]  ;;  %v26058_v37 = vld [vmem:[#allocation39_spill] sm:$0xff] }
 0x52c   : > { %19738 = vmatprep.mubr.msk.f32.mxu0 %vm371_vm1, %v26056_v13  ;;  %v10862_v0 = vpop.f32.mrf.mxu1  ;;  %v12984_v56 = vld [vmem:[#allocation3 + $0xd9] sm:$0xff] }
 0x52d   : > { %v11252_v25 = vpop.f32.mrf.mxu0  ;;  %v24525_v29 = vadd.f32 %v19437_v14, %v10998_v47  ;;  %v10997_v27 = vadd.f32 %v10862_v0, %v24266_v49  ;;  %v12985_v47 = vld [vmem:[#allocation3 + $0xe1] sm:$0xff] }
 0x52e   : > { %v19390_v12 = vpop.f32.mrf.mxu1  ;;  %19689 = vmatmul.mubr.msk.f32.gmra.mxu1 %vm371_vm1, %v12983_v50 }
 0x52f   : > { %v19440_v11 = vpop.f32.mrf.mxu0  ;;  %19739 = vmatmul.mubr.msk.f32.gmra.mxu0 %vm371_vm1, %v26057_v35  ;;  %v24531_v41 = vadd.f32 %v11252_v25, %v10997_v27  ;;  %v11000_v1 = vadd.f32 %v19390_v12, %v24273_v6  ;;  %19691 = vmatprep.mubr.msk.f32.mxu1 %vm371_vm1, %v12984_v56  ;;  %v26059_v25 = vld [vmem:[#allocation17_spill] sm:$0xff]  ;;  %v26060_v12 = vld [vmem:[#allocation44_spill] sm:$0xff] }
 0x530   : > { %19741 = vmatprep.mubr.msk.f32.mxu0 %vm371_vm1, %v26058_v37  ;;  %v10872_v14 = vpop.f32.mrf.mxu1  ;;  %v12986_v6 = vld [vmem:[#allocation3 + $0xf1] sm:$0xff] }
 0x531   : > { %v11262_v49 = vpop.f32.mrf.mxu0  ;;  %v24537_v10 = vadd.f32 %v19440_v11, %v11000_v1  ;;  %v10999_v61 = vadd.f32 %v10872_v14, %v24284_v42  ;;  %v12987_v1 = vld [vmem:[#allocation3 + $0xf9] sm:$0xff] }
 0x532   : > { %v19393_v13 = vpop.f32.mrf.mxu1  ;;  %19692 = vmatmul.mubr.msk.f32.gmra.mxu1 %vm371_vm1, %v12985_v47 }
 0x533   : > { %v19443_v0 = vpop.f32.mrf.mxu0  ;;  %19742 = vmatmul.mubr.msk.f32.gmra.mxu0 %vm371_vm1, %v26059_v25  ;;  %v24543_v27 = vadd.f32 %v11262_v49, %v10999_v61  ;;  %v11002_v50 = vadd.f32 %v19393_v13, %v24291_v54  ;;  %19694 = vmatprep.mubr.msk.f32.mxu1 %vm371_vm1, %v12986_v6  ;;  %v26061_v49 = vld [vmem:[#allocation41_spill] sm:$0xff]  ;;  %v12988_v54 = vld [vmem:[#allocation3 + $0x109] sm:$0xff] }
 0x534   : > { %19744 = vmatprep.mubr.msk.f32.mxu0 %vm371_vm1, %v26060_v12  ;;  %v10882_v11 = vpop.f32.mrf.mxu1  ;;  %v26062_v13 = vld [vmem:[#allocation43_spill] sm:$0xff] }
 0x535   : > { %v11272_v42 = vpop.f32.mrf.mxu0  ;;  %v24549_v35 = vadd.f32 %v19443_v0, %v11002_v50  ;;  %v11001_v56 = vadd.f32 %v10882_v11, %v24302_v40  ;;  %v12989_v50 = vld [vmem:[#allocation3 + $0x111] sm:$0xff] }
 0x536   : > { %v19396_v37 = vpop.f32.mrf.mxu1  ;;  %19695 = vmatmul.mubr.msk.f32.gmra.mxu1 %vm371_vm1, %v12987_v1 }
 0x537   : > { %v19446_v14 = vpop.f32.mrf.mxu0  ;;  %19745 = vmatmul.mubr.msk.f32.gmra.mxu0 %vm371_vm1, %v26061_v49  ;;  %v24555_v61 = vadd.f32 %v11272_v42, %v11001_v56  ;;  %v11004_v47 = vadd.f32 %v19396_v37, %v24309_v34  ;;  %19697 = vmatprep.mubr.msk.f32.mxu1 %vm371_vm1, %v12988_v54  ;;  %v26063_v42 = vld [vmem:[#allocation18_spill] sm:$0xff] }
 0x538   : > { %19747 = vmatprep.mubr.msk.f32.mxu0 %vm371_vm1, %v26062_v13  ;;  %v10892_v0 = vpop.f32.mrf.mxu1  ;;  %v12990_v34 = vld [vmem:[#allocation3 + $0x121] sm:$0xff] }
 0x539   : > { %v11282_v40 = vpop.f32.mrf.mxu0  ;;  %v24561_v25 = vadd.f32 %v19446_v14, %v11004_v47  ;;  %v11003_v6 = vadd.f32 %v10892_v0, %v24320_v30  ;;  %v26064_v37 = vld [vmem:[#allocation46_spill] sm:$0xff]  ;;  %v12991_v47 = vld [vmem:[#allocation3 + $0x129] sm:$0xff] }
 0x53a   : > { %v19399_v12 = vpop.f32.mrf.mxu1  ;;  %19698 = vmatmul.mubr.msk.f32.gmra.mxu1 %vm371_vm1, %v12989_v50 }
 0x53b   : > { %v19449_v11 = vpop.f32.mrf.mxu0  ;;  %19748 = vmatmul.mubr.msk.f32.gmra.mxu0 %vm371_vm1, %v26063_v42  ;;  %v24567_v56 = vadd.f32 %v11282_v40, %v11003_v6  ;;  %v11006_v1 = vadd.f32 %v19399_v12, %v24327_v9  ;;  %19700 = vmatprep.mubr.msk.f32.mxu1 %vm371_vm1, %v12990_v34  ;;  %v26065_v40 = vld [vmem:[#allocation45_spill] sm:$0xff]  ;;  %v12993_v34 = vld [vmem:[#allocation3 + $0x141] sm:$0xff] }
 0x53c   : > { %19750 = vmatprep.mubr.msk.f32.mxu0 %vm371_vm1, %v26064_v37  ;;  %v10902_v14 = vpop.f32.mrf.mxu1  ;;  %v12992_v9 = vld [vmem:[#allocation3 + $0x139] sm:$0xff] }
 0x53d   : > { %v11292_v30 = vpop.f32.mrf.mxu0  ;;  %v24573_v49 = vadd.f32 %v19449_v11, %v11006_v1  ;;  %v11005_v54 = vadd.f32 %v10902_v14, %v24338_v46  ;;  %v26066_v14 = vld [vmem:[#allocation19_spill] sm:$0xff] }
 0x53e   : > { %v19402_v13 = vpop.f32.mrf.mxu1  ;;  %19701 = vmatmul.mubr.msk.f32.gmra.mxu1 %vm371_vm1, %v12991_v47 }
 0x53f   : > { %v19452_v0 = vpop.f32.mrf.mxu0  ;;  %19751 = vmatmul.mubr.msk.f32.gmra.mxu0 %vm371_vm1, %v26065_v40  ;;  %v24579_v6 = vadd.f32 %v11292_v30, %v11005_v54  ;;  %v11008_v50 = vadd.f32 %v19402_v13, %v24345_v57  ;;  %19703 = vmatprep.mubr.msk.f32.mxu1 %vm371_vm1, %v12992_v9  ;;  %v12994_v57 = vld [vmem:[#allocation3 + $0x151] sm:$0xff] }
 0x540   : > { %19753 = vmatprep.mubr.msk.f32.mxu0 %vm371_vm1, %v24056_v52  ;;  %v10912_v12 = vpop.f32.mrf.mxu1 }
 0x541   : > { %v11302_v46 = vpop.f32.mrf.mxu0  ;;  %v24585_v11 = vadd.f32 %v19452_v0, %v11008_v50  ;;  %v11007_v42 = vadd.f32 %v10912_v12, %v24356_v15  ;;  %v12995_v0 = vld [vmem:[#allocation3 + $0x159] sm:$0xff]  ;;  %v26067_v50 = vld [vmem:[#allocation48_spill] sm:$0xff] }
 0x542   : > { %v19405_v1 = vpop.f32.mrf.mxu1  ;;  %19704 = vmatmul.mubr.msk.f32.gmra.mxu1 %vm371_vm1, %v12993_v34 }
 0x543   : > { %v19455_v37 = vpop.f32.mrf.mxu0  ;;  %19754 = vmatmul.mubr.msk.f32.gmra.mxu0 %vm371_vm1, %v26066_v14  ;;  %v24591_v30 = vadd.f32 %v11302_v46, %v11007_v42  ;;  %v11010_v54 = vadd.f32 %v19405_v1, %v24363_v53  ;;  %19706 = vmatprep.mubr.msk.f32.mxu1 %vm371_vm1, %v12994_v57  ;;  %v12996_v53 = vld [vmem:[#allocation3 + $0x169] sm:$0xff] }
 0x544   : > { %19756 = vmatprep.mubr.msk.f32.mxu0 %vm371_vm1, %v24074_v20  ;;  %v10922_v52 = vpop.f32.mrf.mxu1  ;;  %v26068_v20 = vld [vmem:[#allocation20_spill] sm:$0xff] }
 0x545   : > { %v11312_v15 = vpop.f32.mrf.mxu0  ;;  %v24597_v47 = vadd.f32 %v19455_v37, %v11010_v54  ;;  %v11009_v13 = vadd.f32 %v10922_v52, %v24374_v44  ;;  %v12997_v37 = vld [vmem:[#allocation3 + $0x171] sm:$0xff]  ;;  %v26069_v54 = vld [vmem:[#allocation50_spill] sm:$0xff] }
 0x546   : > { %v19408_v40 = vpop.f32.mrf.mxu1  ;;  %19707 = vmatmul.mubr.msk.f32.gmra.mxu1 %vm371_vm1, %v12995_v0 }
 0x547   : > { %v19458_v9 = vpop.f32.mrf.mxu0  ;;  %19757 = vmatmul.mubr.msk.f32.gmra.mxu0 %vm371_vm1, %v26067_v50  ;;  %v24603_v12 = vadd.f32 %v11312_v15, %v11009_v13  ;;  %v11012_v46 = vadd.f32 %v19408_v40, %v24381_v28  ;;  %19709 = vmatprep.mubr.msk.f32.mxu1 %vm371_vm1, %v12996_v53  ;;  %v12998_v28 = vld [vmem:[#allocation3 + $0x181] sm:$0xff]  ;;  %v12999_v50 = vld [vmem:[#allocation3 + $0x189] sm:$0xff] }
 0x548   : > { %19759 = vmatprep.mubr.msk.f32.mxu0 %vm371_vm1, %v26068_v20  ;;  %v10932_v42 = vpop.f32.mrf.mxu1  ;;  %v26070_v13 = vld [vmem:[#allocation47_spill] sm:$0xff]  ;;  %v26071_v20 = vld [vmem:[#allocation21_spill] sm:$0xff] }
 0x549   : > { %v11322_v44 = vpop.f32.mrf.mxu0  ;;  %v24609_v34 = vadd.f32 %v19458_v9, %v11012_v46  ;;  %v11011_v1 = vadd.f32 %v10932_v42, %v24392_v31 }
 0x54a   : > { %v19411_v14 = vpop.f32.mrf.mxu1  ;;  %19710 = vmatmul.mubr.msk.f32.gmra.mxu1 %vm371_vm1, %v12997_v37 }
 0x54b   : > { %v19461_v57 = vpop.f32.mrf.mxu0  ;;  %19760 = vmatmul.mubr.msk.f32.gmra.mxu0 %vm371_vm1, %v26069_v54  ;;  %v24615_v52 = vadd.f32 %v11322_v44, %v11011_v1  ;;  %v11014_v15 = vadd.f32 %v19411_v14, %v24399_v19  ;;  %19712 = vmatprep.mubr.msk.f32.mxu1 %vm371_vm1, %v12998_v28  ;;  %v13000_v19 = vld [vmem:[#allocation3 + $0x199] sm:$0xff]  ;;  %v13002_v14 = vld [vmem:[#allocation3 + $0x1b1] sm:$0xff]  ;;  %v13001_v28 = vld [vmem:[#allocation3 + $0x1a1] sm:$0xff] }
 0x54c   : > { %19762 = vmatprep.mubr.msk.f32.mxu0 %vm371_vm1, %v26070_v13  ;;  %v10942_v0 = vpop.f32.mrf.mxu1  ;;  %v26072_v1 = vld [vmem:[#allocation49_spill] sm:$0xff] }
 0x54d   : > { %v11332_v31 = vpop.f32.mrf.mxu0  ;;  %v24621_v40 = vadd.f32 %v19461_v57, %v11014_v15  ;;  %v11013_v9 = vadd.f32 %v10942_v0, %v24410_v36  ;;  %v26073_v0 = vld [vmem:[#allocation51_spill] sm:$0xff] }
 0x54e   : > { %v19414_v53 = vpop.f32.mrf.mxu1  ;;  %19713 = vmatmul.mubr.msk.f32.gmra.mxu1 %vm371_vm1, %v12999_v50 }
 0x54f   : > { %v19464_v46 = vpop.f32.mrf.mxu0  ;;  %19763 = vmatmul.mubr.msk.f32.gmra.mxu0 %vm371_vm1, %v26071_v20  ;;  %v24627_v42 = vadd.f32 %v11332_v31, %v11013_v9  ;;  %v11016_v44 = vadd.f32 %v19414_v53, %v24417_v63  ;;  %19715 = vmatprep.mubr.msk.f32.mxu1 %vm371_vm1, %v13000_v19  ;;  %v13003_v9 = vld [vmem:[#allocation3 + $0x1b9] sm:$0xff]  ;;  %v13004_v53 = vld [vmem:[#allocation3 + $0x1c9] sm:$0xff] }
 0x550   : > { %19765 = vmatprep.mubr.msk.f32.mxu0 %vm371_vm1, %v26072_v1  ;;  %v10952_v37 = vpop.f32.mrf.mxu1 }
 0x551   : > { %v11342_v36 = vpop.f32.mrf.mxu0  ;;  %v24633_v57 = vadd.f32 %v19464_v46, %v11016_v44  ;;  %v11015_v54 = vadd.f32 %v10952_v37, %v24428_v62  ;;  %v13394_v46 = vld [vmem:[#allocation3 + $0x1ca] sm:$0xff]  ;;  %v26074_v37 = vld [vmem:[#allocation22_spill] sm:$0xff] }
 0x552   : > { %v19417_v15 = vpop.f32.mrf.mxu1  ;;  %19716 = vmatmul.mubr.msk.f32.gmra.mxu1 %vm371_vm1, %v13001_v28 }
 0x553   : > { %v19467_v13 = vpop.f32.mrf.mxu0  ;;  %19766 = vmatmul.mubr.msk.f32.gmra.mxu0 %vm371_vm1, %v26073_v0  ;;  %v24639_v63 = vadd.f32 %v11342_v36, %v11015_v54  ;;  %v11018_v31 = vadd.f32 %v19417_v15, %v24437_v2  ;;  %19718 = vmatprep.mubr.msk.f32.mxu1 %vm371_vm1, %v13002_v14  ;;  %v13005_v36 = vld [vmem:[#allocation3 + $0x1d1] sm:$0xff] }
 0x554   : > { %19768 = vmatprep.mubr.msk.f32.mxu0 %vm371_vm1, %v24137_v7  ;;  %v10962_v50 = vpop.f32.mrf.mxu1  ;;  %v13395_v14 = vld [vmem:[#allocation3 + $0x1d2] sm:$0xff] }
 0x555   : > { %v11352_v62 = vpop.f32.mrf.mxu0  ;;  %v24645_v20 = vadd.f32 %v19467_v13, %v11018_v31  ;;  %v11017_v19 = vadd.f32 %v10962_v50, %v24446_v59  ;;  %v13754_v31 = vld [vmem:[#allocation3 + $0x63] sm:$0xff] }
 0x556   : > { %v19420_v44 = vpop.f32.mrf.mxu1  ;;  %19719 = vmatmul.mubr.msk.f32.gmra.mxu1 %vm371_vm1, %v13003_v9 }
 0x557   : > { %v19470_v1 = vpop.f32.mrf.mxu0  ;;  %19769 = vmatmul.mubr.msk.f32.gmra.mxu0 %vm371_vm1, %v26074_v37  ;;  %v24651_v2 = vadd.f32 %v11352_v62, %v11017_v19  ;;  %v11020_v7 = vadd.f32 %v19420_v44, %v24454_v5  ;;  %19721 = vmatprep.mubr.msk.f32.mxu1 %vm371_vm1, %v13004_v53 }
 0x558   : > { %19771 = vmatprep.mubr.msk.f32.mxu0 %vm371_vm1, %v13394_v46  ;;  %v10972_v54 = vpop.f32.mrf.mxu1  ;;  %v13755_v46 = vld [vmem:[#allocation3 + $0x6b] sm:$0xff] }
 0x559   : > { %v11362_v28 = vpop.f32.mrf.mxu0  ;;  %v24656_v59 = vadd.f32 %v19470_v1, %v11020_v7  ;;  %v11019_v15 = vadd.f32 %v10972_v54, %v24460_v51 }
 0x55a   : > { %v19423_v13 = vpop.f32.mrf.mxu1  ;;  %19722 = vmatmul.mubr.msk.f32.gmra.mxu1 %vm371_vm1, %v13005_v36 }
 0x55b   : > { %v19473_v0 = vpop.f32.mrf.mxu0  ;;  %19772 = vmatmul.mubr.msk.f32.gmra.mxu0 %vm371_vm1, %v13395_v14  ;;  %v24661_v5 = vadd.f32 %v11362_v28, %v11019_v15  ;;  %v11022_v9 = vadd.f32 %v19423_v13, %v24466_v55  ;;  %19776 = vmatprep.mubr.msk.f32.mxu1 %vm371_vm1, %v13754_v31  ;;  %v13756_v55 = vld [vmem:[#allocation3 + $0x7b] sm:$0xff] }
 0x55c   : > { %19826 = vmatprep.mubr.msk.f32.mxu0 %vm371_vm1, %v24174_v23  ;;  %v10982_v50 = vpop.f32.mrf.mxu1 }
 0x55d   : > { %v11372_v62 = vpop.f32.mrf.mxu0  ;;  %v24667_v53 = vadd.f32 %v19473_v0, %v11022_v9  ;;  %v11021_v51 = vadd.f32 %v10982_v50, %v24477_v22  ;;  %v13759_v0 = vld [vmem:[#allocation3 + $0x9b] sm:$0xff] }
 0x55e   : > { %v19478_v19 = vpop.f32.mrf.mxu1  ;;  %19777 = vmatmul.mubr.msk.f32.vlgmr.msra.gmra.mxu1 %vm371_vm1, %v13755_v46  ;;  %v13761_v46 = vld [vmem:[#allocation3 + $0xb3] sm:$0xff] }
 0x55f   : > { %v19528_v44 = vpop.f32.mrf.mxu0  ;;  %19827 = vmatmul.mubr.msk.f32.vlgmr.msra.gmra.mxu0 %vm371_vm1, %v24200_v8  ;;  %v24673_v1 = vadd.f32 %v11372_v62, %v11021_v51  ;;  %v11772_v37 = vadd.f32 %v19478_v19, %v24487_v21  ;;  %19779 = vmatprep.mubr.msk.f32.mxu1 %vm371_vm1, %v13756_v55  ;;  %v13757_v8 = vld [vmem:[#allocation3 + $0x83] sm:$0xff]  ;;  %v13758_v21 = vld [vmem:[#allocation3 + $0x93] sm:$0xff] }
 0x560   : > { %19829 = vmatprep.mubr.msk.f32.mxu0 %vm371_vm1, %v24210_v58  ;;  %v11612_v23 = vpop.f32.mrf.mxu1  ;;  %19875 = vmatpush3.msk.msra.mxu1 %vm468_vm0, %v24475_v39 }
 0x561   : > { %v12002_v22 = vpop.f32.mrf.mxu0  ;;  %v24681_v7 = vadd.f32 %v19528_v44, %v11772_v37  ;;  %v11771_v36 = vadd.f32 %v11612_v23, %v24495_v60 }
 0x562   : > { %v19481_v14 = vpop.f32.mrf.mxu1  ;;  %19780 = vmatmul.mubr.msk.f32.gmra.mxu1 %vm371_vm1, %v13757_v8 }
 0x563   : > { %v19531_v54 = vpop.f32.mrf.mxu0  ;;  %19830 = vmatmul.mubr.msk.f32.gmra.mxu0 %vm371_vm1, %v24222_v33  ;;  %v24687_v28 = vadd.f32 %v12002_v22, %v11771_v36  ;;  %v11774_v58 = vadd.f32 %v19481_v14, %v24501_v32  ;;  %19782 = vmatprep.mubr.msk.f32.mxu1 %vm371_vm1, %v13758_v21  ;;  %v13760_v33 = vld [vmem:[#allocation3 + $0xab] sm:$0xff] }
 0x564   : > { %19832 = vmatprep.mubr.msk.f32.mxu0 %vm371_vm1, %v24228_v24  ;;  %v11622_v39 = vpop.f32.mrf.mxu1  ;;  %v13763_v22 = vld [vmem:[#allocation3 + $0xcb] sm:$0xff] }
 0x565   : > { %v12012_v60 = vpop.f32.mrf.mxu0  ;;  %v24693_v15 = vadd.f32 %v19531_v54, %v11774_v58  ;;  %v11773_v13 = vadd.f32 %v11622_v39, %v24507_v18  ;;  %v13765_v58 = vld [vmem:[#allocation3 + $0xe3] sm:$0xff] }
 0x566   : > { %v19484_v31 = vpop.f32.mrf.mxu1  ;;  %19783 = vmatmul.mubr.msk.f32.gmra.mxu1 %vm371_vm1, %v13759_v0 }
 0x567   : > { %v19534_v9 = vpop.f32.mrf.mxu0  ;;  %19833 = vmatmul.mubr.msk.f32.gmra.mxu0 %vm371_vm1, %v24240_v48  ;;  %v24699_v32 = vadd.f32 %v12012_v60, %v11773_v13  ;;  %v11776_v50 = vadd.f32 %v19484_v31, %v24513_v38  ;;  %19785 = vmatprep.mubr.msk.f32.mxu1 %vm371_vm1, %v13760_v33  ;;  %v13762_v48 = vld [vmem:[#allocation3 + $0xc3] sm:$0xff] }
 0x568   : > { %19835 = vmatprep.mubr.msk.f32.mxu0 %vm371_vm1, %v24246_v4  ;;  %v11632_v24 = vpop.f32.mrf.mxu1 }
 0x569   : > { %v12022_v18 = vpop.f32.mrf.mxu0  ;;  %v24705_v62 = vadd.f32 %v19534_v9, %v11776_v50  ;;  %v11775_v51 = vadd.f32 %v11632_v24, %v24519_v43  ;;  %v13767_v50 = vld [vmem:[#allocation3 + $0xfb] sm:$0xff] }
 0x56a   : > { %v19487_v19 = vpop.f32.mrf.mxu1  ;;  %19786 = vmatmul.mubr.msk.f32.gmra.mxu1 %vm371_vm1, %v13761_v46 }
 0x56b   : > { %v19537_v44 = vpop.f32.mrf.mxu0  ;;  %19836 = vmatmul.mubr.msk.f32.gmra.mxu0 %vm371_vm1, %v24258_v17  ;;  %v24711_v38 = vadd.f32 %v12022_v18, %v11775_v51  ;;  %v11778_v55 = vadd.f32 %v19487_v19, %v24525_v29  ;;  %19788 = vmatprep.mubr.msk.f32.mxu1 %vm371_vm1, %v13762_v48  ;;  %v13764_v17 = vld [vmem:[#allocation3 + $0xdb] sm:$0xff]  ;;  %v26077_v51 = vld [vmem:[#allocation8_spill] sm:$0xff] }
 0x56c   : > { %19838 = vmatprep.mubr.msk.f32.mxu0 %vm371_vm1, %v24264_v16  ;;  %v11642_v4 = vpop.f32.mrf.mxu1 }
 0x56d   : > { %v12032_v43 = vpop.f32.mrf.mxu0  ;;  %v24717_v37 = vadd.f32 %v19537_v44, %v11778_v55  ;;  %v11777_v23 = vadd.f32 %v11642_v4, %v24531_v41  ;;  %v26078_v44 = vld [vmem:[#allocation26_spill] sm:$0xff] }
 0x56e   : > { %v19490_v36 = vpop.f32.mrf.mxu1  ;;  %19789 = vmatmul.mubr.msk.f32.gmra.mxu1 %vm371_vm1, %v13763_v22 }
 0x56f   : > { %v19540_v8 = vpop.f32.mrf.mxu0  ;;  %19839 = vmatmul.mubr.msk.f32.gmra.mxu0 %vm371_vm1, %v24276_v45  ;;  %v24723_v29 = vadd.f32 %v12032_v43, %v11777_v23  ;;  %v11780_v14 = vadd.f32 %v19490_v36, %v24537_v10  ;;  %19791 = vmatprep.mubr.msk.f32.mxu1 %vm371_vm1, %v13764_v17  ;;  %v26075_v45 = vld [vmem:[#allocation23_spill] sm:$0xff]  ;;  %v13766_v10 = vld [vmem:[#allocation3 + $0xf3] sm:$0xff] }
 0x570   : > { %19841 = vmatprep.mubr.msk.f32.mxu0 %vm371_vm1, %v24282_v3  ;;  %v11652_v16 = vpop.f32.mrf.mxu1  ;;  %v26076_v3 = vld [vmem:[#allocation52_spill] sm:$0xff] }
 0x571   : > { %v12042_v41 = vpop.f32.mrf.mxu0  ;;  %v24729_v54 = vadd.f32 %v19540_v8, %v11780_v14  ;;  %v11779_v21 = vadd.f32 %v11652_v16, %v24543_v27  ;;  %v13769_v43 = vld [vmem:[#allocation3 + $0x113] sm:$0xff] }
 0x572   : > { %v19493_v39 = vpop.f32.mrf.mxu1  ;;  %19792 = vmatmul.mubr.msk.f32.gmra.mxu1 %vm371_vm1, %v13765_v58  ;;  %v26079_v36 = vld [vmem:[#allocation24_spill] sm:$0xff]  ;;  %v26080_v14 = vld [vmem:[#allocation9_spill] sm:$0xff] }
 0x573   : > { %v19543_v60 = vpop.f32.mrf.mxu0  ;;  %19842 = vmatmul.mubr.msk.f32.gmra.mxu0 %vm371_vm1, %v26075_v45  ;;  %v24735_v13 = vadd.f32 %v12042_v41, %v11779_v21  ;;  %v11782_v0 = vadd.f32 %v19493_v39, %v24549_v35  ;;  %19794 = vmatprep.mubr.msk.f32.mxu1 %vm371_vm1, %v13766_v10  ;;  %v13768_v35 = vld [vmem:[#allocation3 + $0x10b] sm:$0xff] }
 0x574   : > { %19844 = vmatprep.mubr.msk.f32.mxu0 %vm371_vm1, %v26076_v3  ;;  %v11662_v31 = vpop.f32.mrf.mxu1  ;;  %v13771_v58 = vld [vmem:[#allocation3 + $0x12b] sm:$0xff]  ;;  %v26082_v3 = vld [vmem:[#allocation25_spill] sm:$0xff] }
 0x575   : > { %v12052_v27 = vpop.f32.mrf.mxu0  ;;  %v24741_v9 = vadd.f32 %v19543_v60, %v11782_v0  ;;  %v11781_v33 = vadd.f32 %v11662_v31, %v24555_v61  ;;  %v26081_v45 = vld [vmem:[#allocation28_spill] sm:$0xff] }
 0x576   : > { %v19496_v24 = vpop.f32.mrf.mxu1  ;;  %19795 = vmatmul.mubr.msk.f32.gmra.mxu1 %vm371_vm1, %v13767_v50  ;;  %v13773_v50 = vld [vmem:[#allocation3 + $0x143] sm:$0xff] }
 0x577   : > { %v19546_v18 = vpop.f32.mrf.mxu0  ;;  %19845 = vmatmul.mubr.msk.f32.gmra.mxu0 %vm371_vm1, %v26077_v51  ;;  %v24747_v46 = vadd.f32 %v12052_v27, %v11781_v33  ;;  %v11784_v19 = vadd.f32 %v19496_v24, %v24561_v25  ;;  %19797 = vmatprep.mubr.msk.f32.mxu1 %vm371_vm1, %v13768_v35  ;;  %v13770_v25 = vld [vmem:[#allocation3 + $0x123] sm:$0xff] }
 0x578   : > { %19847 = vmatprep.mubr.msk.f32.mxu0 %vm371_vm1, %v26078_v44  ;;  %v11672_v48 = vpop.f32.mrf.mxu1  ;;  %v26083_v51 = vld [vmem:[#allocation27_spill] sm:$0xff]  ;;  %v26084_v44 = vld [vmem:[#allocation10_spill] sm:$0xff] }
 0x579   : > { %v12062_v61 = vpop.f32.mrf.mxu0  ;;  %v24753_v55 = vadd.f32 %v19546_v18, %v11784_v19  ;;  %v11783_v4 = vadd.f32 %v11672_v48, %v24567_v56 }
 0x57a   : > { %v19499_v23 = vpop.f32.mrf.mxu1  ;;  %19798 = vmatmul.mubr.msk.f32.gmra.mxu1 %vm371_vm1, %v13769_v43  ;;  %v13775_v43 = vld [vmem:[#allocation3 + $0x15b] sm:$0xff] }
 0x57b   : > { %v19549_v22 = vpop.f32.mrf.mxu0  ;;  %19848 = vmatmul.mubr.msk.f32.gmra.mxu0 %vm371_vm1, %v26079_v36  ;;  %v24759_v8 = vadd.f32 %v12062_v61, %v11783_v4  ;;  %v11786_v17 = vadd.f32 %v19499_v23, %v24573_v49  ;;  %19800 = vmatprep.mubr.msk.f32.mxu1 %vm371_vm1, %v13770_v25  ;;  %v13772_v49 = vld [vmem:[#allocation3 + $0x13b] sm:$0xff] }
 0x57c   : > { %19850 = vmatprep.mubr.msk.f32.mxu0 %vm371_vm1, %v26080_v14  ;;  %v11682_v16 = vpop.f32.mrf.mxu1  ;;  %v26085_v36 = vld [vmem:[#allocation30_spill] sm:$0xff] }
 0x57d   : > { %v12072_v56 = vpop.f32.mrf.mxu0  ;;  %v24765_v41 = vadd.f32 %v19549_v22, %v11786_v17  ;;  %v11785_v21 = vadd.f32 %v11682_v16, %v24579_v6  ;;  %v14853_v25 = vld [vmem:[#allocation4] sm:$0xff]  ;;  %v26086_v16 = vld [vmem:[#allocation29_spill] sm:$0xff] }
 0x57e   : > { %v19502_v39 = vpop.f32.mrf.mxu1  ;;  %19801 = vmatmul.mubr.msk.f32.gmra.mxu1 %vm371_vm1, %v13771_v58 }
 0x57f   : > { %v19552_v60 = vpop.f32.mrf.mxu0  ;;  %19851 = vmatmul.mubr.msk.f32.gmra.mxu0 %vm371_vm1, %v26081_v45  ;;  %v24771_v10 = vadd.f32 %v12072_v56, %v11785_v21  ;;  %v11788_v0 = vadd.f32 %v19502_v39, %v24585_v11  ;;  %19803 = vmatprep.mubr.msk.f32.mxu1 %vm371_vm1, %v13772_v49  ;;  %v13774_v11 = vld [vmem:[#allocation3 + $0x153] sm:$0xff]  ;;  %v14889_v56 = vld [vmem:[#allocation4 + $0x1] sm:$0xff] }
 0x580   : > { %19853 = vmatprep.mubr.msk.f32.mxu0 %vm371_vm1, %v26082_v3  ;;  %v11692_v31 = vpop.f32.mrf.mxu1  ;;  %v14891_v21 = vld [vmem:[#allocation4 + $0x19] sm:$0xff]  ;;  %v14857_v3 = vld [vmem:[#allocation4 + $0x30] sm:$0xff] }
 0x581   : > { %v12082_v6 = vpop.f32.mrf.mxu0  ;;  %v24777_v27 = vadd.f32 %v19552_v60, %v11788_v0  ;;  %v11787_v33 = vadd.f32 %v11692_v31, %v24591_v30  ;;  %v13777_v60 = vld [vmem:[#allocation3 + $0x173] sm:$0xff]  ;;  %v13778_v0 = vld [vmem:[#allocation3 + $0x183] sm:$0xff] }
 0x582   : > { %v19505_v24 = vpop.f32.mrf.mxu1  ;;  %19804 = vmatmul.mubr.msk.f32.gmra.mxu1 %vm371_vm1, %v13773_v50  ;;  %v14854_v31 = vld [vmem:[#allocation4 + $0x8] sm:$0xff]  ;;  %v14925_v50 = vmax.f32 %v14853_v25, %v14889_v56  ;;  %v14858_v25 = vld [vmem:[#allocation4 + $0x38] sm:$0xff] }
 0x583   : > { %v19555_v18 = vpop.f32.mrf.mxu0  ;;  %19854 = vmatmul.mubr.msk.f32.gmra.mxu0 %vm371_vm1, %v26083_v51  ;;  %v24783_v35 = vadd.f32 %v12082_v6, %v11787_v33  ;;  %v11790_v19 = vadd.f32 %v19505_v24, %v24597_v47  ;;  %19806 = vmatprep.mubr.msk.f32.mxu1 %vm371_vm1, %v13774_v11  ;;  %v13776_v47 = vld [vmem:[#allocation3 + $0x16b] sm:$0xff]  ;;  %v14892_v11 = vld [vmem:[#allocation4 + $0x21] sm:$0xff] }
 0x584   : > { %19856 = vmatprep.mubr.msk.f32.mxu0 %vm371_vm1, %v26084_v44  ;;  %v11702_v48 = vpop.f32.mrf.mxu1  ;;  %v26087_v33 = vld [vmem:[#allocation11_spill] sm:$0xff] }
 0x585   : > { %v12092_v30 = vpop.f32.mrf.mxu0  ;;  %v24789_v61 = vadd.f32 %v19555_v18, %v11790_v19  ;;  %v11789_v4 = vadd.f32 %v11702_v48, %v24603_v12  ;;  %v14855_v12 = vld [vmem:[#allocation4 + $0x18] sm:$0xff]  ;;  %v14856_v18 = vld [vmem:[#allocation4 + $0x20] sm:$0xff]  ;;  %v14890_v51 = vld [vmem:[#allocation4 + $0x9] sm:$0xff] }
 0x586   : > { %v19508_v23 = vpop.f32.mrf.mxu1  ;;  %19807 = vmatmul.mubr.msk.f32.gmra.mxu1 %vm371_vm1, %v13775_v43  ;;  %v14927_v24 = vmax.f32 %v14855_v12, %v14891_v21  ;;  %v14893_v48 = vld [vmem:[#allocation4 + $0x31] sm:$0xff]  ;;  %v14928_v12 = vmax.f32 %v14856_v18, %v14892_v11 }
 0x587   : > { %v19558_v22 = vpop.f32.mrf.mxu0  ;;  %19857 = vmatmul.mubr.msk.f32.gmra.mxu0 %vm371_vm1, %v26085_v36  ;;  %v24795_v17 = vadd.f32 %v12092_v30, %v11789_v4  ;;  %v11792_v14 = vadd.f32 %v19508_v23, %v24609_v34  ;;  %19809 = vmatprep.mubr.msk.f32.mxu1 %vm371_vm1, %v13776_v47  ;;  %v14961_v30 = vld [vmem:[#allocation4 + $0x2] sm:$0xff]  ;;  %v14963_v4 = vld [vmem:[#allocation4 + $0x1a] sm:$0xff]  ;;  %v13779_v47 = vld [vmem:[#allocation3 + $0x18b] sm:$0xff] }
 0x588   : > { %19859 = vmatprep.mubr.msk.f32.mxu0 %vm371_vm1, %v26086_v16  ;;  %v11712_v58 = vpop.f32.mrf.mxu1  ;;  %v14926_v16 = vmax.f32 %v14854_v31, %v14890_v51  ;;  %v26089_v21 = vld [vmem:[#allocation12_spill] sm:$0xff]  ;;  %v26090_v31 = vld [vmem:[#allocation34_spill] sm:$0xff] }
 0x589   : > { %v12102_v39 = vpop.f32.mrf.mxu0  ;;  %v24801_v45 = vadd.f32 %v19558_v22, %v11792_v14  ;;  %v11791_v49 = vadd.f32 %v11712_v58, %v24615_v52  ;;  %v26088_v52 = vld [vmem:[#allocation32_spill] sm:$0xff]  ;;  %v14894_v14 = vld [vmem:[#allocation4 + $0x39] sm:$0xff] }
 0x58a   : > { %v19511_v6 = vpop.f32.mrf.mxu1  ;;  %19810 = vmatmul.mubr.msk.f32.gmra.mxu1 %vm371_vm1, %v13777_v60  ;;  %v13780_v58 = vld [vmem:[#allocation3 + $0x19b] sm:$0xff]  ;;  %v14997_v60 = vmax.f32 %v14925_v50, %v14961_v30  ;;  %v13782_v11 = vld [vmem:[#allocation3 + $0x1b3] sm:$0xff]  ;;  %v14895_v50 = vld [vmem:[#allocation4 + $0x49] sm:$0xff] }
 0x58b   : > { %v19561_v34 = vpop.f32.mrf.mxu0  ;;  %19860 = vmatmul.mubr.msk.f32.gmra.mxu0 %vm371_vm1, %v26087_v33  ;;  %v24807_v19 = vadd.f32 %v12102_v39, %v11791_v49  ;;  %v11794_v44 = vadd.f32 %v19511_v6, %v24621_v40  ;;  %19812 = vmatprep.mubr.msk.f32.mxu1 %vm371_vm1, %v13778_v0  ;;  %v14929_v39 = vmax.f32 %v14857_v3, %v14893_v48  ;;  %v14962_v0 = vld [vmem:[#allocation4 + $0xa] sm:$0xff]  ;;  %v14964_v6 = vld [vmem:[#allocation4 + $0x22] sm:$0xff]  ;;  %v14965_v33 = vld [vmem:[#allocation4 + $0x32] sm:$0xff] }
 0x58c   : > { %19862 = vmatprep.mubr.msk.f32.mxu0 %vm371_vm1, %v26088_v52  ;;  %v11722_v43 = vpop.f32.mrf.mxu1  ;;  %v24819_v49 = vmax.f32 %v14927_v24, %v14963_v4  ;;  %v14859_v3 = vld [vmem:[#allocation4 + $0x48] sm:$0xff]  ;;  %v14966_v30 = vld [vmem:[#allocation4 + $0x3a] sm:$0xff]  ;;  %v14998_v4 = vmax.f32 %v14926_v16, %v14962_v0 }
 0x58d   : > { %v12112_v23 = vpop.f32.mrf.mxu0  ;;  %v24813_v22 = vadd.f32 %v19561_v34, %v11794_v44  ;;  %v11793_v36 = vadd.f32 %v11722_v43, %v24627_v42  ;;  %v14930_v44 = vmax.f32 %v14858_v25, %v14894_v14  ;;  %v13781_v48 = vld [vmem:[#allocation3 + $0x1a3] sm:$0xff]  ;;  %v14860_v14 = vld [vmem:[#allocation4 + $0x50] sm:$0xff]  ;;  %v13783_v16 = vld [vmem:[#allocation3 + $0x1bb] sm:$0xff] }
 0x58e   : > { %v19514_v40 = vpop.f32.mrf.mxu1  ;;  %19813 = vmatmul.mubr.msk.f32.gmra.mxu1 %vm371_vm1, %v13779_v47  ;;  %v24835_v47 = vmax.f32 %v14929_v39, %v14965_v33  ;;  %v15033_v25 = vmax.f32 %v14997_v60, %v24819_v49 }
 0x58f   : > { %v19564_v56 = vpop.f32.mrf.mxu0  ;;  %19863 = vmatmul.mubr.msk.f32.gmra.mxu0 %vm371_vm1, %v26089_v21  ;;  %v24821_v42 = vadd.f32 %v12112_v23, %v11793_v36  ;;  %v11796_v34 = vadd.f32 %v19514_v40, %v24633_v57  ;;  %19815 = vmatprep.mubr.msk.f32.mxu1 %vm371_vm1, %v13780_v58  ;;  %v24830_v57 = vmax.f32 %v14928_v12, %v14964_v6  ;;  %v26091_v36 = vld [vmem:[#allocation13_spill] sm:$0xff]  ;;  %v14861_v21 = vld [vmem:[#allocation4 + $0x60] sm:$0xff]  ;;  %v13784_v6 = vld [vmem:[#allocation3 + $0x1cb] sm:$0xff] }
 0x590   : > { %19865 = vmatprep.mubr.msk.f32.mxu0 %vm371_vm1, %v26090_v31  ;;  %v11732_v18 = vpop.f32.mrf.mxu1  ;;  %v14896_v40 = vld [vmem:[#allocation4 + $0x51] sm:$0xff]  ;;  %v14931_v12 = vmax.f32 %v14859_v3, %v14895_v50  ;;  %v14897_v58 = vld [vmem:[#allocation4 + $0x61] sm:$0xff]  ;;  %v24844_v60 = vmax.f32 %v14930_v44, %v14966_v30  ;;  %v15065_v44 = vmax.f32 %v15033_v25, %v24835_v47 }
 0x591   : > { %v12122_v51 = vpop.f32.mrf.mxu0  ;;  %v24827_v24 = vadd.f32 %v19564_v56, %v11796_v34  ;;  %v11795_v52 = vadd.f32 %v11732_v18, %v24639_v63  ;;  %v14174_v34 = vld [vmem:[#allocation3 + $0x1cc] sm:$0xff]  ;;  %v15034_v18 = vmax.f32 %v14998_v4, %v24830_v57 }
 0x592   : > { %v19517_v43 = vpop.f32.mrf.mxu1  ;;  %19816 = vmatmul.mubr.msk.f32.gmra.mxu1 %vm371_vm1, %v13781_v48  ;;  %v14967_v31 = vld [vmem:[#allocation4 + $0x4a] sm:$0xff]  ;;  %v13785_v50 = vld [vmem:[#allocation3 + $0x1d3] sm:$0xff]  ;;  %v15035_v48 = vmax.f32 %v24819_v49, %v24835_v47  ;;  %v15036_v49 = vmax.f32 %v24830_v57, %v24844_v60 }
 0x593   : > { %v19567_v23 = vpop.f32.mrf.mxu0  ;;  %19866 = vmatmul.mubr.msk.f32.gmra.mxu0 %vm371_vm1, %v26091_v36  ;;  %v24838_v56 = vadd.f32 %v12122_v51, %v11795_v52  ;;  %v11798_v63 = vadd.f32 %v19517_v43, %v24645_v20  ;;  %19818 = vmatprep.mubr.msk.f32.mxu1 %vm371_vm1, %v13782_v11  ;;  %v14932_v51 = vmax.f32 %v14860_v14, %v14896_v40  ;;  %v26092_v3 = vld [vmem:[#allocation31_spill] sm:$0xff]  ;;  %v14175_v52 = vld [vmem:[#allocation3 + $0x1d4] sm:$0xff] }
 0x594   : > { %19868 = vmatprep.mubr.msk.f32.mxu0 %vm371_vm1, %v24435_v26  ;;  %v11742_v0 = vpop.f32.mrf.mxu1  ;;  %v14968_v30 = vld [vmem:[#allocation4 + $0x52] sm:$0xff]  ;;  %v14933_v43 = vmax.f32 %v14861_v21, %v14897_v58  ;;  %v14969_v36 = vld [vmem:[#allocation4 + $0x62] sm:$0xff] }
 0x595   : > { %v12132_v39 = vpop.f32.mrf.mxu0  ;;  %v24846_v33 = vadd.f32 %v19567_v23, %v11798_v63  ;;  %v11797_v20 = vadd.f32 %v11742_v0, %v24651_v2  ;;  %v24861_v23 = vmax.f32 %v14931_v12, %v14967_v31  ;;  %v14862_v14 = vld [vmem:[#allocation4 + $0x68] sm:$0xff]  ;;  %v14899_v21 = vld [vmem:[#allocation4 + $0x79] sm:$0xff]  ;;  %v15066_v0 = vmax.f32 %v15034_v18, %v24844_v60 }
 0x596   : > { %v19520_v11 = vpop.f32.mrf.mxu1  ;;  %19819 = vmatmul.mubr.msk.f32.gmra.mxu1 %vm371_vm1, %v13783_v16  ;;  %v14898_v40 = vld [vmem:[#allocation4 + $0x69] sm:$0xff]  ;;  %v14863_v16 = vld [vmem:[#allocation4 + $0x78] sm:$0xff] }
 0x597   : > { %v19570_v26 = vpop.f32.mrf.mxu0  ;;  %19869 = vmatmul.mubr.msk.f32.gmra.mxu0 %vm371_vm1, %v26092_v3  ;;  %v24856_v2 = vadd.f32 %v12132_v39, %v11797_v20  ;;  %v11800_v4 = vadd.f32 %v19520_v11, %v24656_v59  ;;  %19821 = vmatprep.mubr.msk.f32.mxu1 %vm371_vm1, %v13784_v6  ;;  %v24869_v39 = vmax.f32 %v14932_v51, %v14968_v30  ;;  %v14864_v20 = vld [vmem:[#allocation4 + $0x80] sm:$0xff]  ;;  %v14970_v51 = vld [vmem:[#allocation4 + $0x6a] sm:$0xff] }
 0x598   : > { %19871 = vmatprep.mubr.msk.f32.mxu0 %vm371_vm1, %v14174_v34  ;;  %v11752_v63 = vpop.f32.mrf.mxu1  ;;  %v24873_v34 = vmax.f32 %v14933_v43, %v14969_v36  ;;  %v15037_v57 = vmax.f32 %v24835_v47, %v24861_v23  ;;  %v14934_v31 = vmax.f32 %v14862_v14, %v14898_v40  ;;  %v14900_v11 = vld [vmem:[#allocation4 + $0x81] sm:$0xff]  ;;  %v15067_v18 = vmax.f32 %v15035_v48, %v24861_v23 }
 0x599   : > { %v12142_v25 = vpop.f32.mrf.mxu0  ;;  %v24865_v58 = vadd.f32 %v19570_v26, %v11800_v4  ;;  %v11799_v59 = vadd.f32 %v11752_v63, %v24661_v5  ;;  %v14935_v3 = vmax.f32 %v14863_v16, %v14899_v21  ;;  %v14971_v4 = vld [vmem:[#allocation4 + $0x7a] sm:$0xff]  ;;  %v15068_v14 = vmax.f32 %v15036_v49, %v24869_v39  ;;  %v14972_v16 = vld [vmem:[#allocation4 + $0x82] sm:$0xff] }
 0x59a   : > { %v19523_v12 = vpop.f32.mrf.mxu1  ;;  %19822 = vmatmul.mubr.msk.f32.gmra.mxu1 %vm371_vm1, %v13785_v50  ;;  %v14865_v50 = vld [vmem:[#allocation4 + $0x90] sm:$0xff]  ;;  %v14936_v40 = vmax.f32 %v14864_v20, %v14900_v11  ;;  %v24888_v48 = vmax.f32 %v14934_v31, %v14970_v51  ;;  %v14867_v11 = vld [vmem:[#allocation4 + $0xa8] sm:$0xff] }
 0x59b   : > { %v19573_v6 = vpop.f32.mrf.mxu0  ;;  %19872 = vmatmul.mubr.msk.f32.gmra.mxu0 %vm371_vm1, %v14175_v52  ;;  %v24877_v26 = vadd.f32 %v12142_v25, %v11799_v59  ;;  %v11802_v5 = vadd.f32 %v19523_v12, %v24667_v53  ;;  %19876 = vmatprep.mubr.msk.f32.mxu1 %vm371_vm1, %v15065_v44  ;;  %v14901_v52 = vld [vmem:[#allocation4 + $0x91] sm:$0xff]  ;;  %v15069_v44 = vmax.f32 %v15037_v57, %v24873_v34  ;;  %v14902_v57 = vld [vmem:[#allocation4 + $0x99] sm:$0xff] }
 0x59c   : > { %v11762_v30 = vpop.f32.mrf.mxu1  ;;  %v15038_v25 = vmax.f32 %v24844_v60, %v24869_v39  ;;  %v14937_v21 = vmax.f32 %v14865_v50, %v14901_v52  ;;  %v24896_v49 = vmax.f32 %v14935_v3, %v14971_v4  ;;  %v14973_v12 = vld [vmem:[#allocation4 + $0x92] sm:$0xff]  ;;  %v14903_v60 = vld [vmem:[#allocation4 + $0xa9] sm:$0xff]  ;;  %v24903_v50 = vmax.f32 %v14936_v40, %v14972_v16 }
 0x59d   : > { %v12152_v43 = vpop.f32.mrf.mxu0  ;;  %v24882_v36 = vadd.f32 %v19573_v6, %v11802_v5  ;;  %v11801_v47 = vadd.f32 %v11762_v30, %v24673_v1  ;;  %v14866_v6 = vld [vmem:[#allocation4 + $0x98] sm:$0xff]  ;;  %v14868_v4 = vld [vmem:[#allocation4 + $0xb0] sm:$0xff] }
 0x59e   : > { %v19578_v63 = vpop.f32.mrf.mxu1  ;;  %19877 = vmatmul.mubr.msk.f32.vlgmr.msra.gmra.mxu1 %vm371_vm1, %v15066_v0  ;;  %v15039_v0 = vmax.f32 %v24861_v23, %v24873_v34  ;;  %v15070_v23 = vmax.f32 %v15038_v25, %v24888_v48  ;;  %v24909_v52 = vmax.f32 %v14937_v21, %v14973_v12  ;;  %v15041_v30 = vmax.f32 %v24873_v34, %v24896_v49  ;;  %v14905_v25 = vld [vmem:[#allocation4 + $0xc1] sm:$0xff] }
 0x59f   : > { %v19628_v53 = vpop.f32.mrf.mxu0  ;;  %v24892_v59 = vadd.f32 %v12152_v43, %v11801_v47  ;;  %v12552_v1 = vadd.f32 %v19578_v63, %v24681_v7  ;;  %19879 = vmatprep.mubr.msk.f32.mxu1 %vm371_vm1, %v15067_v18  ;;  %v15040_v7 = vmax.f32 %v24869_v39, %v24888_v48  ;;  %v14938_v43 = vmax.f32 %v14866_v6, %v14902_v57  ;;  %v14904_v47 = vld [vmem:[#allocation4 + $0xb1] sm:$0xff]  ;;  %v14974_v63 = vld [vmem:[#allocation4 + $0x9a] sm:$0xff] }
 0x5a0   : > { %v12392_v31 = vpop.f32.mrf.mxu1  ;;  %v15071_v39 = vmax.f32 %v15039_v0, %v24896_v49  ;;  %v14940_v57 = vmax.f32 %v14868_v4, %v14904_v47  ;;  %v14871_v47 = vld [vmem:[#allocation4 + $0xd8] sm:$0xff] }
 0x5a1   : > { %v12783_v20 = vpop.f32.mrf.mxu0  ;;  %v24900_v5 = vadd.f32 %v19628_v53, %v12552_v1  ;;  %v12551_v51 = vadd.f32 %v12392_v31, %v24687_v28  ;;  %v14869_v53 = vld [vmem:[#allocation4 + $0xc0] sm:$0xff]  ;;  %v14975_v1 = vld [vmem:[#allocation4 + $0xaa] sm:$0xff]  ;;  %v15072_v6 = vmax.f32 %v15040_v7, %v24903_v50  ;;  %v24924_v0 = vmax.f32 %v14938_v43, %v14974_v63 }
 0x5a2   : > { %v19581_v18 = vpop.f32.mrf.mxu1  ;;  %19880 = vmatmul.mubr.msk.f32.gmra.mxu1 %vm371_vm1, %v15068_v14  ;;  %v14939_v14 = vmax.f32 %v14867_v11, %v14903_v60  ;;  %v14976_v11 = vld [vmem:[#allocation4 + $0xb2] sm:$0xff]  ;;  %v14941_v60 = vmax.f32 %v14869_v53, %v14905_v25 }
 0x5a3   : > { %v19631_v3 = vpop.f32.mrf.mxu0  ;;  %v24913_v28 = vadd.f32 %v12783_v20, %v12551_v51  ;;  %v12554_v40 = vadd.f32 %v19581_v18, %v24693_v15  ;;  %19882 = vmatprep.mubr.msk.f32.mxu1 %vm371_vm1, %v15069_v44  ;;  %v15073_v44 = vmax.f32 %v15041_v30, %v24909_v52  ;;  %v15042_v20 = vmax.f32 %v24888_v48, %v24903_v50  ;;  %v14906_v30 = vld [vmem:[#allocation4 + $0xc9] sm:$0xff]  ;;  %v14907_v48 = vld [vmem:[#allocation4 + $0xd9] sm:$0xff] }
 0x5a4   : > { %v12402_v16 = vpop.f32.mrf.mxu1  ;;  %v24932_v7 = vmax.f32 %v14939_v14, %v14975_v1  ;;  %v15043_v18 = vmax.f32 %v24896_v49, %v24909_v52  ;;  %v24939_v53 = vmax.f32 %v14940_v57, %v14976_v11  ;;  %v14872_v1 = vld [vmem:[#allocation4 + $0xe0] sm:$0xff] }
 0x5a5   : > { %v12793_v21 = vpop.f32.mrf.mxu0  ;;  %v24918_v12 = vadd.f32 %v19631_v3, %v12554_v40  ;;  %v12553_v34 = vadd.f32 %v12402_v16, %v24699_v32  ;;  %v14977_v3 = vld [vmem:[#allocation4 + $0xc2] sm:$0xff]  ;;  %v15074_v49 = vmax.f32 %v15042_v20, %v24924_v0  ;;  %v14909_v20 = vld [vmem:[#allocation4 + $0xf1] sm:$0xff] }
 0x5a6   : > { %v19584_v31 = vpop.f32.mrf.mxu1  ;;  %19883 = vmatmul.mubr.msk.f32.gmra.mxu1 %vm371_vm1, %v15070_v23  ;;  %v14870_v23 = vld [vmem:[#allocation4 + $0xc8] sm:$0xff]  ;;  %v24945_v25 = vmax.f32 %v14941_v60, %v14977_v3  ;;  %v15045_v16 = vmax.f32 %v24909_v52, %v24932_v7 }
 0x5a7   : > { %v19634_v15 = vpop.f32.mrf.mxu0  ;;  %v24928_v51 = vadd.f32 %v12793_v21, %v12553_v34  ;;  %v12556_v32 = vadd.f32 %v19584_v31, %v24705_v62  ;;  %19885 = vmatprep.mubr.msk.f32.mxu1 %vm371_vm1, %v15071_v39  ;;  %v15044_v62 = vmax.f32 %v24903_v50, %v24924_v0  ;;  %v14942_v21 = vmax.f32 %v14870_v23, %v14906_v30  ;;  %v14908_v34 = vld [vmem:[#allocation4 + $0xe1] sm:$0xff]  ;;  %v14978_v31 = vld [vmem:[#allocation4 + $0xca] sm:$0xff] }
 0x5a8   : > { %v12412_v43 = vpop.f32.mrf.mxu1  ;;  %v15075_v50 = vmax.f32 %v15043_v18, %v24932_v7  ;;  %v14944_v30 = vmax.f32 %v14872_v1, %v14908_v34  ;;  %v14875_v34 = vld [vmem:[#allocation4 + $0x108] sm:$0xff] }
 0x5a9   : > { %v12803_v4 = vpop.f32.mrf.mxu0  ;;  %v24936_v40 = vadd.f32 %v19634_v15, %v12556_v32  ;;  %v12555_v63 = vadd.f32 %v12412_v43, %v24711_v38  ;;  %v14873_v15 = vld [vmem:[#allocation4 + $0xf0] sm:$0xff]  ;;  %v14979_v32 = vld [vmem:[#allocation4 + $0xda] sm:$0xff]  ;;  %v15076_v23 = vmax.f32 %v15044_v62, %v24939_v53  ;;  %v24960_v18 = vmax.f32 %v14942_v21, %v14978_v31 }
 0x5aa   : > { %v19587_v39 = vpop.f32.mrf.mxu1  ;;  %19886 = vmatmul.mubr.msk.f32.gmra.mxu1 %vm371_vm1, %v15072_v6  ;;  %v14943_v6 = vmax.f32 %v14871_v47, %v14907_v48  ;;  %v14980_v47 = vld [vmem:[#allocation4 + $0xe2] sm:$0xff]  ;;  %v14945_v48 = vmax.f32 %v14873_v15, %v14909_v20 }
 0x5ab   : > { %v19637_v14 = vpop.f32.mrf.mxu0  ;;  %v24949_v38 = vadd.f32 %v12803_v4, %v12555_v63  ;;  %v12558_v57 = vadd.f32 %v19587_v39, %v24717_v37  ;;  %19888 = vmatprep.mubr.msk.f32.mxu1 %vm371_vm1, %v15073_v44  ;;  %v15077_v44 = vmax.f32 %v15045_v16, %v24945_v25  ;;  %v15046_v4 = vmax.f32 %v24924_v0, %v24939_v53  ;;  %v14910_v16 = vld [vmem:[#allocation4 + $0xf9] sm:$0xff]  ;;  %v14911_v0 = vld [vmem:[#allocation4 + $0x109] sm:$0xff] }
 0x5ac   : > { %v12422_v11 = vpop.f32.mrf.mxu1  ;;  %v24968_v62 = vmax.f32 %v14943_v6, %v14979_v32  ;;  %v15047_v39 = vmax.f32 %v24932_v7, %v24945_v25  ;;  %v24975_v15 = vmax.f32 %v14944_v30, %v14980_v47  ;;  %v14876_v32 = vld [vmem:[#allocation4 + $0x110] sm:$0xff] }
 0x5ad   : > { %v12813_v60 = vpop.f32.mrf.mxu0  ;;  %v24954_v3 = vadd.f32 %v19637_v14, %v12558_v57  ;;  %v12557_v52 = vadd.f32 %v12422_v11, %v24723_v29  ;;  %v14981_v14 = vld [vmem:[#allocation4 + $0xf2] sm:$0xff]  ;;  %v15078_v7 = vmax.f32 %v15046_v4, %v24960_v18  ;;  %v14913_v4 = vld [vmem:[#allocation4 + $0x121] sm:$0xff] }
 0x5ae   : > { %v19590_v43 = vpop.f32.mrf.mxu1  ;;  %19889 = vmatmul.mubr.msk.f32.gmra.mxu1 %vm371_vm1, %v15074_v49  ;;  %v14874_v49 = vld [vmem:[#allocation4 + $0xf8] sm:$0xff]  ;;  %v24981_v20 = vmax.f32 %v14945_v48, %v14981_v14  ;;  %v15049_v11 = vmax.f32 %v24945_v25, %v24968_v62 }
 0x5af   : > { %v19640_v37 = vpop.f32.mrf.mxu0  ;;  %v24964_v63 = vadd.f32 %v12813_v60, %v12557_v52  ;;  %v12560_v29 = vadd.f32 %v19590_v43, %v24729_v54  ;;  %19891 = vmatprep.mubr.msk.f32.mxu1 %vm371_vm1, %v15075_v50  ;;  %v15048_v54 = vmax.f32 %v24939_v53, %v24960_v18  ;;  %v14946_v60 = vmax.f32 %v14874_v49, %v14910_v16  ;;  %v14912_v52 = vld [vmem:[#allocation4 + $0x111] sm:$0xff]  ;;  %v14982_v43 = vld [vmem:[#allocation4 + $0xfa] sm:$0xff] }
 0x5b0   : > { %v12432_v21 = vpop.f32.mrf.mxu1  ;;  %v15079_v53 = vmax.f32 %v15047_v39, %v24968_v62  ;;  %v14948_v16 = vmax.f32 %v14876_v32, %v14912_v52  ;;  %v14879_v52 = vld [vmem:[#allocation4 + $0x138] sm:$0xff] }
 0x5b1   : > { %v12823_v1 = vpop.f32.mrf.mxu0  ;;  %v24972_v57 = vadd.f32 %v19640_v37, %v12560_v29  ;;  %v12559_v31 = vadd.f32 %v12432_v21, %v24735_v13  ;;  %v14877_v37 = vld [vmem:[#allocation4 + $0x120] sm:$0xff]  ;;  %v14983_v29 = vld [vmem:[#allocation4 + $0x10a] sm:$0xff]  ;;  %v15080_v49 = vmax.f32 %v15048_v54, %v24975_v15  ;;  %v24996_v39 = vmax.f32 %v14946_v60, %v14982_v43 }
 0x5b2   : > { %v19593_v50 = vpop.f32.mrf.mxu1  ;;  %19892 = vmatmul.mubr.msk.f32.gmra.mxu1 %vm371_vm1, %v15076_v23  ;;  %v14947_v23 = vmax.f32 %v14875_v34, %v14911_v0  ;;  %v14984_v34 = vld [vmem:[#allocation4 + $0x112] sm:$0xff]  ;;  %v14949_v0 = vmax.f32 %v14877_v37, %v14913_v4 }
 0x5b3   : > { %v19643_v6 = vpop.f32.mrf.mxu0  ;;  %v24985_v13 = vadd.f32 %v12823_v1, %v12559_v31  ;;  %v12562_v30 = vadd.f32 %v19593_v50, %v24741_v9  ;;  %19894 = vmatprep.mubr.msk.f32.mxu1 %vm371_vm1, %v15077_v44  ;;  %v15081_v44 = vmax.f32 %v15049_v11, %v24981_v20  ;;  %v15050_v1 = vmax.f32 %v24960_v18, %v24975_v15  ;;  %v14914_v11 = vld [vmem:[#allocation4 + $0x129] sm:$0xff]  ;;  %v14915_v18 = vld [vmem:[#allocation4 + $0x139] sm:$0xff] }
 0x5b4   : > { %v12442_v47 = vpop.f32.mrf.mxu1  ;;  %v25004_v54 = vmax.f32 %v14947_v23, %v14983_v29  ;;  %v15051_v50 = vmax.f32 %v24968_v62, %v24981_v20  ;;  %v25011_v37 = vmax.f32 %v14948_v16, %v14984_v34  ;;  %v14880_v29 = vld [vmem:[#allocation4 + $0x140] sm:$0xff] }
 0x5b5   : > { %v12833_v48 = vpop.f32.mrf.mxu0  ;;  %v24990_v14 = vadd.f32 %v19643_v6, %v12562_v30  ;;  %v12561_v25 = vadd.f32 %v12442_v47, %v24747_v46  ;;  %v14985_v6 = vld [vmem:[#allocation4 + $0x122] sm:$0xff]  ;;  %v15082_v62 = vmax.f32 %v15050_v1, %v24996_v39  ;;  %v14917_v1 = vld [vmem:[#allocation4 + $0x151] sm:$0xff] }
 0x5b6   : > { %v19596_v21 = vpop.f32.mrf.mxu1  ;;  %19895 = vmatmul.mubr.msk.f32.gmra.mxu1 %vm371_vm1, %v15078_v7  ;;  %v14878_v7 = vld [vmem:[#allocation4 + $0x128] sm:$0xff]  ;;  %v25017_v4 = vmax.f32 %v14949_v0, %v14985_v6  ;;  %v15053_v47 = vmax.f32 %v24981_v20, %v25004_v54 }
 0x5b7   : > { %v19646_v9 = vpop.f32.mrf.mxu0  ;;  %v25000_v31 = vadd.f32 %v12833_v48, %v12561_v25  ;;  %v12564_v46 = vadd.f32 %v19596_v21, %v24753_v55  ;;  %19897 = vmatprep.mubr.msk.f32.mxu1 %vm371_vm1, %v15079_v53  ;;  %v15052_v55 = vmax.f32 %v24975_v15, %v24996_v39  ;;  %v14950_v48 = vmax.f32 %v14878_v7, %v14914_v11  ;;  %v14916_v25 = vld [vmem:[#allocation4 + $0x141] sm:$0xff]  ;;  %v14986_v21 = vld [vmem:[#allocation4 + $0x12a] sm:$0xff] }
 0x5b8   : > { %v12452_v60 = vpop.f32.mrf.mxu1  ;;  %v15083_v15 = vmax.f32 %v15051_v50, %v25004_v54  ;;  %v14952_v11 = vmax.f32 %v14880_v29, %v14916_v25  ;;  %v14883_v25 = vld [vmem:[#allocation4 + $0x168] sm:$0xff] }
 0x5b9   : > { %v12843_v32 = vpop.f32.mrf.mxu0  ;;  %v25008_v30 = vadd.f32 %v19646_v9, %v12564_v46  ;;  %v12563_v43 = vadd.f32 %v12452_v60, %v24759_v8  ;;  %v14881_v9 = vld [vmem:[#allocation4 + $0x150] sm:$0xff]  ;;  %v14987_v46 = vld [vmem:[#allocation4 + $0x13a] sm:$0xff]  ;;  %v15084_v7 = vmax.f32 %v15052_v55, %v25011_v37  ;;  %v25032_v50 = vmax.f32 %v14950_v48, %v14986_v21 }
 0x5ba   : > { %v19599_v53 = vpop.f32.mrf.mxu1  ;;  %19898 = vmatmul.mubr.msk.f32.gmra.mxu1 %vm371_vm1, %v15080_v49  ;;  %v14951_v49 = vmax.f32 %v14879_v52, %v14915_v18  ;;  %v14988_v52 = vld [vmem:[#allocation4 + $0x142] sm:$0xff]  ;;  %v14953_v18 = vmax.f32 %v14881_v9, %v14917_v1 }
 0x5bb   : > { %v19649_v23 = vpop.f32.mrf.mxu0  ;;  %v25021_v8 = vadd.f32 %v12843_v32, %v12563_v43  ;;  %v12566_v16 = vadd.f32 %v19599_v53, %v24765_v41  ;;  %19900 = vmatprep.mubr.msk.f32.mxu1 %vm371_vm1, %v15081_v44  ;;  %v15085_v44 = vmax.f32 %v15053_v47, %v25017_v4  ;;  %v15054_v32 = vmax.f32 %v24996_v39, %v25011_v37  ;;  %v14918_v47 = vld [vmem:[#allocation4 + $0x159] sm:$0xff]  ;;  %v14919_v39 = vld [vmem:[#allocation4 + $0x169] sm:$0xff] }
 0x5bc   : > { %v12462_v34 = vpop.f32.mrf.mxu1  ;;  %v25040_v55 = vmax.f32 %v14951_v49, %v14987_v46  ;;  %v15055_v53 = vmax.f32 %v25004_v54, %v25017_v4  ;;  %v25047_v9 = vmax.f32 %v14952_v11, %v14988_v52  ;;  %v14884_v46 = vld [vmem:[#allocation4 + $0x170] sm:$0xff] }
 0x5bd   : > { %v12853_v0 = vpop.f32.mrf.mxu0  ;;  %v25026_v6 = vadd.f32 %v19649_v23, %v12566_v16  ;;  %v12565_v20 = vadd.f32 %v12462_v34, %v24771_v10  ;;  %v14989_v23 = vld [vmem:[#allocation4 + $0x152] sm:$0xff]  ;;  %v15086_v54 = vmax.f32 %v15054_v32, %v25032_v50  ;;  %v14921_v32 = vld [vmem:[#allocation4 + $0x181] sm:$0xff] }
 0x5be   : > { %v19602_v60 = vpop.f32.mrf.mxu1  ;;  %19901 = vmatmul.mubr.msk.f32.gmra.mxu1 %vm371_vm1, %v15082_v62  ;;  %v14882_v62 = vld [vmem:[#allocation4 + $0x158] sm:$0xff]  ;;  %v25053_v1 = vmax.f32 %v14953_v18, %v14989_v23  ;;  %v15057_v34 = vmax.f32 %v25017_v4, %v25040_v55 }
 0x5bf   : > { %v19652_v41 = vpop.f32.mrf.mxu0  ;;  %v25036_v43 = vadd.f32 %v12853_v0, %v12565_v20  ;;  %v12568_v10 = vadd.f32 %v19602_v60, %v24777_v27  ;;  %19903 = vmatprep.mubr.msk.f32.mxu1 %vm371_vm1, %v15083_v15  ;;  %v15056_v27 = vmax.f32 %v25011_v37, %v25032_v50  ;;  %v14954_v0 = vmax.f32 %v14882_v62, %v14918_v47  ;;  %v14920_v20 = vld [vmem:[#allocation4 + $0x171] sm:$0xff]  ;;  %v14990_v60 = vld [vmem:[#allocation4 + $0x15a] sm:$0xff] }
 0x5c0   : > { %v12472_v48 = vpop.f32.mrf.mxu1  ;;  %v15087_v37 = vmax.f32 %v15055_v53, %v25040_v55  ;;  %v14956_v47 = vmax.f32 %v14884_v46, %v14920_v20  ;;  %v14922_v46 = vld [vmem:[#allocation4 + $0x189] sm:$0xff]  ;;  %v14887_v20 = vld [vmem:[#allocation4 + $0x198] sm:$0xff] }
 0x5c1   : > { %v12863_v29 = vpop.f32.mrf.mxu0  ;;  %v25044_v16 = vadd.f32 %v19652_v41, %v12568_v10  ;;  %v12567_v21 = vadd.f32 %v12472_v48, %v24783_v35  ;;  %v14885_v41 = vld [vmem:[#allocation4 + $0x180] sm:$0xff]  ;;  %v14991_v10 = vld [vmem:[#allocation4 + $0x16a] sm:$0xff]  ;;  %v15088_v62 = vmax.f32 %v15056_v27, %v25047_v9  ;;  %v15026_v53 = vmax.f32 %v14954_v0, %v14990_v60 }
 0x5c2   : > { %v19605_v15 = vpop.f32.mrf.mxu1  ;;  %19904 = vmatmul.mubr.msk.f32.gmra.mxu1 %vm371_vm1, %v15084_v7  ;;  %v14955_v7 = vmax.f32 %v14883_v25, %v14919_v39  ;;  %v14992_v25 = vld [vmem:[#allocation4 + $0x172] sm:$0xff]  ;;  %v14957_v39 = vmax.f32 %v14885_v41, %v14921_v32  ;;  %v15059_v27 = vmax.f32 %v25040_v55, %v25053_v1 }
 0x5c3   : > { %v19655_v49 = vpop.f32.mrf.mxu0  ;;  %v25057_v35 = vadd.f32 %v12863_v29, %v12567_v21  ;;  %v12570_v11 = vadd.f32 %v19605_v15, %v24789_v61  ;;  %19906 = vmatprep.mubr.msk.f32.mxu1 %vm371_vm1, %v15085_v44  ;;  %v15089_v44 = vmax.f32 %v15057_v34, %v25053_v1  ;;  %v15058_v29 = vmax.f32 %v25032_v50, %v25047_v9 }
 0x5c4   : > { %v12482_v52 = vpop.f32.mrf.mxu1  ;;  %v15028_v41 = vmax.f32 %v14956_v47, %v14992_v25 }
 0x5c5   : > { %v12873_v18 = vpop.f32.mrf.mxu0  ;;  %v25062_v23 = vadd.f32 %v19655_v49, %v12570_v11  ;;  %v12569_v4 = vadd.f32 %v12482_v52, %v24795_v17  ;;  %v15027_v17 = vmax.f32 %v14955_v7, %v14991_v10  ;;  %v14993_v49 = vld [vmem:[#allocation4 + $0x182] sm:$0xff]  ;;  %v14923_v11 = vld [vmem:[#allocation4 + $0x199] sm:$0xff]  ;;  %v15090_v7 = vmax.f32 %v15058_v29, %v15026_v53 }
 0x5c6   : > { %v19608_v48 = vpop.f32.mrf.mxu1  ;;  %19907 = vmatmul.mubr.msk.f32.gmra.mxu1 %vm371_vm1, %v15086_v54  ;;  %v14886_v54 = vld [vmem:[#allocation4 + $0x188] sm:$0xff]  ;;  %v15029_v55 = vmax.f32 %v14957_v39, %v14993_v49  ;;  %v14959_v47 = vmax.f32 %v14887_v20, %v14923_v11 }
 0x5c7   : > { %26093 = vst [vmem:[#allocation36_spill] sm:$0xff] %v25062_v23  ;;  %v19658_v61 = vpop.f32.mrf.mxu0  ;;  %v25070_v21 = vadd.f32 %v12873_v18, %v12569_v4  ;;  %v12572_v15 = vadd.f32 %v19608_v48, %v24801_v45  ;;  %19909 = vmatprep.mubr.msk.f32.mxu1 %vm371_vm1, %v15087_v37  ;;  %v15060_v45 = vmax.f32 %v25047_v9, %v15026_v53  ;;  %v14924_v9 = vld [vmem:[#allocation4 + $0x1a1] sm:$0xff] }
 0x5c8   : > { %v12492_v34 = vpop.f32.mrf.mxu1  ;;  %v15061_v52 = vmax.f32 %v25053_v1, %v15027_v17  ;;  %v14958_v18 = vmax.f32 %v14886_v54, %v14922_v46  ;;  %v15091_v48 = vmax.f32 %v15059_v27, %v15027_v17  ;;  %v15063_v11 = vmax.f32 %v15027_v17, %v15029_v55 }
 0x5c9   : > { %26094 = vst [vmem:[#allocation33_spill] sm:$0xff] %v25070_v21  ;;  %v12883_v0 = vpop.f32.mrf.mxu0  ;;  %v25076_v50 = vadd.f32 %v19658_v61, %v12572_v15  ;;  %v12571_v60 = vadd.f32 %v12492_v34, %v24807_v19  ;;  %v14994_v19 = vld [vmem:[#allocation4 + $0x18a] sm:$0xff]  ;;  %v14888_v61 = vld [vmem:[#allocation4 + $0x1a0] sm:$0xff]  ;;  %v15092_v1 = vmax.f32 %v15060_v45, %v15028_v41 }
 0x5ca   : > { %v19611_v32 = vpop.f32.mrf.mxu1  ;;  %19910 = vmatmul.mubr.msk.f32.gmra.mxu1 %vm371_vm1, %v15088_v62  ;;  %v14995_v34 = vld [vmem:[#allocation4 + $0x19a] sm:$0xff]  ;;  %v15030_v54 = vmax.f32 %v14958_v18, %v14994_v19  ;;  %v14960_v27 = vmax.f32 %v14888_v61, %v14924_v9 }
 0x5cb   : > { %26095 = vst [vmem:[#allocation35_spill] sm:$0xff] %v25076_v50  ;;  %v19661_v37 = vpop.f32.mrf.mxu0  ;;  %v25082_v10 = vadd.f32 %v12883_v0, %v12571_v60  ;;  %v12574_v4 = vadd.f32 %v19611_v32, %v24813_v22  ;;  %19912 = vmatprep.mubr.msk.f32.mxu1 %vm371_vm1, %v15089_v44  ;;  %v15093_v22 = vmax.f32 %v15061_v52, %v15029_v55  ;;  %v14996_v60 = vld [vmem:[#allocation4 + $0x1a2] sm:$0xff] }
 0x5cc   : > { %v12502_v25 = vpop.f32.mrf.mxu1  ;;  %v15062_v44 = vmax.f32 %v15026_v53, %v15028_v41  ;;  %v15031_v20 = vmax.f32 %v14959_v47, %v14995_v34  ;;  %v15032_v18 = vmax.f32 %v14960_v27, %v14996_v60 }
 0x5cd   : > { %26096 = vst [vmem:[#allocation14_spill] sm:$0xff] %v25082_v10  ;;  %v12893_v15 = vpop.f32.mrf.mxu0  ;;  %v25086_v62 = vadd.f32 %v19661_v37, %v12574_v4  ;;  %v12573_v29 = vadd.f32 %v12502_v25, %v24821_v42  ;;  %v15064_v4 = vmax.f32 %v15028_v41, %v15030_v54 }
 0x5ce   : > { %v19614_v39 = vpop.f32.mrf.mxu1  ;;  %19913 = vmatmul.mubr.msk.f32.gmra.mxu1 %vm371_vm1, %v15090_v7  ;;  %v15094_v53 = vmax.f32 %v15062_v44, %v15030_v54  ;;  %v15095_v17 = vmax.f32 %v15063_v11, %v15031_v20 }
 0x5cf   : > { %26097 = vst [vmem:[#allocation38_spill] sm:$0xff] %v25086_v62  ;;  %v19664_v49 = vpop.f32.mrf.mxu0  ;;  %v25090_v46 = vadd.f32 %v12893_v15, %v12573_v29  ;;  %v12576_v0 = vadd.f32 %v19614_v39, %v24827_v24  ;;  %19915 = vmatprep.mubr.msk.f32.mxu1 %vm371_vm1, %v15091_v48  ;;  %v15096_v25 = vmax.f32 %v15064_v4, %v15032_v18 }
 0x5d0   : > { %v12512_v32 = vpop.f32.mrf.mxu1 }
 0x5d1   : > { %26098 = vst [vmem:[#allocation37_spill] sm:$0xff] %v25090_v46  ;;  %v12903_v42 = vpop.f32.mrf.mxu0  ;;  %v25094_v45 = vadd.f32 %v19664_v49, %v12576_v0  ;;  %v12575_v37 = vadd.f32 %v12512_v32, %v24838_v56 }
 0x5d2   : > { %v19617_v7 = vpop.f32.mrf.mxu1  ;;  %19916 = vmatmul.mubr.msk.f32.gmra.mxu1 %vm371_vm1, %v15092_v1 }
 0x5d3   : > { %26099 = vst [vmem:[#allocation15_spill] sm:$0xff] %v25094_v45  ;;  %v19667_v52 = vpop.f32.mrf.mxu0  ;;  %v25098_v19 = vadd.f32 %v12903_v42, %v12575_v37  ;;  %v12578_v24 = vadd.f32 %v19617_v7, %v24846_v33  ;;  %19918 = vmatprep.mubr.msk.f32.mxu1 %vm371_vm1, %v15093_v22 }
 0x5d4   : > { %v12522_v55 = vpop.f32.mrf.mxu1 }
 0x5d5   : > { %26100 = vst [vmem:[#allocation40_spill] sm:$0xff] %v25098_v19  ;;  %v12913_v48 = vpop.f32.mrf.mxu0  ;;  %v25102_v47 = vadd.f32 %v19667_v52, %v12578_v24  ;;  %v12577_v56 = vadd.f32 %v12522_v55, %v24856_v2 }
 0x5d6   : > { %v19620_v61 = vpop.f32.mrf.mxu1  ;;  %19919 = vmatmul.mubr.msk.f32.gmra.mxu1 %vm371_vm1, %v15094_v53 }
 0x5d7   : > { %26101 = vst [vmem:[#allocation16_spill] sm:$0xff] %v25102_v47  ;;  %v19670_v9 = vpop.f32.mrf.mxu0  ;;  %v25106_v15 = vadd.f32 %v12913_v48, %v12577_v56  ;;  %v12580_v41 = vadd.f32 %v19620_v61, %v24865_v58  ;;  %19921 = vmatprep.mubr.msk.f32.mxu1 %vm371_vm1, %v15095_v17 }
 0x5d8   : > { %v12532_v33 = vpop.f32.mrf.mxu1 }
 0x5d9   : > { %26102 = vst [vmem:[#allocation42_spill] sm:$0xff] %v25106_v15  ;;  %v12923_v34 = vpop.f32.mrf.mxu0  ;;  %v25110_v29 = vadd.f32 %v19670_v9, %v12580_v41  ;;  %v12579_v1 = vadd.f32 %v12532_v33, %v24877_v26 }
 0x5da   : > { %v19623_v39 = vpop.f32.mrf.mxu1  ;;  %19922 = vmatmul.mubr.msk.f32.gmra.mxu1 %vm371_vm1, %v15096_v25 }
 0x5db   : > { %26103 = vst [vmem:[#allocation39_spill] sm:$0xff] %v25110_v29  ;;  %v19673_v49 = vpop.f32.mrf.mxu0  ;;  %v25114_v2 = vadd.f32 %v12923_v34, %v12579_v1  ;;  %v12582_v22 = vadd.f32 %v19623_v39, %v24882_v36 }
 0x5dc   : > { %v12542_v54 = vpop.f32.mrf.mxu1 }
 0x5dd   : > { %26104 = vst [vmem:[#allocation17_spill] sm:$0xff] %v25114_v2  ;;  %v12933_v44 = vpop.f32.mrf.mxu0  ;;  %v25117_v27 = vadd.f32 %v19673_v49, %v12582_v22  ;;  %v12581_v58 = vadd.f32 %v12542_v54, %v24892_v59 }
 0x5de   : > { %v19678_v0 = vpop.f32.mrf.mxu1 }
 0x5df   : > { %26105 = vst [vmem:[#allocation44_spill] sm:$0xff] %v25117_v27  ;;  %v25120_v20 = vpop.f32.mrf.mxu0  ;;  %v25122_v11 = vadd.f32 %v12933_v44, %v12581_v58 }
 0x5e0   : > { %v13173_v26 = vpop.f32.mrf.mxu1 }
 0x5e1   : > { %26106 = vst [vmem:[#allocation41_spill] sm:$0xff] %v25122_v11  ;;  %v25124_v60 = vpop.f32.mrf.mxu0 }
 0x5e2   : > { %v25126_v32 = vpop.f32.mrf.mxu1 }
 0x5e3   : > { %v25128_v42 = vpop.f32.mrf.mxu0 }
 0x5e4   : > { %v25130_v37 = vpop.f32.mrf.mxu1 }
 0x5e5   : > { %v25132_v36 = vpop.f32.mrf.mxu0 }
 0x5e6   : > { %v25134_v7 = vpop.f32.mrf.mxu1 }
 0x5e7   : > { %v25136_v52 = vpop.f32.mrf.mxu0 }
 0x5e8   : > { %v25138_v59 = vpop.f32.mrf.mxu1 }
 0x5e9   : > { %v25140_v53 = vpop.f32.mrf.mxu0 }
 0x5ea   : > { %v25142_v18 = vpop.f32.mrf.mxu1 }
 0x5eb   : > { %v25144_v4 = vpop.f32.mrf.mxu0 }
 0x5ec   : > { %v25146_v24 = vpop.f32.mrf.mxu1 }
 0x5ed   : > { %v25148_v17 = vpop.f32.mrf.mxu0 }
 0x5ee   : > { %v25150_v55 = vpop.f32.mrf.mxu1 }
 0x5ef   : > { %v25152_v48 = vpop.f32.mrf.mxu0 }
 0x5f0   : > { %v25154_v56 = vpop.f32.mrf.mxu1 }
 0x5f1   : > { %v25156_v61 = vpop.f32.mrf.mxu0 }
 0x5f2   : > { %v25158_v9 = vpop.f32.mrf.mxu1 }
 0x5f3   : > { %v25160_v25 = vpop.f32.mrf.mxu0 }
 0x5f4   : > { %v25162_v41 = vpop.f32.mrf.mxu1 }
 0x5f5   : > { %v25164_v33 = vpop.f32.mrf.mxu0 }
 0x5f6   : > { %v25166_v34 = vpop.f32.mrf.mxu1 }
 0x5f7   : > { %v25168_v1 = vpop.f32.mrf.mxu0 }
 0x5f8   : > { %v25170_v39 = vpop.f32.mrf.mxu1 }
 0x5f9   : > { %v25172_v49 = vpop.f32.mrf.mxu0 }
 0x5fa   : > { %v25174_v22 = vpop.f32.mrf.mxu1 }
 0x5fb   : > { %v25176_v54 = vpop.f32.mrf.mxu0 }
 0x5fc   : > { %v25178_v44 = vpop.f32.mrf.mxu1 }
 0x5fd   : > { %v25180_v58 = vpop.f32.mrf.mxu0 }
 0x5fe   : > { %v25182_v11 = vpop.f32.mrf.mxu1 }
 0x5ff   : > { %v25184_v27 = vpop.f32.mrf.mxu0 }
 0x600   : > { %v25186_v2 = vpop.f32.mrf.mxu1 }
 0x601   : > { %v25188_v29 = vpop.f32.mrf.mxu0 }
 0x602   : > { %26107 = vst [vmem:[#allocation43_spill] sm:$0xff] %v25188_v29  ;;  %v25190_v15 = vpop.f32.mrf.mxu1 }
 0x603   : > { %26108 = vst [vmem:[#allocation18_spill] sm:$0xff] %v25190_v15  ;;  %v25192_v47 = vpop.f32.mrf.mxu0 }
 0x604   : > { %26109 = vst [vmem:[#allocation46_spill] sm:$0xff] %v25192_v47  ;;  %v25194_v19 = vpop.f32.mrf.mxu1 }
 0x605   : > { %26110 = vst [vmem:[#allocation45_spill] sm:$0xff] %v25194_v19  ;;  %v25196_v45 = vpop.f32.mrf.mxu0 }
 0x606   : > { %26111 = vst [vmem:[#allocation19_spill] sm:$0xff] %v25196_v45  ;;  %v25198_v46 = vpop.f32.mrf.mxu1 }
 0x607   : > { %26112 = vst [vmem:[#allocation48_spill] sm:$0xff] %v25198_v46  ;;  %v25200_v62 = vpop.f32.mrf.mxu0 }
 0x608   : > { %26113 = vst [vmem:[#allocation20_spill] sm:$0xff] %v25200_v62  ;;  %v25202_v10 = vpop.f32.mrf.mxu1 }
 0x609   : > { %26114 = vst [vmem:[#allocation50_spill] sm:$0xff] %v25202_v10  ;;  %v25204_v50 = vpop.f32.mrf.mxu0 }
 0x60a   : > { %26115 = vst [vmem:[#allocation47_spill] sm:$0xff] %v25204_v50  ;;  %v25206_v21 = vpop.f32.mrf.mxu1 }
 0x60b   : > { %26116 = vst [vmem:[#allocation21_spill] sm:$0xff] %v25206_v21  ;;  %v25208_v23 = vpop.f32.mrf.mxu0 }
 0x60c   : > { %26117 = vst [vmem:[#allocation49_spill] sm:$0xff] %v25208_v23  ;;  %v25210_v29 = vpop.f32.mrf.mxu1 }
 0x60d   : > { %26118 = vst [vmem:[#allocation51_spill] sm:$0xff] %v25210_v29  ;;  %v25212_v15 = vpop.f32.mrf.mxu0 }
 0x60e   : > { %26119 = vst [vmem:[#allocation22_spill] sm:$0xff] %v25212_v15  ;;  %v25214_v47 = vpop.f32.mrf.mxu1 }
 0x60f   : > { %26120 = vst [vmem:[#allocation23_spill] sm:$0xff] %v25214_v47  ;;  %v25216_v19 = vpop.f32.mrf.mxu0 }
 0x610   : > { %26121 = vst [vmem:[#allocation52_spill] sm:$0xff] %v25216_v19  ;;  %v25218_v45 = vpop.f32.mrf.mxu1  ;;  %v13333_v19 = vadd.f32 %v19678_v0, %v24900_v5  ;;  %v13334_v5 = vadd.f32 %v25130_v37, %v24928_v51 }
 0x611   : > { %26122 = vst [vmem:[#allocation8_spill] sm:$0xff] %v25218_v45  ;;  %v25220_v46 = vpop.f32.mrf.mxu0 }
 0x612   : > { %26123 = vst [vmem:[#allocation26_spill] sm:$0xff] %v25220_v46  ;;  %v25222_v62 = vpop.f32.mrf.mxu1 }
 0x613   : > { %26124 = vst [vmem:[#allocation24_spill] sm:$0xff] %v25222_v62  ;;  %v25224_v10 = vpop.f32.mrf.mxu0 }
 0x614   : > { %26125 = vst [vmem:[#allocation9_spill] sm:$0xff] %v25224_v10  ;;  %v25226_v50 = vpop.f32.mrf.mxu1  ;;  %v13332_v10 = vadd.f32 %v13173_v26, %v24913_v28  ;;  %v13337_v28 = vadd.f32 %v25134_v7, %v24936_v40  ;;  %v25259_v26 = vld [vmem:[%s25664_s6] ss:$0 sm:$0xff] }
 0x615   : > { %26126 = vst [vmem:[#allocation28_spill] sm:$0xff] %v25226_v50  ;;  %v25228_v21 = vpop.f32.mrf.mxu0 }
 0x616   : > { %26127 = vst [vmem:[#allocation25_spill] sm:$0xff] %v25228_v21  ;;  %v25230_v23 = vpop.f32.mrf.mxu1  ;;  %v13723_v21 = vadd.f32 %v25120_v20, %v13333_v19  ;;  %v13727_v7 = vadd.f32 %v25136_v52, %v13337_v28 }
 0x617   : > { %26128 = vst [vmem:[#allocation27_spill] sm:$0xff] %v25230_v23  ;;  %v25232_v29 = vpop.f32.mrf.mxu0 }
 0x618   : > { %26129 = vst [vmem:[#allocation10_spill] sm:$0xff] %v25232_v29  ;;  %v25234_v15 = vpop.f32.mrf.mxu1  ;;  %v13335_v29 = vadd.f32 %v25126_v32, %v24918_v12 }
 0x619   : > { %26130 = vst [vmem:[#allocation30_spill] sm:$0xff] %v25234_v15  ;;  %v25236_v47 = vpop.f32.mrf.mxu0 }
 0x61a   : > { %26131 = vst [vmem:[#allocation29_spill] sm:$0xff] %v25236_v47  ;;  %v25239_v45 = vpop.f32.mrf.mxu1  ;;  %v13722_v47 = vadd.f32 %v25124_v60, %v13332_v10  ;;  %v13725_v12 = vadd.f32 %v25128_v42, %v13335_v29  ;;  %v13336_v10 = vadd.f32 %v25138_v59, %v24949_v38 }
 0x61b   : > { %v25241_v46 = vpop.f32.mrf.mxu0 }
 0x61c   : > { %26132 = vst [vmem:[#allocation11_spill] sm:$0xff] %v25241_v46  ;;  %v25244_v62 = vpop.f32.mrf.mxu1  ;;  %v13339_v46 = vadd.f32 %v25142_v18, %v24954_v3  ;;  %v13726_v59 = vadd.f32 %v25140_v53, %v13336_v10  ;;  %v13340_v10 = vadd.f32 %v25154_v56, %v24985_v13 }
 0x61d   : > { %26133 = vst [vmem:[#allocation32_spill] sm:$0xff] %v25244_v62  ;;  %v25246_v50 = vpop.f32.mrf.mxu0 }
 0x61e   : > { %26134 = vst [vmem:[#allocation12_spill] sm:$0xff] %v25246_v50  ;;  %v19778_v15 = vpop.f32.mrf.mxu1  ;;  %v13729_v3 = vadd.f32 %v25144_v4, %v13339_v46 }
 0x61f   : > { %v19828_v23 = vpop.f32.mrf.mxu0  ;;  %v14113_v0 = vadd.f32 %v19778_v15, %v13723_v21  ;;  %v13724_v21 = vadd.f32 %v25132_v36, %v13334_v5  ;;  %v13338_v36 = vadd.f32 %v25146_v24, %v24964_v63 }
 0x620   : > { %v13953_v19 = vpop.f32.mrf.mxu1 }
 0x621   : > { %v14343_v20 = vpop.f32.mrf.mxu0  ;;  %v14503_v32 = vadd.f32 %v19828_v23, %v14113_v0  ;;  %v14112_v50 = vadd.f32 %v13953_v19, %v13722_v47 }
 0x622   : > { %v19781_v60 = vpop.f32.mrf.mxu1 }
 0x623   : > { %v19831_v51 = vpop.f32.mrf.mxu0  ;;  %v14542_v40 = vadd.f32 %v25259_v26, %v14503_v32  ;;  %v14502_v15 = vadd.f32 %v14343_v20, %v14112_v50  ;;  %v14115_v37 = vadd.f32 %v19781_v60, %v13725_v12  ;;  %v13728_v32 = vadd.f32 %v25148_v17, %v13338_v36 }
 0x624   : > { %v13963_v62 = vpop.f32.mrf.mxu1  ;;  %v13345_v36 = vadd.f32 %v25166_v34, %v25008_v30 }
 0x625   : > { %v14353_v29 = vpop.f32.mrf.mxu0  ;;  %v14574_v23 = vmax.f32 %v14542_v40, 0.0  ;;  %v14541_v47 = vadd.f32 %v25259_v26, %v14502_v15  ;;  %v14505_v42 = vadd.f32 %v19831_v51, %v14115_v37  ;;  %v14114_v38 = vadd.f32 %v13963_v62, %v13724_v21 }
 0x626   : > { %v19784_v5 = vpop.f32.mrf.mxu1  ;;  %v13341_v62 = vadd.f32 %v25150_v55, %v24972_v57  ;;  %v13343_v40 = vadd.f32 %v25158_v9, %v24990_v14 }
 0x627   : > { %v19834_v50 = vpop.f32.mrf.mxu0  ;;  %v14573_v0 = vmax.f32 %v14541_v47, 0.0  ;;  %v14544_v52 = vadd.f32 %v25259_v26, %v14505_v42  ;;  %v14504_v28 = vadd.f32 %v14353_v29, %v14114_v38  ;;  %v14117_v19 = vadd.f32 %v19784_v5, %v13727_v7  ;;  %14639 = vrot.lane.b32.xlu1 %v14574_v23, %s20040_s17 }
 0x628   : > { %v13973_v18 = vpop.f32.mrf.mxu1  ;;  %v13731_v21 = vadd.f32 %v25152_v48, %v13341_v62  ;;  %v13730_v29 = vadd.f32 %v25156_v61, %v13340_v10  ;;  %v13342_v23 = vadd.f32 %v25162_v41, %v25000_v31 }
 0x629   : > { %v14363_v53 = vpop.f32.mrf.mxu0  ;;  %v14576_v20 = vmax.f32 %v14544_v52, 0.0  ;;  %v14543_v63 = vadd.f32 %v25259_v26, %v14504_v28  ;;  %v14507_v24 = vadd.f32 %v19834_v50, %v14117_v19  ;;  %v14116_v12 = vadd.f32 %v13973_v18, %v13726_v59  ;;  %14637 = vrot.lane.b32.xlu0 %v14573_v0, %s20040_s17 }
 0x62a   : > { %v19787_v60 = vpop.f32.mrf.mxu1  ;;  %v13733_v59 = vadd.f32 %v25160_v25, %v13343_v40  ;;  %v13732_v52 = vadd.f32 %v25164_v33, %v13342_v23  ;;  %v13344_v28 = vadd.f32 %v25170_v39, %v25021_v8  ;;  %v13735_v18 = vadd.f32 %v25168_v1, %v13345_v36 }
 0x62b   : > { %v19837_v51 = vpop.f32.mrf.mxu0  ;;  %v14575_v46 = vmax.f32 %v14543_v63, 0.0  ;;  %v14546_v4 = vadd.f32 %v25259_v26, %v14507_v24  ;;  %v14506_v57 = vadd.f32 %v14363_v53, %v14116_v12  ;;  %v14119_v55 = vadd.f32 %v19787_v60, %v13729_v3  ;;  %14643 = vrot.lane.b32.xlu1 %v14576_v20, %s20040_s17 }
 0x62c   : > { %v13983_v15 = vpop.f32.mrf.mxu1  ;;  %v13347_v53 = vadd.f32 %v25174_v22, %v25026_v6  ;;  %v13734_v12 = vadd.f32 %v25172_v49, %v13344_v28  ;;  %v26141_v28 = vld [vmem:[#allocation35_spill] sm:$0xff] }
 0x62d   : > { %v14373_v37 = vpop.f32.mrf.mxu0  ;;  %v14578_v17 = vmax.f32 %v14546_v4, 0.0  ;;  %v14545_v7 = vadd.f32 %v25259_v26, %v14506_v57  ;;  %v14509_v13 = vadd.f32 %v19837_v51, %v14119_v55  ;;  %v14118_v56 = vadd.f32 %v13983_v15, %v13728_v32  ;;  %14641 = vrot.lane.b32.xlu0 %v14575_v46, %s20040_s17 }
 0x62e   : > { %v19790_v47 = vpop.f32.mrf.mxu1  ;;  %v13346_v32 = vadd.f32 %v25178_v44, %v25036_v43  ;;  %v13737_v46 = vadd.f32 %v25176_v54, %v13347_v53  ;;  %v13349_v4 = vadd.f32 %v25182_v11, %v25044_v16  ;;  %v13348_v15 = vadd.f32 %v25186_v2, %v25057_v35 }
 0x62f   : > { %v19840_v42 = vpop.f32.mrf.mxu0  ;;  %v14577_v48 = vmax.f32 %v14545_v7, 0.0  ;;  %v14548_v38 = vadd.f32 %v25259_v26, %v14509_v13  ;;  %v14508_v14 = vadd.f32 %v14373_v37, %v14118_v56  ;;  %v14121_v9 = vadd.f32 %v19790_v47, %v13731_v21  ;;  %14647 = vrot.lane.b32.xlu1 %v14578_v17, %s20040_s17  ;;  %v26135_v56 = vld [vmem:[#allocation36_spill] sm:$0xff] }
 0x630   : > { %v13993_v5 = vpop.f32.mrf.mxu1  ;;  %v13736_v40 = vadd.f32 %v25180_v58, %v13346_v32  ;;  %v13739_v13 = vadd.f32 %v25184_v27, %v13349_v4 }
 0x631   : > { %v14383_v50 = vpop.f32.mrf.mxu0  ;;  %v14580_v61 = vmax.f32 %v14548_v38, 0.0  ;;  %v14547_v0 = vadd.f32 %v25259_v26, %v14508_v14  ;;  %v14511_v31 = vadd.f32 %v19840_v42, %v14121_v9  ;;  %v14120_v41 = vadd.f32 %v13993_v5, %v13730_v29  ;;  %14645 = vrot.lane.b32.xlu0 %v14577_v48, %s20040_s17  ;;  %v26136_v29 = vld [vmem:[#allocation18_spill] sm:$0xff]  ;;  %v26137_v38 = vld [vmem:[#allocation43_spill] sm:$0xff]  ;;  %v26138_v9 = vld [vmem:[#allocation33_spill] sm:$0xff] }
 0x632   : > { %v19793_v19 = vpop.f32.mrf.mxu1  ;;  %v13351_v23 = vadd.f32 %v26136_v29, %v26135_v56  ;;  %v13738_v14 = vadd.f32 %v26137_v38, %v13348_v15 }
 0x633   : > { %v19843_v3 = vpop.f32.mrf.mxu0  ;;  %v14579_v25 = vmax.f32 %v14547_v0, 0.0  ;;  %v14550_v62 = vadd.f32 %v25259_v26, %v14511_v31  ;;  %v14510_v30 = vadd.f32 %v14383_v50, %v14120_v41  ;;  %v14123_v34 = vadd.f32 %v19793_v19, %v13733_v59  ;;  %14651 = vrot.lane.b32.xlu1 %v14580_v61, %s20040_s17  ;;  %v26139_v59 = vld [vmem:[#allocation45_spill] sm:$0xff]  ;;  %v26140_v41 = vld [vmem:[#allocation46_spill] sm:$0xff]  ;;  %v26142_v19 = vld [vmem:[#allocation48_spill] sm:$0xff] }
 0x634   : > { %v14003_v20 = vpop.f32.mrf.mxu1  ;;  %v13350_v36 = vadd.f32 %v26139_v59, %v26138_v9 }
 0x635   : > { %v14393_v63 = vpop.f32.mrf.mxu0  ;;  %v14582_v33 = vmax.f32 %v14550_v62, 0.0  ;;  %v14549_v24 = vadd.f32 %v25259_v26, %v14510_v30  ;;  %v14513_v8 = vadd.f32 %v19843_v3, %v14123_v34  ;;  %v14122_v39 = vadd.f32 %v14003_v20, %v13732_v52  ;;  %14649 = vrot.lane.b32.xlu0 %v14579_v25, %s20040_s17  ;;  %v26143_v20 = vld [vmem:[#allocation19_spill] sm:$0xff] }
 0x636   : > { %v19796_v10 = vpop.f32.mrf.mxu1  ;;  %v13741_v52 = vadd.f32 %v26140_v41, %v13351_v23  ;;  %v13353_v3 = vadd.f32 %v26142_v19, %v26141_v28  ;;  %v26152_v23 = vld [vmem:[#allocation49_spill] sm:$0xff] }
 0x637   : > { %v19846_v60 = vpop.f32.mrf.mxu0  ;;  %v14581_v1 = vmax.f32 %v14549_v24, 0.0  ;;  %v14552_v51 = vadd.f32 %v25259_v26, %v14513_v8  ;;  %v14512_v6 = vadd.f32 %v14393_v63, %v14122_v39  ;;  %v14125_v22 = vadd.f32 %v19796_v10, %v13735_v18  ;;  %14655 = vrot.lane.b32.xlu1 %v14582_v33, %s20040_s17  ;;  %v26144_v33 = vld [vmem:[#allocation14_spill] sm:$0xff] }
 0x638   : > { %v14013_v57 = vpop.f32.mrf.mxu1  ;;  %v13740_v63 = vadd.f32 %v26143_v20, %v13350_v36  ;;  %v26145_v24 = vld [vmem:[#allocation50_spill] sm:$0xff] }
 0x639   : > { %v14403_v55 = vpop.f32.mrf.mxu0  ;;  %v14584_v49 = vmax.f32 %v14552_v51, 0.0  ;;  %v14551_v21 = vadd.f32 %v25259_v26, %v14512_v6  ;;  %v14515_v43 = vadd.f32 %v19846_v60, %v14125_v22  ;;  %v14124_v44 = vadd.f32 %v14013_v57, %v13734_v12  ;;  %14653 = vrot.lane.b32.xlu0 %v14581_v1, %s20040_s17  ;;  %v26146_v51 = vld [vmem:[#allocation20_spill] sm:$0xff]  ;;  %v26147_v22 = vld [vmem:[#allocation38_spill] sm:$0xff] }
 0x63a   : > { %v19799_v37 = vpop.f32.mrf.mxu1  ;;  %v13352_v8 = vadd.f32 %v26145_v24, %v26144_v33  ;;  %v13743_v6 = vadd.f32 %v26146_v51, %v13353_v3  ;;  %v26155_v36 = vld [vmem:[#allocation22_spill] sm:$0xff]  ;;  %v26158_v3 = vld [vmem:[#allocation52_spill] sm:$0xff] }
 0x63b   : > { %v19849_v17 = vpop.f32.mrf.mxu0  ;;  %v14583_v54 = vmax.f32 %v14551_v21, 0.0  ;;  %v14554_v7 = vadd.f32 %v25259_v26, %v14515_v43  ;;  %v14514_v16 = vadd.f32 %v14403_v55, %v14124_v44  ;;  %v14127_v11 = vadd.f32 %v19799_v37, %v13737_v46  ;;  %14659 = vrot.lane.b32.xlu1 %v14584_v49, %s20040_s17  ;;  %v26148_v46 = vld [vmem:[#allocation21_spill] sm:$0xff] }
 0x63c   : > { %v14023_v47 = vpop.f32.mrf.mxu1  ;;  %v13355_v4 = vadd.f32 %v26148_v46, %v26147_v22  ;;  %v26150_v37 = vld [vmem:[#allocation37_spill] sm:$0xff] }
 0x63d   : > { %v14413_v42 = vpop.f32.mrf.mxu0  ;;  %v14586_v58 = vmax.f32 %v14554_v7, 0.0  ;;  %v14553_v48 = vadd.f32 %v25259_v26, %v14514_v16  ;;  %v14517_v35 = vadd.f32 %v19849_v17, %v14127_v11  ;;  %v14126_v2 = vadd.f32 %v14023_v47, %v13736_v40  ;;  %14657 = vrot.lane.b32.xlu0 %v14583_v54, %s20040_s17  ;;  %v26149_v40 = vld [vmem:[#allocation47_spill] sm:$0xff] }
 0x63e   : > { %v19802_v5 = vpop.f32.mrf.mxu1  ;;  %v13742_v15 = vadd.f32 %v26149_v40, %v13352_v8  ;;  %v26151_v17 = vld [vmem:[#allocation51_spill] sm:$0xff]  ;;  %v13745_v47 = vadd.f32 %v26152_v23, %v13355_v4  ;;  %v26161_v8 = vld [vmem:[#allocation26_spill] sm:$0xff]  ;;  %v26164_v4 = vld [vmem:[#allocation9_spill] sm:$0xff] }
 0x63f   : > { %v19852_v50 = vpop.f32.mrf.mxu0  ;;  %v14585_v27 = vmax.f32 %v14553_v48, 0.0  ;;  %v14556_v61 = vadd.f32 %v25259_v26, %v14517_v35  ;;  %v14516_v0 = vadd.f32 %v14413_v42, %v14126_v2  ;;  %v14129_v31 = vadd.f32 %v19802_v5, %v13739_v13  ;;  %14663 = vrot.lane.b32.xlu1 %v14586_v58, %s20040_s17  ;;  %v26153_v42 = vld [vmem:[#allocation15_spill] sm:$0xff] }
 0x640   : > { %v14033_v25 = vpop.f32.mrf.mxu1  ;;  %v13354_v54 = vadd.f32 %v26151_v17, %v26150_v37  ;;  %v26154_v58 = vld [vmem:[#allocation23_spill] sm:$0xff] }
 0x641   : > { %v14423_v62 = vpop.f32.mrf.mxu0  ;;  %v14588_v30 = vmax.f32 %v14556_v61, 0.0  ;;  %v14555_v34 = vadd.f32 %v25259_v26, %v14516_v0  ;;  %v14519_v18 = vadd.f32 %v19852_v50, %v14129_v31  ;;  %v14128_v53 = vadd.f32 %v14033_v25, %v13738_v14  ;;  %14661 = vrot.lane.b32.xlu0 %v14585_v27, %s20040_s17  ;;  %v26156_v50 = vld [vmem:[#allocation40_spill] sm:$0xff] }
 0x642   : > { %v19805_v39 = vpop.f32.mrf.mxu1  ;;  %v13357_v48 = vadd.f32 %v26154_v58, %v26153_v42  ;;  %v13744_v5 = vadd.f32 %v26155_v36, %v13354_v54  ;;  %v26157_v27 = vld [vmem:[#allocation8_spill] sm:$0xff]  ;;  %v26167_v54 = vld [vmem:[#allocation25_spill] sm:$0xff] }
 0x643   : > { %v19855_v12 = vpop.f32.mrf.mxu0  ;;  %v14587_v32 = vmax.f32 %v14555_v34, 0.0  ;;  %v14558_v10 = vadd.f32 %v25259_v26, %v14519_v18  ;;  %v14518_v60 = vadd.f32 %v14423_v62, %v14128_v53  ;;  %v14131_v1 = vadd.f32 %v19805_v39, %v13741_v52  ;;  %14667 = vrot.lane.b32.xlu1 %v14588_v30, %s20040_s17  ;;  %v26159_v62 = vld [vmem:[#allocation16_spill] sm:$0xff] }
 0x644   : > { %v14043_v57 = vpop.f32.mrf.mxu1  ;;  %v13356_v61 = vadd.f32 %v26157_v27, %v26156_v50  ;;  %v13747_v25 = vadd.f32 %v26158_v3, %v13357_v48  ;;  %v26160_v30 = vld [vmem:[#allocation24_spill] sm:$0xff]  ;;  %v26170_v48 = vld [vmem:[#allocation10_spill] sm:$0xff]  ;;  %v26172_v27 = vld [vmem:[#allocation29_spill] sm:$0xff] }
 0x645   : > { %v14433_v55 = vpop.f32.mrf.mxu0  ;;  %v14590_v49 = vmax.f32 %v14558_v10, 0.0  ;;  %v14557_v21 = vadd.f32 %v25259_v26, %v14518_v60  ;;  %v14521_v43 = vadd.f32 %v19855_v12, %v14131_v1  ;;  %v14130_v44 = vadd.f32 %v14043_v57, %v13740_v63  ;;  %14665 = vrot.lane.b32.xlu0 %v14587_v32, %s20040_s17  ;;  %v26162_v12 = vld [vmem:[#allocation42_spill] sm:$0xff]  ;;  %v26163_v32 = vld [vmem:[#allocation28_spill] sm:$0xff] }
 0x646   : > { %v19808_v7 = vpop.f32.mrf.mxu1  ;;  %v13359_v34 = vadd.f32 %v26160_v30, %v26159_v62  ;;  %v13746_v39 = vadd.f32 %v26161_v8, %v13356_v61  ;;  %v13358_v10 = vadd.f32 %v26163_v32, %v26162_v12  ;;  %v26175_v62 = vld [vmem:[#allocation11_spill] sm:$0xff] }
 0x647   : > { %v19858_v16 = vpop.f32.mrf.mxu0  ;;  %v14589_v11 = vmax.f32 %v14557_v21, 0.0  ;;  %v14560_v13 = vadd.f32 %v25259_v26, %v14521_v43  ;;  %v14520_v56 = vadd.f32 %v14433_v55, %v14130_v44  ;;  %v14133_v29 = vadd.f32 %v19808_v7, %v13743_v6  ;;  %14671 = vrot.lane.b32.xlu1 %v14590_v49, %s20040_s17  ;;  %v26165_v55 = vld [vmem:[#allocation39_spill] sm:$0xff] }
 0x648   : > { %v14053_v35 = vpop.f32.mrf.mxu1  ;;  %v13749_v57 = vadd.f32 %v26164_v4, %v13359_v34  ;;  %v26166_v49 = vld [vmem:[#allocation27_spill] sm:$0xff]  ;;  %v13748_v7 = vadd.f32 %v26167_v54, %v13358_v10 }
 0x649   : > { %v14443_v2 = vpop.f32.mrf.mxu0  ;;  %v14592_v38 = vmax.f32 %v14560_v13, 0.0  ;;  %v14559_v14 = vadd.f32 %v25259_v26, %v14520_v56  ;;  %v14523_v9 = vadd.f32 %v19858_v16, %v14133_v29  ;;  %v14132_v59 = vadd.f32 %v14053_v35, %v13742_v15  ;;  %14669 = vrot.lane.b32.xlu0 %v14589_v11, %s20040_s17  ;;  %v26168_v16 = vld [vmem:[#allocation17_spill] sm:$0xff]  ;;  %v26169_v11 = vld [vmem:[#allocation30_spill] sm:$0xff] }
 0x64a   : > { %v19811_v0 = vpop.f32.mrf.mxu1  ;;  %v13361_v21 = vadd.f32 %v26166_v49, %v26165_v55  ;;  %v13360_v13 = vadd.f32 %v26169_v11, %v26168_v16 }
 0x64b   : > { %v19861_v31 = vpop.f32.mrf.mxu0  ;;  %v14591_v41 = vmax.f32 %v14559_v14, 0.0  ;;  %v14562_v52 = vadd.f32 %v25259_v26, %v14523_v9  ;;  %v14522_v28 = vadd.f32 %v14443_v2, %v14132_v59  ;;  %v14135_v19 = vadd.f32 %v19811_v0, %v13745_v47  ;;  %14675 = vrot.lane.b32.xlu1 %v14592_v38, %s20040_s17  ;;  %v26171_v2 = vld [vmem:[#allocation44_spill] sm:$0xff]  ;;  %v26173_v0 = vld [vmem:[#allocation41_spill] sm:$0xff] }
 0x64c   : > { %v14063_v18 = vpop.f32.mrf.mxu1  ;;  %v13751_v35 = vadd.f32 %v26170_v48, %v13361_v21  ;;  %v13363_v38 = vadd.f32 %v25239_v45, %v26171_v2  ;;  %v13750_v61 = vadd.f32 %v26172_v27, %v13360_v13 }
 0x64d   : > { %v14453_v53 = vpop.f32.mrf.mxu0  ;;  %v14594_v20 = vmax.f32 %v14562_v52, 0.0  ;;  %v14561_v63 = vadd.f32 %v25259_v26, %v14522_v28  ;;  %v14525_v33 = vadd.f32 %v19861_v31, %v14135_v19  ;;  %v14134_v24 = vadd.f32 %v14063_v18, %v13744_v5  ;;  %14673 = vrot.lane.b32.xlu0 %v14591_v41, %s20040_s17  ;;  %v26174_v31 = vld [vmem:[#allocation32_spill] sm:$0xff] }
 0x64e   : > { %v19814_v60 = vpop.f32.mrf.mxu1  ;;  %v13362_v41 = vadd.f32 %v26174_v31, %v26173_v0  ;;  %v13753_v30 = vadd.f32 %v26175_v62, %v13363_v38 }
 0x64f   : > { %v19864_v1 = vpop.f32.mrf.mxu0  ;;  %v14593_v51 = vmax.f32 %v14561_v63, 0.0  ;;  %v14564_v6 = vadd.f32 %v25259_v26, %v14525_v33  ;;  %v14524_v22 = vadd.f32 %v14453_v53, %v14134_v24  ;;  %v14137_v46 = vadd.f32 %v19814_v60, %v13747_v25  ;;  %14679 = vrot.lane.b32.xlu1 %v14594_v20, %s20040_s17  ;;  %v26176_v24 = vld [vmem:[#allocation12_spill] sm:$0xff] }
 0x650   : > { %v14073_v43 = vpop.f32.mrf.mxu1  ;;  %v13752_v8 = vadd.f32 %v26176_v24, %v13362_v41 }
 0x651   : > { %v14463_v44 = vpop.f32.mrf.mxu0  ;;  %v14596_v40 = vmax.f32 %v14564_v6, 0.0  ;;  %v14563_v15 = vadd.f32 %v25259_v26, %v14524_v22  ;;  %v14527_v37 = vadd.f32 %v19864_v1, %v14137_v46  ;;  %v14136_v17 = vadd.f32 %v14073_v43, %v13746_v39  ;;  %14677 = vrot.lane.b32.xlu0 %v14593_v51, %s20040_s17  ;;  %v25404_v6 = vld [vmem:[%s25666_s8] ss:$0 sm:$0xff] }
 0x652   : > { %v19817_v56 = vpop.f32.mrf.mxu1 }
 0x653   : > { %v19867_v29 = vpop.f32.mrf.mxu0  ;;  %v14595_v23 = vmax.f32 %v14563_v15, 0.0  ;;  %v14566_v47 = vadd.f32 %v25259_v26, %v14527_v37  ;;  %v14526_v42 = vadd.f32 %v14463_v44, %v14136_v17  ;;  %v14139_v58 = vadd.f32 %v19817_v56, %v13749_v57  ;;  %14683 = vrot.lane.b32.xlu1 %v14596_v40, %s20040_s17 }
 0x654   : > { %v14083_v14 = vpop.f32.mrf.mxu1 }
 0x655   : > { %v14473_v9 = vpop.f32.mrf.mxu0  ;;  %v14598_v59 = vmax.f32 %v14566_v47, 0.0  ;;  %v14565_v36 = vadd.f32 %v25259_v26, %v14526_v42  ;;  %v14529_v5 = vadd.f32 %v19867_v29, %v14139_v58  ;;  %v14138_v50 = vadd.f32 %v14083_v14, %v13748_v7  ;;  %14681 = vrot.lane.b32.xlu0 %v14595_v23, %s20040_s17 }
 0x656   : > { %v19820_v52 = vpop.f32.mrf.mxu1 }
 0x657   : > { %v19870_v28 = vpop.f32.mrf.mxu0  ;;  %v14597_v19 = vmax.f32 %v14565_v36, 0.0  ;;  %v14568_v3 = vadd.f32 %v25259_v26, %v14529_v5  ;;  %v14528_v45 = vadd.f32 %v14473_v9, %v14138_v50  ;;  %v14141_v25 = vadd.f32 %v19820_v52, %v13751_v35  ;;  %14687 = vrot.lane.b32.xlu1 %v14598_v59, %s20040_s17 }
 0x658   : > { %v14093_v34 = vpop.f32.mrf.mxu1 }
 0x659   : > { %v14483_v18 = vpop.f32.mrf.mxu0  ;;  %v14600_v53 = vmax.f32 %v14568_v3, 0.0  ;;  %v14567_v20 = vadd.f32 %v25259_v26, %v14528_v45  ;;  %v14531_v63 = vadd.f32 %v19870_v28, %v14141_v25  ;;  %v14140_v33 = vadd.f32 %v14093_v34, %v13750_v61  ;;  %14685 = vrot.lane.b32.xlu0 %v14597_v19, %s20040_s17 }
 0x65a   : > { %v19823_v39 = vpop.f32.mrf.mxu1 }
 0x65b   : > { %v19873_v12 = vpop.f32.mrf.mxu0  ;;  %v14599_v32 = vmax.f32 %v14567_v20, 0.0  ;;  %v14570_v10 = vadd.f32 %v25259_v26, %v14531_v63  ;;  %v14530_v60 = vadd.f32 %v14483_v18, %v14140_v33  ;;  %v14143_v1 = vadd.f32 %v19823_v39, %v13753_v30  ;;  %14691 = vrot.lane.b32.xlu1 %v14600_v53, %s20040_s17 }
 0x65c   : > { %v14103_v51 = vpop.f32.mrf.mxu1 }
 0x65d   : > { %v14602_v22 = vmax.f32 %v14570_v10, 0.0  ;;  %v14569_v46 = vadd.f32 %v25259_v26, %v14530_v60  ;;  %v14533_v4 = vadd.f32 %v19873_v12, %v14143_v1  ;;  %v14142_v57 = vadd.f32 %v14103_v51, %v13752_v8  ;;  %14689 = vrot.lane.b32.xlu0 %v14599_v32, %s20040_s17  ;;  %v14493_v55 = vpop.f32.mrf.mxu0 }
 0x65e   : > { %v19878_v49 = vpop.f32.mrf.mxu1 }
 0x65f   : > { %v14601_v21 = vmax.f32 %v14569_v46, 0.0  ;;  %v14572_v43 = vadd.f32 %v25259_v26, %v14533_v4  ;;  %v14532_v44 = vadd.f32 %v14493_v55, %v14142_v57  ;;  %14695 = vrot.lane.b32.xlu1 %v14602_v22, %s20040_s17  ;;  %v15276_v40 = vadd.f32 %v19878_v49, %v25404_v6 }
 0x660   : > { %v15270_v15 = vpop.f32.mrf.mxu1 }
 0x661   : > { %v14604_v37 = vmax.f32 %v14572_v43, 0.0  ;;  %v14571_v17 = vadd.f32 %v25259_v26, %v14532_v44  ;;  %14693 = vrot.lane.b32.xlu0 %v14601_v21, %s20040_s17  ;;  %v15430_v16 = vmax.f32 %v15276_v40, 0.0  ;;  %v15271_v11 = vadd.f32 %v25404_v6, %v15270_v15 }
 0x662   : > { %v19881_v54 = vpop.f32.mrf.mxu1 }
 0x663   : > { %v14603_v7 = vmax.f32 %v14571_v17, 0.0  ;;  %14699 = vrot.lane.b32.xlu1 %v14604_v37, %s20040_s17  ;;  %v15286_v13 = vadd.f32 %v19881_v54, %v25404_v6  ;;  %v15429_v23 = vmax.f32 %v15271_v11, 0.0 }
 0x664   : > { %v15280_v56 = vpop.f32.mrf.mxu1 }
 0x665   : > { %14697 = vrot.lane.b32.xlu0 %v14603_v7, %s20040_s17  ;;  %v15432_v47 = vmax.f32 %v15286_v13, 0.0  ;;  %v15281_v42 = vadd.f32 %v25404_v6, %v15280_v56  ;;  %s19973_s17 = scalar_lea.vmem %s25611_s26, 4096 }
 0x666   : > { %v19884_v29 = vpop.f32.mrf.mxu1  ;;  %p19974_p11 = scmp.ne.s32.totalorder %s25611_s26, %s19973_s17 }
 0x667   : > { %15495 = vrot.lane.b32.xlu1 %v15430_v16, %s20041_s23  ;;  %v15296_v26 = vadd.f32 %v19884_v29, %v25404_v6  ;;  %v15431_v35 = vmax.f32 %v15281_v42, 0.0 }
 0x668   : > { %v15290_v58 = vpop.f32.mrf.mxu1  ;;  %p19975_p12 = pnand %p19974_p11, %p20132_p5 }
 0x669   : > { %15493 = vrot.lane.b32.xlu0 %v15429_v23, %s20041_s23  ;;  %v15434_v2 = vmax.f32 %v15296_v26, 0.0  ;;  %v15291_v38 = vadd.f32 %v25404_v6, %v15290_v58 }
 0x66a   : > { %v19887_v48 = vpop.f32.mrf.mxu1  ;;  %p19976_p13 = pneg %p19975_p12 }
 0x66b   : > { %15499 = vrot.lane.b32.xlu1 %v15432_v47, %s20041_s23  ;;  %v15306_v14 = vadd.f32 %v19887_v48, %v25404_v6  ;;  %v15433_v36 = vmax.f32 %v15291_v38, 0.0 }
 0x66c   : > { %v15300_v9 = vpop.f32.mrf.mxu1 }
 0x66d   : > { %15497 = vrot.lane.b32.xlu0 %v15431_v35, %s20041_s23  ;;  %v15436_v5 = vmax.f32 %v15306_v14, 0.0  ;;  %v15301_v50 = vadd.f32 %v25404_v6, %v15300_v9 }
 0x66e   : > { %v19890_v59 = vpop.f32.mrf.mxu1 }
 0x66f   : > { %15503 = vrot.lane.b32.xlu1 %v15434_v2, %s20041_s23  ;;  %v15316_v27 = vadd.f32 %v19890_v59, %v25404_v6  ;;  %v15435_v31 = vmax.f32 %v15301_v50, 0.0 }
 0x670   : > { %v15310_v61 = vpop.f32.mrf.mxu1 }
 0x671   : > { %15501 = vrot.lane.b32.xlu0 %v15433_v36, %s20041_s23  ;;  %v15438_v41 = vmax.f32 %v15316_v27, 0.0  ;;  %v15311_v52 = vadd.f32 %v25404_v6, %v15310_v61 }
 0x672   : > { %v19893_v0 = vpop.f32.mrf.mxu1 }
 0x673   : > { %15507 = vrot.lane.b32.xlu1 %v15436_v5, %s20041_s23  ;;  %v15326_v28 = vadd.f32 %v19893_v0, %v25404_v6  ;;  %v15437_v45 = vmax.f32 %v15311_v52, 0.0 }
 0x674   : > { %v15320_v19 = vpop.f32.mrf.mxu1 }
 0x675   : > { %15505 = vrot.lane.b32.xlu0 %v15435_v31, %s20041_s23  ;;  %v15440_v25 = vmax.f32 %v15326_v28, 0.0  ;;  %v15321_v62 = vadd.f32 %v25404_v6, %v15320_v19 }
 0x676   : > { %v19896_v3 = vpop.f32.mrf.mxu1 }
 0x677   : > { %15511 = vrot.lane.b32.xlu1 %v15438_v41, %s20041_s23  ;;  %v15336_v30 = vadd.f32 %v19896_v3, %v25404_v6  ;;  %v15439_v53 = vmax.f32 %v15321_v62, 0.0 }
 0x678   : > { %v15330_v34 = vpop.f32.mrf.mxu1 }
 0x679   : > { %15509 = vrot.lane.b32.xlu0 %v15437_v45, %s20041_s23  ;;  %v15442_v20 = vmax.f32 %v15336_v30, 0.0  ;;  %v15331_v63 = vadd.f32 %v25404_v6, %v15330_v34 }
 0x67a   : > { %v19899_v18 = vpop.f32.mrf.mxu1 }
 0x67b   : > { %15515 = vrot.lane.b32.xlu1 %v15440_v25, %s20041_s23  ;;  %v15346_v33 = vadd.f32 %v19899_v18, %v25404_v6  ;;  %v15441_v39 = vmax.f32 %v15331_v63, 0.0 }
 0x67c   : > { %v15340_v24 = vpop.f32.mrf.mxu1 }
 0x67d   : > { %15513 = vrot.lane.b32.xlu0 %v15439_v53, %s20041_s23  ;;  %v15444_v12 = vmax.f32 %v15346_v33, 0.0  ;;  %v15341_v32 = vadd.f32 %v25404_v6, %v15340_v24 }
 0x67e   : > { %v19902_v8 = vpop.f32.mrf.mxu1 }
 0x67f   : > { %15519 = vrot.lane.b32.xlu1 %v15442_v20, %s20041_s23  ;;  %v15356_v10 = vadd.f32 %v19902_v8, %v25404_v6  ;;  %v15443_v51 = vmax.f32 %v15341_v32, 0.0 }
 0x680   : > { %v15350_v60 = vpop.f32.mrf.mxu1 }
 0x681   : > { %15517 = vrot.lane.b32.xlu0 %v15441_v39, %s20041_s23  ;;  %v15446_v22 = vmax.f32 %v15356_v10, 0.0  ;;  %v15351_v46 = vadd.f32 %v25404_v6, %v15350_v60 }
 0x682   : > { %v19905_v1 = vpop.f32.mrf.mxu1 }
 0x683   : > { %15523 = vrot.lane.b32.xlu1 %v15444_v12, %s20041_s23  ;;  %v15366_v4 = vadd.f32 %v19905_v1, %v25404_v6  ;;  %v15445_v49 = vmax.f32 %v15351_v46, 0.0 }
 0x684   : > { %v15360_v57 = vpop.f32.mrf.mxu1 }
 0x685   : > { %15521 = vrot.lane.b32.xlu0 %v15443_v51, %s20041_s23  ;;  %v15448_v21 = vmax.f32 %v15366_v4, 0.0  ;;  %v15361_v43 = vadd.f32 %v25404_v6, %v15360_v57 }
 0x686   : > { %v19908_v55 = vpop.f32.mrf.mxu1 }
 0x687   : > { %15527 = vrot.lane.b32.xlu1 %v15446_v22, %s20041_s23  ;;  %v15376_v44 = vadd.f32 %v19908_v55, %v25404_v6  ;;  %v15447_v37 = vmax.f32 %v15361_v43, 0.0 }
 0x688   : > { %v15370_v40 = vpop.f32.mrf.mxu1 }
 0x689   : > { %15525 = vrot.lane.b32.xlu0 %v15445_v49, %s20041_s23  ;;  %v15450_v17 = vmax.f32 %v15376_v44, 0.0  ;;  %v15371_v54 = vadd.f32 %v25404_v6, %v15370_v40 }
 0x68a   : > { %v19911_v15 = vpop.f32.mrf.mxu1 }
 0x68b   : > { %15531 = vrot.lane.b32.xlu1 %v15448_v21, %s20041_s23  ;;  %v15386_v7 = vadd.f32 %v19911_v15, %v25404_v6  ;;  %v15449_v13 = vmax.f32 %v15371_v54, 0.0 }
 0x68c   : > { %v15380_v16 = vpop.f32.mrf.mxu1 }
 0x68d   : > { %15529 = vrot.lane.b32.xlu0 %v15447_v37, %s20041_s23  ;;  %v15452_v56 = vmax.f32 %v15386_v7, 0.0  ;;  %v15381_v29 = vadd.f32 %v25404_v6, %v15380_v16 }
 0x68e   : > { %v19914_v11 = vpop.f32.mrf.mxu1 }
 0x68f   : > { %15535 = vrot.lane.b32.xlu1 %v15450_v17, %s20041_s23  ;;  %v15396_v23 = vadd.f32 %v19914_v11, %v25404_v6  ;;  %v15451_v26 = vmax.f32 %v15381_v29, 0.0 }
 0x690   : > { %v15390_v47 = vpop.f32.mrf.mxu1 }
 0x691   : > { %15533 = vrot.lane.b32.xlu0 %v15449_v13, %s20041_s23  ;;  %v15454_v58 = vmax.f32 %v15396_v23, 0.0  ;;  %v15391_v48 = vadd.f32 %v25404_v6, %v15390_v47 }
 0x692   : > { %v19917_v42 = vpop.f32.mrf.mxu1 }
 0x693   : > { %15539 = vrot.lane.b32.xlu1 %v15452_v56, %s20041_s23  ;;  %v15406_v35 = vadd.f32 %v19917_v42, %v25404_v6  ;;  %v15453_v14 = vmax.f32 %v15391_v48, 0.0 }
 0x694   : > { %v15400_v2 = vpop.f32.mrf.mxu1 }
 0x695   : > { %15537 = vrot.lane.b32.xlu0 %v15451_v26, %s20041_s23  ;;  %v15456_v9 = vmax.f32 %v15406_v35, 0.0  ;;  %v15401_v59 = vadd.f32 %v25404_v6, %v15400_v2 }
 0x696   : > { %v19920_v38 = vpop.f32.mrf.mxu1 }
 0x697   : > { %15543 = vrot.lane.b32.xlu1 %v15454_v58, %s20041_s23  ;;  %v15416_v36 = vadd.f32 %v19920_v38, %v25404_v6  ;;  %v15455_v61 = vmax.f32 %v15401_v59, 0.0 }
 0x698   : > { %v15410_v5 = vpop.f32.mrf.mxu1 }
 0x699   : > { %v14640_v50 = vpop.permute.xlu1 %14639  ;;  %15541 = vrot.lane.b32.xlu0 %v15453_v14, %s20041_s23  ;;  %v15458_v0 = vmax.f32 %v15416_v36, 0.0  ;;  %v15411_v31 = vadd.f32 %v25404_v6, %v15410_v5 }
 0x69a   : > { %14735 = vst.msk [vmem:[%s20530_s28 + $0x8] sm:$0xff] %vm14733_vm6, %v14640_v50  ;;  %v19923_v27 = vpop.f32.mrf.mxu1 }
 0x69b   : > { %15547 = vrot.lane.b32.xlu1 %v15456_v9, %s20041_s23  ;;  %v14638_v41 = vpop.permute.xlu0 %14637  ;;  %v15426_v52 = vadd.f32 %v19923_v27, %v25404_v6  ;;  %v15457_v3 = vmax.f32 %v15411_v31, 0.0 }
 0x69c   : > { %14734 = vst.msk [vmem:[%s20530_s28] sm:$0xff] %vm14733_vm6, %v14638_v41  ;;  %v15420_v28 = vpop.f32.mrf.mxu1 }
 0x69d   : > { %v14644_v19 = vpop.permute.xlu1 %14643  ;;  %15545 = vrot.lane.b32.xlu0 %v15455_v61, %s20041_s23  ;;  %v15460_v45 = vmax.f32 %v15426_v52, 0.0  ;;  %v15421_v25 = vadd.f32 %v25404_v6, %v15420_v28 }
 0x69e   : > { %14737 = vst.msk [vmem:[%s20530_s28 + $0x18] sm:$0xff] %vm14733_vm6, %v14644_v19 }
 0x69f   : > { %15551 = vrot.lane.b32.xlu1 %v15458_v0, %s20041_s23  ;;  %v14642_v62 = vpop.permute.xlu0 %14641  ;;  %v15459_v34 = vmax.f32 %v15421_v25, 0.0 }
 0x6a0   : > { %14736 = vst.msk [vmem:[%s20530_s28 + $0x10] sm:$0xff] %vm14733_vm6, %v14642_v62 }
 0x6a1   : > { %v14648_v30 = vpop.permute.xlu1 %14647  ;;  %15549 = vrot.lane.b32.xlu0 %v15457_v3, %s20041_s23 }
 0x6a2   : > { %14739 = vst.msk [vmem:[%s20530_s28 + $0x28] sm:$0xff] %vm14733_vm6, %v14648_v30 }
 0x6a3   : > { %15555 = vrot.lane.b32.xlu1 %v15460_v45, %s20041_s23  ;;  %v14646_v18 = vpop.permute.xlu0 %14645 }
 0x6a4   : > { %14738 = vst.msk [vmem:[%s20530_s28 + $0x20] sm:$0xff] %vm14733_vm6, %v14646_v18 }
 0x6a5   : > { %v14652_v6 = vpop.permute.xlu1 %14651  ;;  %15553 = vrot.lane.b32.xlu0 %v15459_v34, %s20041_s23  ;;  %s19979_s23 = scalar_lea.vmem %s19978_s22, 8192 }
 0x6a6   : > { %14741 = vst.msk [vmem:[%s20530_s28 + $0x38] sm:$0xff] %vm14733_vm6, %v14652_v6  ;;  %p19981_p1 = scmp.lt.s32.totalorder %s19979_s23, %s19973_s17 }
 0x6a7   : > { %v14650_v53 = vpop.permute.xlu0 %14649 }
 0x6a8   : > { %14740 = vst.msk [vmem:[%s20530_s28 + $0x30] sm:$0xff] %vm14733_vm6, %v14650_v53  ;;  %p19982_p2 = por %p19981_p1, %p19980_p0 }
 0x6a9   : > { %v14656_v20 = vpop.permute.xlu1 %14655 }
 0x6aa   : > { %14743 = vst.msk [vmem:[%s20530_s28 + $0x48] sm:$0xff] %vm14733_vm6, %v14656_v20  ;;  %p19983_p3 = pnand %p19982_p2, %p19976_p13 }
 0x6ab   : > { %v14654_v63 = vpop.permute.xlu0 %14653 }
 0x6ac   : > { %14742 = vst.msk [vmem:[%s20530_s28 + $0x40] sm:$0xff] %vm14733_vm6, %v14654_v63 }
 0x6ad   : > { %v14660_v33 = vpop.permute.xlu1 %14659 }
 0x6ae   : > { %14745 = vst.msk [vmem:[%s20530_s28 + $0x58] sm:$0xff] %vm14733_vm6, %v14660_v33 }
 0x6af   : > { %v14658_v24 = vpop.permute.xlu0 %14657 }
 0x6b0   : > { %14744 = vst.msk [vmem:[%s20530_s28 + $0x50] sm:$0xff] %vm14733_vm6, %v14658_v24 }
 0x6b1   : > { %v14664_v8 = vpop.permute.xlu1 %14663 }
 0x6b2   : > { %14747 = vst.msk [vmem:[%s20530_s28 + $0x68] sm:$0xff] %vm14733_vm6, %v14664_v8 }
 0x6b3   : > { %v14662_v39 = vpop.permute.xlu0 %14661 }
 0x6b4   : > { %14746 = vst.msk [vmem:[%s20530_s28 + $0x60] sm:$0xff] %vm14733_vm6, %v14662_v39 }
 0x6b5   : > { %v14668_v12 = vpop.permute.xlu1 %14667 }
 0x6b6   : > { %14749 = vst.msk [vmem:[%s20530_s28 + $0x78] sm:$0xff] %vm14733_vm6, %v14668_v12 }
 0x6b7   : > { %v14666_v32 = vpop.permute.xlu0 %14665 }
 0x6b8   : > { %14748 = vst.msk [vmem:[%s20530_s28 + $0x70] sm:$0xff] %vm14733_vm6, %v14666_v32 }
 0x6b9   : > { %v14672_v10 = vpop.permute.xlu1 %14671 }
 0x6ba   : > { %14751 = vst.msk [vmem:[%s20530_s28 + $0x88] sm:$0xff] %vm14733_vm6, %v14672_v10 }
 0x6bb   : > { %v14670_v60 = vpop.permute.xlu0 %14669 }
 0x6bc   : > { %14750 = vst.msk [vmem:[%s20530_s28 + $0x80] sm:$0xff] %vm14733_vm6, %v14670_v60 }
 0x6bd   : > { %v14676_v1 = vpop.permute.xlu1 %14675 }
 0x6be   : > { %14753 = vst.msk [vmem:[%s20530_s28 + $0x98] sm:$0xff] %vm14733_vm6, %v14676_v1 }
 0x6bf   : > { %v14674_v51 = vpop.permute.xlu0 %14673 }
 0x6c0   : > { %14752 = vst.msk [vmem:[%s20530_s28 + $0x90] sm:$0xff] %vm14733_vm6, %v14674_v51 }
 0x6c1   : > { %v14680_v22 = vpop.permute.xlu1 %14679 }
 0x6c2   : > { %14755 = vst.msk [vmem:[%s20530_s28 + $0xa8] sm:$0xff] %vm14733_vm6, %v14680_v22 }
 0x6c3   : > { %v14678_v46 = vpop.permute.xlu0 %14677 }
 0x6c4   : > { %14754 = vst.msk [vmem:[%s20530_s28 + $0xa0] sm:$0xff] %vm14733_vm6, %v14678_v46 }
 0x6c5   : > { %v14684_v4 = vpop.permute.xlu1 %14683 }
 0x6c6   : > { %14757 = vst.msk [vmem:[%s20530_s28 + $0xb8] sm:$0xff] %vm14733_vm6, %v14684_v4 }
 0x6c7   : > { %v14682_v57 = vpop.permute.xlu0 %14681 }
 0x6c8   : > { %14756 = vst.msk [vmem:[%s20530_s28 + $0xb0] sm:$0xff] %vm14733_vm6, %v14682_v57 }
 0x6c9   : > { %v14688_v55 = vpop.permute.xlu1 %14687 }
 0x6ca   : > { %14759 = vst.msk [vmem:[%s20530_s28 + $0xc8] sm:$0xff] %vm14733_vm6, %v14688_v55 }
 0x6cb   : > { %v14686_v49 = vpop.permute.xlu0 %14685 }
 0x6cc   : > { %14758 = vst.msk [vmem:[%s20530_s28 + $0xc0] sm:$0xff] %vm14733_vm6, %v14686_v49 }
 0x6cd   : > { %v14692_v21 = vpop.permute.xlu1 %14691 }
 0x6ce   : > { %14761 = vst.msk [vmem:[%s20530_s28 + $0xd8] sm:$0xff] %vm14733_vm6, %v14692_v21 }
 0x6cf   : > { %v14690_v43 = vpop.permute.xlu0 %14689 }
 0x6d0   : > { %14760 = vst.msk [vmem:[%s20530_s28 + $0xd0] sm:$0xff] %vm14733_vm6, %v14690_v43 }
 0x6d1   : > { %v14696_v44 = vpop.permute.xlu1 %14695 }
 0x6d2   : > { %14763 = vst.msk [vmem:[%s20530_s28 + $0xe8] sm:$0xff] %vm14733_vm6, %v14696_v44 }
 0x6d3   : > { %v14694_v40 = vpop.permute.xlu0 %14693 }
 0x6d4   : > { %14762 = vst.msk [vmem:[%s20530_s28 + $0xe0] sm:$0xff] %vm14733_vm6, %v14694_v40 }
 0x6d5   : > { %v14700_v15 = vpop.permute.xlu1 %14699 }
 0x6d6   : > { %14765 = vst.msk [vmem:[%s20530_s28 + $0xf8] sm:$0xff] %vm14733_vm6, %v14700_v15 }
 0x6d7   : > { %v14698_v37 = vpop.permute.xlu0 %14697 }
 0x6d8   : > { %14764 = vst.msk [vmem:[%s20530_s28 + $0xf0] sm:$0xff] %vm14733_vm6, %v14698_v37 }
 0x6d9   : > { %v15496_v17 = vpop.permute.xlu1 %15495 }
 0x6da   : > { %15591 = vst.msk [vmem:[%s20530_s28 + $0x8] sm:$0xff] %vm15589_vm7, %v15496_v17 }
 0x6db   : > { %v15494_v54 = vpop.permute.xlu0 %15493 }
 0x6dc   : > { %15590 = vst.msk [vmem:[%s20530_s28] sm:$0xff] %vm15589_vm7, %v15494_v54 }
 0x6dd   : > { %v15500_v7 = vpop.permute.xlu1 %15499 }
 0x6de   : > { %15593 = vst.msk [vmem:[%s20530_s28 + $0x18] sm:$0xff] %vm15589_vm7, %v15500_v7 }
 0x6df   : > { %v15498_v16 = vpop.permute.xlu0 %15497 }
 0x6e0   : > { %15592 = vst.msk [vmem:[%s20530_s28 + $0x10] sm:$0xff] %vm15589_vm7, %v15498_v16 }
 0x6e1   : > { %v15504_v11 = vpop.permute.xlu1 %15503 }
 0x6e2   : > { %15595 = vst.msk [vmem:[%s20530_s28 + $0x28] sm:$0xff] %vm15589_vm7, %v15504_v11 }
 0x6e3   : > { %v15502_v13 = vpop.permute.xlu0 %15501 }
 0x6e4   : > { %15594 = vst.msk [vmem:[%s20530_s28 + $0x20] sm:$0xff] %vm15589_vm7, %v15502_v13 }
 0x6e5   : > { %v15508_v56 = vpop.permute.xlu1 %15507 }
 0x6e6   : > { %15597 = vst.msk [vmem:[%s20530_s28 + $0x38] sm:$0xff] %vm15589_vm7, %v15508_v56 }
 0x6e7   : > { %v15506_v29 = vpop.permute.xlu0 %15505 }
 0x6e8   : > { %15596 = vst.msk [vmem:[%s20530_s28 + $0x30] sm:$0xff] %vm15589_vm7, %v15506_v29 }
 0x6e9   : > { %v15512_v23 = vpop.permute.xlu1 %15511 }
 0x6ea   : > { %15599 = vst.msk [vmem:[%s20530_s28 + $0x48] sm:$0xff] %vm15589_vm7, %v15512_v23 }
 0x6eb   : > { %v15510_v47 = vpop.permute.xlu0 %15509 }
 0x6ec   : > { %15598 = vst.msk [vmem:[%s20530_s28 + $0x40] sm:$0xff] %vm15589_vm7, %v15510_v47 }
 0x6ed   : > { %v15516_v42 = vpop.permute.xlu1 %15515 }
 0x6ee   : > { %15601 = vst.msk [vmem:[%s20530_s28 + $0x58] sm:$0xff] %vm15589_vm7, %v15516_v42 }
 0x6ef   : > { %v15514_v26 = vpop.permute.xlu0 %15513 }
 0x6f0   : > { %15600 = vst.msk [vmem:[%s20530_s28 + $0x50] sm:$0xff] %vm15589_vm7, %v15514_v26 }
 0x6f1   : > { %v15520_v58 = vpop.permute.xlu1 %15519 }
 0x6f2   : > { %15603 = vst.msk [vmem:[%s20530_s28 + $0x68] sm:$0xff] %vm15589_vm7, %v15520_v58 }
 0x6f3   : > { %v15518_v48 = vpop.permute.xlu0 %15517 }
 0x6f4   : > { %15602 = vst.msk [vmem:[%s20530_s28 + $0x60] sm:$0xff] %vm15589_vm7, %v15518_v48 }
 0x6f5   : > { %v15524_v35 = vpop.permute.xlu1 %15523 }
 0x6f6   : > { %15605 = vst.msk [vmem:[%s20530_s28 + $0x78] sm:$0xff] %vm15589_vm7, %v15524_v35 }
 0x6f7   : > { %v15522_v2 = vpop.permute.xlu0 %15521 }
 0x6f8   : > { %15604 = vst.msk [vmem:[%s20530_s28 + $0x70] sm:$0xff] %vm15589_vm7, %v15522_v2 }
 0x6f9   : > { %v15528_v38 = vpop.permute.xlu1 %15527 }
 0x6fa   : > { %15607 = vst.msk [vmem:[%s20530_s28 + $0x88] sm:$0xff] %vm15589_vm7, %v15528_v38 }
 0x6fb   : > { %v15526_v14 = vpop.permute.xlu0 %15525 }
 0x6fc   : > { %15606 = vst.msk [vmem:[%s20530_s28 + $0x80] sm:$0xff] %vm15589_vm7, %v15526_v14 }
 0x6fd   : > { %v15532_v9 = vpop.permute.xlu1 %15531 }
 0x6fe   : > { %15609 = vst.msk [vmem:[%s20530_s28 + $0x98] sm:$0xff] %vm15589_vm7, %v15532_v9 }
 0x6ff   : > { %v15530_v59 = vpop.permute.xlu0 %15529 }
 0x700   : > { %15608 = vst.msk [vmem:[%s20530_s28 + $0x90] sm:$0xff] %vm15589_vm7, %v15530_v59 }
 0x701   : > { %v15536_v36 = vpop.permute.xlu1 %15535 }
 0x702   : > { %15611 = vst.msk [vmem:[%s20530_s28 + $0xa8] sm:$0xff] %vm15589_vm7, %v15536_v36 }
 0x703   : > { %v15534_v5 = vpop.permute.xlu0 %15533 }
 0x704   : > { %15610 = vst.msk [vmem:[%s20530_s28 + $0xa0] sm:$0xff] %vm15589_vm7, %v15534_v5 }
 0x705   : > { %v15540_v50 = vpop.permute.xlu1 %15539 }
 0x706   : > { %15613 = vst.msk [vmem:[%s20530_s28 + $0xb8] sm:$0xff] %vm15589_vm7, %v15540_v50 }
 0x707   : > { %v15538_v27 = vpop.permute.xlu0 %15537 }
 0x708   : > { %15612 = vst.msk [vmem:[%s20530_s28 + $0xb0] sm:$0xff] %vm15589_vm7, %v15538_v27 }
 0x709   : > { %v15544_v61 = vpop.permute.xlu1 %15543 }
 0x70a   : > { %15615 = vst.msk [vmem:[%s20530_s28 + $0xc8] sm:$0xff] %vm15589_vm7, %v15544_v61 }
 0x70b   : > { %v15542_v0 = vpop.permute.xlu0 %15541 }
 0x70c   : > { %15614 = vst.msk [vmem:[%s20530_s28 + $0xc0] sm:$0xff] %vm15589_vm7, %v15542_v0 }
 0x70d   : > { %v15548_v31 = vpop.permute.xlu1 %15547 }
 0x70e   : > { %15617 = vst.msk [vmem:[%s20530_s28 + $0xd8] sm:$0xff] %vm15589_vm7, %v15548_v31 }
 0x70f   : > { %v15546_v41 = vpop.permute.xlu0 %15545 }
 0x710   : > { %15616 = vst.msk [vmem:[%s20530_s28 + $0xd0] sm:$0xff] %vm15589_vm7, %v15546_v41 }
 0x711   : > { %v15552_v52 = vpop.permute.xlu1 %15551 }
 0x712   : > { %15619 = vst.msk [vmem:[%s20530_s28 + $0xe8] sm:$0xff] %vm15589_vm7, %v15552_v52 }
 0x713   : > { %v15550_v28 = vpop.permute.xlu0 %15549 }
 0x714   : > { %15618 = vst.msk [vmem:[%s20530_s28 + $0xe0] sm:$0xff] %vm15589_vm7, %v15550_v28 }
 0x715   : > { %v15556_v19 = vpop.permute.xlu1 %15555 }
 0x716   : > { %15621 = vst.msk [vmem:[%s20530_s28 + $0xf8] sm:$0xff] %vm15589_vm7, %v15556_v19 }
 0x717   : > { %v15554_v3 = vpop.permute.xlu0 %15553 }
 0x718   : > { %15620 = vst.msk [vmem:[%s20530_s28 + $0xf0] sm:$0xff] %vm15589_vm7, %v15554_v3 }
 0x719   : > { %19986 = shalt.err (!%p19983_p3)
}
 0x71a   : > { %s19987_s14 = scalar_lea.hbm %s25607_s16, 4096  ;;  %s19991_s27 = scalar_lea.hbm %s25667_s9, 8192 }
 0x71b   : > { %p19988_p4 = scmp.ne.s32.totalorder %s25607_s16, %s19987_s14  ;;  %p19992_p9 = scmp.lt.s32.totalorder %s25607_s16, %s25667_s9 }
 0x71c   : > { %p19993_p10 = scmp.lt.s32.totalorder %s19991_s27, %s19987_s14 }
 0x71d   : > { %p19989_p7 = pnand %p19988_p4, %p20132_p5 }
 0x71e   : > { %p19994_p11 = por %p19993_p10, %p19992_p9 }
 0x71f   : > { %p19990_p8 = pneg %p19989_p7 }
 0x721   : > { %p19995_p12 = pnand %p19994_p11, %p19990_p8 }
 0x723   : > { %19998 = shalt.err (!%p19995_p12)
}
 0x724   : > { %s20043_s17 = smov 128  }
 0x725   : > { %19924 = dma.vmem_to_hbm [thread:$0]  (%p20132_p5), %s25611_s26, 4096, %s25607_s16, %s25617_s13, %s20043_s17, %s20043_s17, %s20039_s24  }
 0x726 PF: > { %p19930_p13 = scmp.ge.s32.totalorder %s20033_s12, 2  ;;  %s15651_s22 = sand.u32 1, %s20021_s30  }
 0x727   : > { %s15652_s23 = scalar_lea.sflag [#allocation6], %s15651_s22 }
 0x728   : > { %p19927_p0 = pnand %p19930_p13, %p20136_p6 }
 0x72a   : > { %p19928_p1 = pneg %p19927_p0 }
 0x72c   : > { %20016 = dma.done.wait (%p19928_p1), %s15652_s23, 4096  }
 0x72d   : > { %20018 = vsyncadd (%p19928_p1), %s15652_s23, 4294963200  ;;  %p19_p2 = scmp.ge.s32.totalorder %s20119_s15, 4   ;;  %s26177_s30 = smov %s20025_s10 }
 0x72e   : > { %s26178_s10 = smov %s20029_s11  ;;  %s26179_s11 = smov %s20130_s18 }
 0x72f   : > { %s26180_s12 = smov %s20119_s15  ;;  %21 = sbr.rel (!%p19_p2) target bundleno = 3 (0x3), region = 130 }
 0x734   :  { %15657 = vsyncpa [#allocation6], 1 }
 0x735   :  { %15659 = vsyncpa [#allocation6 + $0x1], 1 }

</bundles_post_ra>
